<compile_context>
chip_gen: v6e
topology: v6e:2x2x1
jax: 0.10.0
libtpu: 0.0.40
codegen_flags: <defaults>
</compile_context>

<pallas_src>
import math
import jax
import jax.numpy as jnp
from jax.experimental import pallas as pl
from jax.experimental.pallas import tpu as pltpu


# ----------------------------------------------------------------------------
# Device-generation heuristic (megacore => give the grid >= 2 parallel steps)
# ----------------------------------------------------------------------------

def _has_megacore():
    try:
        kind = jax.devices()[0].device_kind.lower()
    except Exception:
        return False
    return any(t in kind for t in ("v4", "v5p", "v7"))


_PREFER_MULTI = _has_megacore()


def _round_up(x, m):
    return ((x + m - 1) // m) * m


# ----------------------------------------------------------------------------
# Pallas kernel: fused W(cout,K) @ A^T(K,M) + bias (+residual) (+activation)
# bf16 MXU inputs, f32 epilogue, bf16 lane-dense output.
# ----------------------------------------------------------------------------

def _mm_kernel_factory(act, res_mode):
    def _act(v):
        if act == "relu":
            return jnp.maximum(v, 0.0)
        if act == "sigmoid":
            return jax.nn.sigmoid(v)
        return v

    if res_mode is None:
        def kernel(w_ref, a_ref, b_ref, o_ref):
            acc = jnp.dot(w_ref[...], a_ref[...],
                          preferred_element_type=jnp.float32)
            acc = _act(acc + b_ref[...])
            o_ref[...] = acc.astype(o_ref.dtype)
    else:
        def kernel(w_ref, a_ref, b_ref, r_ref, o_ref):
            acc = jnp.dot(w_ref[...], a_ref[...],
                          preferred_element_type=jnp.float32)
            acc = acc + b_ref[...]
            res = r_ref[...].astype(jnp.float32)
            if res_mode == "add_then_act":          # relu(conv + x)   (RIR)
                acc = _act(acc + res)
            else:                                    # relu(conv) + y   (Fuse)
                acc = _act(acc) + res
            o_ref[...] = acc.astype(o_ref.dtype)
    return kernel


def _pick_tile(M, K):
    """Return (Mp, tm) for the lane (pixel) axis.

    Single grid step on single-TensorCore chips (v5e/v6e: grid is a serial
    loop, ~0.35us per extra step).  On megacore parts prefer >=2 steps so both
    TensorCores get work.  Per-block A^T budget keeps double-buffered tiles
    well inside the 32 MiB scoped-VMEM default (also fine on v7x / 64 MiB)."""
    max_block = 4 << 20                                    # bytes of one bf16 A tile
    divisors = [t for t in (2048, 1024, 512, 256, 128) if M % t == 0]
    if _PREFER_MULTI:
        for t in divisors:
            if M // t >= 2 and K * t * 2 <= max_block:
                return M, t
    if K * M * 2 <= max_block:                             # one step, no padding
        return M, M
    for t in divisors:
        if K * t * 2 <= max_block:
            return M, t
    t = 128
    while K * (t * 2) * 2 <= max_block and t < 2048:       # pad + stream fallback
        t *= 2
    return _round_up(M, t), t


def matmul_bias_act(w, a, b, act="none", residual=None, res_mode="add_then_act"):
    """out(N,M) = act(W(N,K) @ A(K,M) + b(N,1) [+ residual(N,M)]), bf16 out."""
    N, K = w.shape
    M = a.shape[1]
    Mp, tm = _pick_tile(M, K)

    a = a.astype(jnp.bfloat16)
    if Mp != M:
        a = jnp.pad(a, ((0, 0), (0, Mp - M)))
        if residual is not None:
            residual = jnp.pad(residual, ((0, 0), (0, Mp - M)))

    in_specs = [
        pl.BlockSpec((N, K), lambda i: (0, 0)),     # weights resident in VMEM
        pl.BlockSpec((K, tm), lambda i: (0, i)),    # streamed A^T tile
        pl.BlockSpec((N, 1), lambda i: (0, 0)),     # bias (f32)
    ]
    args = [w, a, b]
    if residual is not None:
        in_specs.append(pl.BlockSpec((N, tm), lambda i: (0, i)))
        args.append(residual.astype(jnp.bfloat16))

    res_bytes = N * Mp * 2 if residual is not None else 0
    out = pl.pallas_call(
        _mm_kernel_factory(act, None if residual is None else res_mode),
        out_shape=jax.ShapeDtypeStruct((N, Mp), jnp.bfloat16),
        grid=(Mp // tm,),
        in_specs=in_specs,
        out_specs=pl.BlockSpec((N, tm), lambda i: (0, i)),
        compiler_params=pltpu.CompilerParams(
            dimension_semantics=("parallel",)),
        cost_estimate=pl.CostEstimate(
            flops=2 * N * K * Mp,
            transcendentals=0,
            bytes_accessed=N * K * 2 + K * Mp * 2 + N * Mp * 2 + N * 4 + res_bytes),
    )(*args)
    if Mp != M:
        out = out[:, :M]
    return out


# ----------------------------------------------------------------------------
# Convolutions (channel-major (C, B, H, W) layout, 3x3, stride 1)
# ----------------------------------------------------------------------------

def _im2col_T(xp, k):
    """xp: (C, B, Hp, Wp) padded -> A^T of shape (k*k*C, B*Ho*Wo)."""
    # TODO(synk): at production resolutions replace this materialized im2col
    # with an implicit conv (kh*kw "arbitrary" grid axis + shifted-window
    # index_map + f32 VMEM accumulator) to remove the 9x HBM inflation of A.
    C, B, Hp, Wp = xp.shape
    Ho, Wo = Hp - k + 1, Wp - k + 1
    rows = [xp[:, :, dy:dy + Ho, dx:dx + Wo].reshape(C, B * Ho * Wo)
            for dy in range(k) for dx in range(k)]
    return jnp.concatenate(rows, axis=0), Ho, Wo


def conv2d(x, p, pad="zero", act="relu", residual=None, res_mode="add_then_act"):
    """x: (C, B, H, W) bf16; p['wk']: (cout, 9*C) bf16; p['b']: (cout, 1) f32."""
    k, h = 3, 1
    if pad == "zero":
        xp = jnp.pad(x, ((0, 0), (0, 0), (h, h), (h, h)))
    elif pad == "reflect":
        xp = jnp.pad(x, ((0, 0), (0, 0), (h, h), (h, h)), mode="reflect")
    else:  # "valid"
        xp = x
    A, Ho, Wo = _im2col_T(xp, k)
    res = None if residual is None else residual.reshape(residual.shape[0], -1)
    out = matmul_bias_act(p["wk"], A, p["b"], act=act,
                          residual=res, res_mode=res_mode)
    return out.reshape(p["wk"].shape[0], x.shape[1], Ho, Wo)


def conv2d_small(x, p):
    """cout=2 gamma convs: lane-sparse output, plain jnp (fused by XLA)."""
    xp = jnp.pad(x, ((0, 0), (0, 0), (1, 1), (1, 1)))
    A, Ho, Wo = _im2col_T(xp, 3)
    out = p["wk"].astype(jnp.float32) @ A.astype(jnp.float32) + p["b"]
    return out.reshape(p["wk"].shape[0], x.shape[1], Ho, Wo).astype(x.dtype)


# ----------------------------------------------------------------------------
# Haar DWT / IDWT (J=1), channel-major.
# TODO(synk): exact pytorch_wavelets 'haar' detail-band sign/ordering is not
#             verified; the IDWT here is the exact inverse of this DWT, so the
#             pipeline is self-consistent (synthetic weights).
# ----------------------------------------------------------------------------

def dwt_haar(x):
    C, B, H, W = x.shape
    y = x.reshape(C, B, H // 2, 2, W // 2, 2)
    a, b = y[:, :, :, 0, :, 0], y[:, :, :, 0, :, 1]
    c, d = y[:, :, :, 1, :, 0], y[:, :, :, 1, :, 1]
    ll = (a + b + c + d) * 0.5
    lh = (a - b + c - d) * 0.5
    hl = (a + b - c - d) * 0.5
    hh = (a - b - c + d) * 0.5
    return ll, (lh, hl, hh)


def idwt_haar(ll, bands):
    lh, hl, hh = bands
    a = (ll + lh + hl + hh) * 0.5
    b = (ll - lh + hl - hh) * 0.5
    c = (ll + lh - hl - hh) * 0.5
    d = (ll - lh - hl + hh) * 0.5
    C, B, H, W = ll.shape
    top = jnp.stack([a, b], axis=4).reshape(C, B, H, 2 * W)     # interleave W
    bot = jnp.stack([c, d], axis=4).reshape(C, B, H, 2 * W)
    return jnp.stack([top, bot], axis=3).reshape(C, B, 2 * H, 2 * W)


def transformer(yl, yh):          # _transformer: cat(bands..., yl) on channels
    lh, hl, hh = yh
    return jnp.concatenate([lh, hl, hh, yl], axis=0)


def itransformer(x):              # _Itransformer: (4C, B, H, W) -> yl, bands
    C4, B, H, W = x.shape
    C = C4 // 4
    y = x.reshape(C, 4, B, H, W)
    return y[:, 0], (y[:, 1], y[:, 2], y[:, 3])


# ----------------------------------------------------------------------------
# Parameter initialization (deterministic, synthetic; kernel-ready layout)
# ----------------------------------------------------------------------------

class KeyGen:
    def __init__(self, key):
        self.key = key

    def __call__(self):
        self.key, k = jax.random.split(self.key)
        return k


def _conv_init(kg, cin, cout, k=3):
    K = k * k * cin
    w = (jax.random.normal(kg(), (cout, K), jnp.float32)
         / math.sqrt(K)).astype(jnp.bfloat16)            # pre-cast, pre-reshaped
    b = jax.random.normal(kg(), (cout, 1), jnp.float32) * 0.01
    return {"wk": w, "b": b}


def _linear_init(kg, cin, cout):
    return jax.random.normal(kg(), (cout, cin), jnp.float32) / math.sqrt(cin)


def _rb_init(kg, c):
    return {"c1": _conv_init(kg, c, c),
            "c2": _conv_init(kg, c, c),
            "fc1": _linear_init(kg, c, c),    # SELayer(reduction=1), no bias
            "fc2": _linear_init(kg, c, c)}


def _rir_init(kg, c, blocks):
    return {"rbs": [_rb_init(kg, c) for _ in range(blocks)],
            "conv": _conv_init(kg, c, c)}


def _fuse_init(kg, c):
    # "up" holds the conv-equivalent (pre-flipped) weights of the
    # ConvTranspose2d — synthetic init, generated directly in that form.
    # TODO(synk): loading real PyTorch OIHW transposed-conv weights would need
    #             a flip + transpose conversion.
    return {"up": _conv_init(kg, c, c),
            "conv": _conv_init(kg, c, c),
            "rb": _rb_init(kg, c)}


def make_params(key, n_feats, blocks):
    kg = KeyGen(key)
    c = n_feats
    return {
        "prior": {"q": _conv_init(kg, 32, 32), "k": _conv_init(kg, 32, 32),
                  "g1": _conv_init(kg, 64, 2), "g2": _conv_init(kg, 64, 2)},
        "fuse_res": _conv_init(kg, 2 * c, c),
        "DWT_2": _conv_init(kg, 4 * c, c),
        "DWT_3": _conv_init(kg, 4 * c, c),
        "IDWT_2": _conv_init(kg, c, 4 * c),
        "IDWT_3": _conv_init(kg, c, 4 * c),
        "b1_1": _rir_init(kg, c, blocks), "b1_2": _rir_init(kg, c, blocks),
        "b1_3": _rir_init(kg, c, blocks),
        "b2_1": _rir_init(kg, c, blocks), "b2_2": _rir_init(kg, c, blocks),
        "b2_3": _rir_init(kg, c, blocks),
        "b3_1": _rir_init(kg, c, blocks), "b3_2": _rir_init(kg, c, blocks),
        "b3_3": _rir_init(kg, c, blocks),
        "fuse12": _fuse_init(kg, c),
        "fuse23": _fuse_init(kg, c),
    }


# ----------------------------------------------------------------------------
# Module applies (mirror the PyTorch forward passes)
# ----------------------------------------------------------------------------

def convd_apply(p, x):            # ReflectionPad -> Conv -> ReLU (InstanceNorm unused)
    return conv2d(x, p, pad="reflect", act="relu")


def se_apply(p, x):               # SELayer(reduction=1); tiny FCs stay in jnp
    y = jnp.mean(x.astype(jnp.float32), axis=(2, 3))        # (C, B)
    y = jax.nn.relu(p["fc1"] @ y)
    y = jax.nn.sigmoid(p["fc2"] @ y)
    return x * y[:, :, None, None].astype(x.dtype)


def rb_apply(p, x):
    r = conv2d(x, p["c1"], pad="zero", act="relu")
    r = conv2d(r, p["c2"], pad="zero", act="relu")
    r = se_apply(p, r)
    return r + x                  # scale*r + x is one fused XLA elementwise pass


def rir_apply(p, x):
    r = x
    for rb in p["rbs"]:
        r = rb_apply(rb, r)
    # Tail conv: relu(conv(r) + x) — residual + relu fused into the kernel.
    return conv2d(r, p["conv"], pad="zero", act="relu",
                  residual=x, res_mode="add_then_act")


def upsample_apply(p, x, target_hw):
    # ReflectionPad2d(1) -> ConvTranspose2d(k=3, s=2) -> ReLU -> interp(nearest)
    xp = jnp.pad(x, ((0, 0), (0, 0), (1, 1), (1, 1)), mode="reflect")
    C, B, H, W = xp.shape
    # zero-stuffing (stride-2 dilation) via stack+reshape interleaves
    zw = jnp.zeros_like(xp)
    row = jnp.stack([xp, zw], axis=4).reshape(C, B, H, 2 * W)[..., :2 * W - 1]
    zr = jnp.zeros_like(row)
    dil = jnp.stack([row, zr], axis=3).reshape(C, B, 2 * H, 2 * W - 1)[:, :, :2 * H - 1]
    dil = jnp.pad(dil, ((0, 0), (0, 0), (2, 2), (2, 2)))
    out = conv2d(dil, p, pad="valid", act="relu")
    Hi, Wi = out.shape[2], out.shape[3]
    Ht, Wt = target_hw
    iy = (jnp.arange(Ht) * Hi) // Ht      # PyTorch 'nearest': floor(dst*in/out)
    ix = (jnp.arange(Wt) * Wi) // Wt
    return out[:, :, iy][:, :, :, ix]


def fuse_apply(p, x, y):
    x = upsample_apply(p["up"], x, (y.shape[2], y.shape[3]))
    # convd with the `+ y` skip fused after the ReLU in the kernel epilogue.
    y2 = conv2d(x, p["conv"], pad="reflect", act="relu",
                residual=y, res_mode="act_then_add")
    return jax.nn.relu(rb_apply(p["rb"], y2))


def prior_apply(p, x, prior):
    # query / key convs: MXU work -> Pallas path (no activation)
    xq = conv2d(x, p["q"], pad="zero", act="none")
    pk = conv2d(prior, p["k"], pad="zero", act="none")
    att = jax.nn.sigmoid(xq.astype(jnp.float32)
                         * pk.astype(jnp.float32)).astype(x.dtype)
    ax = x * att
    ap = prior * att
    xg = conv2d_small(jnp.concatenate([x, ax], axis=0), p["g1"])
    x_out = x * xg[0:1] + ax * xg[1:2]
    pg = conv2d_small(jnp.concatenate([prior, ap], axis=0), p["g2"])
    p_out = prior * pg[0:1] + ap * pg[1:2]
    return x_out, p_out


# ----------------------------------------------------------------------------
# subnet forward
# ----------------------------------------------------------------------------

def subnet_forward(params, x, res_feats):
    # x, res_feats: (C, B, H, W) channel-major bf16, 32 channels each
    x_p, res_p = prior_apply(params["prior"], x, res_feats)
    x_s = jnp.concatenate([x_p, res_p], axis=0)
    x1_init = convd_apply(params["fuse_res"], x_s)

    yl2, yh2 = dwt_haar(x1_init)
    x2_init = convd_apply(params["DWT_2"], transformer(yl2, yh2))
    yl3, yh3 = dwt_haar(x2_init)
    x3_init = convd_apply(params["DWT_3"], transformer(yl3, yh3))

    x1 = rir_apply(params["b1_1"], x1_init)
    x2 = rir_apply(params["b2_1"], x2_init)
    x3 = rir_apply(params["b3_1"], x3_init)

    x1 = rir_apply(params["b1_2"], x1)
    x2 = rir_apply(params["b2_2"], x2)
    x3 = rir_apply(params["b3_2"], x3)

    x1 = rir_apply(params["b1_3"], x1)
    x2 = rir_apply(params["b2_3"], x2)
    x3 = rir_apply(params["b3_3"], x3)

    x3 = convd_apply(params["IDWT_3"], x3)          # 32 -> 128 channels
    yl, bands = itransformer(x3)
    IDMT3 = idwt_haar(yl, bands)
    x2 = fuse_apply(params["fuse23"], IDMT3, x2)

    x2 = convd_apply(params["IDWT_2"], x2)          # 32 -> 128 channels
    yl, bands = itransformer(x2)
    IDMT2 = idwt_haar(yl, bands)
    x1 = fuse_apply(params["fuse12"], IDMT2, x1)
    return x1


@jax.jit
def subnet_apply(params, x_nchw, res_nchw):
    """Whole forward (incl. layout transposes and bf16 casts) under one jit."""
    x = jnp.transpose(x_nchw, (1, 0, 2, 3)).astype(jnp.bfloat16)   # -> (C,B,H,W)
    r = jnp.transpose(res_nchw, (1, 0, 2, 3)).astype(jnp.bfloat16)
    out = subnet_forward(params, x, r)
    return jnp.transpose(out, (1, 0, 2, 3)).astype(jnp.float32)     # back to NCHW


# ----------------------------------------------------------------------------
# main
# ----------------------------------------------------------------------------

if __name__ == "__main__":
    # Prior_Sp defaults to in_dim=32 and fuse_res takes 2*n_feats channels,
    # so n_feats must equal 32 for the module to be self-consistent.
    n_feats, blocks = 32, 1
    B, H, W = 2, 16, 16

    root = jax.random.PRNGKey(0)
    kp, kx, kr = jax.random.split(root, 3)
    params = make_params(kp, n_feats, blocks)

    # inputs in PyTorch NCHW convention
    x_nchw = jax.random.normal(kx, (B, 32, H, W), jnp.float32)
    r_nchw = jax.random.normal(kr, (B, 32, H, W), jnp.float32)

    out = subnet_apply(params, x_nchw, r_nchw)
    jax.block_until_ready(out)
    assert out.shape == (B, n_feats, H, W), out.shape
    assert bool(jnp.all(jnp.isfinite(out)))
    print("KERNEL_OK")
</pallas_src>

<mosaic_0001>
module attributes {stable_mosaic.version = 11 : i64} {
  func.func @kernel(%arg0: i32, %arg1: memref<32x288xbf16, #tpu.memory_space<vmem>>, %arg2: memref<288x512xbf16, #tpu.memory_space<vmem>>, %arg3: memref<32x1xf32, #tpu.memory_space<vmem>>, %arg4: memref<32x512xbf16, #tpu.memory_space<vmem>>) attributes {dimension_semantics = [#tpu.dimension_semantics<parallel>], iteration_bounds = array<i64: 1>, scalar_prefetch = 0 : i64, scratch_operands = 0 : i64, tpu.core_type = #tpu.core_type<tc>, window_params = [{pipeline_mode = #tpu.pipeline_mode<synchronous>, transform_indices = @transform_0, window_bounds = array<i64: 32, 288>}, {transform_indices = @transform_1, window_bounds = array<i64: 288, 512>}, {pipeline_mode = #tpu.pipeline_mode<synchronous>, transform_indices = @transform_2, window_bounds = array<i64: 32, 1>}, {transform_indices = @transform_3, window_bounds = array<i64: 32, 512>}]} {
    %c0 = arith.constant 0 : index
    %c0_0 = arith.constant 0 : index
    %0 = vector.load %arg1[%c0, %c0_0] : memref<32x288xbf16, #tpu.memory_space<vmem>>, vector<32x288xbf16>
    %c0_1 = arith.constant 0 : index
    %c0_2 = arith.constant 0 : index
    %1 = vector.load %arg2[%c0_1, %c0_2] : memref<288x512xbf16, #tpu.memory_space<vmem>>, vector<288x512xbf16>
    %cst = arith.constant dense<0.000000e+00> : vector<32x512xf32>
    %2 = tpu.matmul %0, %1, %cst {dimension_numbers = #tpu.dot_dimension_numbers<[1], [0], [0], [1], [0, 0, 1, 1], [], []>} : vector<32x288xbf16>, vector<288x512xbf16>, vector<32x512xf32> -> vector<32x512xf32>
    %c0_3 = arith.constant 0 : index
    %c0_4 = arith.constant 0 : index
    %3 = vector.load %arg3[%c0_3, %c0_4] : memref<32x1xf32, #tpu.memory_space<vmem>>, vector<32x1xf32>
    %4 = vector.broadcast %3 : vector<32x1xf32> to vector<32x512xf32>
    %5 = arith.addf %2, %4 : vector<32x512xf32>
    %6 = arith.truncf %5 : vector<32x512xf32> to vector<32x512xbf16>
    %c0_5 = arith.constant 0 : index
    %c0_6 = arith.constant 0 : index
    %7 = vector.load %arg4[%c0_5, %c0_6] : memref<32x512xbf16, #tpu.memory_space<vmem>>, vector<32x512xbf16>
    tpu.vector_store %arg4[%c0_5, %c0_6], %6 {strides = array<i32>} : memref<32x512xbf16, #tpu.memory_space<vmem>>, vector<32x512xbf16>,
    return
  }
  func.func @transform_0(%arg0: i32) -> (i32, i32) {
    %c0_i32 = arith.constant 0 : i32
    %c0_i32_0 = arith.constant 0 : i32
    %c0_i32_1 = arith.constant 0 : i32
    return %c0_i32, %c0_i32_0 : i32, i32
  }
  func.func @transform_1(%arg0: i32) -> (i32, i32) {
    %c0_i32 = arith.constant 0 : i32
    %c0_i32_0 = arith.constant 0 : i32
    return %c0_i32, %arg0 : i32, i32
  }
  func.func @transform_2(%arg0: i32) -> (i32, i32) {
    %c0_i32 = arith.constant 0 : i32
    %c0_i32_0 = arith.constant 0 : i32
    %c0_i32_1 = arith.constant 0 : i32
    return %c0_i32, %c0_i32_0 : i32, i32
  }
  func.func @transform_3(%arg0: i32) -> (i32, i32) {
    %c0_i32 = arith.constant 0 : i32
    %c0_i32_0 = arith.constant 0 : i32
    return %c0_i32, %arg0 : i32, i32
  }
}

module attributes {stable_mosaic.version = 11 : i64} {
  func.func @kernel(%arg0: i32, %arg1: memref<32x576xbf16, #tpu.memory_space<vmem>>, %arg2: memref<576x512xbf16, #tpu.memory_space<vmem>>, %arg3: memref<32x1xf32, #tpu.memory_space<vmem>>, %arg4: memref<32x512xbf16, #tpu.memory_space<vmem>>) attributes {dimension_semantics = [#tpu.dimension_semantics<parallel>], iteration_bounds = array<i64: 1>, scalar_prefetch = 0 : i64, scratch_operands = 0 : i64, tpu.core_type = #tpu.core_type<tc>, window_params = [{pipeline_mode = #tpu.pipeline_mode<synchronous>, transform_indices = @transform_0, window_bounds = array<i64: 32, 576>}, {transform_indices = @transform_1, window_bounds = array<i64: 576, 512>}, {pipeline_mode = #tpu.pipeline_mode<synchronous>, transform_indices = @transform_2, window_bounds = array<i64: 32, 1>}, {transform_indices = @transform_3, window_bounds = array<i64: 32, 512>}]} {
    %c0 = arith.constant 0 : index
    %c0_0 = arith.constant 0 : index
    %0 = vector.load %arg1[%c0, %c0_0] : memref<32x576xbf16, #tpu.memory_space<vmem>>, vector<32x576xbf16>
    %c0_1 = arith.constant 0 : index
    %c0_2 = arith.constant 0 : index
    %1 = vector.load %arg2[%c0_1, %c0_2] : memref<576x512xbf16, #tpu.memory_space<vmem>>, vector<576x512xbf16>
    %cst = arith.constant dense<0.000000e+00> : vector<32x512xf32>
    %2 = tpu.matmul %0, %1, %cst {dimension_numbers = #tpu.dot_dimension_numbers<[1], [0], [0], [1], [0, 0, 1, 1], [], []>} : vector<32x576xbf16>, vector<576x512xbf16>, vector<32x512xf32> -> vector<32x512xf32>
    %c0_3 = arith.constant 0 : index
    %c0_4 = arith.constant 0 : index
    %3 = vector.load %arg3[%c0_3, %c0_4] : memref<32x1xf32, #tpu.memory_space<vmem>>, vector<32x1xf32>
    %4 = vector.broadcast %3 : vector<32x1xf32> to vector<32x512xf32>
    %5 = arith.addf %2, %4 : vector<32x512xf32>
    %cst_5 = arith.constant 0.000000e+00 : f32
    %6 = vector.broadcast %cst_5 : f32 to vector<32x512xf32>
    %7 = arith.maximumf %5, %6 : vector<32x512xf32>
    %8 = arith.truncf %7 : vector<32x512xf32> to vector<32x512xbf16>
    %c0_6 = arith.constant 0 : index
    %c0_7 = arith.constant 0 : index
    %9 = vector.load %arg4[%c0_6, %c0_7] : memref<32x512xbf16, #tpu.memory_space<vmem>>, vector<32x512xbf16>
    tpu.vector_store %arg4[%c0_6, %c0_7], %8 {strides = array<i32>} : memref<32x512xbf16, #tpu.memory_space<vmem>>, vector<32x512xbf16>,
    return
  }
  func.func @transform_0(%arg0: i32) -> (i32, i32) {
    %c0_i32 = arith.constant 0 : i32
    %c0_i32_0 = arith.constant 0 : i32
    %c0_i32_1 = arith.constant 0 : i32
    return %c0_i32, %c0_i32_0 : i32, i32
  }
  func.func @transform_1(%arg0: i32) -> (i32, i32) {
    %c0_i32 = arith.constant 0 : i32
    %c0_i32_0 = arith.constant 0 : i32
    return %c0_i32, %arg0 : i32, i32
  }
  func.func @transform_2(%arg0: i32) -> (i32, i32) {
    %c0_i32 = arith.constant 0 : i32
    %c0_i32_0 = arith.constant 0 : i32
    %c0_i32_1 = arith.constant 0 : i32
    return %c0_i32, %c0_i32_0 : i32, i32
  }
  func.func @transform_3(%arg0: i32) -> (i32, i32) {
    %c0_i32 = arith.constant 0 : i32
    %c0_i32_0 = arith.constant 0 : i32
    return %c0_i32, %arg0 : i32, i32
  }
}

module attributes {stable_mosaic.version = 11 : i64} {
  func.func @kernel(%arg0: i32, %arg1: memref<32x1152xbf16, #tpu.memory_space<vmem>>, %arg2: memref<1152x128xbf16, #tpu.memory_space<vmem>>, %arg3: memref<32x1xf32, #tpu.memory_space<vmem>>, %arg4: memref<32x128xbf16, #tpu.memory_space<vmem>>) attributes {dimension_semantics = [#tpu.dimension_semantics<parallel>], iteration_bounds = array<i64: 1>, scalar_prefetch = 0 : i64, scratch_operands = 0 : i64, tpu.core_type = #tpu.core_type<tc>, window_params = [{pipeline_mode = #tpu.pipeline_mode<synchronous>, transform_indices = @transform_0, window_bounds = array<i64: 32, 1152>}, {transform_indices = @transform_1, window_bounds = array<i64: 1152, 128>}, {pipeline_mode = #tpu.pipeline_mode<synchronous>, transform_indices = @transform_2, window_bounds = array<i64: 32, 1>}, {transform_indices = @transform_3, window_bounds = array<i64: 32, 128>}]} {
    %c0 = arith.constant 0 : index
    %c0_0 = arith.constant 0 : index
    %0 = vector.load %arg1[%c0, %c0_0] : memref<32x1152xbf16, #tpu.memory_space<vmem>>, vector<32x1152xbf16>
    %c0_1 = arith.constant 0 : index
    %c0_2 = arith.constant 0 : index
    %1 = vector.load %arg2[%c0_1, %c0_2] : memref<1152x128xbf16, #tpu.memory_space<vmem>>, vector<1152x128xbf16>
    %cst = arith.constant dense<0.000000e+00> : vector<32x128xf32>
    %2 = tpu.matmul %0, %1, %cst {dimension_numbers = #tpu.dot_dimension_numbers<[1], [0], [0], [1], [0, 0, 1, 1], [], []>} : vector<32x1152xbf16>, vector<1152x128xbf16>, vector<32x128xf32> -> vector<32x128xf32>
    %c0_3 = arith.constant 0 : index
    %c0_4 = arith.constant 0 : index
    %3 = vector.load %arg3[%c0_3, %c0_4] : memref<32x1xf32, #tpu.memory_space<vmem>>, vector<32x1xf32>
    %4 = vector.broadcast %3 : vector<32x1xf32> to vector<32x128xf32>
    %5 = arith.addf %2, %4 : vector<32x128xf32>
    %cst_5 = arith.constant 0.000000e+00 : f32
    %6 = vector.broadcast %cst_5 : f32 to vector<32x128xf32>
    %7 = arith.maximumf %5, %6 : vector<32x128xf32>
    %8 = arith.truncf %7 : vector<32x128xf32> to vector<32x128xbf16>
    %c0_6 = arith.constant 0 : index
    %c0_7 = arith.constant 0 : index
    %9 = vector.load %arg4[%c0_6, %c0_7] : memref<32x128xbf16, #tpu.memory_space<vmem>>, vector<32x128xbf16>
    tpu.vector_store %arg4[%c0_6, %c0_7], %8 {strides = array<i32>} : memref<32x128xbf16, #tpu.memory_space<vmem>>, vector<32x128xbf16>,
    return
  }
  func.func @transform_0(%arg0: i32) -> (i32, i32) {
    %c0_i32 = arith.constant 0 : i32
    %c0_i32_0 = arith.constant 0 : i32
    %c0_i32_1 = arith.constant 0 : i32
    return %c0_i32, %c0_i32_0 : i32, i32
  }
  func.func @transform_1(%arg0: i32) -> (i32, i32) {
    %c0_i32 = arith.constant 0 : i32
    %c0_i32_0 = arith.constant 0 : i32
    return %c0_i32, %arg0 : i32, i32
  }
  func.func @transform_2(%arg0: i32) -> (i32, i32) {
    %c0_i32 = arith.constant 0 : i32
    %c0_i32_0 = arith.constant 0 : i32
    %c0_i32_1 = arith.constant 0 : i32
    return %c0_i32, %c0_i32_0 : i32, i32
  }
  func.func @transform_3(%arg0: i32) -> (i32, i32) {
    %c0_i32 = arith.constant 0 : i32
    %c0_i32_0 = arith.constant 0 : i32
    return %c0_i32, %arg0 : i32, i32
  }
}

module attributes {stable_mosaic.version = 11 : i64} {
  func.func @kernel(%arg0: i32, %arg1: memref<32x1152xbf16, #tpu.memory_space<vmem>>, %arg2: memref<1152x32xbf16, #tpu.memory_space<vmem>>, %arg3: memref<32x1xf32, #tpu.memory_space<vmem>>, %arg4: memref<32x32xbf16, #tpu.memory_space<vmem>>) attributes {dimension_semantics = [#tpu.dimension_semantics<parallel>], iteration_bounds = array<i64: 1>, scalar_prefetch = 0 : i64, scratch_operands = 0 : i64, tpu.core_type = #tpu.core_type<tc>, window_params = [{pipeline_mode = #tpu.pipeline_mode<synchronous>, transform_indices = @transform_0, window_bounds = array<i64: 32, 1152>}, {transform_indices = @transform_1, window_bounds = array<i64: 1152, 32>}, {pipeline_mode = #tpu.pipeline_mode<synchronous>, transform_indices = @transform_2, window_bounds = array<i64: 32, 1>}, {transform_indices = @transform_3, window_bounds = array<i64: 32, 32>}]} {
    %c0 = arith.constant 0 : index
    %c0_0 = arith.constant 0 : index
    %0 = vector.load %arg1[%c0, %c0_0] : memref<32x1152xbf16, #tpu.memory_space<vmem>>, vector<32x1152xbf16>
    %c0_1 = arith.constant 0 : index
    %c0_2 = arith.constant 0 : index
    %1 = vector.load %arg2[%c0_1, %c0_2] : memref<1152x32xbf16, #tpu.memory_space<vmem>>, vector<1152x32xbf16>
    %cst = arith.constant dense<0.000000e+00> : vector<32x32xf32>
    %2 = tpu.matmul %0, %1, %cst {dimension_numbers = #tpu.dot_dimension_numbers<[1], [0], [0], [1], [0, 0, 1, 1], [], []>} : vector<32x1152xbf16>, vector<1152x32xbf16>, vector<32x32xf32> -> vector<32x32xf32>
    %c0_3 = arith.constant 0 : index
    %c0_4 = arith.constant 0 : index
    %3 = vector.load %arg3[%c0_3, %c0_4] : memref<32x1xf32, #tpu.memory_space<vmem>>, vector<32x1xf32>
    %4 = vector.broadcast %3 : vector<32x1xf32> to vector<32x32xf32>
    %5 = arith.addf %2, %4 : vector<32x32xf32>
    %cst_5 = arith.constant 0.000000e+00 : f32
    %6 = vector.broadcast %cst_5 : f32 to vector<32x32xf32>
    %7 = arith.maximumf %5, %6 : vector<32x32xf32>
    %8 = arith.truncf %7 : vector<32x32xf32> to vector<32x32xbf16>
    %c0_6 = arith.constant 0 : index
    %c0_7 = arith.constant 0 : index
    %9 = vector.load %arg4[%c0_6, %c0_7] : memref<32x32xbf16, #tpu.memory_space<vmem>>, vector<32x32xbf16>
    tpu.vector_store %arg4[%c0_6, %c0_7], %8 {strides = array<i32>} : memref<32x32xbf16, #tpu.memory_space<vmem>>, vector<32x32xbf16>,
    return
  }
  func.func @transform_0(%arg0: i32) -> (i32, i32) {
    %c0_i32 = arith.constant 0 : i32
    %c0_i32_0 = arith.constant 0 : i32
    %c0_i32_1 = arith.constant 0 : i32
    return %c0_i32, %c0_i32_0 : i32, i32
  }
  func.func @transform_1(%arg0: i32) -> (i32, i32) {
    %c0_i32 = arith.constant 0 : i32
    %c0_i32_0 = arith.constant 0 : i32
    return %c0_i32, %arg0 : i32, i32
  }
  func.func @transform_2(%arg0: i32) -> (i32, i32) {
    %c0_i32 = arith.constant 0 : i32
    %c0_i32_0 = arith.constant 0 : i32
    %c0_i32_1 = arith.constant 0 : i32
    return %c0_i32, %c0_i32_0 : i32, i32
  }
  func.func @transform_3(%arg0: i32) -> (i32, i32) {
    %c0_i32 = arith.constant 0 : i32
    %c0_i32_0 = arith.constant 0 : i32
    return %c0_i32, %arg0 : i32, i32
  }
}

module attributes {stable_mosaic.version = 11 : i64} {
  func.func @kernel(%arg0: i32, %arg1: memref<32x288xbf16, #tpu.memory_space<vmem>>, %arg2: memref<288x32xbf16, #tpu.memory_space<vmem>>, %arg3: memref<32x1xf32, #tpu.memory_space<vmem>>, %arg4: memref<32x32xbf16, #tpu.memory_space<vmem>>) attributes {dimension_semantics = [#tpu.dimension_semantics<parallel>], iteration_bounds = array<i64: 1>, scalar_prefetch = 0 : i64, scratch_operands = 0 : i64, tpu.core_type = #tpu.core_type<tc>, window_params = [{pipeline_mode = #tpu.pipeline_mode<synchronous>, transform_indices = @transform_0, window_bounds = array<i64: 32, 288>}, {transform_indices = @transform_1, window_bounds = array<i64: 288, 32>}, {pipeline_mode = #tpu.pipeline_mode<synchronous>, transform_indices = @transform_2, window_bounds = array<i64: 32, 1>}, {transform_indices = @transform_3, window_bounds = array<i64: 32, 32>}]} {
    %c0 = arith.constant 0 : index
    %c0_0 = arith.constant 0 : index
    %0 = vector.load %arg1[%c0, %c0_0] : memref<32x288xbf16, #tpu.memory_space<vmem>>, vector<32x288xbf16>
    %c0_1 = arith.constant 0 : index
    %c0_2 = arith.constant 0 : index
    %1 = vector.load %arg2[%c0_1, %c0_2] : memref<288x32xbf16, #tpu.memory_space<vmem>>, vector<288x32xbf16>
    %cst = arith.constant dense<0.000000e+00> : vector<32x32xf32>
    %2 = tpu.matmul %0, %1, %cst {dimension_numbers = #tpu.dot_dimension_numbers<[1], [0], [0], [1], [0, 0, 1, 1], [], []>} : vector<32x288xbf16>, vector<288x32xbf16>, vector<32x32xf32> -> vector<32x32xf32>
    %c0_3 = arith.constant 0 : index
    %c0_4 = arith.constant 0 : index
    %3 = vector.load %arg3[%c0_3, %c0_4] : memref<32x1xf32, #tpu.memory_space<vmem>>, vector<32x1xf32>
    %4 = vector.broadcast %3 : vector<32x1xf32> to vector<32x32xf32>
    %5 = arith.addf %2, %4 : vector<32x32xf32>
    %cst_5 = arith.constant 0.000000e+00 : f32
    %6 = vector.broadcast %cst_5 : f32 to vector<32x32xf32>
    %7 = arith.maximumf %5, %6 : vector<32x32xf32>
    %8 = arith.truncf %7 : vector<32x32xf32> to vector<32x32xbf16>
    %c0_6 = arith.constant 0 : index
    %c0_7 = arith.constant 0 : index
    %9 = vector.load %arg4[%c0_6, %c0_7] : memref<32x32xbf16, #tpu.memory_space<vmem>>, vector<32x32xbf16>
    tpu.vector_store %arg4[%c0_6, %c0_7], %8 {strides = array<i32>} : memref<32x32xbf16, #tpu.memory_space<vmem>>, vector<32x32xbf16>,
    return
  }
  func.func @transform_0(%arg0: i32) -> (i32, i32) {
    %c0_i32 = arith.constant 0 : i32
    %c0_i32_0 = arith.constant 0 : i32
    %c0_i32_1 = arith.constant 0 : i32
    return %c0_i32, %c0_i32_0 : i32, i32
  }
  func.func @transform_1(%arg0: i32) -> (i32, i32) {
    %c0_i32 = arith.constant 0 : i32
    %c0_i32_0 = arith.constant 0 : i32
    return %c0_i32, %arg0 : i32, i32
  }
  func.func @transform_2(%arg0: i32) -> (i32, i32) {
    %c0_i32 = arith.constant 0 : i32
    %c0_i32_0 = arith.constant 0 : i32
    %c0_i32_1 = arith.constant 0 : i32
    return %c0_i32, %c0_i32_0 : i32, i32
  }
  func.func @transform_3(%arg0: i32) -> (i32, i32) {
    %c0_i32 = arith.constant 0 : i32
    %c0_i32_0 = arith.constant 0 : i32
    return %c0_i32, %arg0 : i32, i32
  }
}

module attributes {stable_mosaic.version = 11 : i64} {
  func.func @kernel(%arg0: i32, %arg1: memref<32x288xbf16, #tpu.memory_space<vmem>>, %arg2: memref<288x32xbf16, #tpu.memory_space<vmem>>, %arg3: memref<32x1xf32, #tpu.memory_space<vmem>>, %arg4: memref<32x32xbf16, #tpu.memory_space<vmem>>, %arg5: memref<32x32xbf16, #tpu.memory_space<vmem>>) attributes {dimension_semantics = [#tpu.dimension_semantics<parallel>], iteration_bounds = array<i64: 1>, scalar_prefetch = 0 : i64, scratch_operands = 0 : i64, tpu.core_type = #tpu.core_type<tc>, window_params = [{pipeline_mode = #tpu.pipeline_mode<synchronous>, transform_indices = @transform_0, window_bounds = array<i64: 32, 288>}, {transform_indices = @transform_1, window_bounds = array<i64: 288, 32>}, {pipeline_mode = #tpu.pipeline_mode<synchronous>, transform_indices = @transform_2, window_bounds = array<i64: 32, 1>}, {transform_indices = @transform_3, window_bounds = array<i64: 32, 32>}, {transform_indices = @transform_4, window_bounds = array<i64: 32, 32>}]} {
    %c0 = arith.constant 0 : index
    %c0_0 = arith.constant 0 : index
    %0 = vector.load %arg1[%c0, %c0_0] : memref<32x288xbf16, #tpu.memory_space<vmem>>, vector<32x288xbf16>
    %c0_1 = arith.constant 0 : index
    %c0_2 = arith.constant 0 : index
    %1 = vector.load %arg2[%c0_1, %c0_2] : memref<288x32xbf16, #tpu.memory_space<vmem>>, vector<288x32xbf16>
    %cst = arith.constant dense<0.000000e+00> : vector<32x32xf32>
    %2 = tpu.matmul %0, %1, %cst {dimension_numbers = #tpu.dot_dimension_numbers<[1], [0], [0], [1], [0, 0, 1, 1], [], []>} : vector<32x288xbf16>, vector<288x32xbf16>, vector<32x32xf32> -> vector<32x32xf32>
    %c0_3 = arith.constant 0 : index
    %c0_4 = arith.constant 0 : index
    %3 = vector.load %arg3[%c0_3, %c0_4] : memref<32x1xf32, #tpu.memory_space<vmem>>, vector<32x1xf32>
    %4 = vector.broadcast %3 : vector<32x1xf32> to vector<32x32xf32>
    %5 = arith.addf %2, %4 : vector<32x32xf32>
    %c0_5 = arith.constant 0 : index
    %c0_6 = arith.constant 0 : index
    %6 = vector.load %arg4[%c0_5, %c0_6] : memref<32x32xbf16, #tpu.memory_space<vmem>>, vector<32x32xbf16>
    %7 = arith.extf %6 : vector<32x32xbf16> to vector<32x32xf32>
    %8 = arith.addf %5, %7 : vector<32x32xf32>
    %cst_7 = arith.constant 0.000000e+00 : f32
    %9 = vector.broadcast %cst_7 : f32 to vector<32x32xf32>
    %10 = arith.maximumf %8, %9 : vector<32x32xf32>
    %11 = arith.truncf %10 : vector<32x32xf32> to vector<32x32xbf16>
    %c0_8 = arith.constant 0 : index
    %c0_9 = arith.constant 0 : index
    %12 = vector.load %arg5[%c0_8, %c0_9] : memref<32x32xbf16, #tpu.memory_space<vmem>>, vector<32x32xbf16>
    tpu.vector_store %arg5[%c0_8, %c0_9], %11 {strides = array<i32>} : memref<32x32xbf16, #tpu.memory_space<vmem>>, vector<32x32xbf16>,
    return
  }
  func.func @transform_0(%arg0: i32) -> (i32, i32) {
    %c0_i32 = arith.constant 0 : i32
    %c0_i32_0 = arith.constant 0 : i32
    %c0_i32_1 = arith.constant 0 : i32
    return %c0_i32, %c0_i32_0 : i32, i32
  }
  func.func @transform_1(%arg0: i32) -> (i32, i32) {
    %c0_i32 = arith.constant 0 : i32
    %c0_i32_0 = arith.constant 0 : i32
    return %c0_i32, %arg0 : i32, i32
  }
  func.func @transform_2(%arg0: i32) -> (i32, i32) {
    %c0_i32 = arith.constant 0 : i32
    %c0_i32_0 = arith.constant 0 : i32
    %c0_i32_1 = arith.constant 0 : i32
    return %c0_i32, %c0_i32_0 : i32, i32
  }
  func.func @transform_3(%arg0: i32) -> (i32, i32) {
    %c0_i32 = arith.constant 0 : i32
    %c0_i32_0 = arith.constant 0 : i32
    return %c0_i32, %arg0 : i32, i32
  }
  func.func @transform_4(%arg0: i32) -> (i32, i32) {
    %c0_i32 = arith.constant 0 : i32
    %c0_i32_0 = arith.constant 0 : i32
    return %c0_i32, %arg0 : i32, i32
  }
}

module attributes {stable_mosaic.version = 11 : i64} {
  func.func @kernel(%arg0: i32, %arg1: memref<128x288xbf16, #tpu.memory_space<vmem>>, %arg2: memref<288x32xbf16, #tpu.memory_space<vmem>>, %arg3: memref<128x1xf32, #tpu.memory_space<vmem>>, %arg4: memref<128x32xbf16, #tpu.memory_space<vmem>>) attributes {dimension_semantics = [#tpu.dimension_semantics<parallel>], iteration_bounds = array<i64: 1>, scalar_prefetch = 0 : i64, scratch_operands = 0 : i64, tpu.core_type = #tpu.core_type<tc>, window_params = [{pipeline_mode = #tpu.pipeline_mode<synchronous>, transform_indices = @transform_0, window_bounds = array<i64: 128, 288>}, {transform_indices = @transform_1, window_bounds = array<i64: 288, 32>}, {pipeline_mode = #tpu.pipeline_mode<synchronous>, transform_indices = @transform_2, window_bounds = array<i64: 128, 1>}, {transform_indices = @transform_3, window_bounds = array<i64: 128, 32>}]} {
    %c0 = arith.constant 0 : index
    %c0_0 = arith.constant 0 : index
    %0 = vector.load %arg1[%c0, %c0_0] : memref<128x288xbf16, #tpu.memory_space<vmem>>, vector<128x288xbf16>
    %c0_1 = arith.constant 0 : index
    %c0_2 = arith.constant 0 : index
    %1 = vector.load %arg2[%c0_1, %c0_2] : memref<288x32xbf16, #tpu.memory_space<vmem>>, vector<288x32xbf16>
    %cst = arith.constant dense<0.000000e+00> : vector<128x32xf32>
    %2 = tpu.matmul %0, %1, %cst {dimension_numbers = #tpu.dot_dimension_numbers<[1], [0], [0], [1], [0, 0, 1, 1], [], []>} : vector<128x288xbf16>, vector<288x32xbf16>, vector<128x32xf32> -> vector<128x32xf32>
    %c0_3 = arith.constant 0 : index
    %c0_4 = arith.constant 0 : index
    %3 = vector.load %arg3[%c0_3, %c0_4] : memref<128x1xf32, #tpu.memory_space<vmem>>, vector<128x1xf32>
    %4 = vector.broadcast %3 : vector<128x1xf32> to vector<128x32xf32>
    %5 = arith.addf %2, %4 : vector<128x32xf32>
    %cst_5 = arith.constant 0.000000e+00 : f32
    %6 = vector.broadcast %cst_5 : f32 to vector<128x32xf32>
    %7 = arith.maximumf %5, %6 : vector<128x32xf32>
    %8 = arith.truncf %7 : vector<128x32xf32> to vector<128x32xbf16>
    %c0_6 = arith.constant 0 : index
    %c0_7 = arith.constant 0 : index
    %9 = vector.load %arg4[%c0_6, %c0_7] : memref<128x32xbf16, #tpu.memory_space<vmem>>, vector<128x32xbf16>
    tpu.vector_store %arg4[%c0_6, %c0_7], %8 {strides = array<i32>} : memref<128x32xbf16, #tpu.memory_space<vmem>>, vector<128x32xbf16>,
    return
  }
  func.func @transform_0(%arg0: i32) -> (i32, i32) {
    %c0_i32 = arith.constant 0 : i32
    %c0_i32_0 = arith.constant 0 : i32
    %c0_i32_1 = arith.constant 0 : i32
    return %c0_i32, %c0_i32_0 : i32, i32
  }
  func.func @transform_1(%arg0: i32) -> (i32, i32) {
    %c0_i32 = arith.constant 0 : i32
    %c0_i32_0 = arith.constant 0 : i32
    return %c0_i32, %arg0 : i32, i32
  }
  func.func @transform_2(%arg0: i32) -> (i32, i32) {
    %c0_i32 = arith.constant 0 : i32
    %c0_i32_0 = arith.constant 0 : i32
    %c0_i32_1 = arith.constant 0 : i32
    return %c0_i32, %c0_i32_0 : i32, i32
  }
  func.func @transform_3(%arg0: i32) -> (i32, i32) {
    %c0_i32 = arith.constant 0 : i32
    %c0_i32_0 = arith.constant 0 : i32
    return %c0_i32, %arg0 : i32, i32
  }
}

module attributes {stable_mosaic.version = 11 : i64} {
  func.func @kernel(%arg0: i32, %arg1: memref<32x288xbf16, #tpu.memory_space<vmem>>, %arg2: memref<288x128xbf16, #tpu.memory_space<vmem>>, %arg3: memref<32x1xf32, #tpu.memory_space<vmem>>, %arg4: memref<32x128xbf16, #tpu.memory_space<vmem>>) attributes {dimension_semantics = [#tpu.dimension_semantics<parallel>], iteration_bounds = array<i64: 1>, scalar_prefetch = 0 : i64, scratch_operands = 0 : i64, tpu.core_type = #tpu.core_type<tc>, window_params = [{pipeline_mode = #tpu.pipeline_mode<synchronous>, transform_indices = @transform_0, window_bounds = array<i64: 32, 288>}, {transform_indices = @transform_1, window_bounds = array<i64: 288, 128>}, {pipeline_mode = #tpu.pipeline_mode<synchronous>, transform_indices = @transform_2, window_bounds = array<i64: 32, 1>}, {transform_indices = @transform_3, window_bounds = array<i64: 32, 128>}]} {
    %c0 = arith.constant 0 : index
    %c0_0 = arith.constant 0 : index
    %0 = vector.load %arg1[%c0, %c0_0] : memref<32x288xbf16, #tpu.memory_space<vmem>>, vector<32x288xbf16>
    %c0_1 = arith.constant 0 : index
    %c0_2 = arith.constant 0 : index
    %1 = vector.load %arg2[%c0_1, %c0_2] : memref<288x128xbf16, #tpu.memory_space<vmem>>, vector<288x128xbf16>
    %cst = arith.constant dense<0.000000e+00> : vector<32x128xf32>
    %2 = tpu.matmul %0, %1, %cst {dimension_numbers = #tpu.dot_dimension_numbers<[1], [0], [0], [1], [0, 0, 1, 1], [], []>} : vector<32x288xbf16>, vector<288x128xbf16>, vector<32x128xf32> -> vector<32x128xf32>
    %c0_3 = arith.constant 0 : index
    %c0_4 = arith.constant 0 : index
    %3 = vector.load %arg3[%c0_3, %c0_4] : memref<32x1xf32, #tpu.memory_space<vmem>>, vector<32x1xf32>
    %4 = vector.broadcast %3 : vector<32x1xf32> to vector<32x128xf32>
    %5 = arith.addf %2, %4 : vector<32x128xf32>
    %cst_5 = arith.constant 0.000000e+00 : f32
    %6 = vector.broadcast %cst_5 : f32 to vector<32x128xf32>
    %7 = arith.maximumf %5, %6 : vector<32x128xf32>
    %8 = arith.truncf %7 : vector<32x128xf32> to vector<32x128xbf16>
    %c0_6 = arith.constant 0 : index
    %c0_7 = arith.constant 0 : index
    %9 = vector.load %arg4[%c0_6, %c0_7] : memref<32x128xbf16, #tpu.memory_space<vmem>>, vector<32x128xbf16>
    tpu.vector_store %arg4[%c0_6, %c0_7], %8 {strides = array<i32>} : memref<32x128xbf16, #tpu.memory_space<vmem>>, vector<32x128xbf16>,
    return
  }
  func.func @transform_0(%arg0: i32) -> (i32, i32) {
    %c0_i32 = arith.constant 0 : i32
    %c0_i32_0 = arith.constant 0 : i32
    %c0_i32_1 = arith.constant 0 : i32
    return %c0_i32, %c0_i32_0 : i32, i32
  }
  func.func @transform_1(%arg0: i32) -> (i32, i32) {
    %c0_i32 = arith.constant 0 : i32
    %c0_i32_0 = arith.constant 0 : i32
    return %c0_i32, %arg0 : i32, i32
  }
  func.func @transform_2(%arg0: i32) -> (i32, i32) {
    %c0_i32 = arith.constant 0 : i32
    %c0_i32_0 = arith.constant 0 : i32
    %c0_i32_1 = arith.constant 0 : i32
    return %c0_i32, %c0_i32_0 : i32, i32
  }
  func.func @transform_3(%arg0: i32) -> (i32, i32) {
    %c0_i32 = arith.constant 0 : i32
    %c0_i32_0 = arith.constant 0 : i32
    return %c0_i32, %arg0 : i32, i32
  }
}

module attributes {stable_mosaic.version = 11 : i64} {
  func.func @kernel(%arg0: i32, %arg1: memref<32x288xbf16, #tpu.memory_space<vmem>>, %arg2: memref<288x128xbf16, #tpu.memory_space<vmem>>, %arg3: memref<32x1xf32, #tpu.memory_space<vmem>>, %arg4: memref<32x128xbf16, #tpu.memory_space<vmem>>, %arg5: memref<32x128xbf16, #tpu.memory_space<vmem>>) attributes {dimension_semantics = [#tpu.dimension_semantics<parallel>], iteration_bounds = array<i64: 1>, scalar_prefetch = 0 : i64, scratch_operands = 0 : i64, tpu.core_type = #tpu.core_type<tc>, window_params = [{pipeline_mode = #tpu.pipeline_mode<synchronous>, transform_indices = @transform_0, window_bounds = array<i64: 32, 288>}, {transform_indices = @transform_1, window_bounds = array<i64: 288, 128>}, {pipeline_mode = #tpu.pipeline_mode<synchronous>, transform_indices = @transform_2, window_bounds = array<i64: 32, 1>}, {transform_indices = @transform_3, window_bounds = array<i64: 32, 128>}, {transform_indices = @transform_4, window_bounds = array<i64: 32, 128>}]} {
    %c0 = arith.constant 0 : index
    %c0_0 = arith.constant 0 : index
    %0 = vector.load %arg1[%c0, %c0_0] : memref<32x288xbf16, #tpu.memory_space<vmem>>, vector<32x288xbf16>
    %c0_1 = arith.constant 0 : index
    %c0_2 = arith.constant 0 : index
    %1 = vector.load %arg2[%c0_1, %c0_2] : memref<288x128xbf16, #tpu.memory_space<vmem>>, vector<288x128xbf16>
    %cst = arith.constant dense<0.000000e+00> : vector<32x128xf32>
    %2 = tpu.matmul %0, %1, %cst {dimension_numbers = #tpu.dot_dimension_numbers<[1], [0], [0], [1], [0, 0, 1, 1], [], []>} : vector<32x288xbf16>, vector<288x128xbf16>, vector<32x128xf32> -> vector<32x128xf32>
    %c0_3 = arith.constant 0 : index
    %c0_4 = arith.constant 0 : index
    %3 = vector.load %arg3[%c0_3, %c0_4] : memref<32x1xf32, #tpu.memory_space<vmem>>, vector<32x1xf32>
    %4 = vector.broadcast %3 : vector<32x1xf32> to vector<32x128xf32>
    %5 = arith.addf %2, %4 : vector<32x128xf32>
    %c0_5 = arith.constant 0 : index
    %c0_6 = arith.constant 0 : index
    %6 = vector.load %arg4[%c0_5, %c0_6] : memref<32x128xbf16, #tpu.memory_space<vmem>>, vector<32x128xbf16>
    %7 = arith.extf %6 : vector<32x128xbf16> to vector<32x128xf32>
    %8 = arith.addf %5, %7 : vector<32x128xf32>
    %cst_7 = arith.constant 0.000000e+00 : f32
    %9 = vector.broadcast %cst_7 : f32 to vector<32x128xf32>
    %10 = arith.maximumf %8, %9 : vector<32x128xf32>
    %11 = arith.truncf %10 : vector<32x128xf32> to vector<32x128xbf16>
    %c0_8 = arith.constant 0 : index
    %c0_9 = arith.constant 0 : index
    %12 = vector.load %arg5[%c0_8, %c0_9] : memref<32x128xbf16, #tpu.memory_space<vmem>>, vector<32x128xbf16>
    tpu.vector_store %arg5[%c0_8, %c0_9], %11 {strides = array<i32>} : memref<32x128xbf16, #tpu.memory_space<vmem>>, vector<32x128xbf16>,
    return
  }
  func.func @transform_0(%arg0: i32) -> (i32, i32) {
    %c0_i32 = arith.constant 0 : i32
    %c0_i32_0 = arith.constant 0 : i32
    %c0_i32_1 = arith.constant 0 : i32
    return %c0_i32, %c0_i32_0 : i32, i32
  }
  func.func @transform_1(%arg0: i32) -> (i32, i32) {
    %c0_i32 = arith.constant 0 : i32
    %c0_i32_0 = arith.constant 0 : i32
    return %c0_i32, %arg0 : i32, i32
  }
  func.func @transform_2(%arg0: i32) -> (i32, i32) {
    %c0_i32 = arith.constant 0 : i32
    %c0_i32_0 = arith.constant 0 : i32
    %c0_i32_1 = arith.constant 0 : i32
    return %c0_i32, %c0_i32_0 : i32, i32
  }
  func.func @transform_3(%arg0: i32) -> (i32, i32) {
    %c0_i32 = arith.constant 0 : i32
    %c0_i32_0 = arith.constant 0 : i32
    return %c0_i32, %arg0 : i32, i32
  }
  func.func @transform_4(%arg0: i32) -> (i32, i32) {
    %c0_i32 = arith.constant 0 : i32
    %c0_i32_0 = arith.constant 0 : i32
    return %c0_i32, %arg0 : i32, i32
  }
}

module attributes {stable_mosaic.version = 11 : i64} {
  func.func @kernel(%arg0: i32, %arg1: memref<32x288xbf16, #tpu.memory_space<vmem>>, %arg2: memref<288x512xbf16, #tpu.memory_space<vmem>>, %arg3: memref<32x1xf32, #tpu.memory_space<vmem>>, %arg4: memref<32x512xbf16, #tpu.memory_space<vmem>>) attributes {dimension_semantics = [#tpu.dimension_semantics<parallel>], iteration_bounds = array<i64: 1>, scalar_prefetch = 0 : i64, scratch_operands = 0 : i64, tpu.core_type = #tpu.core_type<tc>, window_params = [{pipeline_mode = #tpu.pipeline_mode<synchronous>, transform_indices = @transform_0, window_bounds = array<i64: 32, 288>}, {transform_indices = @transform_1, window_bounds = array<i64: 288, 512>}, {pipeline_mode = #tpu.pipeline_mode<synchronous>, transform_indices = @transform_2, window_bounds = array<i64: 32, 1>}, {transform_indices = @transform_3, window_bounds = array<i64: 32, 512>}]} {
    %c0 = arith.constant 0 : index
    %c0_0 = arith.constant 0 : index
    %0 = vector.load %arg1[%c0, %c0_0] : memref<32x288xbf16, #tpu.memory_space<vmem>>, vector<32x288xbf16>
    %c0_1 = arith.constant 0 : index
    %c0_2 = arith.constant 0 : index
    %1 = vector.load %arg2[%c0_1, %c0_2] : memref<288x512xbf16, #tpu.memory_space<vmem>>, vector<288x512xbf16>
    %cst = arith.constant dense<0.000000e+00> : vector<32x512xf32>
    %2 = tpu.matmul %0, %1, %cst {dimension_numbers = #tpu.dot_dimension_numbers<[1], [0], [0], [1], [0, 0, 1, 1], [], []>} : vector<32x288xbf16>, vector<288x512xbf16>, vector<32x512xf32> -> vector<32x512xf32>
    %c0_3 = arith.constant 0 : index
    %c0_4 = arith.constant 0 : index
    %3 = vector.load %arg3[%c0_3, %c0_4] : memref<32x1xf32, #tpu.memory_space<vmem>>, vector<32x1xf32>
    %4 = vector.broadcast %3 : vector<32x1xf32> to vector<32x512xf32>
    %5 = arith.addf %2, %4 : vector<32x512xf32>
    %cst_5 = arith.constant 0.000000e+00 : f32
    %6 = vector.broadcast %cst_5 : f32 to vector<32x512xf32>
    %7 = arith.maximumf %5, %6 : vector<32x512xf32>
    %8 = arith.truncf %7 : vector<32x512xf32> to vector<32x512xbf16>
    %c0_6 = arith.constant 0 : index
    %c0_7 = arith.constant 0 : index
    %9 = vector.load %arg4[%c0_6, %c0_7] : memref<32x512xbf16, #tpu.memory_space<vmem>>, vector<32x512xbf16>
    tpu.vector_store %arg4[%c0_6, %c0_7], %8 {strides = array<i32>} : memref<32x512xbf16, #tpu.memory_space<vmem>>, vector<32x512xbf16>,
    return
  }
  func.func @transform_0(%arg0: i32) -> (i32, i32) {
    %c0_i32 = arith.constant 0 : i32
    %c0_i32_0 = arith.constant 0 : i32
    %c0_i32_1 = arith.constant 0 : i32
    return %c0_i32, %c0_i32_0 : i32, i32
  }
  func.func @transform_1(%arg0: i32) -> (i32, i32) {
    %c0_i32 = arith.constant 0 : i32
    %c0_i32_0 = arith.constant 0 : i32
    return %c0_i32, %arg0 : i32, i32
  }
  func.func @transform_2(%arg0: i32) -> (i32, i32) {
    %c0_i32 = arith.constant 0 : i32
    %c0_i32_0 = arith.constant 0 : i32
    %c0_i32_1 = arith.constant 0 : i32
    return %c0_i32, %c0_i32_0 : i32, i32
  }
  func.func @transform_3(%arg0: i32) -> (i32, i32) {
    %c0_i32 = arith.constant 0 : i32
    %c0_i32_0 = arith.constant 0 : i32
    return %c0_i32, %arg0 : i32, i32
  }
}

module attributes {stable_mosaic.version = 11 : i64} {
  func.func @kernel(%arg0: i32, %arg1: memref<32x288xbf16, #tpu.memory_space<vmem>>, %arg2: memref<288x512xbf16, #tpu.memory_space<vmem>>, %arg3: memref<32x1xf32, #tpu.memory_space<vmem>>, %arg4: memref<32x512xbf16, #tpu.memory_space<vmem>>, %arg5: memref<32x512xbf16, #tpu.memory_space<vmem>>) attributes {dimension_semantics = [#tpu.dimension_semantics<parallel>], iteration_bounds = array<i64: 1>, scalar_prefetch = 0 : i64, scratch_operands = 0 : i64, tpu.core_type = #tpu.core_type<tc>, window_params = [{pipeline_mode = #tpu.pipeline_mode<synchronous>, transform_indices = @transform_0, window_bounds = array<i64: 32, 288>}, {transform_indices = @transform_1, window_bounds = array<i64: 288, 512>}, {pipeline_mode = #tpu.pipeline_mode<synchronous>, transform_indices = @transform_2, window_bounds = array<i64: 32, 1>}, {transform_indices = @transform_3, window_bounds = array<i64: 32, 512>}, {transform_indices = @transform_4, window_bounds = array<i64: 32, 512>}]} {
    %c0 = arith.constant 0 : index
    %c0_0 = arith.constant 0 : index
    %0 = vector.load %arg1[%c0, %c0_0] : memref<32x288xbf16, #tpu.memory_space<vmem>>, vector<32x288xbf16>
    %c0_1 = arith.constant 0 : index
    %c0_2 = arith.constant 0 : index
    %1 = vector.load %arg2[%c0_1, %c0_2] : memref<288x512xbf16, #tpu.memory_space<vmem>>, vector<288x512xbf16>
    %cst = arith.constant dense<0.000000e+00> : vector<32x512xf32>
    %2 = tpu.matmul %0, %1, %cst {dimension_numbers = #tpu.dot_dimension_numbers<[1], [0], [0], [1], [0, 0, 1, 1], [], []>} : vector<32x288xbf16>, vector<288x512xbf16>, vector<32x512xf32> -> vector<32x512xf32>
    %c0_3 = arith.constant 0 : index
    %c0_4 = arith.constant 0 : index
    %3 = vector.load %arg3[%c0_3, %c0_4] : memref<32x1xf32, #tpu.memory_space<vmem>>, vector<32x1xf32>
    %4 = vector.broadcast %3 : vector<32x1xf32> to vector<32x512xf32>
    %5 = arith.addf %2, %4 : vector<32x512xf32>
    %c0_5 = arith.constant 0 : index
    %c0_6 = arith.constant 0 : index
    %6 = vector.load %arg4[%c0_5, %c0_6] : memref<32x512xbf16, #tpu.memory_space<vmem>>, vector<32x512xbf16>
    %7 = arith.extf %6 : vector<32x512xbf16> to vector<32x512xf32>
    %8 = arith.addf %5, %7 : vector<32x512xf32>
    %cst_7 = arith.constant 0.000000e+00 : f32
    %9 = vector.broadcast %cst_7 : f32 to vector<32x512xf32>
    %10 = arith.maximumf %8, %9 : vector<32x512xf32>
    %11 = arith.truncf %10 : vector<32x512xf32> to vector<32x512xbf16>
    %c0_8 = arith.constant 0 : index
    %c0_9 = arith.constant 0 : index
    %12 = vector.load %arg5[%c0_8, %c0_9] : memref<32x512xbf16, #tpu.memory_space<vmem>>, vector<32x512xbf16>
    tpu.vector_store %arg5[%c0_8, %c0_9], %11 {strides = array<i32>} : memref<32x512xbf16, #tpu.memory_space<vmem>>, vector<32x512xbf16>,
    return
  }
  func.func @transform_0(%arg0: i32) -> (i32, i32) {
    %c0_i32 = arith.constant 0 : i32
    %c0_i32_0 = arith.constant 0 : i32
    %c0_i32_1 = arith.constant 0 : i32
    return %c0_i32, %c0_i32_0 : i32, i32
  }
  func.func @transform_1(%arg0: i32) -> (i32, i32) {
    %c0_i32 = arith.constant 0 : i32
    %c0_i32_0 = arith.constant 0 : i32
    return %c0_i32, %arg0 : i32, i32
  }
  func.func @transform_2(%arg0: i32) -> (i32, i32) {
    %c0_i32 = arith.constant 0 : i32
    %c0_i32_0 = arith.constant 0 : i32
    %c0_i32_1 = arith.constant 0 : i32
    return %c0_i32, %c0_i32_0 : i32, i32
  }
  func.func @transform_3(%arg0: i32) -> (i32, i32) {
    %c0_i32 = arith.constant 0 : i32
    %c0_i32_0 = arith.constant 0 : i32
    return %c0_i32, %arg0 : i32, i32
  }
  func.func @transform_4(%arg0: i32) -> (i32, i32) {
    %c0_i32 = arith.constant 0 : i32
    %c0_i32_0 = arith.constant 0 : i32
    return %c0_i32, %arg0 : i32, i32
  }
}

module attributes {stable_mosaic.version = 11 : i64} {
  func.func @kernel(%arg0: i32, %arg1: memref<32x288xbf16, #tpu.memory_space<vmem>>, %arg2: memref<288x882xbf16, #tpu.memory_space<vmem>>, %arg3: memref<32x1xf32, #tpu.memory_space<vmem>>, %arg4: memref<32x882xbf16, #tpu.memory_space<vmem>>) attributes {dimension_semantics = [#tpu.dimension_semantics<parallel>], iteration_bounds = array<i64: 1>, scalar_prefetch = 0 : i64, scratch_operands = 0 : i64, tpu.core_type = #tpu.core_type<tc>, window_params = [{pipeline_mode = #tpu.pipeline_mode<synchronous>, transform_indices = @transform_0, window_bounds = array<i64: 32, 288>}, {transform_indices = @transform_1, window_bounds = array<i64: 288, 882>}, {pipeline_mode = #tpu.pipeline_mode<synchronous>, transform_indices = @transform_2, window_bounds = array<i64: 32, 1>}, {transform_indices = @transform_3, window_bounds = array<i64: 32, 882>}]} {
    %c0 = arith.constant 0 : index
    %c0_0 = arith.constant 0 : index
    %0 = vector.load %arg1[%c0, %c0_0] : memref<32x288xbf16, #tpu.memory_space<vmem>>, vector<32x288xbf16>
    %c0_1 = arith.constant 0 : index
    %c0_2 = arith.constant 0 : index
    %1 = vector.load %arg2[%c0_1, %c0_2] : memref<288x882xbf16, #tpu.memory_space<vmem>>, vector<288x882xbf16>
    %cst = arith.constant dense<0.000000e+00> : vector<32x882xf32>
    %2 = tpu.matmul %0, %1, %cst {dimension_numbers = #tpu.dot_dimension_numbers<[1], [0], [0], [1], [0, 0, 1, 1], [], []>} : vector<32x288xbf16>, vector<288x882xbf16>, vector<32x882xf32> -> vector<32x882xf32>
    %c0_3 = arith.constant 0 : index
    %c0_4 = arith.constant 0 : index
    %3 = vector.load %arg3[%c0_3, %c0_4] : memref<32x1xf32, #tpu.memory_space<vmem>>, vector<32x1xf32>
    %4 = vector.broadcast %3 : vector<32x1xf32> to vector<32x882xf32>
    %5 = arith.addf %2, %4 : vector<32x882xf32>
    %cst_5 = arith.constant 0.000000e+00 : f32
    %6 = vector.broadcast %cst_5 : f32 to vector<32x882xf32>
    %7 = arith.maximumf %5, %6 : vector<32x882xf32>
    %8 = arith.truncf %7 : vector<32x882xf32> to vector<32x882xbf16>
    %c0_6 = arith.constant 0 : index
    %c0_7 = arith.constant 0 : index
    %9 = vector.load %arg4[%c0_6, %c0_7] : memref<32x882xbf16, #tpu.memory_space<vmem>>, vector<32x882xbf16>
    tpu.vector_store %arg4[%c0_6, %c0_7], %8 {strides = array<i32>} : memref<32x882xbf16, #tpu.memory_space<vmem>>, vector<32x882xbf16>,
    return
  }
  func.func @transform_0(%arg0: i32) -> (i32, i32) {
    %c0_i32 = arith.constant 0 : i32
    %c0_i32_0 = arith.constant 0 : i32
    %c0_i32_1 = arith.constant 0 : i32
    return %c0_i32, %c0_i32_0 : i32, i32
  }
  func.func @transform_1(%arg0: i32) -> (i32, i32) {
    %c0_i32 = arith.constant 0 : i32
    %c0_i32_0 = arith.constant 0 : i32
    return %c0_i32, %arg0 : i32, i32
  }
  func.func @transform_2(%arg0: i32) -> (i32, i32) {
    %c0_i32 = arith.constant 0 : i32
    %c0_i32_0 = arith.constant 0 : i32
    %c0_i32_1 = arith.constant 0 : i32
    return %c0_i32, %c0_i32_0 : i32, i32
  }
  func.func @transform_3(%arg0: i32) -> (i32, i32) {
    %c0_i32 = arith.constant 0 : i32
    %c0_i32_0 = arith.constant 0 : i32
    return %c0_i32, %arg0 : i32, i32
  }
}

module attributes {stable_mosaic.version = 11 : i64} {
  func.func @kernel(%arg0: i32, %arg1: memref<32x288xbf16, #tpu.memory_space<vmem>>, %arg2: memref<288x128xbf16, #tpu.memory_space<vmem>>, %arg3: memref<32x1xf32, #tpu.memory_space<vmem>>, %arg4: memref<32x128xbf16, #tpu.memory_space<vmem>>, %arg5: memref<32x128xbf16, #tpu.memory_space<vmem>>) attributes {dimension_semantics = [#tpu.dimension_semantics<parallel>], iteration_bounds = array<i64: 1>, scalar_prefetch = 0 : i64, scratch_operands = 0 : i64, tpu.core_type = #tpu.core_type<tc>, window_params = [{pipeline_mode = #tpu.pipeline_mode<synchronous>, transform_indices = @transform_0, window_bounds = array<i64: 32, 288>}, {transform_indices = @transform_1, window_bounds = array<i64: 288, 128>}, {pipeline_mode = #tpu.pipeline_mode<synchronous>, transform_indices = @transform_2, window_bounds = array<i64: 32, 1>}, {transform_indices = @transform_3, window_bounds = array<i64: 32, 128>}, {transform_indices = @transform_4, window_bounds = array<i64: 32, 128>}]} {
    %c0 = arith.constant 0 : index
    %c0_0 = arith.constant 0 : index
    %0 = vector.load %arg1[%c0, %c0_0] : memref<32x288xbf16, #tpu.memory_space<vmem>>, vector<32x288xbf16>
    %c0_1 = arith.constant 0 : index
    %c0_2 = arith.constant 0 : index
    %1 = vector.load %arg2[%c0_1, %c0_2] : memref<288x128xbf16, #tpu.memory_space<vmem>>, vector<288x128xbf16>
    %cst = arith.constant dense<0.000000e+00> : vector<32x128xf32>
    %2 = tpu.matmul %0, %1, %cst {dimension_numbers = #tpu.dot_dimension_numbers<[1], [0], [0], [1], [0, 0, 1, 1], [], []>} : vector<32x288xbf16>, vector<288x128xbf16>, vector<32x128xf32> -> vector<32x128xf32>
    %c0_3 = arith.constant 0 : index
    %c0_4 = arith.constant 0 : index
    %3 = vector.load %arg3[%c0_3, %c0_4] : memref<32x1xf32, #tpu.memory_space<vmem>>, vector<32x1xf32>
    %4 = vector.broadcast %3 : vector<32x1xf32> to vector<32x128xf32>
    %5 = arith.addf %2, %4 : vector<32x128xf32>
    %c0_5 = arith.constant 0 : index
    %c0_6 = arith.constant 0 : index
    %6 = vector.load %arg4[%c0_5, %c0_6] : memref<32x128xbf16, #tpu.memory_space<vmem>>, vector<32x128xbf16>
    %7 = arith.extf %6 : vector<32x128xbf16> to vector<32x128xf32>
    %cst_7 = arith.constant 0.000000e+00 : f32
    %8 = vector.broadcast %cst_7 : f32 to vector<32x128xf32>
    %9 = arith.maximumf %5, %8 : vector<32x128xf32>
    %10 = arith.addf %9, %7 : vector<32x128xf32>
    %11 = arith.truncf %10 : vector<32x128xf32> to vector<32x128xbf16>
    %c0_8 = arith.constant 0 : index
    %c0_9 = arith.constant 0 : index
    %12 = vector.load %arg5[%c0_8, %c0_9] : memref<32x128xbf16, #tpu.memory_space<vmem>>, vector<32x128xbf16>
    tpu.vector_store %arg5[%c0_8, %c0_9], %11 {strides = array<i32>} : memref<32x128xbf16, #tpu.memory_space<vmem>>, vector<32x128xbf16>,
    return
  }
  func.func @transform_0(%arg0: i32) -> (i32, i32) {
    %c0_i32 = arith.constant 0 : i32
    %c0_i32_0 = arith.constant 0 : i32
    %c0_i32_1 = arith.constant 0 : i32
    return %c0_i32, %c0_i32_0 : i32, i32
  }
  func.func @transform_1(%arg0: i32) -> (i32, i32) {
    %c0_i32 = arith.constant 0 : i32
    %c0_i32_0 = arith.constant 0 : i32
    return %c0_i32, %arg0 : i32, i32
  }
  func.func @transform_2(%arg0: i32) -> (i32, i32) {
    %c0_i32 = arith.constant 0 : i32
    %c0_i32_0 = arith.constant 0 : i32
    %c0_i32_1 = arith.constant 0 : i32
    return %c0_i32, %c0_i32_0 : i32, i32
  }
  func.func @transform_3(%arg0: i32) -> (i32, i32) {
    %c0_i32 = arith.constant 0 : i32
    %c0_i32_0 = arith.constant 0 : i32
    return %c0_i32, %arg0 : i32, i32
  }
  func.func @transform_4(%arg0: i32) -> (i32, i32) {
    %c0_i32 = arith.constant 0 : i32
    %c0_i32_0 = arith.constant 0 : i32
    return %c0_i32, %arg0 : i32, i32
  }
}

module attributes {stable_mosaic.version = 11 : i64} {
  func.func @kernel(%arg0: i32, %arg1: memref<128x288xbf16, #tpu.memory_space<vmem>>, %arg2: memref<288x128xbf16, #tpu.memory_space<vmem>>, %arg3: memref<128x1xf32, #tpu.memory_space<vmem>>, %arg4: memref<128x128xbf16, #tpu.memory_space<vmem>>) attributes {dimension_semantics = [#tpu.dimension_semantics<parallel>], iteration_bounds = array<i64: 1>, scalar_prefetch = 0 : i64, scratch_operands = 0 : i64, tpu.core_type = #tpu.core_type<tc>, window_params = [{pipeline_mode = #tpu.pipeline_mode<synchronous>, transform_indices = @transform_0, window_bounds = array<i64: 128, 288>}, {transform_indices = @transform_1, window_bounds = array<i64: 288, 128>}, {pipeline_mode = #tpu.pipeline_mode<synchronous>, transform_indices = @transform_2, window_bounds = array<i64: 128, 1>}, {transform_indices = @transform_3, window_bounds = array<i64: 128, 128>}]} {
    %c0 = arith.constant 0 : index
    %c0_0 = arith.constant 0 : index
    %0 = vector.load %arg1[%c0, %c0_0] : memref<128x288xbf16, #tpu.memory_space<vmem>>, vector<128x288xbf16>
    %c0_1 = arith.constant 0 : index
    %c0_2 = arith.constant 0 : index
    %1 = vector.load %arg2[%c0_1, %c0_2] : memref<288x128xbf16, #tpu.memory_space<vmem>>, vector<288x128xbf16>
    %cst = arith.constant dense<0.000000e+00> : vector<128x128xf32>
    %2 = tpu.matmul %0, %1, %cst {dimension_numbers = #tpu.dot_dimension_numbers<[1], [0], [0], [1], [0, 0, 1, 1], [], []>} : vector<128x288xbf16>, vector<288x128xbf16>, vector<128x128xf32> -> vector<128x128xf32>
    %c0_3 = arith.constant 0 : index
    %c0_4 = arith.constant 0 : index
    %3 = vector.load %arg3[%c0_3, %c0_4] : memref<128x1xf32, #tpu.memory_space<vmem>>, vector<128x1xf32>
    %4 = vector.broadcast %3 : vector<128x1xf32> to vector<128x128xf32>
    %5 = arith.addf %2, %4 : vector<128x128xf32>
    %cst_5 = arith.constant 0.000000e+00 : f32
    %6 = vector.broadcast %cst_5 : f32 to vector<128x128xf32>
    %7 = arith.maximumf %5, %6 : vector<128x128xf32>
    %8 = arith.truncf %7 : vector<128x128xf32> to vector<128x128xbf16>
    %c0_6 = arith.constant 0 : index
    %c0_7 = arith.constant 0 : index
    %9 = vector.load %arg4[%c0_6, %c0_7] : memref<128x128xbf16, #tpu.memory_space<vmem>>, vector<128x128xbf16>
    tpu.vector_store %arg4[%c0_6, %c0_7], %8 {strides = array<i32>} : memref<128x128xbf16, #tpu.memory_space<vmem>>, vector<128x128xbf16>,
    return
  }
  func.func @transform_0(%arg0: i32) -> (i32, i32) {
    %c0_i32 = arith.constant 0 : i32
    %c0_i32_0 = arith.constant 0 : i32
    %c0_i32_1 = arith.constant 0 : i32
    return %c0_i32, %c0_i32_0 : i32, i32
  }
  func.func @transform_1(%arg0: i32) -> (i32, i32) {
    %c0_i32 = arith.constant 0 : i32
    %c0_i32_0 = arith.constant 0 : i32
    return %c0_i32, %arg0 : i32, i32
  }
  func.func @transform_2(%arg0: i32) -> (i32, i32) {
    %c0_i32 = arith.constant 0 : i32
    %c0_i32_0 = arith.constant 0 : i32
    %c0_i32_1 = arith.constant 0 : i32
    return %c0_i32, %c0_i32_0 : i32, i32
  }
  func.func @transform_3(%arg0: i32) -> (i32, i32) {
    %c0_i32 = arith.constant 0 : i32
    %c0_i32_0 = arith.constant 0 : i32
    return %c0_i32, %arg0 : i32, i32
  }
}

module attributes {stable_mosaic.version = 11 : i64} {
  func.func @kernel(%arg0: i32, %arg1: memref<32x288xbf16, #tpu.memory_space<vmem>>, %arg2: memref<288x2738xbf16, #tpu.memory_space<vmem>>, %arg3: memref<32x1xf32, #tpu.memory_space<vmem>>, %arg4: memref<32x2738xbf16, #tpu.memory_space<vmem>>) attributes {dimension_semantics = [#tpu.dimension_semantics<parallel>], iteration_bounds = array<i64: 1>, scalar_prefetch = 0 : i64, scratch_operands = 0 : i64, tpu.core_type = #tpu.core_type<tc>, window_params = [{pipeline_mode = #tpu.pipeline_mode<synchronous>, transform_indices = @transform_0, window_bounds = array<i64: 32, 288>}, {transform_indices = @transform_1, window_bounds = array<i64: 288, 2738>}, {pipeline_mode = #tpu.pipeline_mode<synchronous>, transform_indices = @transform_2, window_bounds = array<i64: 32, 1>}, {transform_indices = @transform_3, window_bounds = array<i64: 32, 2738>}]} {
    %c0 = arith.constant 0 : index
    %c0_0 = arith.constant 0 : index
    %0 = vector.load %arg1[%c0, %c0_0] : memref<32x288xbf16, #tpu.memory_space<vmem>>, vector<32x288xbf16>
    %c0_1 = arith.constant 0 : index
    %c0_2 = arith.constant 0 : index
    %1 = vector.load %arg2[%c0_1, %c0_2] : memref<288x2738xbf16, #tpu.memory_space<vmem>>, vector<288x2738xbf16>
    %cst = arith.constant dense<0.000000e+00> : vector<32x2738xf32>
    %2 = tpu.matmul %0, %1, %cst {dimension_numbers = #tpu.dot_dimension_numbers<[1], [0], [0], [1], [0, 0, 1, 1], [], []>} : vector<32x288xbf16>, vector<288x2738xbf16>, vector<32x2738xf32> -> vector<32x2738xf32>
    %c0_3 = arith.constant 0 : index
    %c0_4 = arith.constant 0 : index
    %3 = vector.load %arg3[%c0_3, %c0_4] : memref<32x1xf32, #tpu.memory_space<vmem>>, vector<32x1xf32>
    %4 = vector.broadcast %3 : vector<32x1xf32> to vector<32x2738xf32>
    %5 = arith.addf %2, %4 : vector<32x2738xf32>
    %cst_5 = arith.constant 0.000000e+00 : f32
    %6 = vector.broadcast %cst_5 : f32 to vector<32x2738xf32>
    %7 = arith.maximumf %5, %6 : vector<32x2738xf32>
    %8 = arith.truncf %7 : vector<32x2738xf32> to vector<32x2738xbf16>
    %c0_6 = arith.constant 0 : index
    %c0_7 = arith.constant 0 : index
    %9 = vector.load %arg4[%c0_6, %c0_7] : memref<32x2738xbf16, #tpu.memory_space<vmem>>, vector<32x2738xbf16>
    tpu.vector_store %arg4[%c0_6, %c0_7], %8 {strides = array<i32>} : memref<32x2738xbf16, #tpu.memory_space<vmem>>, vector<32x2738xbf16>,
    return
  }
  func.func @transform_0(%arg0: i32) -> (i32, i32) {
    %c0_i32 = arith.constant 0 : i32
    %c0_i32_0 = arith.constant 0 : i32
    %c0_i32_1 = arith.constant 0 : i32
    return %c0_i32, %c0_i32_0 : i32, i32
  }
  func.func @transform_1(%arg0: i32) -> (i32, i32) {
    %c0_i32 = arith.constant 0 : i32
    %c0_i32_0 = arith.constant 0 : i32
    return %c0_i32, %arg0 : i32, i32
  }
  func.func @transform_2(%arg0: i32) -> (i32, i32) {
    %c0_i32 = arith.constant 0 : i32
    %c0_i32_0 = arith.constant 0 : i32
    %c0_i32_1 = arith.constant 0 : i32
    return %c0_i32, %c0_i32_0 : i32, i32
  }
  func.func @transform_3(%arg0: i32) -> (i32, i32) {
    %c0_i32 = arith.constant 0 : i32
    %c0_i32_0 = arith.constant 0 : i32
    return %c0_i32, %arg0 : i32, i32
  }
}

module attributes {stable_mosaic.version = 11 : i64} {
  func.func @kernel(%arg0: i32, %arg1: memref<32x288xbf16, #tpu.memory_space<vmem>>, %arg2: memref<288x512xbf16, #tpu.memory_space<vmem>>, %arg3: memref<32x1xf32, #tpu.memory_space<vmem>>, %arg4: memref<32x512xbf16, #tpu.memory_space<vmem>>, %arg5: memref<32x512xbf16, #tpu.memory_space<vmem>>) attributes {dimension_semantics = [#tpu.dimension_semantics<parallel>], iteration_bounds = array<i64: 1>, scalar_prefetch = 0 : i64, scratch_operands = 0 : i64, tpu.core_type = #tpu.core_type<tc>, window_params = [{pipeline_mode = #tpu.pipeline_mode<synchronous>, transform_indices = @transform_0, window_bounds = array<i64: 32, 288>}, {transform_indices = @transform_1, window_bounds = array<i64: 288, 512>}, {pipeline_mode = #tpu.pipeline_mode<synchronous>, transform_indices = @transform_2, window_bounds = array<i64: 32, 1>}, {transform_indices = @transform_3, window_bounds = array<i64: 32, 512>}, {transform_indices = @transform_4, window_bounds = array<i64: 32, 512>}]} {
    %c0 = arith.constant 0 : index
    %c0_0 = arith.constant 0 : index
    %0 = vector.load %arg1[%c0, %c0_0] : memref<32x288xbf16, #tpu.memory_space<vmem>>, vector<32x288xbf16>
    %c0_1 = arith.constant 0 : index
    %c0_2 = arith.constant 0 : index
    %1 = vector.load %arg2[%c0_1, %c0_2] : memref<288x512xbf16, #tpu.memory_space<vmem>>, vector<288x512xbf16>
    %cst = arith.constant dense<0.000000e+00> : vector<32x512xf32>
    %2 = tpu.matmul %0, %1, %cst {dimension_numbers = #tpu.dot_dimension_numbers<[1], [0], [0], [1], [0, 0, 1, 1], [], []>} : vector<32x288xbf16>, vector<288x512xbf16>, vector<32x512xf32> -> vector<32x512xf32>
    %c0_3 = arith.constant 0 : index
    %c0_4 = arith.constant 0 : index
    %3 = vector.load %arg3[%c0_3, %c0_4] : memref<32x1xf32, #tpu.memory_space<vmem>>, vector<32x1xf32>
    %4 = vector.broadcast %3 : vector<32x1xf32> to vector<32x512xf32>
    %5 = arith.addf %2, %4 : vector<32x512xf32>
    %c0_5 = arith.constant 0 : index
    %c0_6 = arith.constant 0 : index
    %6 = vector.load %arg4[%c0_5, %c0_6] : memref<32x512xbf16, #tpu.memory_space<vmem>>, vector<32x512xbf16>
    %7 = arith.extf %6 : vector<32x512xbf16> to vector<32x512xf32>
    %cst_7 = arith.constant 0.000000e+00 : f32
    %8 = vector.broadcast %cst_7 : f32 to vector<32x512xf32>
    %9 = arith.maximumf %5, %8 : vector<32x512xf32>
    %10 = arith.addf %9, %7 : vector<32x512xf32>
    %11 = arith.truncf %10 : vector<32x512xf32> to vector<32x512xbf16>
    %c0_8 = arith.constant 0 : index
    %c0_9 = arith.constant 0 : index
    %12 = vector.load %arg5[%c0_8, %c0_9] : memref<32x512xbf16, #tpu.memory_space<vmem>>, vector<32x512xbf16>
    tpu.vector_store %arg5[%c0_8, %c0_9], %11 {strides = array<i32>} : memref<32x512xbf16, #tpu.memory_space<vmem>>, vector<32x512xbf16>,
    return
  }
  func.func @transform_0(%arg0: i32) -> (i32, i32) {
    %c0_i32 = arith.constant 0 : i32
    %c0_i32_0 = arith.constant 0 : i32
    %c0_i32_1 = arith.constant 0 : i32
    return %c0_i32, %c0_i32_0 : i32, i32
  }
  func.func @transform_1(%arg0: i32) -> (i32, i32) {
    %c0_i32 = arith.constant 0 : i32
    %c0_i32_0 = arith.constant 0 : i32
    return %c0_i32, %arg0 : i32, i32
  }
  func.func @transform_2(%arg0: i32) -> (i32, i32) {
    %c0_i32 = arith.constant 0 : i32
    %c0_i32_0 = arith.constant 0 : i32
    %c0_i32_1 = arith.constant 0 : i32
    return %c0_i32, %c0_i32_0 : i32, i32
  }
  func.func @transform_3(%arg0: i32) -> (i32, i32) {
    %c0_i32 = arith.constant 0 : i32
    %c0_i32_0 = arith.constant 0 : i32
    return %c0_i32, %arg0 : i32, i32
  }
  func.func @transform_4(%arg0: i32) -> (i32, i32) {
    %c0_i32 = arith.constant 0 : i32
    %c0_i32_0 = arith.constant 0 : i32
    return %c0_i32, %arg0 : i32, i32
  }
}

</mosaic_0001>

<bundles_post_ra>
// kernel: subnet_apply.43
= control target key start
LH: loop header
LB: loop body
LE: loop exit
PB: predicated region body
PF: predicated region fallthrough
CT: control target
= control target key end

     0   :  { %v1005_v1 = vmov 0   ;;  %vm509_vm0 = vcmask 261120   ;;  %s1314_s1 = inlined_call_operand.vmem [shape: bf16[288,512], index: 1, kind: input, shape index: {}]   ;;  %s1315_s0 = inlined_call_operand.vmem [shape: bf16[32,288], index: 0, kind: input, shape index: {}]   ;;  %s1316_s2 = inlined_call_operand.vmem [shape: f32[32,1], index: 2, kind: input, shape index: {}]   ;;  %s1317_s3 = inlined_call_operand.vmem [shape: bf16[32,512], index: 3, kind: output, shape index: {}]  }
   0x1   :  { %v889_v0 = vld [vmem:[%s1314_s1 + $0xe4] ss:$16 sps:$4 sm:$0xff]   ;;  %601 = vmatprep.mubr.bf16.mxu1 %v1005_v1  ;;  %887 = vset.pattern.permute.xlu0 %v1005_v1  ;;  %v891_v2 = vld [vmem:[%s1314_s1 + $0xe0] ss:$16 sps:$4 sm:$0xff]   ;;  %v904_v11 = vld [vmem:[%s1314_s1 + $0xe8] ss:$16 sps:$4 sm:$0xff]  }
   0x2   :  { %888 = vset.pattern.permute.xlu1 %v1005_v1  ;;  %516 = vmatprep.subr.bf16.mxu0 %v889_v0  ;;  %v892_v3 = vld [vmem:[%s1314_s1 + $0x224] ss:$16 sps:$4 sm:$0xff]   ;;  %v894_v4 = vld [vmem:[%s1314_s1 + $0x220] ss:$16 sps:$4 sm:$0xff]   ;;  %v906_v12 = vld [vmem:[%s1314_s1 + $0xec] ss:$16 sps:$4 sm:$0xff]  }
   0x3   :  { %517 = vmatpush1.bf16.msra.mxu0 %v891_v2  ;;  %v895_v5 = vld [vmem:[%s1314_s1 + $0xc4] ss:$16 sps:$4 sm:$0xff]   ;;  %v897_v6 = vld [vmem:[%s1314_s1 + $0xc0] ss:$16 sps:$4 sm:$0xff]   ;;  %581 = vmatprep.subr.bf16.mxu1 %v892_v3  ;;  %v913_v16 = vld [vmem:[%s1314_s1 + $0xcc] ss:$16 sps:$4 sm:$0xff]  }
   0x4   :  { %v898_v7 = vld [vmem:[%s1314_s1 + $0x204] ss:$16 sps:$4 sm:$0xff]   ;;  %582 = vmatpush1.bf16.msra.mxu1 %v894_v4  ;;  %518 = vmatprep.subr.bf16.mxu0 %v895_v5  ;;  %v900_v8 = vld [vmem:[%s1314_s1 + $0x200] ss:$16 sps:$4 sm:$0xff]   ;;  %v911_v18 = vld [vmem:[%s1314_s1 + $0xc8] ss:$16 sps:$4 sm:$0xff]  }
   0x5   :  { %583 = vmatprep.subr.bf16.mxu1 %v898_v7  ;;  %v901_v9 = vld [vmem:[%s1314_s1 + $0xa4] ss:$16 sps:$4 sm:$0xff]   ;;  %v903_v10 = vld [vmem:[%s1314_s1 + $0xa0] ss:$16 sps:$4 sm:$0xff]   ;;  %v919_v19 = vld [vmem:[%s1314_s1 + $0xac] ss:$16 sps:$4 sm:$0xff]  }
   0x6   :  { %v1068_v13 = vld [vmem:[%s1315_s0 + $0x8] ss:$12 sps:$4 sm:$0xff]   ;;  %v910_v15 = vld [vmem:[%s1314_s1 + $0x80] ss:$16 sps:$4 sm:$0xff]   ;;  %v925_v23 = vld [vmem:[%s1314_s1 + $0x8c] ss:$16 sps:$4 sm:$0xff]  }
   0x7   :  { %519 = vmatpush1.bf16.msra.mxu0 %v897_v6  ;;  %v908_v14 = vld [vmem:[%s1314_s1 + $0x84] ss:$16 sps:$4 sm:$0xff]   ;;  %v916_v20 = vld [vmem:[%s1314_s1 + $0x60] ss:$16 sps:$4 sm:$0xff]   ;;  %v917_v22 = vld [vmem:[%s1314_s1 + $0xa8] ss:$16 sps:$4 sm:$0xff]  }
   0x8   :  { %520 = vmatprep.subr.bf16.mxu0 %v901_v9  ;;  %584 = vmatpush1.bf16.msra.mxu1 %v900_v8  ;;  %v914_v17 = vld [vmem:[%s1314_s1 + $0x64] ss:$16 sps:$4 sm:$0xff]   ;;  %v922_v24 = vld [vmem:[%s1314_s1 + $0x40] ss:$16 sps:$4 sm:$0xff]   ;;  %v923_v26 = vld [vmem:[%s1314_s1 + $0x88] ss:$16 sps:$4 sm:$0xff]  }
   0x9   :  { %622 = vmatprep.subr.bf16.mxu1 %v906_v12  ;;  %v920_v21 = vld [vmem:[%s1314_s1 + $0x44] ss:$16 sps:$4 sm:$0xff]   ;;  %v931_v27 = vld [vmem:[%s1314_s1 + $0x6c] ss:$16 sps:$4 sm:$0xff]   ;;  %v928_v28 = vld [vmem:[%s1314_s1 + $0x20] ss:$16 sps:$4 sm:$0xff]  }
   0xa   :  { %v926_v25 = vld [vmem:[%s1314_s1 + $0x24] ss:$16 sps:$4 sm:$0xff]   ;;  %v929_v30 = vld [vmem:[%s1314_s1 + $0x68] ss:$16 sps:$4 sm:$0xff]   ;;  %v937_v31 = vld [vmem:[%s1314_s1 + $0x4c] ss:$16 sps:$4 sm:$0xff]  }
   0xb   :  { %521 = vmatpush1.bf16.msra.mxu0 %v903_v10  ;;  %866 = vmatmul.mubr.msk.bf16.vlgmr.msra.gmra.mxu1 %vm509_vm0, %v1068_v13  ;;  %v932_v29 = vld [vmem:[%s1314_s1 + $0x4] ss:$16 sps:$4 sm:$0xff]   ;;  %v934_v32 = vld [vmem:[%s1314_s1] ss:$16 sps:$4 sm:$0xff]   ;;  %v935_v34 = vld [vmem:[%s1314_s1 + $0x48] ss:$16 sps:$4 sm:$0xff]  }
   0xc   :  { %522 = vmatprep.subr.bf16.mxu0 %v908_v14  ;;  %623 = vmatpush1.bf16.msra.mxu1 %v904_v11  ;;  %v938_v33 = vld [vmem:[%s1314_s1 + $0x1e4] ss:$16 sps:$4 sm:$0xff]   ;;  %v943_v35 = vld [vmem:[%s1314_s1 + $0x2c] ss:$16 sps:$4 sm:$0xff]   ;;  %v940_v36 = vld [vmem:[%s1314_s1 + $0x1e0] ss:$16 sps:$4 sm:$0xff]  }
   0xd   :  { %611 = vmatprep.mubr.bf16.mxu1 %v1005_v1  ;;  %624 = vmatprep.subr.bf16.mxu1 %v913_v16  ;;  %v944_v37 = vld [vmem:[%s1314_s1 + $0x1c4] ss:$16 sps:$4 sm:$0xff]   ;;  %v941_v38 = vld [vmem:[%s1314_s1 + $0x28] ss:$16 sps:$4 sm:$0xff]   ;;  %v949_v39 = vld [vmem:[%s1314_s1 + $0xc] ss:$16 sps:$4 sm:$0xff]  }
   0xe   :  { %v946_v40 = vld [vmem:[%s1314_s1 + $0x1c0] ss:$16 sps:$4 sm:$0xff]   ;;  %v950_v41 = vld [vmem:[%s1314_s1 + $0x1a4] ss:$16 sps:$4 sm:$0xff]   ;;  %v947_v42 = vld [vmem:[%s1314_s1 + $0x8] ss:$16 sps:$4 sm:$0xff]  }
   0xf   :  { %523 = vmatpush1.bf16.msra.mxu0 %v910_v15  ;;  %v955_v43 = vld [vmem:[%s1314_s1 + $0x1ec] ss:$16 sps:$4 sm:$0xff]   ;;  %v952_v44 = vld [vmem:[%s1314_s1 + $0x1a0] ss:$16 sps:$4 sm:$0xff]   ;;  %v956_v45 = vld [vmem:[%s1314_s1 + $0x184] ss:$16 sps:$4 sm:$0xff]  }
  0x10   :  { %524 = vmatprep.subr.bf16.mxu0 %v914_v17  ;;  %625 = vmatpush1.bf16.msra.mxu1 %v911_v18  ;;  %v953_v46 = vld [vmem:[%s1314_s1 + $0x1e8] ss:$16 sps:$4 sm:$0xff]   ;;  %v961_v47 = vld [vmem:[%s1314_s1 + $0x1cc] ss:$16 sps:$4 sm:$0xff]   ;;  %v958_v48 = vld [vmem:[%s1314_s1 + $0x180] ss:$16 sps:$4 sm:$0xff]  }
  0x11   :  { %626 = vmatprep.subr.bf16.mxu1 %v919_v19  ;;  %v959_v49 = vld [vmem:[%s1314_s1 + $0x1c8] ss:$16 sps:$4 sm:$0xff]   ;;  %v962_v50 = vld [vmem:[%s1314_s1 + $0x164] ss:$16 sps:$4 sm:$0xff]   ;;  %v964_v52 = vld [vmem:[%s1314_s1 + $0x160] ss:$16 sps:$4 sm:$0xff]  }
  0x12   :  { %v988_v51 = vld [vmem:[%s1315_s0 + $0x4] ss:$12 sps:$4 sm:$0xff]   ;;  %v967_v53 = vld [vmem:[%s1314_s1 + $0x1ac] ss:$16 sps:$4 sm:$0xff]   ;;  %v965_v56 = vld [vmem:[%s1314_s1 + $0x1a8] ss:$16 sps:$4 sm:$0xff]  }
  0x13   :  { %525 = vmatpush1.bf16.msra.mxu0 %v916_v20  ;;  %548 = vmatprep.mubr.bf16.mxu0 %v988_v51  ;;  %v1196_v54 = vld [vmem:[%s1315_s0 + $0x20] ss:$12 sps:$4 sm:$0xff]   ;;  %v968_v55 = vld [vmem:[%s1314_s1 + $0x144] ss:$16 sps:$4 sm:$0xff]   ;;  %v971_v61 = vld [vmem:[%s1314_s1 + $0x188] ss:$16 sps:$4 sm:$0xff]  }
  0x14   :  { %526 = vmatprep.subr.bf16.mxu0 %v920_v21  ;;  %627 = vmatpush1.bf16.msra.mxu1 %v917_v22  ;;  %v973_v57 = vld [vmem:[%s1314_s1 + $0x18c] ss:$16 sps:$4 sm:$0xff]   ;;  %v970_v58 = vld [vmem:[%s1314_s1 + $0x140] ss:$16 sps:$4 sm:$0xff]   ;;  %v974_v59 = vld [vmem:[%s1314_s1 + $0x124] ss:$16 sps:$4 sm:$0xff]  }
  0x15   :  { %628 = vmatprep.subr.bf16.mxu1 %v925_v23  ;;  %867 = vmatmul.mubr.msk.bf16.gmra.mxu1 %vm509_vm0, %v1196_v54  ;;  %v95_v60 = vld [vmem:[%s1316_s2] sm:$0xff]  ;;  %v97_v62 = vld [vmem:[%s1316_s2 + $0x10] sm:$0xff]  ;;  %v979_v63 = vld [vmem:[%s1314_s1 + $0x16c] ss:$16 sps:$4 sm:$0xff]  }
  0x16   :  { %654 = vmatprep.mubr.bf16.mxu1 %v988_v51  ;;  %101 = vperm.xlu0 %887, %v95_v60   ;;  %v96_v0 = vld [vmem:[%s1316_s2 + $0x8] sm:$0xff]  ;;  %v976_v2 = vld [vmem:[%s1314_s1 + $0x120] ss:$16 sps:$4 sm:$0xff]   ;;  %v98_v3 = vld [vmem:[%s1316_s2 + $0x18] sm:$0xff] }
  0x17   :  { %527 = vmatpush1.bf16.msra.mxu0 %v922_v24  ;;  %111 = vperm.xlu1 %888, %v97_v62   ;;  %v980_v4 = vld [vmem:[%s1314_s1 + $0x104] ss:$16 sps:$4 sm:$0xff]   ;;  %v977_v5 = vld [vmem:[%s1314_s1 + $0x168] ss:$16 sps:$4 sm:$0xff]   ;;  %v985_v6 = vld [vmem:[%s1314_s1 + $0x14c] ss:$16 sps:$4 sm:$0xff]  }
  0x18   :  { %528 = vmatprep.subr.bf16.mxu0 %v926_v25  ;;  %629 = vmatpush1.bf16.msra.mxu1 %v923_v26  ;;  %v982_v7 = vld [vmem:[%s1314_s1 + $0x100] ss:$16 sps:$4 sm:$0xff]   ;;  %v991_v8 = vld [vmem:[%s1314_s1 + $0x22c] ss:$16 sps:$4 sm:$0xff]   ;;  %v983_v9 = vld [vmem:[%s1314_s1 + $0x148] ss:$16 sps:$4 sm:$0xff]  }
  0x19   :  { %630 = vmatprep.subr.bf16.mxu1 %v931_v27  ;;  %v986_v10 = vld [vmem:[%s1315_s0] ss:$12 sps:$4 sm:$0xff]   ;;  %v989_v12 = vld [vmem:[%s1314_s1 + $0x228] ss:$16 sps:$4 sm:$0xff]  }
  0x1a   :  { %106 = vperm.xlu0 %887, %v96_v0   ;;  %v995_v11 = vld [vmem:[%s1314_s1 + $0x12c] ss:$16 sps:$4 sm:$0xff]   ;;  %v993_v16 = vld [vmem:[%s1314_s1 + $0x128] ss:$16 sps:$4 sm:$0xff]  }
  0x1b   :  { %529 = vmatpush1.bf16.msra.mxu0 %v928_v28  ;;  %116 = vperm.xlu1 %888, %v98_v3   ;;  %v999_v14 = vld [vmem:[%s1315_s0 + $0x1c] ss:$12 sps:$4 sm:$0xff]   ;;  %v1001_v20 = vld [vmem:[%s1315_s0 + $0x18] ss:$12 sps:$4 sm:$0xff]  }
  0x1c   :  { %530 = vmatprep.subr.bf16.mxu0 %v932_v29  ;;  %631 = vmatpush1.bf16.msra.mxu1 %v929_v30  ;;  %v1004_v15 = vld [vmem:[%s1314_s1 + $0x20c] ss:$16 sps:$4 sm:$0xff]   ;;  %v1002_v18 = vld [vmem:[%s1314_s1 + $0x208] ss:$16 sps:$4 sm:$0xff]  }
  0x1d   :  { %632 = vmatprep.subr.bf16.mxu1 %v937_v31  ;;  %v998_v17 = vld [vmem:[%s1314_s1 + $0x10c] ss:$16 sps:$4 sm:$0xff]   ;;  %v996_v19 = vld [vmem:[%s1314_s1 + $0x108] ss:$16 sps:$4 sm:$0xff]  }
  0x1f   :  { %531 = vmatpush1.bf16.msra.mxu0 %v934_v32 }
  0x20   :  { %532 = vmatprep.subr.bf16.mxu0 %v938_v33  ;;  %633 = vmatpush1.bf16.msra.mxu1 %v935_v34 }
  0x21   :  { %634 = vmatprep.subr.bf16.mxu1 %v943_v35 }
  0x23   :  { %533 = vmatpush2.bf16.msra.mxu0 %v940_v36 }
  0x24   :  { %534 = vmatprep.subr.bf16.mxu0 %v944_v37  ;;  %635 = vmatpush1.bf16.msra.mxu1 %v941_v38 }
  0x25   :  { %636 = vmatprep.subr.bf16.mxu1 %v949_v39 }
  0x27   :  { %535 = vmatpush2.bf16.msra.mxu0 %v946_v40 }
  0x28   :  { %536 = vmatprep.subr.bf16.mxu0 %v950_v41  ;;  %637 = vmatpush1.bf16.msra.mxu1 %v947_v42 }
  0x29   :  { %638 = vmatprep.subr.bf16.mxu1 %v955_v43 }
  0x2b   :  { %537 = vmatpush2.bf16.msra.mxu0 %v952_v44 }
  0x2c   :  { %538 = vmatprep.subr.bf16.mxu0 %v956_v45  ;;  %639 = vmatpush2.bf16.msra.mxu1 %v953_v46 }
  0x2d   :  { %640 = vmatprep.subr.bf16.mxu1 %v961_v47 }
  0x2f   :  { %539 = vmatpush2.bf16.msra.mxu0 %v958_v48 }
  0x30   :  { %540 = vmatprep.subr.bf16.mxu0 %v962_v50  ;;  %641 = vmatpush2.bf16.msra.mxu1 %v959_v49 }
  0x31   :  { %642 = vmatprep.subr.bf16.mxu1 %v967_v53 }
  0x33   :  { %541 = vmatpush2.bf16.msra.mxu0 %v964_v52 }
  0x34   :  { %542 = vmatprep.subr.bf16.mxu0 %v968_v55  ;;  %643 = vmatpush2.bf16.msra.mxu1 %v965_v56 }
  0x35   :  { %644 = vmatprep.subr.bf16.mxu1 %v973_v57 }
  0x37   :  { %543 = vmatpush2.bf16.msra.mxu0 %v970_v58 }
  0x38   :  { %544 = vmatprep.subr.bf16.mxu0 %v974_v59  ;;  %645 = vmatpush2.bf16.msra.mxu1 %v971_v61 }
  0x39   :  { %646 = vmatprep.subr.bf16.mxu1 %v979_v63 }
  0x3b   :  { %545 = vmatpush2.bf16.msra.mxu0 %v976_v2 }
  0x3c   :  { %546 = vmatprep.subr.bf16.mxu0 %v980_v4  ;;  %647 = vmatpush2.bf16.msra.mxu1 %v977_v5 }
  0x3d   :  { %648 = vmatprep.subr.bf16.mxu1 %v985_v6 }
  0x3f   :  { %547 = vmatpush2.bf16.msra.mxu0 %v982_v7 }
  0x40   :  { %687 = vmatprep.subr.bf16.mxu0 %v991_v8  ;;  %649 = vmatpush2.bf16.msra.mxu1 %v983_v9 }
  0x41   :  { %650 = vmatprep.subr.bf16.mxu1 %v995_v11 }
  0x42   :  { %549 = vmatmul.mubr.bf16.vlgmr.msra.gmra.mxu0 %v986_v10 }
  0x43   :  { %688 = vmatpush1.bf16.msra.mxu0 %v989_v12  ;;  %558 = vmatprep.mubr.bf16.mxu0 %v999_v14 }
  0x44   :  { %689 = vmatprep.subr.bf16.mxu0 %v1004_v15  ;;  %651 = vmatpush2.bf16.msra.mxu1 %v993_v16 }
  0x45   :  { %652 = vmatprep.subr.bf16.mxu1 %v998_v17 }
  0x47   :  { %690 = vmatpush1.bf16.msra.mxu0 %v1002_v18 }
  0x48   :  { %653 = vmatpush2.bf16.msra.mxu1 %v996_v19 }
  0x4a   :  { %559 = vmatmul.mubr.bf16.gmra.mxu0 %v1001_v20 }
  0x4b   :  { %707 = vmatprep.mubr.bf16.mxu0 %v1005_v1  ;;  %655 = vmatmul.mubr.bf16.vlgmr.msra.gmra.mxu1 %v986_v10 }
  0x4c   :  { %664 = vmatprep.mubr.bf16.mxu1 %v999_v14 }
  0x52   :  { %868 = vmatmul.mubr.msk.bf16.vlgmr.msra.gmra.mxu0 %vm509_vm0, %v1068_v13 }
  0x53   :  { %717 = vmatprep.mubr.bf16.mxu0 %v1005_v1  ;;  %665 = vmatmul.mubr.bf16.gmra.mxu1 %v1001_v20 }
  0x5a   :  { %869 = vmatmul.mubr.msk.bf16.gmra.mxu0 %vm509_vm0, %v1196_v54 }
  0x91   :  { %v102_v26 = vpop.permute.xlu0 %101 }
  0x92   :  { %v112_v13 = vpop.permute.xlu1 %111 }
  0x95   :  { %v107_v30 = vpop.permute.xlu0 %106 }
  0x96   :  { %v117_v45 = vpop.permute.xlu1 %116 }
  0xcb   :  { %v603_v21 = vpop.f32.mrf.mxu1 }
  0xcd   :  { %v605_v22 = vpop.f32.mrf.mxu1 }
  0xcf   :  { %v607_v23 = vpop.f32.mrf.mxu1 }
  0xd1   :  { %v609_v24 = vpop.f32.mrf.mxu1 }
  0xd5   :  { %v613_v25 = vpop.f32.mrf.mxu1 }
  0xd7   :  { %v615_v27 = vpop.f32.mrf.mxu1 }
  0xd9   :  { %v617_v32 = vpop.f32.mrf.mxu1 }
  0xdb   :  { %v619_v38 = vpop.f32.mrf.mxu1 }
 0x102   :  { %v550_v28 = vpop.f32.mrf.mxu0 }
 0x103   :  { %v551_v29 = vadd.f32 %v550_v28, %v102_v26 }
 0x104   :  { %v552_v31 = vpop.f32.mrf.mxu0 }
 0x105   :  { %v553_v33 = vadd.f32 %v552_v31, %v102_v26  ;;  %v604_v1 = vadd.f32 %v603_v21, %v551_v29 }
 0x106   :  { %v554_v34 = vpop.f32.mrf.mxu0 }
 0x107   :  { %v606_v35 = vadd.f32 %v605_v22, %v553_v33  ;;  %v555_v36 = vadd.f32 %v554_v34, %v107_v30 }
 0x108   :  { %v556_v37 = vpop.f32.mrf.mxu0 }
 0x109   :  { %v878_v39 = vpack.c.bf16 %v606_v35, %v604_v1  ;;  %v557_v40 = vadd.f32 %v556_v37, %v107_v30  ;;  %v608_v42 = vadd.f32 %v607_v23, %v555_v36 }
 0x10a   :  { %v560_v41 = vpop.f32.mrf.mxu0 }
 0x10b   :  { %776 = vst [vmem:[%s1317_s3] sm:$0xff] %v878_v39  ;;  %v610_v43 = vadd.f32 %v609_v24, %v557_v40  ;;  %v561_v44 = vadd.f32 %v560_v41, %v112_v13  ;;  %v656_v46 = vpop.f32.mrf.mxu1 }
 0x10c   :  { %v562_v47 = vpop.f32.mrf.mxu0  ;;  %v657_v57 = vadd.f32 %v656_v46, %v102_v26 }
 0x10d   :  { %v880_v48 = vpack.c.bf16 %v610_v43, %v608_v42  ;;  %v563_v49 = vadd.f32 %v562_v47, %v112_v13  ;;  %v658_v50 = vpop.f32.mrf.mxu1  ;;  %v614_v52 = vadd.f32 %v613_v25, %v561_v44 }
 0x10e   :  { %v564_v51 = vpop.f32.mrf.mxu0  ;;  %v659_v62 = vadd.f32 %v658_v50, %v102_v26 }
 0x10f   :  { %778 = vst [vmem:[%s1317_s3 + $0x10] sm:$0xff] %v880_v48  ;;  %v616_v53 = vadd.f32 %v615_v27, %v563_v49  ;;  %v565_v54 = vadd.f32 %v564_v51, %v117_v45  ;;  %v660_v55 = vpop.f32.mrf.mxu1 }
 0x110   :  { %v566_v56 = vpop.f32.mrf.mxu0  ;;  %v661_v9 = vadd.f32 %v660_v55, %v107_v30 }
 0x111   :  { %v882_v58 = vpack.c.bf16 %v616_v53, %v614_v52  ;;  %v567_v59 = vadd.f32 %v566_v56, %v117_v45  ;;  %v662_v60 = vpop.f32.mrf.mxu1  ;;  %v618_v63 = vadd.f32 %v617_v32, %v565_v54 }
 0x112   :  { %v709_v61 = vpop.f32.mrf.mxu0  ;;  %v663_v10 = vadd.f32 %v662_v60, %v107_v30 }
 0x113   :  { %780 = vst [vmem:[%s1317_s3 + $0x20] sm:$0xff] %v882_v58  ;;  %v620_v0 = vadd.f32 %v619_v38, %v567_v59  ;;  %v666_v2 = vpop.f32.mrf.mxu1  ;;  %v710_v5 = vadd.f32 %v709_v61, %v657_v57 }
 0x114   :  { %v711_v3 = vpop.f32.mrf.mxu0  ;;  %v667_v15 = vadd.f32 %v666_v2, %v112_v13 }
 0x115   :  { %v884_v4 = vpack.c.bf16 %v620_v0, %v618_v63  ;;  %v712_v6 = vadd.f32 %v711_v3, %v659_v62  ;;  %v668_v7 = vpop.f32.mrf.mxu1 }
 0x116   :  { %v713_v8 = vpop.f32.mrf.mxu0  ;;  %v669_v19 = vadd.f32 %v668_v7, %v112_v13 }
 0x117   :  { %782 = vst [vmem:[%s1317_s3 + $0x30] sm:$0xff] %v884_v4  ;;  %v879_v11 = vpack.c.bf16 %v712_v6, %v710_v5  ;;  %v670_v12 = vpop.f32.mrf.mxu1  ;;  %v714_v16 = vadd.f32 %v713_v8, %v661_v9 }
 0x118   :  { %v715_v14 = vpop.f32.mrf.mxu0  ;;  %v671_v26 = vadd.f32 %v670_v12, %v117_v45 }
 0x119   :  { %777 = vst [vmem:[%s1317_s3 + $0x8] sm:$0xff] %v879_v11  ;;  %v716_v17 = vadd.f32 %v715_v14, %v663_v10  ;;  %v672_v21 = vpop.f32.mrf.mxu1 }
 0x11a   :  { %v719_v18 = vpop.f32.mrf.mxu0  ;;  %v673_v27 = vadd.f32 %v672_v21, %v117_v45 }
 0x11b   :  { %v881_v20 = vpack.c.bf16 %v716_v17, %v714_v16  ;;  %v720_v23 = vadd.f32 %v719_v18, %v667_v15 }
 0x11c   :  { %v721_v22 = vpop.f32.mrf.mxu0 }
 0x11d   :  { %779 = vst [vmem:[%s1317_s3 + $0x18] sm:$0xff] %v881_v20  ;;  %v722_v24 = vadd.f32 %v721_v22, %v669_v19 }
 0x11e   :  { %v723_v25 = vpop.f32.mrf.mxu0 }
 0x11f   :  { %v883_v28 = vpack.c.bf16 %v722_v24, %v720_v23  ;;  %v724_v30 = vadd.f32 %v723_v25, %v671_v26 }
 0x120   :  { %v725_v29 = vpop.f32.mrf.mxu0 }
 0x121   :  { %781 = vst [vmem:[%s1317_s3 + $0x28] sm:$0xff] %v883_v28  ;;  %v726_v31 = vadd.f32 %v725_v29, %v673_v27 }
 0x123   :  { %v885_v32 = vpack.c.bf16 %v726_v31, %v724_v30 }
 0x125   :  { %783 = vst [vmem:[%s1317_s3 + $0x38] sm:$0xff] %v885_v32 }

// kernel: mul.87
= control target key start
LH: loop header
LB: loop body
LE: loop exit
PB: predicated region body
PF: predicated region fallthrough
CT: control target
= control target key end

     0   :  { %s121_s8 = smov 80   ;;  %vm20_vm0 = vcmask 130048   ;;  %s122_s9 = smov 96   ;;  %s154_s0 = inlined_call_operand.vmem [shape: bf16[512], index: 0, kind: input, shape index: {}]   ;;  %s155_s1 = inlined_call_operand.vmem [shape: bf16[2,16,16], index: 1, kind: output, shape index: {}]  }
   0x1   :  { %v15_v0 = vld [vmem:[%s154_s0] sm:$0x3]  ;;  %s120_s0 = smov 112   ;;  %s123_s10 = smov 64  }
   0x2   :  { %v16_v1 = vunpack.c.l.bf16 %v15_v0  ;;  %s124_s11 = smov 48   ;;  %s125_s12 = smov 32  }
   0x3   :  { %s126_s13 = smov 16  }
   0x4   :  { %18 = vst [vmem:[#allocation1] sm:$0xf] %v16_v1 }
   0xb   :  { %v22_v2 = vld [vmem:[#allocation1] sm:$0xf]  }
   0xc   :  { %v34_v3 = vld [vmem:[#allocation1] sm:$0xf]   ;;  %23 = vrot.lane.b32.xlu0 %v22_v2, %s120_s0 }
   0xd   :  { %35 = vrot.lane.b32.xlu1 %v34_v3, %s121_s8  ;;  %v28_v4 = vld [vmem:[#allocation1] sm:$0xf]  }
   0xe   :  { %v40_v5 = vld [vmem:[#allocation1] sm:$0xf]  }
   0xf   :  { %v19_v6 = vld [vmem:[#allocation1] sm:$0xf]  }
  0x10   :  { %21 = vst.msk [vmem:[#allocation0] ss:$8 sm:$0xf] %vm20_vm0, %v19_v6   ;;  %29 = vrot.lane.b32.xlu0 %v28_v4, %s122_s9  ;;  %v46_v7 = vld [vmem:[#allocation1] sm:$0xf]  }
  0x11   :  { %41 = vrot.lane.b32.xlu1 %v40_v5, %s123_s10  ;;  %v52_v8 = vld [vmem:[#allocation1] sm:$0xf]  }
  0x12   :  { %v58_v9 = vld [vmem:[#allocation1] sm:$0xf]  }
  0x14   :  { %47 = vrot.lane.b32.xlu0 %v46_v7, %s124_s11 }
  0x15   :  { %53 = vrot.lane.b32.xlu1 %v52_v8, %s125_s12 }
  0x18   :  { %59 = vrot.lane.b32.xlu0 %v58_v9, %s126_s13 }
  0x7e   :  { %v24_v10 = vpop.permute.xlu0 %23  }
  0x7f   :  { %v36_v11 = vpop.permute.xlu1 %35   ;;  %27 = vst.msk [vmem:[#allocation0 + $0x1] ss:$8 sm:$0xf] %vm20_vm0, %v24_v10  }
  0x80   :  { %39 = vst.msk [vmem:[#allocation0 + $0x3] ss:$8 sm:$0xf] %vm20_vm0, %v36_v11  }
  0x82   :  { %v30_v12 = vpop.permute.xlu0 %29  }
  0x83   :  { %v42_v13 = vpop.permute.xlu1 %41   ;;  %33 = vst.msk [vmem:[#allocation0 + $0x2] ss:$8 sm:$0xf] %vm20_vm0, %v30_v12  }
  0x84   :  { %45 = vst.msk [vmem:[#allocation0 + $0x4] ss:$8 sm:$0xf] %vm20_vm0, %v42_v13  }
  0x86   :  { %v48_v14 = vpop.permute.xlu0 %47  }
  0x87   :  { %v54_v15 = vpop.permute.xlu1 %53   ;;  %51 = vst.msk [vmem:[#allocation0 + $0x5] ss:$8 sm:$0xf] %vm20_vm0, %v48_v14  }
  0x88   :  { %57 = vst.msk [vmem:[#allocation0 + $0x6] ss:$8 sm:$0xf] %vm20_vm0, %v54_v15  }
  0x8a   :  { %v60_v16 = vpop.permute.xlu0 %59  }
  0x8b   :  { %63 = vst.msk [vmem:[#allocation0 + $0x7] ss:$8 sm:$0xf] %vm20_vm0, %v60_v16  }
  0x92   :  { %v69_v17 = vld [vmem:[#allocation0] sm:$0xff]  ;;  %v75_v18 = vld [vmem:[#allocation0 + $0x8] sm:$0xff]  ;;  %v82_v19 = vld [vmem:[#allocation0 + $0x10] sm:$0xff] }
  0x93   :  { %v105_v20 = vpack.c.bf16 %v75_v18, %v69_v17  ;;  %v90_v21 = vld [vmem:[#allocation0 + $0x18] sm:$0xff] }
  0x94   :  { %v110_v22 = vpack.c.bf16 %v90_v21, %v82_v19 }
  0x95   :  { %106 = vst [vmem:[%s155_s1] sm:$0xff] %v105_v20  }
  0x96   :  { %112 = vst [vmem:[%s155_s1 + $0x8] sm:$0xff] %v110_v22  }

// kernel: subnet_apply.44
= control target key start
LH: loop header
LB: loop body
LE: loop exit
PB: predicated region body
PF: predicated region fallthrough
CT: control target
= control target key end

     0   :  { %v1773_v1 = vmov 0   ;;  %vm965_vm0 = vcmask 523264   ;;  %s2366_s1 = inlined_call_operand.vmem [shape: bf16[576,512], index: 1, kind: input, shape index: {}]   ;;  %s2367_s0 = inlined_call_operand.vmem [shape: bf16[32,576], index: 0, kind: input, shape index: {}]   ;;  %s2368_s2 = inlined_call_operand.vmem [shape: f32[32,1], index: 2, kind: input, shape index: {}]   ;;  %s2369_s3 = inlined_call_operand.vmem [shape: bf16[32,512], index: 3, kind: output, shape index: {}]  }
   0x1   :  { %v1543_v0 = vld [vmem:[%s2366_s1 + $0xe4] ss:$16 sps:$4 sm:$0xff]   ;;  %1541 = vset.pattern.permute.xlu0 %v1773_v1  ;;  %1542 = vset.pattern.permute.xlu1 %v1773_v1  ;;  %v1547_v3 = vld [vmem:[%s2366_s1 + $0xe0] ss:$16 sps:$4 sm:$0xff]  }
   0x2   :  { %v1545_v2 = vld [vmem:[%s2366_s1 + $0x2e4] ss:$16 sps:$4 sm:$0xff]   ;;  %972 = vmatprep.subr.bf16.mxu0 %v1543_v0  ;;  %v1548_v4 = vld [vmem:[%s2366_s1 + $0x2e0] ss:$16 sps:$4 sm:$0xff]  }
   0x3   :  { %1025 = vmatprep.subr.bf16.mxu1 %v1545_v2  ;;  %v1549_v5 = vld [vmem:[%s2366_s1 + $0xc4] ss:$16 sps:$4 sm:$0xff]   ;;  %973 = vmatpush1.bf16.msra.mxu0 %v1547_v3  ;;  %v1553_v7 = vld [vmem:[%s2366_s1 + $0xc0] ss:$16 sps:$4 sm:$0xff]  }
   0x4   :  { %1026 = vmatpush1.bf16.msra.mxu1 %v1548_v4  ;;  %v1551_v6 = vld [vmem:[%s2366_s1 + $0x2c4] ss:$16 sps:$4 sm:$0xff]   ;;  %974 = vmatprep.subr.bf16.mxu0 %v1549_v5  ;;  %v1554_v8 = vld [vmem:[%s2366_s1 + $0x2c0] ss:$16 sps:$4 sm:$0xff]  }
   0x5   :  { %1027 = vmatprep.subr.bf16.mxu1 %v1551_v6  ;;  %v1555_v9 = vld [vmem:[%s2366_s1 + $0xa4] ss:$16 sps:$4 sm:$0xff]   ;;  %v1559_v11 = vld [vmem:[%s2366_s1 + $0xa0] ss:$16 sps:$4 sm:$0xff]   ;;  %v1650_v6 = vld [vmem:[%s2366_s1 + $0xec] ss:$16 sps:$4 sm:$0xff]  }
   0x6   :  { %v1557_v10 = vld [vmem:[%s2366_s1 + $0x2a4] ss:$16 sps:$4 sm:$0xff]   ;;  %v1560_v12 = vld [vmem:[%s2366_s1 + $0x2a0] ss:$16 sps:$4 sm:$0xff]  }
   0x7   :  { %975 = vmatpush1.bf16.msra.mxu0 %v1553_v7  ;;  %v1561_v13 = vld [vmem:[%s2366_s1 + $0x84] ss:$16 sps:$4 sm:$0xff]   ;;  %v1565_v15 = vld [vmem:[%s2366_s1 + $0x80] ss:$16 sps:$4 sm:$0xff]   ;;  %v2014_v7 = vld [vmem:[%s2367_s0 + $0x8] ss:$20 sps:$4 sm:$0xff]  }
   0x8   :  { %1028 = vmatpush1.bf16.msra.mxu1 %v1554_v8  ;;  %976 = vmatprep.subr.bf16.mxu0 %v1555_v9  ;;  %v1563_v14 = vld [vmem:[%s2366_s1 + $0x284] ss:$16 sps:$4 sm:$0xff]   ;;  %v1566_v16 = vld [vmem:[%s2366_s1 + $0x280] ss:$16 sps:$4 sm:$0xff]   ;;  %v1648_v9 = vld [vmem:[%s2366_s1 + $0xe8] ss:$16 sps:$4 sm:$0xff]  }
   0x9   :  { %1029 = vmatprep.subr.bf16.mxu1 %v1557_v10  ;;  %v1567_v17 = vld [vmem:[%s2366_s1 + $0x64] ss:$16 sps:$4 sm:$0xff]   ;;  %v1571_v19 = vld [vmem:[%s2366_s1 + $0x60] ss:$16 sps:$4 sm:$0xff]  }
   0xa   :  { %v1569_v18 = vld [vmem:[%s2366_s1 + $0x264] ss:$16 sps:$4 sm:$0xff]   ;;  %v1572_v20 = vld [vmem:[%s2366_s1 + $0x260] ss:$16 sps:$4 sm:$0xff]  }
   0xb   :  { %977 = vmatpush1.bf16.msra.mxu0 %v1559_v11  ;;  %v1573_v21 = vld [vmem:[%s2366_s1 + $0x44] ss:$16 sps:$4 sm:$0xff]   ;;  %v1577_v23 = vld [vmem:[%s2366_s1 + $0x40] ss:$16 sps:$4 sm:$0xff]   ;;  %v1656_v11 = vld [vmem:[%s2366_s1 + $0xcc] ss:$16 sps:$4 sm:$0xff]  }
   0xc   :  { %1030 = vmatpush1.bf16.msra.mxu1 %v1560_v12  ;;  %978 = vmatprep.subr.bf16.mxu0 %v1561_v13  ;;  %v1575_v22 = vld [vmem:[%s2366_s1 + $0x244] ss:$16 sps:$4 sm:$0xff]   ;;  %v1578_v24 = vld [vmem:[%s2366_s1 + $0x240] ss:$16 sps:$4 sm:$0xff]  }
   0xd   :  { %1031 = vmatprep.subr.bf16.mxu1 %v1563_v14  ;;  %v1579_v25 = vld [vmem:[%s2366_s1 + $0x24] ss:$16 sps:$4 sm:$0xff]   ;;  %v1583_v27 = vld [vmem:[%s2366_s1 + $0x20] ss:$16 sps:$4 sm:$0xff]  }
   0xe   :  { %v1581_v26 = vld [vmem:[%s2366_s1 + $0x224] ss:$16 sps:$4 sm:$0xff]   ;;  %v1584_v28 = vld [vmem:[%s2366_s1 + $0x220] ss:$16 sps:$4 sm:$0xff]  }
   0xf   :  { %979 = vmatpush1.bf16.msra.mxu0 %v1565_v15  ;;  %v1585_v29 = vld [vmem:[%s2366_s1 + $0x4] ss:$16 sps:$4 sm:$0xff]   ;;  %v1589_v31 = vld [vmem:[%s2366_s1] ss:$16 sps:$4 sm:$0xff]   ;;  %v1654_v15 = vld [vmem:[%s2366_s1 + $0xc8] ss:$16 sps:$4 sm:$0xff]  }
  0x10   :  { %1032 = vmatpush1.bf16.msra.mxu1 %v1566_v16  ;;  %980 = vmatprep.subr.bf16.mxu0 %v1567_v17  ;;  %v1587_v30 = vld [vmem:[%s2366_s1 + $0x204] ss:$16 sps:$4 sm:$0xff]   ;;  %v1590_v32 = vld [vmem:[%s2366_s1 + $0x200] ss:$16 sps:$4 sm:$0xff]   ;;  %v1665_v17 = vld [vmem:[%s2366_s1 + $0xac] ss:$16 sps:$4 sm:$0xff]  }
  0x11   :  { %1033 = vmatprep.subr.bf16.mxu1 %v1569_v18  ;;  %v1591_v33 = vld [vmem:[%s2366_s1 + $0x1e4] ss:$16 sps:$4 sm:$0xff]   ;;  %v1595_v35 = vld [vmem:[%s2366_s1 + $0x1e0] ss:$16 sps:$4 sm:$0xff]   ;;  %v2056_v18 = vld [vmem:[%s2367_s0 + $0x28] ss:$20 sps:$4 sm:$0xff]  }
  0x12   :  { %v1593_v34 = vld [vmem:[%s2366_s1 + $0x3e4] ss:$16 sps:$4 sm:$0xff]   ;;  %v1596_v36 = vld [vmem:[%s2366_s1 + $0x3e0] ss:$16 sps:$4 sm:$0xff]  }
  0x13   :  { %981 = vmatpush1.bf16.msra.mxu0 %v1571_v19  ;;  %v1597_v37 = vld [vmem:[%s2366_s1 + $0x1c4] ss:$16 sps:$4 sm:$0xff]   ;;  %v1601_v39 = vld [vmem:[%s2366_s1 + $0x1c0] ss:$16 sps:$4 sm:$0xff]  }
  0x14   :  { %1034 = vmatpush1.bf16.msra.mxu1 %v1572_v20  ;;  %982 = vmatprep.subr.bf16.mxu0 %v1573_v21  ;;  %v1599_v38 = vld [vmem:[%s2366_s1 + $0x3c4] ss:$16 sps:$4 sm:$0xff]   ;;  %v1602_v40 = vld [vmem:[%s2366_s1 + $0x3c0] ss:$16 sps:$4 sm:$0xff]   ;;  %v1663_v21 = vld [vmem:[%s2366_s1 + $0xa8] ss:$16 sps:$4 sm:$0xff]  }
  0x15   :  { %1035 = vmatprep.subr.bf16.mxu1 %v1575_v22  ;;  %v1603_v41 = vld [vmem:[%s2366_s1 + $0x1a4] ss:$16 sps:$4 sm:$0xff]   ;;  %v1607_v43 = vld [vmem:[%s2366_s1 + $0x1a0] ss:$16 sps:$4 sm:$0xff]  }
  0x16   :  { %v1605_v42 = vld [vmem:[%s2366_s1 + $0x3a4] ss:$16 sps:$4 sm:$0xff]   ;;  %v1608_v44 = vld [vmem:[%s2366_s1 + $0x3a0] ss:$16 sps:$4 sm:$0xff]  }
  0x17   :  { %983 = vmatpush1.bf16.msra.mxu0 %v1577_v23  ;;  %v1609_v45 = vld [vmem:[%s2366_s1 + $0x184] ss:$16 sps:$4 sm:$0xff]   ;;  %v1613_v47 = vld [vmem:[%s2366_s1 + $0x180] ss:$16 sps:$4 sm:$0xff]   ;;  %v1674_v23 = vld [vmem:[%s2366_s1 + $0x8c] ss:$16 sps:$4 sm:$0xff]  }
  0x18   :  { %1036 = vmatpush1.bf16.msra.mxu1 %v1578_v24  ;;  %984 = vmatprep.subr.bf16.mxu0 %v1579_v25  ;;  %v1611_v46 = vld [vmem:[%s2366_s1 + $0x384] ss:$16 sps:$4 sm:$0xff]   ;;  %v1614_v48 = vld [vmem:[%s2366_s1 + $0x380] ss:$16 sps:$4 sm:$0xff]   ;;  %v1672_v25 = vld [vmem:[%s2366_s1 + $0x88] ss:$16 sps:$4 sm:$0xff]  }
  0x19   :  { %1037 = vmatprep.subr.bf16.mxu1 %v1581_v26  ;;  %v1615_v49 = vld [vmem:[%s2366_s1 + $0x164] ss:$16 sps:$4 sm:$0xff]   ;;  %v1954_v52 = vld [vmem:[%s2367_s0 + $0xc] ss:$20 sps:$4 sm:$0xff]  }
  0x1a   :  { %v1946_v50 = vld [vmem:[%s2367_s0 + $0x4] ss:$20 sps:$4 sm:$0xff]   ;;  %v1619_v53 = vld [vmem:[%s2366_s1 + $0x160] ss:$16 sps:$4 sm:$0xff]   ;;  %1057 = vmatprep.mubr.bf16.mxu1 %v1954_v52  ;;  %v2036_v13 = vld [vmem:[%s2367_s0 + $0x34] ss:$20 sps:$4 sm:$0xff]  }
  0x1b   :  { %985 = vmatpush1.bf16.msra.mxu0 %v1583_v27  ;;  %v1617_v51 = vld [vmem:[%s2366_s1 + $0x364] ss:$16 sps:$4 sm:$0xff]   ;;  %1004 = vmatprep.mubr.bf16.mxu0 %v1946_v50  ;;  %v1620_v54 = vld [vmem:[%s2366_s1 + $0x360] ss:$16 sps:$4 sm:$0xff]   ;;  %v1678_v26 = vld [vmem:[%s2366_s1 + $0x6c] ss:$16 sps:$4 sm:$0xff]  }
  0x1c   :  { %1038 = vmatpush1.bf16.msra.mxu1 %v1584_v28  ;;  %986 = vmatprep.subr.bf16.mxu0 %v1585_v29  ;;  %v1621_v55 = vld [vmem:[%s2366_s1 + $0x144] ss:$16 sps:$4 sm:$0xff]   ;;  %v1625_v57 = vld [vmem:[%s2366_s1 + $0x140] ss:$16 sps:$4 sm:$0xff]   ;;  %v1681_v27 = vld [vmem:[%s2366_s1 + $0x2ec] ss:$16 sps:$4 sm:$0xff]  }
  0x1d   :  { %1039 = vmatprep.subr.bf16.mxu1 %v1587_v30  ;;  %v1623_v56 = vld [vmem:[%s2366_s1 + $0x344] ss:$16 sps:$4 sm:$0xff]   ;;  %v1626_v58 = vld [vmem:[%s2366_s1 + $0x340] ss:$16 sps:$4 sm:$0xff]   ;;  %v1676_v29 = vld [vmem:[%s2366_s1 + $0x68] ss:$16 sps:$4 sm:$0xff]  }
  0x1e   :  { %v1627_v59 = vld [vmem:[%s2366_s1 + $0x124] ss:$16 sps:$4 sm:$0xff]   ;;  %v1631_v61 = vld [vmem:[%s2366_s1 + $0x120] ss:$16 sps:$4 sm:$0xff]   ;;  %v1679_v30 = vld [vmem:[%s2366_s1 + $0x2e8] ss:$16 sps:$4 sm:$0xff]  }
  0x1f   :  { %987 = vmatpush1.bf16.msra.mxu0 %v1589_v31  ;;  %v1629_v60 = vld [vmem:[%s2366_s1 + $0x324] ss:$16 sps:$4 sm:$0xff]   ;;  %v1632_v62 = vld [vmem:[%s2366_s1 + $0x320] ss:$16 sps:$4 sm:$0xff]   ;;  %v1684_v31 = vld [vmem:[%s2366_s1 + $0x4c] ss:$16 sps:$4 sm:$0xff]  }
  0x20   :  { %1040 = vmatpush1.bf16.msra.mxu1 %v1590_v32  ;;  %988 = vmatprep.subr.bf16.mxu0 %v1591_v33  ;;  %v1633_v63 = vld [vmem:[%s2366_s1 + $0x104] ss:$16 sps:$4 sm:$0xff]   ;;  %v1637_v2 = vld [vmem:[%s2366_s1 + $0x100] ss:$16 sps:$4 sm:$0xff]   ;;  %v1687_v32 = vld [vmem:[%s2366_s1 + $0x2cc] ss:$16 sps:$4 sm:$0xff]  }
  0x21   :  { %1041 = vmatprep.subr.bf16.mxu1 %v1593_v34  ;;  %v1635_v0 = vld [vmem:[%s2366_s1 + $0x304] ss:$16 sps:$4 sm:$0xff]   ;;  %v1638_v3 = vld [vmem:[%s2366_s1 + $0x300] ss:$16 sps:$4 sm:$0xff]   ;;  %v1682_v33 = vld [vmem:[%s2366_s1 + $0x48] ss:$16 sps:$4 sm:$0xff]  }
  0x22   :  { %v1647_v4 = vld [vmem:[%s2366_s1 + $0x464] ss:$16 sps:$4 sm:$0xff]   ;;  %v1645_v8 = vld [vmem:[%s2366_s1 + $0x460] ss:$16 sps:$4 sm:$0xff]   ;;  %v1685_v34 = vld [vmem:[%s2366_s1 + $0x2c8] ss:$16 sps:$4 sm:$0xff]  }
  0x23   :  { %989 = vmatpush2.bf16.msra.mxu0 %v1595_v35  ;;  %v2006_v5 = vld [vmem:[%s2367_s0] ss:$20 sps:$4 sm:$0xff]   ;;  %v2062_v19 = vld [vmem:[%s2367_s0 + $0x30] ss:$20 sps:$4 sm:$0xff]   ;;  %v1691_v35 = vld [vmem:[%s2366_s1 + $0x2c] ss:$16 sps:$4 sm:$0xff]  }
  0x24   :  { %1042 = vmatpush2.bf16.msra.mxu1 %v1596_v36  ;;  %990 = vmatprep.subr.bf16.mxu0 %v1597_v37  ;;  %v1653_v10 = vld [vmem:[%s2366_s1 + $0x444] ss:$16 sps:$4 sm:$0xff]   ;;  %v2031_v12 = vld [vmem:[%s2367_s0 + $0x2c] ss:$20 sps:$4 sm:$0xff]  }
  0x25   :  { %1043 = vmatprep.subr.bf16.mxu1 %v1599_v38  ;;  %v1651_v14 = vld [vmem:[%s2366_s1 + $0x440] ss:$16 sps:$4 sm:$0xff]   ;;  %v1662_v16 = vld [vmem:[%s2366_s1 + $0x424] ss:$16 sps:$4 sm:$0xff]   ;;  %v1694_v36 = vld [vmem:[%s2366_s1 + $0x2ac] ss:$16 sps:$4 sm:$0xff]  }
  0x26   :  { %v1660_v20 = vld [vmem:[%s2366_s1 + $0x420] ss:$16 sps:$4 sm:$0xff]   ;;  %v1671_v22 = vld [vmem:[%s2366_s1 + $0x404] ss:$16 sps:$4 sm:$0xff]   ;;  %v2127_v37 = vld [vmem:[%s2367_s0 + $0x38] ss:$20 sps:$4 sm:$0xff]  }
  0x27   :  { %991 = vmatpush2.bf16.msra.mxu0 %v1601_v39  ;;  %v1669_v24 = vld [vmem:[%s2366_s1 + $0x400] ss:$16 sps:$4 sm:$0xff]   ;;  %v1689_v38 = vld [vmem:[%s2366_s1 + $0x28] ss:$16 sps:$4 sm:$0xff]  }
  0x28   :  { %1044 = vmatpush2.bf16.msra.mxu1 %v1602_v40  ;;  %992 = vmatprep.subr.bf16.mxu0 %v1603_v41  ;;  %v2095_v28 = vld [vmem:[%s2367_s0 + $0x10] ss:$20 sps:$4 sm:$0xff]   ;;  %v1692_v39 = vld [vmem:[%s2366_s1 + $0x2a8] ss:$16 sps:$4 sm:$0xff]   ;;  %v1697_v40 = vld [vmem:[%s2366_s1 + $0xc] ss:$16 sps:$4 sm:$0xff]  }
  0x29   :  { %1045 = vmatprep.subr.bf16.mxu1 %v1605_v42  ;;  %v1700_v41 = vld [vmem:[%s2366_s1 + $0x28c] ss:$16 sps:$4 sm:$0xff]   ;;  %v1695_v42 = vld [vmem:[%s2366_s1 + $0x8] ss:$16 sps:$4 sm:$0xff]  }
  0x2b   :  { %993 = vmatpush2.bf16.msra.mxu0 %v1607_v43  ;;  %v1698_v43 = vld [vmem:[%s2366_s1 + $0x288] ss:$16 sps:$4 sm:$0xff]  }
  0x2c   :  { %1046 = vmatpush2.bf16.msra.mxu1 %v1608_v44  ;;  %994 = vmatprep.subr.bf16.mxu0 %v1609_v45  ;;  %v1703_v44 = vld [vmem:[%s2366_s1 + $0x1ec] ss:$16 sps:$4 sm:$0xff]  }
  0x2d   :  { %1047 = vmatprep.subr.bf16.mxu1 %v1611_v46  ;;  %v1706_v45 = vld [vmem:[%s2366_s1 + $0x26c] ss:$16 sps:$4 sm:$0xff]   ;;  %v1701_v46 = vld [vmem:[%s2366_s1 + $0x1e8] ss:$16 sps:$4 sm:$0xff]  }
  0x2f   :  { %995 = vmatpush2.bf16.msra.mxu0 %v1613_v47  ;;  %v1704_v47 = vld [vmem:[%s2366_s1 + $0x268] ss:$16 sps:$4 sm:$0xff]  }
  0x30   :  { %1048 = vmatpush2.bf16.msra.mxu1 %v1614_v48  ;;  %996 = vmatprep.subr.bf16.mxu0 %v1615_v49  ;;  %v1709_v48 = vld [vmem:[%s2366_s1 + $0x1cc] ss:$16 sps:$4 sm:$0xff]  }
  0x31   :  { %1049 = vmatprep.subr.bf16.mxu1 %v1617_v51  ;;  %v1712_v49 = vld [vmem:[%s2366_s1 + $0x24c] ss:$16 sps:$4 sm:$0xff]   ;;  %v1707_v51 = vld [vmem:[%s2366_s1 + $0x1c8] ss:$16 sps:$4 sm:$0xff]  }
  0x33   :  { %997 = vmatpush2.bf16.msra.mxu0 %v1619_v53  ;;  %v1715_v53 = vld [vmem:[%s2366_s1 + $0x1ac] ss:$16 sps:$4 sm:$0xff]  }
  0x34   :  { %1050 = vmatpush2.bf16.msra.mxu1 %v1620_v54  ;;  %998 = vmatprep.subr.bf16.mxu0 %v1621_v55  ;;  %v1718_v54 = vld [vmem:[%s2366_s1 + $0x22c] ss:$16 sps:$4 sm:$0xff]  }
  0x35   :  { %1051 = vmatprep.subr.bf16.mxu1 %v1623_v56  ;;  %v172_v55 = vld [vmem:[%s2368_s2 + $0x8] sm:$0xff] }
  0x36   :  { %v1713_v56 = vld [vmem:[%s2366_s1 + $0x1a8] ss:$16 sps:$4 sm:$0xff]  }
  0x37   :  { %999 = vmatpush2.bf16.msra.mxu0 %v1625_v57  ;;  %v1716_v57 = vld [vmem:[%s2366_s1 + $0x228] ss:$16 sps:$4 sm:$0xff]  }
  0x38   :  { %1052 = vmatpush2.bf16.msra.mxu1 %v1626_v58  ;;  %1000 = vmatprep.subr.bf16.mxu0 %v1627_v59  ;;  %v173_v58 = vld [vmem:[%s2368_s2 + $0x10] sm:$0xff]  ;;  %v1721_v59 = vld [vmem:[%s2366_s1 + $0x18c] ss:$16 sps:$4 sm:$0xff]  }
  0x39   :  { %1053 = vmatprep.subr.bf16.mxu1 %v1629_v60  ;;  %v1724_v60 = vld [vmem:[%s2366_s1 + $0x20c] ss:$16 sps:$4 sm:$0xff]   ;;  %187 = vperm.xlu1 %1542, %v173_v58  }
  0x3b   :  { %1001 = vmatpush2.bf16.msra.mxu0 %v1631_v61  ;;  %v174_v61 = vld [vmem:[%s2368_s2 + $0x18] sm:$0xff] }
  0x3c   :  { %1054 = vmatpush2.bf16.msra.mxu1 %v1632_v62  ;;  %1002 = vmatprep.subr.bf16.mxu0 %v1633_v63  ;;  %v1719_v62 = vld [vmem:[%s2366_s1 + $0x188] ss:$16 sps:$4 sm:$0xff]  }
  0x3d   :  { %1055 = vmatprep.subr.bf16.mxu1 %v1635_v0  ;;  %v1722_v63 = vld [vmem:[%s2366_s1 + $0x208] ss:$16 sps:$4 sm:$0xff]   ;;  %v1727_v0 = vld [vmem:[%s2366_s1 + $0x16c] ss:$16 sps:$4 sm:$0xff]   ;;  %192 = vperm.xlu1 %1542, %v174_v61  }
  0x3f   :  { %1003 = vmatpush2.bf16.msra.mxu0 %v1637_v2  ;;  %v1730_v2 = vld [vmem:[%s2366_s1 + $0x3ec] ss:$16 sps:$4 sm:$0xff]  }
  0x40   :  { %1056 = vmatpush2.bf16.msra.mxu1 %v1638_v3  ;;  %1086 = vmatprep.subr.bf16.mxu0 %v1647_v4  ;;  %v1725_v3 = vld [vmem:[%s2366_s1 + $0x168] ss:$16 sps:$4 sm:$0xff]  }
  0x41   :  { %1131 = vmatprep.subr.bf16.mxu1 %v1650_v6  ;;  %v1728_v4 = vld [vmem:[%s2366_s1 + $0x3e8] ss:$16 sps:$4 sm:$0xff]   ;;  %v1733_v6 = vld [vmem:[%s2366_s1 + $0x14c] ss:$16 sps:$4 sm:$0xff]  }
  0x42   :  { %1005 = vmatmul.mubr.bf16.vlgmr.msra.gmra.mxu0 %v2006_v5 }
  0x43   :  { %1058 = vmatmul.mubr.bf16.vlgmr.msra.gmra.mxu1 %v2014_v7  ;;  %1087 = vmatpush1.bf16.msra.mxu0 %v1645_v8  ;;  %v1736_v8 = vld [vmem:[%s2366_s1 + $0x3cc] ss:$16 sps:$4 sm:$0xff]  }
  0x44   :  { %1132 = vmatpush1.bf16.msra.mxu1 %v1648_v9  ;;  %1088 = vmatprep.subr.bf16.mxu0 %v1653_v10  ;;  %v1731_v9 = vld [vmem:[%s2366_s1 + $0x148] ss:$16 sps:$4 sm:$0xff]  }
  0x45   :  { %1133 = vmatprep.subr.bf16.mxu1 %v1656_v11  ;;  %1014 = vmatprep.mubr.bf16.mxu0 %v2031_v12  ;;  %v1734_v10 = vld [vmem:[%s2366_s1 + $0x3c8] ss:$16 sps:$4 sm:$0xff]   ;;  %v1739_v11 = vld [vmem:[%s2366_s1 + $0x12c] ss:$16 sps:$4 sm:$0xff]  }
  0x46   :  { %1067 = vmatprep.mubr.bf16.mxu1 %v2036_v13 }
  0x47   :  { %1089 = vmatpush1.bf16.msra.mxu0 %v1651_v14  ;;  %v1742_v14 = vld [vmem:[%s2366_s1 + $0x3ac] ss:$16 sps:$4 sm:$0xff]  }
  0x48   :  { %1134 = vmatpush1.bf16.msra.mxu1 %v1654_v15  ;;  %1090 = vmatprep.subr.bf16.mxu0 %v1662_v16  ;;  %v1737_v15 = vld [vmem:[%s2366_s1 + $0x128] ss:$16 sps:$4 sm:$0xff]  }
  0x49   :  { %1135 = vmatprep.subr.bf16.mxu1 %v1665_v17  ;;  %v1740_v16 = vld [vmem:[%s2366_s1 + $0x3a8] ss:$16 sps:$4 sm:$0xff]   ;;  %v1745_v17 = vld [vmem:[%s2366_s1 + $0x10c] ss:$16 sps:$4 sm:$0xff]  }
  0x4a   :  { %1015 = vmatmul.mubr.bf16.gmra.mxu0 %v2056_v18 }
  0x4b   :  { %1068 = vmatmul.mubr.bf16.gmra.mxu1 %v2062_v19  ;;  %1091 = vmatpush1.bf16.msra.mxu0 %v1660_v20  ;;  %v1748_v20 = vld [vmem:[%s2366_s1 + $0x38c] ss:$16 sps:$4 sm:$0xff]  }
  0x4c   :  { %1136 = vmatpush1.bf16.msra.mxu1 %v1663_v21  ;;  %1092 = vmatprep.subr.bf16.mxu0 %v1671_v22  ;;  %v1743_v21 = vld [vmem:[%s2366_s1 + $0x108] ss:$16 sps:$4 sm:$0xff]  }
  0x4d   :  { %1137 = vmatprep.subr.bf16.mxu1 %v1674_v23  ;;  %1110 = vmatprep.mubr.bf16.mxu0 %v1773_v1  ;;  %v1746_v22 = vld [vmem:[%s2366_s1 + $0x388] ss:$16 sps:$4 sm:$0xff]   ;;  %v1751_v23 = vld [vmem:[%s2366_s1 + $0x36c] ss:$16 sps:$4 sm:$0xff]  }
  0x4e   :  { %1163 = vmatprep.mubr.bf16.mxu1 %v1946_v50  ;;  %v171_v50 = vld [vmem:[%s2368_s2] sm:$0xff] }
  0x4f   :  { %1093 = vmatpush1.bf16.msra.mxu0 %v1669_v24  ;;  %177 = vperm.xlu0 %1541, %v171_v50   ;;  %v1754_v24 = vld [vmem:[%s2366_s1 + $0x46c] ss:$16 sps:$4 sm:$0xff]  }
  0x50   :  { %1138 = vmatpush1.bf16.msra.mxu1 %v1672_v25  ;;  %1184 = vmatprep.subr.bf16.mxu0 %v1681_v27  ;;  %v1749_v25 = vld [vmem:[%s2366_s1 + $0x368] ss:$16 sps:$4 sm:$0xff]   ;;  %v1757_v27 = vld [vmem:[%s2366_s1 + $0x34c] ss:$16 sps:$4 sm:$0xff]  }
  0x51   :  { %1139 = vmatprep.subr.bf16.mxu1 %v1678_v26  ;;  %v1752_v26 = vld [vmem:[%s2366_s1 + $0x468] ss:$16 sps:$4 sm:$0xff]  }
  0x52   :  { %1520 = vmatmul.mubr.msk.bf16.vlgmr.msra.gmra.mxu0 %vm965_vm0, %v2095_v28 }
  0x53   :  { %1185 = vmatpush1.bf16.msra.mxu0 %v1679_v30  ;;  %1120 = vmatprep.mubr.bf16.mxu0 %v1773_v1  ;;  %v1755_v30 = vld [vmem:[%s2366_s1 + $0x348] ss:$16 sps:$4 sm:$0xff]  }
  0x54   :  { %1140 = vmatpush1.bf16.msra.mxu1 %v1676_v29  ;;  %1186 = vmatprep.subr.bf16.mxu0 %v1687_v32  ;;  %v1760_v29 = vld [vmem:[%s2366_s1 + $0x44c] ss:$16 sps:$4 sm:$0xff]  }
  0x55   :  { %1141 = vmatprep.subr.bf16.mxu1 %v1684_v31  ;;  %182 = vperm.xlu0 %1541, %v172_v55   ;;  %v1758_v31 = vld [vmem:[%s2366_s1 + $0x448] ss:$16 sps:$4 sm:$0xff]   ;;  %v1763_v32 = vld [vmem:[%s2366_s1 + $0x32c] ss:$16 sps:$4 sm:$0xff]  }
  0x57   :  { %1187 = vmatpush1.bf16.msra.mxu0 %v1685_v34  ;;  %v1764_v34 = vld [vmem:[%s2366_s1 + $0x428] ss:$16 sps:$4 sm:$0xff]  }
  0x58   :  { %1142 = vmatpush1.bf16.msra.mxu1 %v1682_v33  ;;  %1188 = vmatprep.subr.bf16.mxu0 %v1694_v36  ;;  %v1761_v33 = vld [vmem:[%s2366_s1 + $0x328] ss:$16 sps:$4 sm:$0xff]  }
  0x59   :  { %1143 = vmatprep.subr.bf16.mxu1 %v1691_v35  ;;  %v1769_v35 = vld [vmem:[%s2366_s1 + $0x30c] ss:$16 sps:$4 sm:$0xff]   ;;  %v1767_v36 = vld [vmem:[%s2366_s1 + $0x308] ss:$16 sps:$4 sm:$0xff]  }
  0x5a   :  { %1521 = vmatmul.mubr.msk.bf16.gmra.mxu0 %vm965_vm0, %v2127_v37 }
  0x5b   :  { %1189 = vmatpush1.bf16.msra.mxu0 %v1692_v39  ;;  %1216 = vmatprep.mubr.bf16.mxu0 %v1954_v52  ;;  %v1710_v52 = vld [vmem:[%s2366_s1 + $0x248] ss:$16 sps:$4 sm:$0xff]  }
  0x5c   :  { %1144 = vmatpush1.bf16.msra.mxu1 %v1689_v38  ;;  %1190 = vmatprep.subr.bf16.mxu0 %v1700_v41  ;;  %v1770_v38 = vld [vmem:[%s2366_s1 + $0x408] ss:$16 sps:$4 sm:$0xff]  }
  0x5d   :  { %1145 = vmatprep.subr.bf16.mxu1 %v1697_v40 }
  0x5f   :  { %1191 = vmatpush1.bf16.msra.mxu0 %v1698_v43 }
  0x60   :  { %1146 = vmatpush1.bf16.msra.mxu1 %v1695_v42  ;;  %1192 = vmatprep.subr.bf16.mxu0 %v1706_v45 }
  0x61   :  { %1147 = vmatprep.subr.bf16.mxu1 %v1703_v44 }
  0x63   :  { %1193 = vmatpush1.bf16.msra.mxu0 %v1704_v47 }
  0x64   :  { %1148 = vmatpush2.bf16.msra.mxu1 %v1701_v46  ;;  %1194 = vmatprep.subr.bf16.mxu0 %v1712_v49 }
  0x65   :  { %1149 = vmatprep.subr.bf16.mxu1 %v1709_v48 }
  0x67   :  { %1195 = vmatpush1.bf16.msra.mxu0 %v1710_v52 }
  0x68   :  { %1150 = vmatpush2.bf16.msra.mxu1 %v1707_v51  ;;  %1196 = vmatprep.subr.bf16.mxu0 %v1718_v54 }
  0x69   :  { %1151 = vmatprep.subr.bf16.mxu1 %v1715_v53 }
  0x6b   :  { %1197 = vmatpush1.bf16.msra.mxu0 %v1716_v57 }
  0x6c   :  { %1152 = vmatpush2.bf16.msra.mxu1 %v1713_v56  ;;  %1198 = vmatprep.subr.bf16.mxu0 %v1724_v60 }
  0x6d   :  { %1153 = vmatprep.subr.bf16.mxu1 %v1721_v59 }
  0x6f   :  { %1199 = vmatpush1.bf16.msra.mxu0 %v1722_v63 }
  0x70   :  { %1154 = vmatpush2.bf16.msra.mxu1 %v1719_v62  ;;  %1200 = vmatprep.subr.bf16.mxu0 %v1730_v2 }
  0x71   :  { %1155 = vmatprep.subr.bf16.mxu1 %v1727_v0 }
  0x73   :  { %1201 = vmatpush2.bf16.msra.mxu0 %v1728_v4 }
  0x74   :  { %1156 = vmatpush2.bf16.msra.mxu1 %v1725_v3  ;;  %1202 = vmatprep.subr.bf16.mxu0 %v1736_v8 }
  0x75   :  { %1157 = vmatprep.subr.bf16.mxu1 %v1733_v6 }
  0x77   :  { %1203 = vmatpush2.bf16.msra.mxu0 %v1734_v10 }
  0x78   :  { %1158 = vmatpush2.bf16.msra.mxu1 %v1731_v9  ;;  %1204 = vmatprep.subr.bf16.mxu0 %v1742_v14 }
  0x79   :  { %1159 = vmatprep.subr.bf16.mxu1 %v1739_v11 }
  0x7b   :  { %1205 = vmatpush2.bf16.msra.mxu0 %v1740_v16 }
  0x7c   :  { %1160 = vmatpush2.bf16.msra.mxu1 %v1737_v15  ;;  %1206 = vmatprep.subr.bf16.mxu0 %v1748_v20 }
  0x7d   :  { %1161 = vmatprep.subr.bf16.mxu1 %v1745_v17 }
  0x7f   :  { %1207 = vmatpush2.bf16.msra.mxu0 %v1746_v22 }
  0x80   :  { %1162 = vmatpush2.bf16.msra.mxu1 %v1743_v21  ;;  %1208 = vmatprep.subr.bf16.mxu0 %v1751_v23 }
  0x81   :  { %1245 = vmatprep.subr.bf16.mxu1 %v1754_v24 }
  0x83   :  { %1164 = vmatmul.mubr.bf16.vlgmr.msra.gmra.mxu1 %v2006_v5  ;;  %1209 = vmatpush2.bf16.msra.mxu0 %v1749_v25  ;;  %v1766_v5 = vld [vmem:[%s2366_s1 + $0x42c] ss:$16 sps:$4 sm:$0xff]  }
  0x84   :  { %1246 = vmatpush1.bf16.msra.mxu1 %v1752_v26  ;;  %1210 = vmatprep.subr.bf16.mxu0 %v1757_v27 }
  0x85   :  { %1247 = vmatprep.subr.bf16.mxu1 %v1760_v29  ;;  %1173 = vmatprep.mubr.bf16.mxu1 %v2031_v12  ;;  %v1772_v12 = vld [vmem:[%s2366_s1 + $0x40c] ss:$16 sps:$4 sm:$0xff]  }
  0x87   :  { %1211 = vmatpush2.bf16.msra.mxu0 %v1755_v30 }
  0x88   :  { %1248 = vmatpush1.bf16.msra.mxu1 %v1758_v31  ;;  %1212 = vmatprep.subr.bf16.mxu0 %v1763_v32 }
  0x89   :  { %1249 = vmatprep.subr.bf16.mxu1 %v1766_v5 }
  0x8b   :  { %1174 = vmatmul.mubr.bf16.gmra.mxu1 %v2056_v18  ;;  %1213 = vmatpush2.bf16.msra.mxu0 %v1761_v33 }
  0x8c   :  { %1250 = vmatpush1.bf16.msra.mxu1 %v1764_v34  ;;  %1214 = vmatprep.subr.bf16.mxu0 %v1769_v35 }
  0x8d   :  { %1251 = vmatprep.subr.bf16.mxu1 %v1772_v12  ;;  %1269 = vmatprep.mubr.bf16.mxu1 %v1773_v1 }
  0x8f   :  { %1215 = vmatpush2.bf16.msra.mxu0 %v1767_v36 }
  0x90   :  { %1252 = vmatpush1.bf16.msra.mxu1 %v1770_v38 }
  0x92   :  { %1217 = vmatmul.mubr.bf16.vlgmr.msra.gmra.mxu0 %v2014_v7 }
  0x93   :  { %1522 = vmatmul.mubr.msk.bf16.vlgmr.msra.gmra.mxu1 %vm965_vm0, %v2095_v28  ;;  %1226 = vmatprep.mubr.bf16.mxu0 %v2036_v13 }
  0x94   :  { %1279 = vmatprep.mubr.bf16.mxu1 %v1773_v1 }
  0x9a   :  { %1227 = vmatmul.mubr.bf16.gmra.mxu0 %v2062_v19 }
  0x9b   :  { %1523 = vmatmul.mubr.msk.bf16.gmra.mxu1 %vm965_vm0, %v2127_v37 }
  0xb4   :  { %v2324_v37 = vpop.permute.xlu1 %187 }
  0xb8   :  { %v2330_v62 = vpop.permute.xlu1 %192 }
  0xca   :  { %v2318_v43 = vpop.permute.xlu0 %177 }
  0xd0   :  { %v2321_v46 = vpop.permute.xlu0 %182 }
 0x102   :  { %v1006_v18 = vpop.f32.mrf.mxu0 }
 0x103   :  { %v1059_v39 = vpop.f32.mrf.mxu1  ;;  %v1007_v13 = vadd.f32 %v1006_v18, %v2318_v43 }
 0x104   :  { %v1008_v40 = vpop.f32.mrf.mxu0 }
 0x105   :  { %v1061_v41 = vpop.f32.mrf.mxu1  ;;  %v1009_v47 = vadd.f32 %v1008_v40, %v2318_v43  ;;  %v1060_v50 = vadd.f32 %v1059_v39, %v1007_v13 }
 0x106   :  { %v1010_v42 = vpop.f32.mrf.mxu0 }
 0x107   :  { %v1063_v44 = vpop.f32.mrf.mxu1  ;;  %v1011_v51 = vadd.f32 %v1010_v42, %v2321_v46  ;;  %v1062_v53 = vadd.f32 %v1061_v41, %v1009_v47 }
 0x108   :  { %v1012_v7 = vpop.f32.mrf.mxu0 }
 0x109   :  { %v1065_v1 = vpop.f32.mrf.mxu1  ;;  %v1013_v54 = vadd.f32 %v1012_v7, %v2321_v46  ;;  %v1064_v58 = vadd.f32 %v1063_v44, %v1011_v51 }
 0x10a   :  { %v1016_v45 = vpop.f32.mrf.mxu0 }
 0x10b   :  { %v1069_v48 = vpop.f32.mrf.mxu1  ;;  %v1017_v59 = vadd.f32 %v1016_v45, %v2324_v37  ;;  %v1066_v0 = vadd.f32 %v1065_v1, %v1013_v54 }
 0x10c   :  { %v1018_v28 = vpop.f32.mrf.mxu0 }
 0x10d   :  { %v1071_v56 = vpop.f32.mrf.mxu1  ;;  %v1019_v61 = vadd.f32 %v1018_v28, %v2324_v37  ;;  %v1070_v9 = vadd.f32 %v1069_v48, %v1017_v59 }
 0x10e   :  { %v1020_v19 = vpop.f32.mrf.mxu0 }
 0x10f   :  { %v1073_v6 = vpop.f32.mrf.mxu1  ;;  %v1021_v10 = vadd.f32 %v1020_v19, %v2330_v62  ;;  %v1072_v15 = vadd.f32 %v1071_v56, %v1019_v61 }
 0x110   :  { %v1022_v49 = vpop.f32.mrf.mxu0 }
 0x111   :  { %v1023_v17 = vadd.f32 %v1022_v49, %v2330_v62  ;;  %v1075_v23 = vpop.f32.mrf.mxu1  ;;  %v1074_v25 = vadd.f32 %v1073_v6, %v1021_v10 }
 0x112   :  { %v1112_v52 = vpop.f32.mrf.mxu0 }
 0x113   :  { %v1113_v55 = vadd.f32 %v1112_v52, %v1060_v50  ;;  %v1076_v30 = vadd.f32 %v1075_v23, %v1023_v17 }
 0x114   :  { %v1114_v57 = vpop.f32.mrf.mxu0 }
 0x115   :  { %v1115_v60 = vadd.f32 %v1114_v57, %v1062_v53  ;;  %v1290_v2 = vmax.f32 %v1113_v55, 0.0 }
 0x116   :  { %v1116_v63 = vpop.f32.mrf.mxu0 }
 0x117   :  { %v1291_v3 = vmax.f32 %v1115_v60, 0.0  ;;  %v1117_v4 = vadd.f32 %v1116_v63, %v1064_v58 }
 0x118   :  { %v1118_v8 = vpop.f32.mrf.mxu0 }
 0x119   :  { %v1532_v11 = vpack.c.bf16 %v1291_v3, %v1290_v2  ;;  %v1119_v14 = vadd.f32 %v1118_v8, %v1066_v0  ;;  %v1294_v20 = vmax.f32 %v1117_v4, 0.0 }
 0x11a   :  { %v1122_v16 = vpop.f32.mrf.mxu0 }
 0x11b   :  { %1354 = vst [vmem:[%s2369_s3] sm:$0xff] %v1532_v11  ;;  %v1295_v21 = vmax.f32 %v1119_v14, 0.0  ;;  %v1123_v22 = vadd.f32 %v1122_v16, %v1070_v9 }
 0x11c   :  { %v1124_v24 = vpop.f32.mrf.mxu0 }
 0x11d   :  { %v1534_v26 = vpack.c.bf16 %v1295_v21, %v1294_v20  ;;  %v1125_v27 = vadd.f32 %v1124_v24, %v1072_v15  ;;  %v1298_v31 = vmax.f32 %v1123_v22, 0.0 }
 0x11e   :  { %v1126_v29 = vpop.f32.mrf.mxu0 }
 0x11f   :  { %1356 = vst [vmem:[%s2369_s3 + $0x10] sm:$0xff] %v1534_v26  ;;  %v1299_v32 = vmax.f32 %v1125_v27, 0.0  ;;  %v1127_v5 = vadd.f32 %v1126_v29, %v1074_v25 }
 0x120   :  { %v1128_v33 = vpop.f32.mrf.mxu0 }
 0x121   :  { %v1536_v34 = vpack.c.bf16 %v1299_v32, %v1298_v31  ;;  %v1129_v35 = vadd.f32 %v1128_v33, %v1076_v30  ;;  %v1302_v12 = vmax.f32 %v1127_v5, 0.0 }
 0x123   :  { %1358 = vst [vmem:[%s2369_s3 + $0x20] sm:$0xff] %v1536_v34  ;;  %v1303_v36 = vmax.f32 %v1129_v35, 0.0 }
 0x125   :  { %v1538_v38 = vpack.c.bf16 %v1303_v36, %v1302_v12 }
 0x127   :  { %1360 = vst [vmem:[%s2369_s3 + $0x30] sm:$0xff] %v1538_v38 }
 0x143   :  { %v1165_v18 = vpop.f32.mrf.mxu1 }
 0x144   :  { %v1166_v28 = vadd.f32 %v1165_v18, %v2318_v43 }
 0x145   :  { %v1167_v39 = vpop.f32.mrf.mxu1 }
 0x146   :  { %v1168_v19 = vadd.f32 %v1167_v39, %v2318_v43 }
 0x147   :  { %v1169_v40 = vpop.f32.mrf.mxu1 }
 0x148   :  { %v1170_v50 = vadd.f32 %v1169_v40, %v2321_v46 }
 0x149   :  { %v1171_v41 = vpop.f32.mrf.mxu1 }
 0x14a   :  { %v1172_v55 = vadd.f32 %v1171_v41, %v2321_v46 }
 0x14b   :  { %v1175_v42 = vpop.f32.mrf.mxu1 }
 0x14c   :  { %v1176_v58 = vadd.f32 %v1175_v42, %v2324_v37 }
 0x14d   :  { %v1177_v7 = vpop.f32.mrf.mxu1 }
 0x14e   :  { %v1178_v4 = vadd.f32 %v1177_v7, %v2324_v37 }
 0x14f   :  { %v1179_v44 = vpop.f32.mrf.mxu1 }
 0x150   :  { %v1180_v10 = vadd.f32 %v1179_v44, %v2330_v62 }
 0x151   :  { %v1181_v45 = vpop.f32.mrf.mxu1 }
 0x152   :  { %v1218_v13 = vpop.f32.mrf.mxu0  ;;  %v1182_v22 = vadd.f32 %v1181_v45, %v2330_v62 }
 0x153   :  { %v1271_v1 = vpop.f32.mrf.mxu1  ;;  %v1219_v47 = vadd.f32 %v1218_v13, %v1166_v28 }
 0x154   :  { %v1220_v48 = vpop.f32.mrf.mxu0 }
 0x155   :  { %v1273_v49 = vpop.f32.mrf.mxu1  ;;  %v1272_v51 = vadd.f32 %v1271_v1, %v1219_v47  ;;  %v1221_v52 = vadd.f32 %v1220_v48, %v1168_v19 }
 0x156   :  { %v1222_v53 = vpop.f32.mrf.mxu0 }
 0x157   :  { %v1275_v54 = vpop.f32.mrf.mxu1  ;;  %v1274_v56 = vadd.f32 %v1273_v49, %v1221_v52  ;;  %v1223_v57 = vadd.f32 %v1222_v53, %v1170_v50  ;;  %v1292_v61 = vmax.f32 %v1272_v51, 0.0 }
 0x158   :  { %v1224_v59 = vpop.f32.mrf.mxu0 }
 0x159   :  { %v1277_v60 = vpop.f32.mrf.mxu1  ;;  %v1293_v63 = vmax.f32 %v1274_v56, 0.0  ;;  %v1276_v43 = vadd.f32 %v1275_v54, %v1223_v57  ;;  %v1225_v0 = vadd.f32 %v1224_v59, %v1172_v55 }
 0x15a   :  { %v1228_v2 = vpop.f32.mrf.mxu0 }
 0x15b   :  { %v1281_v3 = vpop.f32.mrf.mxu1  ;;  %v1533_v6 = vpack.c.bf16 %v1293_v63, %v1292_v61  ;;  %v1278_v8 = vadd.f32 %v1277_v60, %v1225_v0  ;;  %v1229_v9 = vadd.f32 %v1228_v2, %v1176_v58  ;;  %v1296_v14 = vmax.f32 %v1276_v43, 0.0 }
 0x15c   :  { %v1230_v46 = vpop.f32.mrf.mxu0 }
 0x15d   :  { %v1283_v11 = vpop.f32.mrf.mxu1  ;;  %1355 = vst [vmem:[%s2369_s3 + $0x8] sm:$0xff] %v1533_v6  ;;  %v1297_v15 = vmax.f32 %v1278_v8, 0.0  ;;  %v1282_v16 = vadd.f32 %v1281_v3, %v1229_v9  ;;  %v1231_v17 = vadd.f32 %v1230_v46, %v1178_v4 }
 0x15e   :  { %v1232_v20 = vpop.f32.mrf.mxu0 }
 0x15f   :  { %v1285_v21 = vpop.f32.mrf.mxu1  ;;  %v1535_v37 = vpack.c.bf16 %v1297_v15, %v1296_v14  ;;  %v1284_v23 = vadd.f32 %v1283_v11, %v1231_v17  ;;  %v1233_v24 = vadd.f32 %v1232_v20, %v1180_v10  ;;  %v1300_v26 = vmax.f32 %v1282_v16, 0.0 }
 0x160   :  { %v1234_v25 = vpop.f32.mrf.mxu0 }
 0x161   :  { %1357 = vst [vmem:[%s2369_s3 + $0x18] sm:$0xff] %v1535_v37  ;;  %v1301_v27 = vmax.f32 %v1284_v23, 0.0  ;;  %v1286_v29 = vadd.f32 %v1285_v21, %v1233_v24  ;;  %v1235_v30 = vadd.f32 %v1234_v25, %v1182_v22  ;;  %v1287_v31 = vpop.f32.mrf.mxu1 }
 0x163   :  { %v1537_v32 = vpack.c.bf16 %v1301_v27, %v1300_v26  ;;  %v1288_v5 = vadd.f32 %v1287_v31, %v1235_v30  ;;  %v1304_v62 = vmax.f32 %v1286_v29, 0.0 }
 0x165   :  { %1359 = vst [vmem:[%s2369_s3 + $0x28] sm:$0xff] %v1537_v32  ;;  %v1305_v33 = vmax.f32 %v1288_v5, 0.0 }
 0x167   :  { %v1539_v34 = vpack.c.bf16 %v1305_v33, %v1304_v62 }
 0x169   :  { %1361 = vst [vmem:[%s2369_s3 + $0x38] sm:$0xff] %v1539_v34 }

// kernel: subnet_apply.45
= control target key start
LH: loop header
LB: loop body
LE: loop exit
PB: predicated region body
PF: predicated region fallthrough
CT: control target
= control target key end

     0   :  { %v1352_v1 = vmov 0   ;;  %s1661_s1 = inlined_call_operand.vmem [shape: bf16[1152,128], index: 1, kind: input, shape index: {}]   ;;  %s1662_s0 = inlined_call_operand.vmem [shape: bf16[32,1152], index: 0, kind: input, shape index: {}]   ;;  %s1663_s2 = inlined_call_operand.vmem [shape: f32[32,1], index: 2, kind: input, shape index: {}]   ;;  %s1664_s3 = inlined_call_operand.vmem [shape: bf16[32,128], index: 3, kind: output, shape index: {}]  }
   0x1   :  { %v1254_v0 = vld [vmem:[%s1661_s1 + $0x78] sm:$0xff]   ;;  %1252 = vset.pattern.permute.xlu0 %v1352_v1  ;;  %1253 = vset.pattern.permute.xlu1 %v1352_v1  ;;  %v1258_v5 = vld [vmem:[%s1661_s1 + $0x70] sm:$0xff]   ;;  %v1262_v9 = vld [vmem:[%s1661_s1 + $0x68] sm:$0xff]  }
   0x2   :  { %v1255_v2 = vld [vmem:[%s1661_s1 + $0x38] sm:$0xff]   ;;  %1109 = vmatprep.subr.bf16.mxu0 %v1254_v0  ;;  %v1259_v6 = vld [vmem:[%s1661_s1 + $0x30] sm:$0xff]   ;;  %v1263_v10 = vld [vmem:[%s1661_s1 + $0x28] sm:$0xff]  }
   0x3   :  { %v1256_v3 = vld [vmem:[%s1661_s1 + $0xf8] sm:$0xff]   ;;  %1110 = vmatpush3.bf16.msra.mxu0 %v1255_v2  ;;  %v1260_v7 = vld [vmem:[%s1661_s1 + $0xf0] sm:$0xff]   ;;  %v1264_v11 = vld [vmem:[%s1661_s1 + $0xe8] sm:$0xff]  }
   0x4   :  { %v1257_v4 = vld [vmem:[%s1661_s1 + $0xb8] sm:$0xff]   ;;  %1137 = vmatprep.subr.bf16.mxu1 %v1256_v3  ;;  %1111 = vmatprep.subr.bf16.mxu0 %v1258_v5  ;;  %v1261_v8 = vld [vmem:[%s1661_s1 + $0xb0] sm:$0xff]   ;;  %v1265_v12 = vld [vmem:[%s1661_s1 + $0xa8] sm:$0xff]  }
   0x5   :  { %1138 = vmatpush3.bf16.msra.mxu1 %v1257_v4  ;;  %v1266_v13 = vld [vmem:[%s1661_s1 + $0x60] sm:$0xff]   ;;  %v1270_v17 = vld [vmem:[%s1661_s1 + $0x58] sm:$0xff]   ;;  %v1274_v21 = vld [vmem:[%s1661_s1 + $0x50] sm:$0xff]  }
   0x6   :  { %1139 = vmatprep.subr.bf16.mxu1 %v1260_v7  ;;  %v1267_v14 = vld [vmem:[%s1661_s1 + $0x20] sm:$0xff]   ;;  %v1271_v18 = vld [vmem:[%s1661_s1 + $0x18] sm:$0xff]   ;;  %v1275_v22 = vld [vmem:[%s1661_s1 + $0x10] sm:$0xff]  }
   0x7   :  { %1112 = vmatpush3.bf16.msra.mxu0 %v1259_v6  ;;  %v1268_v15 = vld [vmem:[%s1661_s1 + $0xe0] sm:$0xff]   ;;  %v1272_v19 = vld [vmem:[%s1661_s1 + $0xd8] sm:$0xff]   ;;  %v1276_v23 = vld [vmem:[%s1661_s1 + $0xd0] sm:$0xff]  }
   0x8   :  { %1113 = vmatprep.subr.bf16.mxu0 %v1262_v9  ;;  %v1269_v16 = vld [vmem:[%s1661_s1 + $0xa0] sm:$0xff]   ;;  %v1273_v20 = vld [vmem:[%s1661_s1 + $0x98] sm:$0xff]   ;;  %v1277_v24 = vld [vmem:[%s1661_s1 + $0x90] sm:$0xff]  }
   0x9   :  { %1140 = vmatpush3.bf16.msra.mxu1 %v1261_v8  ;;  %v1278_v25 = vld [vmem:[%s1661_s1 + $0x48] sm:$0xff]   ;;  %v1282_v29 = vld [vmem:[%s1661_s1 + $0x40] sm:$0xff]   ;;  %v1289_v35 = vld [vmem:[%s1661_s1 + $0x178] sm:$0xff]  }
   0xa   :  { %1141 = vmatprep.subr.bf16.mxu1 %v1264_v11  ;;  %v1279_v26 = vld [vmem:[%s1661_s1 + $0x8] sm:$0xff]   ;;  %v1283_v30 = vld [vmem:[%s1661_s1] sm:$0xff]   ;;  %v1293_v38 = vld [vmem:[%s1661_s1 + $0x138] sm:$0xff]  }
   0xb   :  { %1114 = vmatpush3.bf16.msra.mxu0 %v1263_v10  ;;  %v1280_v27 = vld [vmem:[%s1661_s1 + $0xc8] sm:$0xff]   ;;  %v1284_v31 = vld [vmem:[%s1661_s1 + $0xc0] sm:$0xff]   ;;  %v1294_v39 = vld [vmem:[%s1661_s1 + $0x1f8] sm:$0xff]  }
   0xc   :  { %1115 = vmatprep.subr.bf16.mxu0 %v1266_v13  ;;  %v1281_v28 = vld [vmem:[%s1661_s1 + $0x88] sm:$0xff]   ;;  %v1285_v32 = vld [vmem:[%s1662_s0] ss:$36 sps:$4 sm:$0xff]   ;;  %v1295_v40 = vld [vmem:[%s1661_s1 + $0x1b8] sm:$0xff]  }
   0xd   :  { %1142 = vmatpush3.bf16.msra.mxu1 %v1265_v12  ;;  %v1287_v33 = vld [vmem:[%s1662_s0 + $0x4] ss:$36 sps:$4 sm:$0xff]   ;;  %v1292_v37 = vld [vmem:[%s1662_s0 + $0xc] ss:$36 sps:$4 sm:$0xff]   ;;  %v1308_v53 = vld [vmem:[%s1661_s1 + $0x158] sm:$0xff]  }
   0xe   :  { %1143 = vmatprep.subr.bf16.mxu1 %v1268_v15  ;;  %v1288_v34 = vld [vmem:[%s1661_s1 + $0x80] sm:$0xff]   ;;  %759 = vmatprep.mubr.bf16.mxu0 %v1287_v33  ;;  %v1290_v36 = vld [vmem:[%s1662_s0 + $0x8] ss:$36 sps:$4 sm:$0xff]   ;;  %v1296_v41 = vld [vmem:[%s1661_s1 + $0x170] sm:$0xff]  }
   0xf   :  { %1116 = vmatpush3.bf16.msra.mxu0 %v1267_v14  ;;  %808 = vmatprep.mubr.bf16.mxu1 %v1292_v37  ;;  %v1297_v42 = vld [vmem:[%s1661_s1 + $0x130] sm:$0xff]   ;;  %v1300_v45 = vld [vmem:[%s1661_s1 + $0x168] sm:$0xff]   ;;  %v1304_v49 = vld [vmem:[%s1661_s1 + $0x160] sm:$0xff]  }
  0x10   :  { %1117 = vmatprep.subr.bf16.mxu0 %v1270_v17  ;;  %v1298_v43 = vld [vmem:[%s1661_s1 + $0x1f0] sm:$0xff]   ;;  %v1301_v46 = vld [vmem:[%s1661_s1 + $0x128] sm:$0xff]   ;;  %v1305_v50 = vld [vmem:[%s1661_s1 + $0x120] sm:$0xff]  }
  0x11   :  { %1144 = vmatpush3.bf16.msra.mxu1 %v1269_v16  ;;  %v1299_v44 = vld [vmem:[%s1661_s1 + $0x1b0] sm:$0xff]   ;;  %v1302_v47 = vld [vmem:[%s1661_s1 + $0x1e8] sm:$0xff]   ;;  %v1306_v51 = vld [vmem:[%s1661_s1 + $0x1e0] sm:$0xff]  }
  0x12   :  { %1145 = vmatprep.subr.bf16.mxu1 %v1272_v19  ;;  %v1303_v48 = vld [vmem:[%s1661_s1 + $0x1a8] sm:$0xff]   ;;  %v1307_v52 = vld [vmem:[%s1661_s1 + $0x1a0] sm:$0xff]   ;;  %v1309_v54 = vld [vmem:[%s1661_s1 + $0x118] sm:$0xff]  }
  0x13   :  { %1118 = vmatpush3.bf16.msra.mxu0 %v1271_v18  ;;  %v1310_v55 = vld [vmem:[%s1662_s0 + $0x4c] ss:$36 sps:$4 sm:$0xff]   ;;  %v1312_v56 = vld [vmem:[%s1661_s1 + $0x1d8] sm:$0xff]   ;;  %v1326_v5 = vld [vmem:[%s1661_s1 + $0x140] sm:$0xff]  }
  0x14   :  { %1119 = vmatprep.subr.bf16.mxu0 %v1274_v21  ;;  %v1313_v57 = vld [vmem:[%s1662_s0 + $0x48] ss:$36 sps:$4 sm:$0xff]   ;;  %v1314_v58 = vld [vmem:[%s1661_s1 + $0x198] sm:$0xff]   ;;  %v1317_v60 = vld [vmem:[%s1661_s1 + $0x150] sm:$0xff]  }
  0x15   :  { %1146 = vmatpush3.bf16.msra.mxu1 %v1273_v20  ;;  %v1315_v59 = vld [vmem:[%s1662_s0 + $0x54] ss:$36 sps:$4 sm:$0xff]   ;;  %v1322_v1 = vld [vmem:[%s1661_s1 + $0x148] sm:$0xff]   ;;  %v1327_v6 = vld [vmem:[%s1661_s1 + $0x100] sm:$0xff]  }
  0x16   :  { %1147 = vmatprep.subr.bf16.mxu1 %v1276_v23  ;;  %v1318_v61 = vld [vmem:[%s1662_s0 + $0x50] ss:$36 sps:$4 sm:$0xff]   ;;  %v1323_v2 = vld [vmem:[%s1661_s1 + $0x108] sm:$0xff]   ;;  %v1328_v7 = vld [vmem:[%s1661_s1 + $0x1c0] sm:$0xff]  }
  0x17   :  { %1120 = vmatpush3.bf16.msra.mxu0 %v1275_v22  ;;  %v1319_v62 = vld [vmem:[%s1661_s1 + $0x110] sm:$0xff]   ;;  %v1324_v3 = vld [vmem:[%s1661_s1 + $0x1c8] sm:$0xff]   ;;  %v1332_v10 = vld [vmem:[%s1661_s1 + $0x180] sm:$0xff]  }
  0x18   :  { %1121 = vmatprep.subr.bf16.mxu0 %v1278_v25  ;;  %v1320_v63 = vld [vmem:[%s1661_s1 + $0x1d0] sm:$0xff]   ;;  %v1325_v4 = vld [vmem:[%s1661_s1 + $0x188] sm:$0xff]   ;;  %v1333_v11 = vld [vmem:[%s1661_s1 + $0x238] sm:$0xff]  }
  0x19   :  { %1148 = vmatpush3.bf16.msra.mxu1 %v1277_v24  ;;  %v1321_v0 = vld [vmem:[%s1661_s1 + $0x190] sm:$0xff]   ;;  %v1334_v12 = vld [vmem:[%s1662_s0 + $0x18] ss:$36 sps:$4 sm:$0xff]   ;;  %v1341_v17 = vld [vmem:[%s1661_s1 + $0x228] sm:$0xff]  }
  0x1a   :  { %1149 = vmatprep.subr.bf16.mxu1 %v1280_v27  ;;  %v1329_v8 = vld [vmem:[%s1662_s0 + $0x10] ss:$36 sps:$4 sm:$0xff]   ;;  %v1336_v13 = vld [vmem:[%s1662_s0 + $0x1c] ss:$36 sps:$4 sm:$0xff]   ;;  %v1342_v18 = vld [vmem:[%s1662_s0 + $0x64] ss:$36 sps:$4 sm:$0xff]  }
  0x1b   :  { %1122 = vmatpush3.bf16.msra.mxu0 %v1279_v26  ;;  %v1331_v9 = vld [vmem:[%s1662_s0 + $0x14] ss:$36 sps:$4 sm:$0xff]   ;;  %v1338_v15 = vld [vmem:[%s1662_s0 + $0x5c] ss:$36 sps:$4 sm:$0xff]   ;;  %v180_v25 = vld [vmem:[%s1663_s2 + $0x8] sm:$0xff] }
  0x1c   :  { %1123 = vmatprep.subr.bf16.mxu0 %v1282_v29  ;;  %v1337_v14 = vld [vmem:[%s1661_s1 + $0x230] sm:$0xff]   ;;  %v1340_v16 = vld [vmem:[%s1662_s0 + $0x58] ss:$36 sps:$4 sm:$0xff]   ;;  %v1344_v19 = vld [vmem:[%s1662_s0 + $0x60] ss:$36 sps:$4 sm:$0xff]  }
  0x1d   :  { %1150 = vmatpush3.bf16.msra.mxu1 %v1281_v28  ;;  %v1345_v20 = vld [vmem:[%s1661_s1 + $0x220] sm:$0xff]   ;;  %v1346_v21 = vld [vmem:[%s1661_s1 + $0x218] sm:$0xff]   ;;  %v181_v24 = vld [vmem:[%s1663_s2 + $0x10] sm:$0xff] }
  0x1e   :  { %1151 = vmatprep.subr.bf16.mxu1 %v1284_v31  ;;  %v1350_v22 = vld [vmem:[%s1662_s0 + $0x20] ss:$36 sps:$4 sm:$0xff]   ;;  %195 = vperm.xlu1 %1253, %v181_v24   ;;  %v1347_v26 = vld [vmem:[%s1661_s1 + $0x210] sm:$0xff]   ;;  %v182_v27 = vld [vmem:[%s1663_s2 + $0x18] sm:$0xff] }
  0x1f   :  { %1124 = vmatpush3.bf16.msra.mxu0 %v1283_v30  ;;  %v179_v23 = vld [vmem:[%s1663_s2] sm:$0xff]  ;;  %v1348_v28 = vld [vmem:[%s1661_s1 + $0x208] sm:$0xff]  }
  0x20   :  { %1165 = vmatprep.subr.bf16.mxu0 %v1289_v35  ;;  %185 = vperm.xlu0 %1252, %v179_v23   ;;  %v1349_v29 = vld [vmem:[%s1661_s1 + $0x200] sm:$0xff]   ;;  %v1351_v30 = vld [vmem:[%s1662_s0 + $0x68] ss:$36 sps:$4 sm:$0xff]  }
  0x21   :  { %1152 = vmatpush3.bf16.msra.mxu1 %v1288_v34 }
  0x22   :  { %760 = vmatmul.mubr.bf16.vlgmr.msra.gmra.mxu0 %v1285_v32  ;;  %1193 = vmatprep.subr.bf16.mxu1 %v1294_v39 }
  0x23   :  { %1166 = vmatpush3.bf16.msra.mxu0 %v1293_v38  ;;  %767 = vmatprep.mubr.bf16.mxu0 %v1310_v55 }
  0x24   :  { %809 = vmatmul.mubr.bf16.vlgmr.msra.gmra.mxu1 %v1290_v36  ;;  %1167 = vmatprep.subr.bf16.mxu0 %v1296_v41 }
  0x25   :  { %1194 = vmatpush3.bf16.msra.mxu1 %v1295_v40  ;;  %816 = vmatprep.mubr.bf16.mxu1 %v1315_v59 }
  0x26   :  { %1195 = vmatprep.subr.bf16.mxu1 %v1298_v43  ;;  %190 = vperm.xlu0 %1252, %v180_v25  }
  0x27   :  { %1168 = vmatpush3.bf16.msra.mxu0 %v1297_v42  ;;  %200 = vperm.xlu1 %1253, %v182_v27  }
  0x28   :  { %1169 = vmatprep.subr.bf16.mxu0 %v1300_v45 }
  0x29   :  { %1196 = vmatpush3.bf16.msra.mxu1 %v1299_v44 }
  0x2a   :  { %1197 = vmatprep.subr.bf16.mxu1 %v1302_v47  ;;  %768 = vmatmul.mubr.bf16.gmra.mxu0 %v1313_v57 }
  0x2b   :  { %1170 = vmatpush3.bf16.msra.mxu0 %v1301_v46  ;;  %857 = vmatprep.mubr.bf16.mxu0 %v1331_v9 }
  0x2c   :  { %1171 = vmatprep.subr.bf16.mxu0 %v1304_v49  ;;  %817 = vmatmul.mubr.bf16.gmra.mxu1 %v1318_v61 }
  0x2d   :  { %1198 = vmatpush3.bf16.msra.mxu1 %v1303_v48  ;;  %906 = vmatprep.mubr.bf16.mxu1 %v1336_v13 }
  0x2e   :  { %1199 = vmatprep.subr.bf16.mxu1 %v1306_v51 }
  0x2f   :  { %1172 = vmatpush3.bf16.msra.mxu0 %v1305_v50 }
  0x30   :  { %1173 = vmatprep.subr.bf16.mxu0 %v1308_v53 }
  0x31   :  { %1200 = vmatpush3.bf16.msra.mxu1 %v1307_v52 }
  0x32   :  { %1201 = vmatprep.subr.bf16.mxu1 %v1312_v56 }
  0x33   :  { %1174 = vmatpush3.bf16.msra.mxu0 %v1309_v54 }
  0x34   :  { %1175 = vmatprep.subr.bf16.mxu0 %v1317_v60 }
  0x35   :  { %1202 = vmatpush3.bf16.msra.mxu1 %v1314_v58 }
  0x36   :  { %1203 = vmatprep.subr.bf16.mxu1 %v1320_v63 }
  0x37   :  { %1176 = vmatpush3.bf16.msra.mxu0 %v1319_v62 }
  0x38   :  { %1177 = vmatprep.subr.bf16.mxu0 %v1322_v1 }
  0x39   :  { %1204 = vmatpush3.bf16.msra.mxu1 %v1321_v0 }
  0x3a   :  { %1205 = vmatprep.subr.bf16.mxu1 %v1324_v3 }
  0x3b   :  { %1178 = vmatpush3.bf16.msra.mxu0 %v1323_v2 }
  0x3c   :  { %1179 = vmatprep.subr.bf16.mxu0 %v1326_v5 }
  0x3d   :  { %1206 = vmatpush3.bf16.msra.mxu1 %v1325_v4 }
  0x3e   :  { %1207 = vmatprep.subr.bf16.mxu1 %v1328_v7 }
  0x3f   :  { %1180 = vmatpush3.bf16.msra.mxu0 %v1327_v6 }
  0x40   :  { %1231 = vmatprep.subr.bf16.mxu0 %v1333_v11 }
  0x41   :  { %1208 = vmatpush3.bf16.msra.mxu1 %v1332_v10 }
  0x42   :  { %858 = vmatmul.mubr.bf16.vlgmr.msra.gmra.mxu0 %v1329_v8 }
  0x43   :  { %1232 = vmatpush3.bf16.msra.mxu0 %v1333_v11  ;;  %865 = vmatprep.mubr.bf16.mxu0 %v1338_v15 }
  0x44   :  { %907 = vmatmul.mubr.bf16.vlgmr.msra.gmra.mxu1 %v1334_v12  ;;  %1233 = vmatprep.subr.bf16.mxu0 %v1337_v14 }
  0x45   :  { %914 = vmatprep.mubr.bf16.mxu1 %v1342_v18 }
  0x47   :  { %1234 = vmatpush3.bf16.msra.mxu0 %v1337_v14 }
  0x48   :  { %1235 = vmatprep.subr.bf16.mxu0 %v1341_v17 }
  0x4a   :  { %866 = vmatmul.mubr.bf16.gmra.mxu0 %v1340_v16 }
  0x4b   :  { %1236 = vmatpush3.bf16.msra.mxu0 %v1341_v17  ;;  %1247 = vmatprep.mubr.bf16.mxu0 %v1350_v22 }
  0x4c   :  { %915 = vmatmul.mubr.bf16.gmra.mxu1 %v1344_v19  ;;  %1237 = vmatprep.subr.bf16.mxu0 %v1345_v20 }
  0x4f   :  { %1238 = vmatpush3.bf16.msra.mxu0 %v1345_v20 }
  0x50   :  { %1239 = vmatprep.subr.bf16.mxu0 %v1346_v21 }
  0x53   :  { %1240 = vmatpush3.bf16.msra.mxu0 %v1346_v21 }
  0x54   :  { %1241 = vmatprep.subr.bf16.mxu0 %v1347_v26 }
  0x57   :  { %1242 = vmatpush3.bf16.msra.mxu0 %v1347_v26 }
  0x58   :  { %1243 = vmatprep.subr.bf16.mxu0 %v1348_v28 }
  0x5b   :  { %1244 = vmatpush3.bf16.msra.mxu0 %v1348_v28 }
  0x5c   :  { %1245 = vmatprep.subr.bf16.mxu0 %v1349_v29 }
  0x5f   :  { %1246 = vmatpush3.bf16.msra.mxu0 %v1349_v29 }
  0x62   :  { %1248 = vmatmul.mubr.bf16.vlgmr.msra.gmra.mxu0 %v1351_v30 }
  0x99   :  { %v196_v56 = vpop.permute.xlu1 %195 }
  0x9b   :  { %v186_v59 = vpop.permute.xlu0 %185 }
  0xa1   :  { %v191_v3 = vpop.permute.xlu0 %190 }
  0xa2   :  { %v201_v2 = vpop.permute.xlu1 %200 }
  0xe2   :  { %v1125_v31 = vpop.f32.mrf.mxu0 }
  0xe4   :  { %v1153_v32 = vpop.f32.mrf.mxu1  ;;  %v1126_v33 = vpop.f32.mrf.mxu0 }
  0xe5   :  { %v1127_v61 = vadd.f32 %v1126_v33, %v1125_v31 }
  0xe6   :  { %v1154_v34 = vpop.f32.mrf.mxu1  ;;  %v1128_v35 = vpop.f32.mrf.mxu0 }
  0xe7   :  { %v762_v6 = vadd.f32 %v1127_v61, %v186_v59  ;;  %v1155_v7 = vadd.f32 %v1154_v34, %v1153_v32 }
  0xe8   :  { %v1156_v36 = vpop.f32.mrf.mxu1  ;;  %v1129_v37 = vpop.f32.mrf.mxu0 }
  0xe9   :  { %v1130_v1 = vadd.f32 %v1129_v37, %v1128_v35  ;;  %v811_v18 = vadd.f32 %v1155_v7, %v762_v6 }
  0xea   :  { %v1131_v38 = vpop.f32.mrf.mxu0  ;;  %v1157_v39 = vpop.f32.mrf.mxu1 }
  0xeb   :  { %v765_v13 = vadd.f32 %v1130_v1, %v191_v3  ;;  %v1158_v14 = vadd.f32 %v1157_v39, %v1156_v36 }
  0xec   :  { %v1159_v40 = vpop.f32.mrf.mxu1  ;;  %v1132_v41 = vpop.f32.mrf.mxu0 }
  0xed   :  { %v1133_v60 = vadd.f32 %v1132_v41, %v1131_v38  ;;  %v814_v24 = vadd.f32 %v1158_v14, %v765_v13 }
  0xee   :  { %v1160_v42 = vpop.f32.mrf.mxu1  ;;  %v1134_v43 = vpop.f32.mrf.mxu0 }
  0xef   :  { %v770_v4 = vadd.f32 %v1133_v60, %v196_v56  ;;  %v1161_v5 = vadd.f32 %v1160_v42, %v1159_v40 }
  0xf0   :  { %v1162_v44 = vpop.f32.mrf.mxu1  ;;  %v1135_v45 = vpop.f32.mrf.mxu0 }
  0xf1   :  { %v1136_v0 = vadd.f32 %v1135_v45, %v1134_v43  ;;  %v819_v15 = vadd.f32 %v1161_v5, %v770_v4 }
  0xf2   :  { %v1163_v47 = vpop.f32.mrf.mxu1 }
  0xf3   :  { %v773_v10 = vadd.f32 %v1136_v0, %v201_v2  ;;  %v1164_v11 = vadd.f32 %v1163_v47, %v1162_v44 }
  0xf5   :  { %v822_v20 = vadd.f32 %v1164_v11, %v773_v10 }
 0x102   :  { %v1181_v46 = vpop.f32.mrf.mxu0 }
 0x104   :  { %v1182_v48 = vpop.f32.mrf.mxu0  ;;  %v1209_v49 = vpop.f32.mrf.mxu1 }
 0x105   :  { %v1183_v16 = vadd.f32 %v1182_v48, %v1181_v46 }
 0x106   :  { %v1184_v50 = vpop.f32.mrf.mxu0  ;;  %v1210_v51 = vpop.f32.mrf.mxu1 }
 0x107   :  { %v860_v25 = vadd.f32 %v1183_v16, %v811_v18  ;;  %v1211_v26 = vadd.f32 %v1210_v51, %v1209_v49 }
 0x108   :  { %v1185_v52 = vpop.f32.mrf.mxu0  ;;  %v1212_v53 = vpop.f32.mrf.mxu1 }
 0x109   :  { %v1186_v21 = vadd.f32 %v1185_v52, %v1184_v50  ;;  %v909_v35 = vadd.f32 %v1211_v26, %v860_v25 }
 0x10a   :  { %v1187_v54 = vpop.f32.mrf.mxu0  ;;  %v1213_v55 = vpop.f32.mrf.mxu1 }
 0x10b   :  { %v863_v30 = vadd.f32 %v1186_v21, %v814_v24  ;;  %v1214_v31 = vadd.f32 %v1213_v55, %v1212_v53 }
 0x10c   :  { %v1188_v57 = vpop.f32.mrf.mxu0  ;;  %v1215_v58 = vpop.f32.mrf.mxu1 }
 0x10d   :  { %v1189_v12 = vadd.f32 %v1188_v57, %v1187_v54  ;;  %v912_v40 = vadd.f32 %v1214_v31, %v863_v30 }
 0x10e   :  { %v1190_v62 = vpop.f32.mrf.mxu0  ;;  %v1216_v63 = vpop.f32.mrf.mxu1 }
 0x10f   :  { %v868_v22 = vadd.f32 %v1189_v12, %v819_v15  ;;  %v1217_v23 = vadd.f32 %v1216_v63, %v1215_v58 }
 0x110   :  { %v1191_v8 = vpop.f32.mrf.mxu0  ;;  %v1218_v9 = vpop.f32.mrf.mxu1 }
 0x111   :  { %v1192_v17 = vadd.f32 %v1191_v8, %v1190_v62  ;;  %v917_v32 = vadd.f32 %v1217_v23, %v868_v22 }
 0x112   :  { %v1219_v19 = vpop.f32.mrf.mxu1 }
 0x113   :  { %v871_v27 = vadd.f32 %v1192_v17, %v822_v20  ;;  %v1220_v28 = vadd.f32 %v1219_v19, %v1218_v9 }
 0x115   :  { %v920_v36 = vadd.f32 %v1220_v28, %v871_v27 }
 0x122   :  { %v1249_v29 = vpop.f32.mrf.mxu0 }
 0x123   :  { %v966_v34 = vadd.f32 %v1249_v29, %v917_v32 }
 0x124   :  { %v957_v33 = vpop.f32.mrf.mxu0 }
 0x125   :  { %v958_v38 = vadd.f32 %v957_v33, %v909_v35  ;;  %v974_v42 = vmax.f32 %v966_v34, 0.0 }
 0x126   :  { %v1250_v37 = vpop.f32.mrf.mxu0 }
 0x127   :  { %v969_v39 = vadd.f32 %v1250_v37, %v920_v36  ;;  %v972_v45 = vmax.f32 %v958_v38, 0.0 }
 0x128   :  { %v960_v41 = vpop.f32.mrf.mxu0 }
 0x129   :  { %v975_v43 = vmax.f32 %v969_v39, 0.0  ;;  %v961_v44 = vadd.f32 %v960_v41, %v912_v40 }
 0x12b   :  { %v1106_v46 = vpack.c.bf16 %v975_v43, %v974_v42  ;;  %v973_v47 = vmax.f32 %v961_v44, 0.0 }
 0x12d   :  { %1108 = vst [vmem:[%s1664_s3 + $0x8] sm:$0xff] %v1106_v46   ;;  %v1101_v48 = vpack.c.bf16 %v973_v47, %v972_v45 }
 0x12f   :  { %1102 = vst [vmem:[%s1664_s3] sm:$0xff] %v1101_v48  }

// kernel: mul.120
= control target key start
LH: loop header
LB: loop body
LE: loop exit
PB: predicated region body
PF: predicated region fallthrough
CT: control target
= control target key end

     0   :  { %v45_v3 = vmov 0.0   ;;  %s83_s0 = inlined_call_operand.vmem [shape: bf16[32,2], index: 0, kind: input, shape index: {}]   ;;  %s84_s1 = inlined_call_operand.vmem [shape: bf16[32,2,4,4], index: 1, kind: output, shape index: {}]  }
   0x1   :  { %v4_v0 = vld [vmem:[%s83_s0] ss:$0 sm:$0xff] }
   0x2   :  { %v5_v1 = vunpack.i.l.bf16 %v4_v0  ;;  %v14_v2 = vunpack.i.h.bf16 %v4_v0 }
   0x4   :  { %v9_v4 = vpack.c.bf16 %v45_v3, %v5_v1  ;;  %v17_v5 = vpack.c.bf16 %v45_v3, %v14_v2 }
   0x6   :  { %10 = vst [vmem:[%s84_s1] sm:$0x3] %v9_v4  ;;  %37 = vst [vmem:[%s84_s1 + $0x8] sm:$0x3] %v17_v5 }
   0x7   :  { %38 = vst [vmem:[%s84_s1 + $0x2] sm:$0x3] %v9_v4  ;;  %39 = vst [vmem:[%s84_s1 + $0xa] sm:$0x3] %v17_v5 }
   0x8   :  { %40 = vst [vmem:[%s84_s1 + $0x4] sm:$0x3] %v9_v4  ;;  %41 = vst [vmem:[%s84_s1 + $0xc] sm:$0x3] %v17_v5 }
   0x9   :  { %42 = vst [vmem:[%s84_s1 + $0x6] sm:$0x3] %v9_v4  ;;  %43 = vst [vmem:[%s84_s1 + $0xe] sm:$0x3] %v17_v5 }

// kernel: subnet_apply.46
= control target key start
LH: loop header
LB: loop body
LE: loop exit
PB: predicated region body
PF: predicated region fallthrough
CT: control target
= control target key end

     0   :  { %v1342_v1 = vmov 0   ;;  %vm992_vm0 = vcmask 257024   ;;  %s1661_s1 = inlined_call_operand.vmem [shape: bf16[1152,32], index: 1, kind: input, shape index: {}]   ;;  %s1662_s0 = inlined_call_operand.vmem [shape: bf16[32,1152], index: 0, kind: input, shape index: {}]   ;;  %s1663_s2 = inlined_call_operand.vmem [shape: f32[32,1], index: 2, kind: input, shape index: {}]   ;;  %s1664_s3 = inlined_call_operand.vmem [shape: bf16[32,32], index: 3, kind: output, shape index: {}]  }
   0x1   :  { %v1244_v0 = vld [vmem:[%s1661_s1 + $0x78] sm:$0xff]   ;;  %1242 = vset.pattern.permute.xlu0 %v1342_v1  ;;  %1243 = vset.pattern.permute.xlu1 %v1342_v1  ;;  %v1248_v5 = vld [vmem:[%s1661_s1 + $0x70] sm:$0xff]   ;;  %v1252_v9 = vld [vmem:[%s1661_s1 + $0x68] sm:$0xff]  }
   0x2   :  { %v1245_v2 = vld [vmem:[%s1661_s1 + $0x38] sm:$0xff]   ;;  %1099 = vmatprep.subr.bf16.mxu0 %v1244_v0  ;;  %v1249_v6 = vld [vmem:[%s1661_s1 + $0x30] sm:$0xff]   ;;  %v1253_v10 = vld [vmem:[%s1661_s1 + $0x28] sm:$0xff]  }
   0x3   :  { %v1246_v3 = vld [vmem:[%s1661_s1 + $0xf8] sm:$0xff]   ;;  %1100 = vmatpush3.bf16.msra.mxu0 %v1245_v2  ;;  %v1250_v7 = vld [vmem:[%s1661_s1 + $0xf0] sm:$0xff]   ;;  %v1254_v11 = vld [vmem:[%s1661_s1 + $0xe8] sm:$0xff]  }
   0x4   :  { %v1247_v4 = vld [vmem:[%s1661_s1 + $0xb8] sm:$0xff]   ;;  %1127 = vmatprep.subr.bf16.mxu1 %v1246_v3  ;;  %1101 = vmatprep.subr.bf16.mxu0 %v1248_v5  ;;  %v1251_v8 = vld [vmem:[%s1661_s1 + $0xb0] sm:$0xff]   ;;  %v1255_v12 = vld [vmem:[%s1661_s1 + $0xa8] sm:$0xff]  }
   0x5   :  { %1128 = vmatpush3.bf16.msra.mxu1 %v1247_v4  ;;  %v1256_v13 = vld [vmem:[%s1661_s1 + $0x60] sm:$0xff]   ;;  %v1260_v17 = vld [vmem:[%s1661_s1 + $0x58] sm:$0xff]   ;;  %v1264_v21 = vld [vmem:[%s1661_s1 + $0x50] sm:$0xff]  }
   0x6   :  { %1129 = vmatprep.subr.bf16.mxu1 %v1250_v7  ;;  %v1257_v14 = vld [vmem:[%s1661_s1 + $0x20] sm:$0xff]   ;;  %v1261_v18 = vld [vmem:[%s1661_s1 + $0x18] sm:$0xff]   ;;  %v1265_v22 = vld [vmem:[%s1661_s1 + $0x10] sm:$0xff]  }
   0x7   :  { %1102 = vmatpush3.bf16.msra.mxu0 %v1249_v6  ;;  %v1258_v15 = vld [vmem:[%s1661_s1 + $0xe0] sm:$0xff]   ;;  %v1262_v19 = vld [vmem:[%s1661_s1 + $0xd8] sm:$0xff]   ;;  %v1266_v23 = vld [vmem:[%s1661_s1 + $0xd0] sm:$0xff]  }
   0x8   :  { %1103 = vmatprep.subr.bf16.mxu0 %v1252_v9  ;;  %v1259_v16 = vld [vmem:[%s1661_s1 + $0xa0] sm:$0xff]   ;;  %v1263_v20 = vld [vmem:[%s1661_s1 + $0x98] sm:$0xff]   ;;  %v1267_v24 = vld [vmem:[%s1661_s1 + $0x90] sm:$0xff]  }
   0x9   :  { %1130 = vmatpush3.bf16.msra.mxu1 %v1251_v8  ;;  %v1268_v25 = vld [vmem:[%s1661_s1 + $0x48] sm:$0xff]   ;;  %v1272_v29 = vld [vmem:[%s1661_s1 + $0x40] sm:$0xff]   ;;  %v1279_v35 = vld [vmem:[%s1661_s1 + $0x178] sm:$0xff]  }
   0xa   :  { %1131 = vmatprep.subr.bf16.mxu1 %v1254_v11  ;;  %v1269_v26 = vld [vmem:[%s1661_s1 + $0x8] sm:$0xff]   ;;  %v1273_v30 = vld [vmem:[%s1661_s1] sm:$0xff]   ;;  %v1283_v38 = vld [vmem:[%s1661_s1 + $0x138] sm:$0xff]  }
   0xb   :  { %1104 = vmatpush3.bf16.msra.mxu0 %v1253_v10  ;;  %v1270_v27 = vld [vmem:[%s1661_s1 + $0xc8] sm:$0xff]   ;;  %v1274_v31 = vld [vmem:[%s1661_s1 + $0xc0] sm:$0xff]   ;;  %v1284_v39 = vld [vmem:[%s1661_s1 + $0x1f8] sm:$0xff]  }
   0xc   :  { %1105 = vmatprep.subr.bf16.mxu0 %v1256_v13  ;;  %v1271_v28 = vld [vmem:[%s1661_s1 + $0x88] sm:$0xff]   ;;  %v1275_v32 = vld [vmem:[%s1662_s0] ss:$36 sps:$4 sm:$0xff]   ;;  %v1285_v40 = vld [vmem:[%s1661_s1 + $0x1b8] sm:$0xff]  }
   0xd   :  { %1132 = vmatpush3.bf16.msra.mxu1 %v1255_v12  ;;  %v1277_v33 = vld [vmem:[%s1662_s0 + $0x4] ss:$36 sps:$4 sm:$0xff]   ;;  %v1282_v37 = vld [vmem:[%s1662_s0 + $0xc] ss:$36 sps:$4 sm:$0xff]   ;;  %v1298_v53 = vld [vmem:[%s1661_s1 + $0x158] sm:$0xff]  }
   0xe   :  { %1133 = vmatprep.subr.bf16.mxu1 %v1258_v15  ;;  %v1278_v34 = vld [vmem:[%s1661_s1 + $0x80] sm:$0xff]   ;;  %759 = vmatprep.mubr.bf16.mxu0 %v1277_v33  ;;  %v1280_v36 = vld [vmem:[%s1662_s0 + $0x8] ss:$36 sps:$4 sm:$0xff]   ;;  %v1286_v41 = vld [vmem:[%s1661_s1 + $0x170] sm:$0xff]  }
   0xf   :  { %1106 = vmatpush3.bf16.msra.mxu0 %v1257_v14  ;;  %808 = vmatprep.mubr.bf16.mxu1 %v1282_v37  ;;  %v1287_v42 = vld [vmem:[%s1661_s1 + $0x130] sm:$0xff]   ;;  %v1290_v45 = vld [vmem:[%s1661_s1 + $0x168] sm:$0xff]   ;;  %v1294_v49 = vld [vmem:[%s1661_s1 + $0x160] sm:$0xff]  }
  0x10   :  { %1107 = vmatprep.subr.bf16.mxu0 %v1260_v17  ;;  %v1288_v43 = vld [vmem:[%s1661_s1 + $0x1f0] sm:$0xff]   ;;  %v1291_v46 = vld [vmem:[%s1661_s1 + $0x128] sm:$0xff]   ;;  %v1295_v50 = vld [vmem:[%s1661_s1 + $0x120] sm:$0xff]  }
  0x11   :  { %1134 = vmatpush3.bf16.msra.mxu1 %v1259_v16  ;;  %v1289_v44 = vld [vmem:[%s1661_s1 + $0x1b0] sm:$0xff]   ;;  %v1292_v47 = vld [vmem:[%s1661_s1 + $0x1e8] sm:$0xff]   ;;  %v1296_v51 = vld [vmem:[%s1661_s1 + $0x1e0] sm:$0xff]  }
  0x12   :  { %1135 = vmatprep.subr.bf16.mxu1 %v1262_v19  ;;  %v1293_v48 = vld [vmem:[%s1661_s1 + $0x1a8] sm:$0xff]   ;;  %v1297_v52 = vld [vmem:[%s1661_s1 + $0x1a0] sm:$0xff]   ;;  %v1299_v54 = vld [vmem:[%s1661_s1 + $0x118] sm:$0xff]  }
  0x13   :  { %1108 = vmatpush3.bf16.msra.mxu0 %v1261_v18  ;;  %v1300_v55 = vld [vmem:[%s1662_s0 + $0x4c] ss:$36 sps:$4 sm:$0xff]   ;;  %v1302_v56 = vld [vmem:[%s1661_s1 + $0x1d8] sm:$0xff]   ;;  %v1316_v5 = vld [vmem:[%s1661_s1 + $0x140] sm:$0xff]  }
  0x14   :  { %1109 = vmatprep.subr.bf16.mxu0 %v1264_v21  ;;  %v1303_v57 = vld [vmem:[%s1662_s0 + $0x48] ss:$36 sps:$4 sm:$0xff]   ;;  %v1304_v58 = vld [vmem:[%s1661_s1 + $0x198] sm:$0xff]   ;;  %v1307_v60 = vld [vmem:[%s1661_s1 + $0x150] sm:$0xff]  }
  0x15   :  { %1136 = vmatpush3.bf16.msra.mxu1 %v1263_v20  ;;  %v1305_v59 = vld [vmem:[%s1662_s0 + $0x54] ss:$36 sps:$4 sm:$0xff]   ;;  %v1312_v1 = vld [vmem:[%s1661_s1 + $0x148] sm:$0xff]   ;;  %v1317_v6 = vld [vmem:[%s1661_s1 + $0x100] sm:$0xff]  }
  0x16   :  { %1137 = vmatprep.subr.bf16.mxu1 %v1266_v23  ;;  %v1308_v61 = vld [vmem:[%s1662_s0 + $0x50] ss:$36 sps:$4 sm:$0xff]   ;;  %v1313_v2 = vld [vmem:[%s1661_s1 + $0x108] sm:$0xff]   ;;  %v1318_v7 = vld [vmem:[%s1661_s1 + $0x1c0] sm:$0xff]  }
  0x17   :  { %1110 = vmatpush3.bf16.msra.mxu0 %v1265_v22  ;;  %v1309_v62 = vld [vmem:[%s1661_s1 + $0x110] sm:$0xff]   ;;  %v1314_v3 = vld [vmem:[%s1661_s1 + $0x1c8] sm:$0xff]   ;;  %v1322_v10 = vld [vmem:[%s1661_s1 + $0x180] sm:$0xff]  }
  0x18   :  { %1111 = vmatprep.subr.bf16.mxu0 %v1268_v25  ;;  %v1310_v63 = vld [vmem:[%s1661_s1 + $0x1d0] sm:$0xff]   ;;  %v1315_v4 = vld [vmem:[%s1661_s1 + $0x188] sm:$0xff]   ;;  %v1323_v11 = vld [vmem:[%s1661_s1 + $0x238] sm:$0xff]  }
  0x19   :  { %1138 = vmatpush3.bf16.msra.mxu1 %v1267_v24  ;;  %v1311_v0 = vld [vmem:[%s1661_s1 + $0x190] sm:$0xff]   ;;  %v1324_v12 = vld [vmem:[%s1662_s0 + $0x18] ss:$36 sps:$4 sm:$0xff]   ;;  %v1331_v17 = vld [vmem:[%s1661_s1 + $0x228] sm:$0xff]  }
  0x1a   :  { %1139 = vmatprep.subr.bf16.mxu1 %v1270_v27  ;;  %v1319_v8 = vld [vmem:[%s1662_s0 + $0x10] ss:$36 sps:$4 sm:$0xff]   ;;  %v1326_v13 = vld [vmem:[%s1662_s0 + $0x1c] ss:$36 sps:$4 sm:$0xff]   ;;  %v1332_v18 = vld [vmem:[%s1662_s0 + $0x64] ss:$36 sps:$4 sm:$0xff]  }
  0x1b   :  { %1112 = vmatpush3.bf16.msra.mxu0 %v1269_v26  ;;  %v1321_v9 = vld [vmem:[%s1662_s0 + $0x14] ss:$36 sps:$4 sm:$0xff]   ;;  %v1328_v15 = vld [vmem:[%s1662_s0 + $0x5c] ss:$36 sps:$4 sm:$0xff]   ;;  %v180_v25 = vld [vmem:[%s1663_s2 + $0x8] sm:$0xff] }
  0x1c   :  { %1113 = vmatprep.subr.bf16.mxu0 %v1272_v29  ;;  %v1327_v14 = vld [vmem:[%s1661_s1 + $0x230] sm:$0xff]   ;;  %v1330_v16 = vld [vmem:[%s1662_s0 + $0x58] ss:$36 sps:$4 sm:$0xff]   ;;  %v1334_v19 = vld [vmem:[%s1662_s0 + $0x60] ss:$36 sps:$4 sm:$0xff]  }
  0x1d   :  { %1140 = vmatpush3.bf16.msra.mxu1 %v1271_v28  ;;  %v1335_v20 = vld [vmem:[%s1661_s1 + $0x220] sm:$0xff]   ;;  %v1336_v21 = vld [vmem:[%s1661_s1 + $0x218] sm:$0xff]   ;;  %v181_v24 = vld [vmem:[%s1663_s2 + $0x10] sm:$0xff] }
  0x1e   :  { %1141 = vmatprep.subr.bf16.mxu1 %v1274_v31  ;;  %v1340_v22 = vld [vmem:[%s1662_s0 + $0x20] ss:$36 sps:$4 sm:$0xff]   ;;  %195 = vperm.xlu1 %1243, %v181_v24   ;;  %v1337_v26 = vld [vmem:[%s1661_s1 + $0x210] sm:$0xff]   ;;  %v182_v27 = vld [vmem:[%s1663_s2 + $0x18] sm:$0xff] }
  0x1f   :  { %1114 = vmatpush3.bf16.msra.mxu0 %v1273_v30  ;;  %v179_v23 = vld [vmem:[%s1663_s2] sm:$0xff]  ;;  %v1338_v28 = vld [vmem:[%s1661_s1 + $0x208] sm:$0xff]  }
  0x20   :  { %1155 = vmatprep.subr.bf16.mxu0 %v1279_v35  ;;  %185 = vperm.xlu0 %1242, %v179_v23   ;;  %v1339_v29 = vld [vmem:[%s1661_s1 + $0x200] sm:$0xff]   ;;  %v1341_v30 = vld [vmem:[%s1662_s0 + $0x68] ss:$36 sps:$4 sm:$0xff]  }
  0x21   :  { %1142 = vmatpush3.bf16.msra.mxu1 %v1278_v34 }
  0x22   :  { %760 = vmatmul.mubr.bf16.vlgmr.msra.gmra.mxu0 %v1275_v32  ;;  %1183 = vmatprep.subr.bf16.mxu1 %v1284_v39 }
  0x23   :  { %1156 = vmatpush3.bf16.msra.mxu0 %v1283_v38  ;;  %767 = vmatprep.mubr.bf16.mxu0 %v1300_v55 }
  0x24   :  { %809 = vmatmul.mubr.bf16.vlgmr.msra.gmra.mxu1 %v1280_v36  ;;  %1157 = vmatprep.subr.bf16.mxu0 %v1286_v41 }
  0x25   :  { %1184 = vmatpush3.bf16.msra.mxu1 %v1285_v40  ;;  %816 = vmatprep.mubr.bf16.mxu1 %v1305_v59 }
  0x26   :  { %1185 = vmatprep.subr.bf16.mxu1 %v1288_v43  ;;  %190 = vperm.xlu0 %1242, %v180_v25  }
  0x27   :  { %1158 = vmatpush3.bf16.msra.mxu0 %v1287_v42  ;;  %200 = vperm.xlu1 %1243, %v182_v27  }
  0x28   :  { %1159 = vmatprep.subr.bf16.mxu0 %v1290_v45 }
  0x29   :  { %1186 = vmatpush3.bf16.msra.mxu1 %v1289_v44 }
  0x2a   :  { %1187 = vmatprep.subr.bf16.mxu1 %v1292_v47  ;;  %768 = vmatmul.mubr.bf16.gmra.mxu0 %v1303_v57 }
  0x2b   :  { %1160 = vmatpush3.bf16.msra.mxu0 %v1291_v46  ;;  %857 = vmatprep.mubr.bf16.mxu0 %v1321_v9 }
  0x2c   :  { %1161 = vmatprep.subr.bf16.mxu0 %v1294_v49  ;;  %817 = vmatmul.mubr.bf16.gmra.mxu1 %v1308_v61 }
  0x2d   :  { %1188 = vmatpush3.bf16.msra.mxu1 %v1293_v48  ;;  %906 = vmatprep.mubr.bf16.mxu1 %v1326_v13 }
  0x2e   :  { %1189 = vmatprep.subr.bf16.mxu1 %v1296_v51 }
  0x2f   :  { %1162 = vmatpush3.bf16.msra.mxu0 %v1295_v50 }
  0x30   :  { %1163 = vmatprep.subr.bf16.mxu0 %v1298_v53 }
  0x31   :  { %1190 = vmatpush3.bf16.msra.mxu1 %v1297_v52 }
  0x32   :  { %1191 = vmatprep.subr.bf16.mxu1 %v1302_v56 }
  0x33   :  { %1164 = vmatpush3.bf16.msra.mxu0 %v1299_v54 }
  0x34   :  { %1165 = vmatprep.subr.bf16.mxu0 %v1307_v60 }
  0x35   :  { %1192 = vmatpush3.bf16.msra.mxu1 %v1304_v58 }
  0x36   :  { %1193 = vmatprep.subr.bf16.mxu1 %v1310_v63 }
  0x37   :  { %1166 = vmatpush3.bf16.msra.mxu0 %v1309_v62 }
  0x38   :  { %1167 = vmatprep.subr.bf16.mxu0 %v1312_v1 }
  0x39   :  { %1194 = vmatpush3.bf16.msra.mxu1 %v1311_v0 }
  0x3a   :  { %1195 = vmatprep.subr.bf16.mxu1 %v1314_v3 }
  0x3b   :  { %1168 = vmatpush3.bf16.msra.mxu0 %v1313_v2 }
  0x3c   :  { %1169 = vmatprep.subr.bf16.mxu0 %v1316_v5 }
  0x3d   :  { %1196 = vmatpush3.bf16.msra.mxu1 %v1315_v4 }
  0x3e   :  { %1197 = vmatprep.subr.bf16.mxu1 %v1318_v7 }
  0x3f   :  { %1170 = vmatpush3.bf16.msra.mxu0 %v1317_v6 }
  0x40   :  { %1221 = vmatprep.subr.bf16.mxu0 %v1323_v11 }
  0x41   :  { %1198 = vmatpush3.bf16.msra.mxu1 %v1322_v10 }
  0x42   :  { %858 = vmatmul.mubr.bf16.vlgmr.msra.gmra.mxu0 %v1319_v8 }
  0x43   :  { %1222 = vmatpush3.bf16.msra.mxu0 %v1323_v11  ;;  %865 = vmatprep.mubr.bf16.mxu0 %v1328_v15 }
  0x44   :  { %907 = vmatmul.mubr.bf16.vlgmr.msra.gmra.mxu1 %v1324_v12  ;;  %1223 = vmatprep.subr.bf16.mxu0 %v1327_v14 }
  0x45   :  { %914 = vmatprep.mubr.bf16.mxu1 %v1332_v18 }
  0x47   :  { %1224 = vmatpush3.bf16.msra.mxu0 %v1327_v14 }
  0x48   :  { %1225 = vmatprep.subr.bf16.mxu0 %v1331_v17 }
  0x4a   :  { %866 = vmatmul.mubr.bf16.gmra.mxu0 %v1330_v16 }
  0x4b   :  { %1226 = vmatpush3.bf16.msra.mxu0 %v1331_v17  ;;  %1237 = vmatprep.mubr.bf16.mxu0 %v1340_v22 }
  0x4c   :  { %915 = vmatmul.mubr.bf16.gmra.mxu1 %v1334_v19  ;;  %1227 = vmatprep.subr.bf16.mxu0 %v1335_v20 }
  0x4f   :  { %1228 = vmatpush3.bf16.msra.mxu0 %v1335_v20 }
  0x50   :  { %1229 = vmatprep.subr.bf16.mxu0 %v1336_v21 }
  0x53   :  { %1230 = vmatpush3.bf16.msra.mxu0 %v1336_v21 }
  0x54   :  { %1231 = vmatprep.subr.bf16.mxu0 %v1337_v26 }
  0x57   :  { %1232 = vmatpush3.bf16.msra.mxu0 %v1337_v26 }
  0x58   :  { %1233 = vmatprep.subr.bf16.mxu0 %v1338_v28 }
  0x5b   :  { %1234 = vmatpush3.bf16.msra.mxu0 %v1338_v28 }
  0x5c   :  { %1235 = vmatprep.subr.bf16.mxu0 %v1339_v29 }
  0x5f   :  { %1236 = vmatpush3.bf16.msra.mxu0 %v1339_v29 }
  0x62   :  { %1238 = vmatmul.mubr.bf16.vlgmr.msra.gmra.mxu0 %v1341_v30 }
  0x99   :  { %v196_v56 = vpop.permute.xlu1 %195 }
  0x9b   :  { %v186_v59 = vpop.permute.xlu0 %185 }
  0xa1   :  { %v191_v7 = vpop.permute.xlu0 %190 }
  0xa2   :  { %v201_v6 = vpop.permute.xlu1 %200 }
  0xe2   :  { %v1115_v31 = vpop.f32.mrf.mxu0 }
  0xe4   :  { %v1143_v32 = vpop.f32.mrf.mxu1  ;;  %v1116_v33 = vpop.f32.mrf.mxu0 }
  0xe5   :  { %v1117_v61 = vadd.f32 %v1116_v33, %v1115_v31 }
  0xe6   :  { %v1144_v34 = vpop.f32.mrf.mxu1  ;;  %v1118_v35 = vpop.f32.mrf.mxu0 }
  0xe7   :  { %v762_v3 = vadd.f32 %v1117_v61, %v186_v59  ;;  %v1145_v4 = vadd.f32 %v1144_v34, %v1143_v32 }
  0xe8   :  { %v1146_v36 = vpop.f32.mrf.mxu1  ;;  %v1119_v37 = vpop.f32.mrf.mxu0 }
  0xe9   :  { %v1120_v5 = vadd.f32 %v1119_v37, %v1118_v35  ;;  %v811_v15 = vadd.f32 %v1145_v4, %v762_v3 }
  0xea   :  { %v1121_v38 = vpop.f32.mrf.mxu0  ;;  %v1147_v39 = vpop.f32.mrf.mxu1 }
  0xeb   :  { %v765_v16 = vadd.f32 %v1120_v5, %v191_v7  ;;  %v1148_v17 = vadd.f32 %v1147_v39, %v1146_v36 }
  0xec   :  { %v1149_v40 = vpop.f32.mrf.mxu1  ;;  %v1122_v41 = vpop.f32.mrf.mxu0 }
  0xed   :  { %v1123_v60 = vadd.f32 %v1122_v41, %v1121_v38  ;;  %v814_v26 = vadd.f32 %v1148_v17, %v765_v16 }
  0xee   :  { %v1150_v42 = vpop.f32.mrf.mxu1  ;;  %v1124_v43 = vpop.f32.mrf.mxu0 }
  0xef   :  { %v770_v0 = vadd.f32 %v1123_v60, %v196_v56  ;;  %v1151_v1 = vadd.f32 %v1150_v42, %v1149_v40 }
  0xf0   :  { %v1152_v44 = vpop.f32.mrf.mxu1  ;;  %v1125_v45 = vpop.f32.mrf.mxu0 }
  0xf1   :  { %v1126_v2 = vadd.f32 %v1125_v45, %v1124_v43  ;;  %v819_v11 = vadd.f32 %v1151_v1, %v770_v0 }
  0xf2   :  { %v1153_v47 = vpop.f32.mrf.mxu1 }
  0xf3   :  { %v773_v12 = vadd.f32 %v1126_v2, %v201_v6  ;;  %v1154_v13 = vadd.f32 %v1153_v47, %v1152_v44 }
  0xf5   :  { %v822_v22 = vadd.f32 %v1154_v13, %v773_v12 }
 0x102   :  { %v1171_v46 = vpop.f32.mrf.mxu0 }
 0x104   :  { %v1172_v48 = vpop.f32.mrf.mxu0  ;;  %v1199_v49 = vpop.f32.mrf.mxu1 }
 0x105   :  { %v1173_v14 = vadd.f32 %v1172_v48, %v1171_v46 }
 0x106   :  { %v1174_v50 = vpop.f32.mrf.mxu0  ;;  %v1200_v51 = vpop.f32.mrf.mxu1 }
 0x107   :  { %v860_v23 = vadd.f32 %v1173_v14, %v811_v15  ;;  %v1201_v24 = vadd.f32 %v1200_v51, %v1199_v49 }
 0x108   :  { %v1175_v52 = vpop.f32.mrf.mxu0  ;;  %v1202_v53 = vpop.f32.mrf.mxu1 }
 0x109   :  { %v1176_v25 = vadd.f32 %v1175_v52, %v1174_v50  ;;  %v909_v34 = vadd.f32 %v1201_v24, %v860_v23 }
 0x10a   :  { %v1177_v54 = vpop.f32.mrf.mxu0  ;;  %v1203_v55 = vpop.f32.mrf.mxu1 }
 0x10b   :  { %v863_v31 = vadd.f32 %v1176_v25, %v814_v26  ;;  %v1204_v32 = vadd.f32 %v1203_v55, %v1202_v53 }
 0x10c   :  { %v1178_v57 = vpop.f32.mrf.mxu0  ;;  %v1205_v58 = vpop.f32.mrf.mxu1 }
 0x10d   :  { %v1179_v8 = vadd.f32 %v1178_v57, %v1177_v54  ;;  %v912_v43 = vadd.f32 %v1204_v32, %v863_v31 }
 0x10e   :  { %v1180_v62 = vpop.f32.mrf.mxu0  ;;  %v1206_v63 = vpop.f32.mrf.mxu1 }
 0x10f   :  { %v868_v18 = vadd.f32 %v1179_v8, %v819_v11  ;;  %v1207_v19 = vadd.f32 %v1206_v63, %v1205_v58 }
 0x110   :  { %v1181_v9 = vpop.f32.mrf.mxu0  ;;  %v1208_v10 = vpop.f32.mrf.mxu1 }
 0x111   :  { %v1182_v20 = vadd.f32 %v1181_v9, %v1180_v62  ;;  %v917_v29 = vadd.f32 %v1207_v19, %v868_v18 }
 0x112   :  { %v1209_v21 = vpop.f32.mrf.mxu1 }
 0x113   :  { %v871_v27 = vadd.f32 %v1182_v20, %v822_v22  ;;  %v1210_v28 = vadd.f32 %v1209_v21, %v1208_v10 }
 0x115   :  { %v920_v38 = vadd.f32 %v1210_v28, %v871_v27 }
 0x122   :  { %v1239_v30 = vpop.f32.mrf.mxu0 }
 0x123   :  { %v966_v33 = vadd.f32 %v1239_v30, %v917_v29 }
 0x124   :  { %v957_v35 = vpop.f32.mrf.mxu0 }
 0x125   :  { %v974_v37 = vmax.f32 %v966_v33, 0.0  ;;  %v958_v36 = vadd.f32 %v957_v35, %v909_v34 }
 0x126   :  { %v1240_v39 = vpop.f32.mrf.mxu0 }
 0x127   :  { %v1097_v40 = vpack.c.bf16 %v974_v37, %v974_v37  ;;  %v972_v41 = vmax.f32 %v958_v36, 0.0  ;;  %v969_v42 = vadd.f32 %v1240_v39, %v920_v38 }
 0x128   :  { %v960_v44 = vpop.f32.mrf.mxu0 }
 0x129   :  { %995 = vst.msk [vmem:[%s1664_s3 + $0x8] sm:$0xf] %vm992_vm0, %v1097_v40  ;;  %v1095_v45 = vpack.c.bf16 %v972_v41, %v972_v41  ;;  %v975_v46 = vmax.f32 %v969_v42, 0.0  ;;  %v961_v47 = vadd.f32 %v960_v44, %v912_v43 }
 0x12b   :  { %993 = vst.msk [vmem:[%s1664_s3] sm:$0xf] %vm992_vm0, %v1095_v45  ;;  %v1098_v48 = vpack.c.bf16 %v975_v46, %v975_v46  ;;  %v973_v49 = vmax.f32 %v961_v47, 0.0 }
 0x12d   :  { %996 = vst.msk [vmem:[%s1664_s3 + $0xc] sm:$0xf] %vm992_vm0, %v1098_v48  ;;  %v1096_v50 = vpack.c.bf16 %v973_v49, %v973_v49 }
 0x12f   :  { %994 = vst.msk [vmem:[%s1664_s3 + $0x4] sm:$0xf] %vm992_vm0, %v1096_v50 }

// kernel: subnet_apply.53
= control target key start
LH: loop header
LB: loop body
LE: loop exit
PB: predicated region body
PF: predicated region fallthrough
CT: control target
= control target key end

     0   :  { %v458_v1 = vmov 0   ;;  %vm221_vm0 = vcmask 261120   ;;  %vm346_vm1 = vcmask 257024   ;;  %s581_s1 = inlined_call_operand.vmem [shape: bf16[288,32], index: 1, kind: input, shape index: {}]   ;;  %s582_s0 = inlined_call_operand.vmem [shape: bf16[32,288], index: 0, kind: input, shape index: {}]   ;;  %s583_s2 = inlined_call_operand.vmem [shape: f32[32,1], index: 2, kind: input, shape index: {}]   ;;  %s584_s3 = inlined_call_operand.vmem [shape: bf16[32,32], index: 3, kind: output, shape index: {}]  }
   0x1   :  { %v432_v0 = vld [vmem:[%s581_s1 + $0x78] sm:$0xff]   ;;  %430 = vset.pattern.permute.xlu0 %v458_v1  ;;  %431 = vset.pattern.permute.xlu1 %v458_v1  ;;  %v434_v3 = vld [vmem:[%s581_s1 + $0x70] sm:$0xff]   ;;  %v436_v5 = vld [vmem:[%s581_s1 + $0x68] sm:$0xff]  }
   0x2   :  { %v433_v2 = vld [vmem:[%s581_s1 + $0x38] sm:$0xff]   ;;  %389 = vmatprep.subr.bf16.mxu0 %v432_v0  ;;  %v435_v4 = vld [vmem:[%s581_s1 + $0x30] sm:$0xff]   ;;  %v437_v6 = vld [vmem:[%s581_s1 + $0x28] sm:$0xff]  }
   0x3   :  { %390 = vmatpush3.bf16.msra.mxu0 %v433_v2  ;;  %v438_v7 = vld [vmem:[%s581_s1 + $0x60] sm:$0xff]   ;;  %v440_v9 = vld [vmem:[%s581_s1 + $0x58] sm:$0xff]   ;;  %v447_v11 = vld [vmem:[%s581_s1 + $0x88] sm:$0xff]  }
   0x4   :  { %391 = vmatprep.subr.bf16.mxu0 %v434_v3  ;;  %v439_v8 = vld [vmem:[%s581_s1 + $0x20] sm:$0xff]   ;;  %v441_v10 = vld [vmem:[%s581_s1 + $0x18] sm:$0xff]   ;;  %v442_v12 = vld [vmem:[%s581_s1 + $0x50] sm:$0xff]   ;;  %421 = vmatprep.subr.bf16.mxu1 %v447_v11 }
   0x5   :  { %v443_v13 = vld [vmem:[%s581_s1 + $0x10] sm:$0xff]   ;;  %v444_v14 = vld [vmem:[%s581_s1 + $0x48] sm:$0xff]   ;;  %422 = vmatpush3.bf16.msra.mxu1 %v447_v11  ;;  %v452_v16 = vld [vmem:[%s581_s1 + $0x80] sm:$0xff]  }
   0x6   :  { %v451_v15 = vld [vmem:[%s582_s0 + $0x4] ss:$12 sps:$4 sm:$0xff]   ;;  %v453_v17 = vld [vmem:[%s582_s0 + $0x8] ss:$12 sps:$4 sm:$0xff]   ;;  %423 = vmatprep.subr.bf16.mxu1 %v452_v16  ;;  %v454_v18 = vld [vmem:[%s582_s0 + $0x20] ss:$12 sps:$4 sm:$0xff]  }
   0x7   :  { %392 = vmatpush3.bf16.msra.mxu0 %v435_v4  ;;  %260 = vmatprep.mubr.bf16.mxu0 %v451_v15  ;;  %v59_v19 = vld [vmem:[%s583_s2] sm:$0xff]  ;;  %v445_v20 = vld [vmem:[%s581_s1 + $0x8] sm:$0xff]   ;;  %v61_v21 = vld [vmem:[%s583_s2 + $0x10] sm:$0xff] }
   0x8   :  { %393 = vmatprep.subr.bf16.mxu0 %v436_v5  ;;  %425 = vmatprep.mubr.msk.bf16.mxu1 %vm221_vm0, %v453_v17  ;;  %v446_v22 = vld [vmem:[%s581_s1 + $0x40] sm:$0xff]   ;;  %v60_v23 = vld [vmem:[%s583_s2 + $0x8] sm:$0xff]  ;;  %v62_v24 = vld [vmem:[%s583_s2 + $0x18] sm:$0xff] }
   0x9   :  { %424 = vmatpush3.bf16.msra.mxu1 %v452_v16  ;;  %65 = vperm.xlu0 %430, %v59_v19   ;;  %v448_v25 = vld [vmem:[%s581_s1] sm:$0xff]   ;;  %v455_v27 = vld [vmem:[%s582_s0 + $0x1c] ss:$12 sps:$4 sm:$0xff]  }
   0xa   :  { %75 = vperm.xlu1 %431, %v61_v21   ;;  %v449_v26 = vld [vmem:[%s582_s0] ss:$12 sps:$4 sm:$0xff]   ;;  %v457_v28 = vld [vmem:[%s582_s0 + $0x18] ss:$12 sps:$4 sm:$0xff]  }
   0xb   :  { %394 = vmatpush3.bf16.msra.mxu0 %v437_v6 }
   0xc   :  { %395 = vmatprep.subr.bf16.mxu0 %v438_v7  ;;  %426 = vmatmul.mubr.msk.bf16.vlgmr.msra.gmra.mxu1 %vm221_vm0, %v454_v18 }
   0xd   :  { %70 = vperm.xlu0 %430, %v60_v23  }
   0xe   :  { %80 = vperm.xlu1 %431, %v62_v24  }
   0xf   :  { %396 = vmatpush3.bf16.msra.mxu0 %v439_v8 }
  0x10   :  { %397 = vmatprep.subr.bf16.mxu0 %v440_v9 }
  0x13   :  { %398 = vmatpush3.bf16.msra.mxu0 %v441_v10 }
  0x14   :  { %399 = vmatprep.subr.bf16.mxu0 %v442_v12 }
  0x17   :  { %400 = vmatpush3.bf16.msra.mxu0 %v443_v13 }
  0x18   :  { %401 = vmatprep.subr.bf16.mxu0 %v444_v14 }
  0x1b   :  { %402 = vmatpush3.bf16.msra.mxu0 %v445_v20 }
  0x1c   :  { %403 = vmatprep.subr.bf16.mxu0 %v446_v22 }
  0x1f   :  { %404 = vmatpush3.bf16.msra.mxu0 %v448_v25 }
  0x22   :  { %261 = vmatmul.mubr.bf16.vlgmr.msra.gmra.mxu0 %v449_v26 }
  0x23   :  { %268 = vmatprep.mubr.bf16.mxu0 %v455_v27 }
  0x2a   :  { %269 = vmatmul.mubr.bf16.gmra.mxu0 %v457_v28 }
  0x84   :  { %v66_v30 = vpop.permute.xlu0 %65 }
  0x85   :  { %v76_v46 = vpop.permute.xlu1 %75 }
  0x88   :  { %v71_v39 = vpop.permute.xlu0 %70 }
  0x89   :  { %v81_v58 = vpop.permute.xlu1 %80 }
  0xcc   :  { %v427_v29 = vpop.f32.mrf.mxu1 }
  0xce   :  { %v311_v32 = vpop.f32.mrf.mxu1 }
  0xd0   :  { %v428_v36 = vpop.f32.mrf.mxu1 }
  0xd2   :  { %v314_v43 = vpop.f32.mrf.mxu1 }
  0xe2   :  { %v405_v31 = vpop.f32.mrf.mxu0 }
  0xe4   :  { %v406_v33 = vpop.f32.mrf.mxu0 }
  0xe5   :  { %v407_v34 = vadd.f32 %v406_v33, %v405_v31 }
  0xe6   :  { %v408_v35 = vpop.f32.mrf.mxu0 }
  0xe7   :  { %v263_v37 = vadd.f32 %v407_v34, %v66_v30 }
  0xe8   :  { %v409_v38 = vpop.f32.mrf.mxu0 }
  0xe9   :  { %v410_v40 = vadd.f32 %v409_v38, %v408_v35  ;;  %v312_v41 = vadd.f32 %v311_v32, %v263_v37 }
  0xea   :  { %v411_v42 = vpop.f32.mrf.mxu0 }
  0xeb   :  { %v326_v44 = vmax.f32 %v312_v41, 0.0  ;;  %v266_v45 = vadd.f32 %v410_v40, %v71_v39 }
  0xec   :  { %v412_v47 = vpop.f32.mrf.mxu0 }
  0xed   :  { %v385_v48 = vpack.c.bf16 %v326_v44, %v326_v44  ;;  %v413_v49 = vadd.f32 %v412_v47, %v411_v42  ;;  %v315_v50 = vadd.f32 %v314_v43, %v266_v45 }
  0xee   :  { %v414_v51 = vpop.f32.mrf.mxu0 }
  0xef   :  { %347 = vst.msk [vmem:[%s584_s3] sm:$0xf] %vm346_vm1, %v385_v48  ;;  %v271_v52 = vadd.f32 %v413_v49, %v76_v46  ;;  %v327_v53 = vmax.f32 %v315_v50, 0.0 }
  0xf0   :  { %v415_v54 = vpop.f32.mrf.mxu0 }
  0xf1   :  { %v320_v55 = vadd.f32 %v427_v29, %v271_v52  ;;  %v386_v56 = vpack.c.bf16 %v327_v53, %v327_v53  ;;  %v416_v57 = vadd.f32 %v415_v54, %v414_v51 }
  0xf3   :  { %v328_v59 = vmax.f32 %v320_v55, 0.0  ;;  %348 = vst.msk [vmem:[%s584_s3 + $0x4] sm:$0xf] %vm346_vm1, %v386_v56  ;;  %v274_v60 = vadd.f32 %v416_v57, %v81_v58 }
  0xf5   :  { %v387_v61 = vpack.c.bf16 %v328_v59, %v328_v59  ;;  %v323_v62 = vadd.f32 %v428_v36, %v274_v60 }
  0xf7   :  { %349 = vst.msk [vmem:[%s584_s3 + $0x8] sm:$0xf] %vm346_vm1, %v387_v61  ;;  %v329_v63 = vmax.f32 %v323_v62, 0.0 }
  0xf9   :  { %v388_v0 = vpack.c.bf16 %v329_v63, %v329_v63 }
  0xfb   :  { %350 = vst.msk [vmem:[%s584_s3 + $0xc] sm:$0xf] %vm346_vm1, %v388_v0 }

// kernel: subnet_apply.55
= control target key start
LH: loop header
LB: loop body
LE: loop exit
PB: predicated region body
PF: predicated region fallthrough
CT: control target
= control target key end

     0   :  { %v482_v1 = vmov 0   ;;  %vm224_vm0 = vcmask 261120   ;;  %vm361_vm1 = vcmask 257024   ;;  %s616_s1 = inlined_call_operand.vmem [shape: bf16[288,32], index: 1, kind: input, shape index: {}]   ;;  %s617_s0 = inlined_call_operand.vmem [shape: bf16[32,288], index: 0, kind: input, shape index: {}]   ;;  %s618_s2 = inlined_call_operand.vmem [shape: f32[32,1], index: 2, kind: input, shape index: {}]   ;;  %s619_s3 = inlined_call_operand.vmem [shape: bf16[32,32], index: 3, kind: input, shape index: {}]   ;;  %s620_s4 = inlined_call_operand.vmem [shape: bf16[32,32], index: 4, kind: output, shape index: {}]  }
   0x1   :  { %v456_v0 = vld [vmem:[%s616_s1 + $0x78] sm:$0xff]   ;;  %454 = vset.pattern.permute.xlu0 %v482_v1  ;;  %455 = vset.pattern.permute.xlu1 %v482_v1  ;;  %v458_v3 = vld [vmem:[%s616_s1 + $0x70] sm:$0xff]   ;;  %v460_v5 = vld [vmem:[%s616_s1 + $0x68] sm:$0xff]  }
   0x2   :  { %v457_v2 = vld [vmem:[%s616_s1 + $0x38] sm:$0xff]   ;;  %413 = vmatprep.subr.bf16.mxu0 %v456_v0  ;;  %v459_v4 = vld [vmem:[%s616_s1 + $0x30] sm:$0xff]   ;;  %v461_v6 = vld [vmem:[%s616_s1 + $0x28] sm:$0xff]  }
   0x3   :  { %414 = vmatpush3.bf16.msra.mxu0 %v457_v2  ;;  %v462_v7 = vld [vmem:[%s616_s1 + $0x60] sm:$0xff]   ;;  %v464_v9 = vld [vmem:[%s616_s1 + $0x58] sm:$0xff]   ;;  %v471_v11 = vld [vmem:[%s616_s1 + $0x88] sm:$0xff]  }
   0x4   :  { %415 = vmatprep.subr.bf16.mxu0 %v458_v3  ;;  %v463_v8 = vld [vmem:[%s616_s1 + $0x20] sm:$0xff]   ;;  %v465_v10 = vld [vmem:[%s616_s1 + $0x18] sm:$0xff]   ;;  %v466_v12 = vld [vmem:[%s616_s1 + $0x50] sm:$0xff]   ;;  %445 = vmatprep.subr.bf16.mxu1 %v471_v11 }
   0x5   :  { %v467_v13 = vld [vmem:[%s616_s1 + $0x10] sm:$0xff]   ;;  %v468_v14 = vld [vmem:[%s616_s1 + $0x48] sm:$0xff]   ;;  %446 = vmatpush3.bf16.msra.mxu1 %v471_v11  ;;  %v476_v16 = vld [vmem:[%s616_s1 + $0x80] sm:$0xff]  }
   0x6   :  { %v475_v15 = vld [vmem:[%s617_s0 + $0x4] ss:$12 sps:$4 sm:$0xff]   ;;  %v477_v17 = vld [vmem:[%s617_s0 + $0x8] ss:$12 sps:$4 sm:$0xff]   ;;  %447 = vmatprep.subr.bf16.mxu1 %v476_v16  ;;  %v478_v18 = vld [vmem:[%s617_s0 + $0x20] ss:$12 sps:$4 sm:$0xff]  }
   0x7   :  { %416 = vmatpush3.bf16.msra.mxu0 %v459_v4  ;;  %263 = vmatprep.mubr.bf16.mxu0 %v475_v15  ;;  %v62_v19 = vld [vmem:[%s618_s2] sm:$0xff]  ;;  %v469_v20 = vld [vmem:[%s616_s1 + $0x8] sm:$0xff]   ;;  %v64_v21 = vld [vmem:[%s618_s2 + $0x10] sm:$0xff] }
   0x8   :  { %417 = vmatprep.subr.bf16.mxu0 %v460_v5  ;;  %449 = vmatprep.mubr.msk.bf16.mxu1 %vm224_vm0, %v477_v17  ;;  %v470_v22 = vld [vmem:[%s616_s1 + $0x40] sm:$0xff]   ;;  %v63_v23 = vld [vmem:[%s618_s2 + $0x8] sm:$0xff]  ;;  %v65_v24 = vld [vmem:[%s618_s2 + $0x18] sm:$0xff] }
   0x9   :  { %448 = vmatpush3.bf16.msra.mxu1 %v476_v16  ;;  %68 = vperm.xlu0 %454, %v62_v19   ;;  %v472_v25 = vld [vmem:[%s616_s1] sm:$0xff]   ;;  %v479_v27 = vld [vmem:[%s617_s0 + $0x1c] ss:$12 sps:$4 sm:$0xff]  }
   0xa   :  { %78 = vperm.xlu1 %455, %v64_v21   ;;  %v473_v26 = vld [vmem:[%s617_s0] ss:$12 sps:$4 sm:$0xff]   ;;  %v481_v28 = vld [vmem:[%s617_s0 + $0x18] ss:$12 sps:$4 sm:$0xff]  }
   0xb   :  { %418 = vmatpush3.bf16.msra.mxu0 %v461_v6  ;;  %v405_v34 = vld [vmem:[%s619_s3] sm:$0xff]   ;;  %v412_v49 = vld [vmem:[%s619_s3 + $0x8] sm:$0xff]  }
   0xc   :  { %419 = vmatprep.subr.bf16.mxu0 %v462_v7  ;;  %450 = vmatmul.mubr.msk.bf16.vlgmr.msra.gmra.mxu1 %vm224_vm0, %v478_v18  ;;  %v406_v39 = vunpack.c.l.bf16 %v405_v34  ;;  %v407_v48 = vunpack.c.h.bf16 %v405_v34  ;;  %v410_v58 = vunpack.c.l.bf16 %v412_v49  ;;  %v411_v4 = vunpack.c.h.bf16 %v412_v49 }
   0xd   :  { %73 = vperm.xlu0 %454, %v63_v23  }
   0xe   :  { %83 = vperm.xlu1 %455, %v65_v24  }
   0xf   :  { %420 = vmatpush3.bf16.msra.mxu0 %v463_v8 }
  0x10   :  { %421 = vmatprep.subr.bf16.mxu0 %v464_v9 }
  0x13   :  { %422 = vmatpush3.bf16.msra.mxu0 %v465_v10 }
  0x14   :  { %423 = vmatprep.subr.bf16.mxu0 %v466_v12 }
  0x17   :  { %424 = vmatpush3.bf16.msra.mxu0 %v467_v13 }
  0x18   :  { %425 = vmatprep.subr.bf16.mxu0 %v468_v14 }
  0x1b   :  { %426 = vmatpush3.bf16.msra.mxu0 %v469_v20 }
  0x1c   :  { %427 = vmatprep.subr.bf16.mxu0 %v470_v22 }
  0x1f   :  { %428 = vmatpush3.bf16.msra.mxu0 %v472_v25 }
  0x22   :  { %264 = vmatmul.mubr.bf16.vlgmr.msra.gmra.mxu0 %v473_v26 }
  0x23   :  { %271 = vmatprep.mubr.bf16.mxu0 %v479_v27 }
  0x2a   :  { %272 = vmatmul.mubr.bf16.gmra.mxu0 %v481_v28 }
  0x84   :  { %v69_v30 = vpop.permute.xlu0 %68 }
  0x85   :  { %v79_v50 = vpop.permute.xlu1 %78 }
  0x88   :  { %v74_v41 = vpop.permute.xlu0 %73 }
  0x89   :  { %v84_v0 = vpop.permute.xlu1 %83 }
  0xcc   :  { %v451_v29 = vpop.f32.mrf.mxu1 }
  0xce   :  { %v314_v32 = vpop.f32.mrf.mxu1 }
  0xd0   :  { %v452_v37 = vpop.f32.mrf.mxu1 }
  0xd2   :  { %v317_v45 = vpop.f32.mrf.mxu1 }
  0xe2   :  { %v429_v31 = vpop.f32.mrf.mxu0 }
  0xe4   :  { %v430_v33 = vpop.f32.mrf.mxu0 }
  0xe5   :  { %v431_v35 = vadd.f32 %v430_v33, %v429_v31 }
  0xe6   :  { %v432_v36 = vpop.f32.mrf.mxu0 }
  0xe7   :  { %v266_v38 = vadd.f32 %v431_v35, %v69_v30 }
  0xe8   :  { %v433_v40 = vpop.f32.mrf.mxu0 }
  0xe9   :  { %v434_v42 = vadd.f32 %v433_v40, %v432_v36  ;;  %v315_v43 = vadd.f32 %v314_v32, %v266_v38 }
  0xea   :  { %v435_v44 = vpop.f32.mrf.mxu0 }
  0xeb   :  { %v337_v46 = vadd.f32 %v406_v39, %v315_v43  ;;  %v269_v47 = vadd.f32 %v434_v42, %v74_v41 }
  0xec   :  { %v436_v51 = vpop.f32.mrf.mxu0 }
  0xed   :  { %v341_v52 = vmax.f32 %v337_v46, 0.0  ;;  %v437_v53 = vadd.f32 %v436_v51, %v435_v44  ;;  %v318_v54 = vadd.f32 %v317_v45, %v269_v47 }
  0xee   :  { %v438_v55 = vpop.f32.mrf.mxu0 }
  0xef   :  { %v400_v56 = vpack.c.bf16 %v341_v52, %v341_v52  ;;  %v274_v57 = vadd.f32 %v437_v53, %v79_v50  ;;  %v338_v59 = vadd.f32 %v407_v48, %v318_v54 }
  0xf0   :  { %v439_v60 = vpop.f32.mrf.mxu0 }
  0xf1   :  { %362 = vst.msk [vmem:[%s620_s4] sm:$0xf] %vm361_vm1, %v400_v56  ;;  %v323_v61 = vadd.f32 %v451_v29, %v274_v57  ;;  %v342_v62 = vmax.f32 %v338_v59, 0.0  ;;  %v440_v63 = vadd.f32 %v439_v60, %v438_v55 }
  0xf3   :  { %v339_v1 = vadd.f32 %v410_v58, %v323_v61  ;;  %v401_v2 = vpack.c.bf16 %v342_v62, %v342_v62  ;;  %v277_v3 = vadd.f32 %v440_v63, %v84_v0 }
  0xf5   :  { %v343_v5 = vmax.f32 %v339_v1, 0.0  ;;  %363 = vst.msk [vmem:[%s620_s4 + $0x4] sm:$0xf] %vm361_vm1, %v401_v2  ;;  %v326_v6 = vadd.f32 %v452_v37, %v277_v3 }
  0xf7   :  { %v402_v7 = vpack.c.bf16 %v343_v5, %v343_v5  ;;  %v340_v8 = vadd.f32 %v411_v4, %v326_v6 }
  0xf9   :  { %364 = vst.msk [vmem:[%s620_s4 + $0x8] sm:$0xf] %vm361_vm1, %v402_v7  ;;  %v344_v9 = vmax.f32 %v340_v8, 0.0 }
  0xfb   :  { %v403_v10 = vpack.c.bf16 %v344_v9, %v344_v9 }
  0xfd   :  { %365 = vst.msk [vmem:[%s620_s4 + $0xc] sm:$0xf] %vm361_vm1, %v403_v10 }

// kernel: subnet_apply.74
= control target key start
LH: loop header
LB: loop body
LE: loop exit
PB: predicated region body
PF: predicated region fallthrough
CT: control target
= control target key end

     0   :  { %v972_v1 = vmov 0   ;;  %vm407_vm0 = vcmask 261120   ;;  %vm706_vm1 = vcmask 257024   ;;  %s1275_s1 = inlined_call_operand.vmem [shape: bf16[288,32], index: 1, kind: input, shape index: {}]   ;;  %s1276_s0 = inlined_call_operand.vmem [shape: bf16[128,288], index: 0, kind: input, shape index: {}]   ;;  %s1277_s2 = inlined_call_operand.vmem [shape: f32[128,1], index: 2, kind: input, shape index: {}]   ;;  %s1278_s3 = inlined_call_operand.vmem [shape: bf16[128,32], index: 3, kind: output, shape index: {}]  }
   0x1   :  { %v922_v0 = vld [vmem:[%s1275_s1 + $0x78] sm:$0xff]   ;;  %920 = vset.pattern.permute.xlu0 %v972_v1  ;;  %921 = vset.pattern.permute.xlu1 %v972_v1  ;;  %v924_v3 = vld [vmem:[%s1275_s1 + $0x70] sm:$0xff]   ;;  %v926_v5 = vld [vmem:[%s1275_s1 + $0x68] sm:$0xff]  }
   0x2   :  { %v923_v2 = vld [vmem:[%s1275_s1 + $0x38] sm:$0xff]   ;;  %809 = vmatprep.subr.bf16.mxu0 %v922_v0  ;;  %903 = vmatprep.subr.bf16.mxu1 %v922_v0  ;;  %v925_v4 = vld [vmem:[%s1275_s1 + $0x30] sm:$0xff]   ;;  %v927_v6 = vld [vmem:[%s1275_s1 + $0x28] sm:$0xff]  }
   0x3   :  { %810 = vmatpush3.bf16.msra.mxu0 %v923_v2  ;;  %911 = vmatpush3.bf16.msra.mxu1 %v923_v2  ;;  %v928_v7 = vld [vmem:[%s1275_s1 + $0x60] sm:$0xff]   ;;  %v930_v9 = vld [vmem:[%s1275_s1 + $0x58] sm:$0xff]   ;;  %v932_v11 = vld [vmem:[%s1275_s1 + $0x50] sm:$0xff]  }
   0x4   :  { %811 = vmatprep.subr.bf16.mxu0 %v924_v3  ;;  %904 = vmatprep.subr.bf16.mxu1 %v924_v3  ;;  %v929_v8 = vld [vmem:[%s1275_s1 + $0x20] sm:$0xff]   ;;  %v931_v10 = vld [vmem:[%s1275_s1 + $0x18] sm:$0xff]   ;;  %v933_v14 = vld [vmem:[%s1275_s1 + $0x10] sm:$0xff]  }
   0x5   :  { %v940_v12 = vld [vmem:[%s1276_s0 + $0x4] ss:$12 sps:$4 sm:$0xff]   ;;  %v943_v13 = vld [vmem:[%s1276_s0 + $0x94] ss:$12 sps:$4 sm:$0xff]   ;;  %v934_v15 = vld [vmem:[%s1275_s1 + $0x48] sm:$0xff]  }
   0x6   :  { %464 = vmatprep.mubr.bf16.mxu0 %v940_v12  ;;  %512 = vmatprep.mubr.bf16.mxu1 %v943_v13  ;;  %v935_v16 = vld [vmem:[%s1275_s1 + $0x8] sm:$0xff]   ;;  %v936_v17 = vld [vmem:[%s1275_s1 + $0x40] sm:$0xff]   ;;  %v941_v21 = vld [vmem:[%s1276_s0 + $0x90] ss:$12 sps:$4 sm:$0xff]  }
   0x7   :  { %812 = vmatpush3.bf16.msra.mxu0 %v925_v4  ;;  %912 = vmatpush3.bf16.msra.mxu1 %v925_v4  ;;  %v937_v18 = vld [vmem:[%s1275_s1] sm:$0xff]   ;;  %v944_v20 = vld [vmem:[%s1275_s1 + $0x88] sm:$0xff]   ;;  %v85_v26 = vld [vmem:[%s1277_s2 + $0x10] sm:$0xff] }
   0x8   :  { %813 = vmatprep.subr.bf16.mxu0 %v926_v5  ;;  %905 = vmatprep.subr.bf16.mxu1 %v926_v5  ;;  %v938_v19 = vld [vmem:[%s1276_s0] ss:$12 sps:$4 sm:$0xff]   ;;  %v945_v22 = vld [vmem:[%s1276_s0 + $0x1c] ss:$12 sps:$4 sm:$0xff]   ;;  %v949_v27 = vld [vmem:[%s1276_s0 + $0x18] ss:$12 sps:$4 sm:$0xff]  }
   0x9   :  { %v947_v23 = vld [vmem:[%s1276_s0 + $0xac] ss:$12 sps:$4 sm:$0xff]   ;;  %v951_v24 = vld [vmem:[%s1275_s1 + $0x80] sm:$0xff]   ;;  %v950_v28 = vld [vmem:[%s1276_s0 + $0xa8] ss:$12 sps:$4 sm:$0xff]   ;;  %111 = vperm.xlu1 %921, %v85_v26  }
   0xa   :  { %v83_v25 = vld [vmem:[%s1277_s2] sm:$0xff]  ;;  %v84_v29 = vld [vmem:[%s1277_s2 + $0x8] sm:$0xff]  ;;  %v86_v32 = vld [vmem:[%s1277_s2 + $0x18] sm:$0xff] }
   0xb   :  { %814 = vmatpush3.bf16.msra.mxu0 %v927_v6  ;;  %913 = vmatpush3.bf16.msra.mxu1 %v927_v6  ;;  %v952_v30 = vld [vmem:[%s1276_s0 + $0x34] ss:$12 sps:$4 sm:$0xff]   ;;  %v88_v34 = vld [vmem:[%s1277_s2 + $0x28] sm:$0xff]  ;;  %v955_v35 = vld [vmem:[%s1276_s0 + $0x30] ss:$12 sps:$4 sm:$0xff]  }
   0xc   :  { %815 = vmatprep.subr.bf16.mxu0 %v928_v7  ;;  %906 = vmatprep.subr.bf16.mxu1 %v928_v7  ;;  %v954_v31 = vld [vmem:[%s1276_s0 + $0x8] ss:$12 sps:$4 sm:$0xff]   ;;  %v87_v33 = vld [vmem:[%s1277_s2 + $0x20] sm:$0xff]  ;;  %v957_v38 = vld [vmem:[%s1276_s0 + $0x4c] ss:$12 sps:$4 sm:$0xff]  }
   0xd   :  { %101 = vperm.xlu0 %920, %v83_v25   ;;  %116 = vperm.xlu1 %921, %v86_v32   ;;  %v956_v36 = vld [vmem:[%s1276_s0 + $0x20] ss:$12 sps:$4 sm:$0xff]   ;;  %v89_v37 = vld [vmem:[%s1277_s2 + $0x30] sm:$0xff]  ;;  %v959_v39 = vld [vmem:[%s1276_s0 + $0x38] ss:$12 sps:$4 sm:$0xff]  }
   0xe   :  { %v90_v40 = vld [vmem:[%s1277_s2 + $0x38] sm:$0xff]  ;;  %v91_v41 = vld [vmem:[%s1277_s2 + $0x40] sm:$0xff]  ;;  %v92_v42 = vld [vmem:[%s1277_s2 + $0x48] sm:$0xff] }
   0xf   :  { %816 = vmatpush3.bf16.msra.mxu0 %v929_v8  ;;  %914 = vmatpush3.bf16.msra.mxu1 %v929_v8  ;;  %v960_v43 = vld [vmem:[%s1276_s0 + $0x48] ss:$12 sps:$4 sm:$0xff]   ;;  %v961_v44 = vld [vmem:[%s1276_s0 + $0x50] ss:$12 sps:$4 sm:$0xff]   ;;  %v95_v49 = vld [vmem:[%s1277_s2 + $0x60] sm:$0xff] }
  0x10   :  { %817 = vmatprep.subr.bf16.mxu0 %v930_v9  ;;  %907 = vmatprep.subr.bf16.mxu1 %v930_v9  ;;  %v93_v45 = vld [vmem:[%s1277_s2 + $0x50] sm:$0xff]  ;;  %v94_v48 = vld [vmem:[%s1277_s2 + $0x58] sm:$0xff]  ;;  %v96_v50 = vld [vmem:[%s1277_s2 + $0x68] sm:$0xff] }
  0x11   :  { %106 = vperm.xlu0 %920, %v84_v29   ;;  %126 = vperm.xlu1 %921, %v88_v34   ;;  %v962_v46 = vld [vmem:[%s1276_s0 + $0x64] ss:$12 sps:$4 sm:$0xff]   ;;  %v964_v47 = vld [vmem:[%s1276_s0 + $0x68] ss:$12 sps:$4 sm:$0xff]   ;;  %v965_v51 = vld [vmem:[%s1276_s0 + $0x60] ss:$12 sps:$4 sm:$0xff]  }
  0x12   :  { %v966_v52 = vld [vmem:[%s1276_s0 + $0x80] ss:$12 sps:$4 sm:$0xff]   ;;  %v97_v53 = vld [vmem:[%s1277_s2 + $0x70] sm:$0xff]  ;;  %v967_v54 = vld [vmem:[%s1276_s0 + $0x7c] ss:$12 sps:$4 sm:$0xff]  }
  0x13   :  { %818 = vmatpush3.bf16.msra.mxu0 %v931_v10  ;;  %915 = vmatpush3.bf16.msra.mxu1 %v931_v10  ;;  %v969_v55 = vld [vmem:[%s1276_s0 + $0x98] ss:$12 sps:$4 sm:$0xff]   ;;  %v971_v58 = vld [vmem:[%s1276_s0 + $0xb0] ss:$12 sps:$4 sm:$0xff]  }
  0x14   :  { %819 = vmatprep.subr.bf16.mxu0 %v932_v11  ;;  %908 = vmatprep.subr.bf16.mxu1 %v932_v11  ;;  %v98_v56 = vld [vmem:[%s1277_s2 + $0x78] sm:$0xff] }
  0x15   :  { %121 = vperm.xlu0 %920, %v87_v33   ;;  %136 = vperm.xlu1 %921, %v90_v40   ;;  %v970_v57 = vld [vmem:[%s1276_s0 + $0x78] ss:$12 sps:$4 sm:$0xff]  }
  0x17   :  { %820 = vmatpush3.bf16.msra.mxu0 %v933_v14  ;;  %916 = vmatpush3.bf16.msra.mxu1 %v933_v14 }
  0x18   :  { %821 = vmatprep.subr.bf16.mxu0 %v934_v15  ;;  %909 = vmatprep.subr.bf16.mxu1 %v934_v15 }
  0x19   :  { %131 = vperm.xlu0 %920, %v89_v37   ;;  %146 = vperm.xlu1 %921, %v92_v42  }
  0x1b   :  { %822 = vmatpush3.bf16.msra.mxu0 %v935_v16  ;;  %917 = vmatpush3.bf16.msra.mxu1 %v935_v16 }
  0x1c   :  { %823 = vmatprep.subr.bf16.mxu0 %v936_v17  ;;  %910 = vmatprep.subr.bf16.mxu1 %v936_v17 }
  0x1d   :  { %141 = vperm.xlu0 %920, %v91_v41   ;;  %156 = vperm.xlu1 %921, %v94_v48  }
  0x1f   :  { %824 = vmatpush3.bf16.msra.mxu0 %v937_v18  ;;  %918 = vmatpush3.bf16.msra.mxu1 %v937_v18 }
  0x20   :  { %883 = vmatprep.subr.bf16.mxu1 %v944_v20 }
  0x21   :  { %151 = vperm.xlu0 %920, %v93_v45   ;;  %166 = vperm.xlu1 %921, %v96_v50  }
  0x22   :  { %465 = vmatmul.mubr.bf16.vlgmr.msra.gmra.mxu0 %v938_v19  ;;  %513 = vmatmul.mubr.bf16.vlgmr.msra.gmra.mxu1 %v941_v21 }
  0x23   :  { %884 = vmatpush3.bf16.msra.mxu1 %v944_v20  ;;  %472 = vmatprep.mubr.bf16.mxu0 %v945_v22 }
  0x24   :  { %520 = vmatprep.mubr.bf16.mxu1 %v947_v23  ;;  %885 = vmatprep.subr.bf16.mxu1 %v951_v24 }
  0x25   :  { %161 = vperm.xlu0 %920, %v95_v49   ;;  %176 = vperm.xlu1 %921, %v98_v56  }
  0x27   :  { %886 = vmatpush3.bf16.msra.mxu1 %v951_v24 }
  0x29   :  { %171 = vperm.xlu0 %920, %v97_v53  }
  0x2a   :  { %473 = vmatmul.mubr.bf16.gmra.mxu0 %v949_v27  ;;  %521 = vmatmul.mubr.bf16.gmra.mxu1 %v950_v28 }
  0x2b   :  { %480 = vmatprep.mubr.bf16.mxu0 %v952_v30  ;;  %887 = vmatprep.mubr.msk.bf16.mxu1 %vm407_vm0, %v954_v31 }
  0x32   :  { %481 = vmatmul.mubr.bf16.gmra.mxu0 %v955_v35  ;;  %888 = vmatmul.mubr.msk.bf16.vlgmr.msra.gmra.mxu1 %vm407_vm0, %v956_v36 }
  0x33   :  { %488 = vmatprep.mubr.bf16.mxu0 %v957_v38  ;;  %891 = vmatprep.mubr.msk.bf16.mxu1 %vm407_vm0, %v959_v39 }
  0x3a   :  { %489 = vmatmul.mubr.bf16.gmra.mxu0 %v960_v43  ;;  %892 = vmatmul.mubr.msk.bf16.gmra.mxu1 %vm407_vm0, %v961_v44 }
  0x3b   :  { %496 = vmatprep.mubr.bf16.mxu0 %v962_v46  ;;  %895 = vmatprep.mubr.msk.bf16.mxu1 %vm407_vm0, %v964_v47 }
  0x42   :  { %497 = vmatmul.mubr.bf16.gmra.mxu0 %v965_v51  ;;  %896 = vmatmul.mubr.msk.bf16.gmra.mxu1 %vm407_vm0, %v966_v52 }
  0x43   :  { %504 = vmatprep.mubr.bf16.mxu0 %v967_v54  ;;  %899 = vmatprep.mubr.msk.bf16.mxu1 %vm407_vm0, %v969_v55 }
  0x4a   :  { %505 = vmatmul.mubr.bf16.gmra.mxu0 %v970_v57  ;;  %900 = vmatmul.mubr.msk.bf16.gmra.mxu1 %vm407_vm0, %v971_v58 }
  0x84   :  { %v112_v60 = vpop.permute.xlu1 %111 }
  0x88   :  { %v102_v59 = vpop.permute.xlu0 %101  ;;  %v117_v4 = vpop.permute.xlu1 %116 }
  0x8c   :  { %v107_v63 = vpop.permute.xlu0 %106  ;;  %v127_v12 = vpop.permute.xlu1 %126 }
  0x90   :  { %v122_v7 = vpop.permute.xlu0 %121  ;;  %v137_v25 = vpop.permute.xlu1 %136 }
  0x94   :  { %v132_v16 = vpop.permute.xlu0 %131  ;;  %v1193_v43 = vpop.permute.xlu1 %146 }
  0x98   :  { %v1191_v30 = vpop.permute.xlu0 %141 }
  0x9c   :  { %v1199_v49 = vpop.permute.xlu0 %151 }
  0xe2   :  { %v825_v61 = vpop.f32.mrf.mxu0  ;;  %v1175_v62 = vpop.f32.mrf.mxu1 }
  0xe4   :  { %v826_v0 = vpop.f32.mrf.mxu0  ;;  %v1177_v1 = vpop.f32.mrf.mxu1 }
  0xe5   :  { %v827_v17 = vadd.f32 %v826_v0, %v825_v61  ;;  %v1209_v61 = vpop.permute.xlu1 %156 }
  0xe6   :  { %v828_v2 = vpop.f32.mrf.mxu0  ;;  %v1179_v3 = vpop.f32.mrf.mxu1 }
  0xe7   :  { %v467_v27 = vadd.f32 %v827_v17, %v102_v59 }
  0xe8   :  { %v829_v5 = vpop.f32.mrf.mxu0  ;;  %v1181_v6 = vpop.f32.mrf.mxu1 }
  0xe9   :  { %v830_v22 = vadd.f32 %v829_v5, %v828_v2 }
  0xea   :  { %v831_v8 = vpop.f32.mrf.mxu0  ;;  %v1183_v9 = vpop.f32.mrf.mxu1 }
  0xeb   :  { %v470_v36 = vadd.f32 %v830_v22, %v107_v63 }
  0xec   :  { %v832_v10 = vpop.f32.mrf.mxu0  ;;  %v1185_v11 = vpop.f32.mrf.mxu1 }
  0xed   :  { %v833_v13 = vadd.f32 %v832_v10, %v831_v8 }
  0xee   :  { %v834_v14 = vpop.f32.mrf.mxu0  ;;  %v1187_v15 = vpop.f32.mrf.mxu1 }
  0xef   :  { %v475_v21 = vadd.f32 %v833_v13, %v112_v60 }
  0xf0   :  { %v835_v18 = vpop.f32.mrf.mxu0  ;;  %v1189_v19 = vpop.f32.mrf.mxu1 }
  0xf1   :  { %v836_v20 = vadd.f32 %v835_v18, %v834_v14 }
  0xf2   :  { %v837_v23 = vpop.f32.mrf.mxu0  ;;  %v889_v24 = vpop.f32.mrf.mxu1 }
  0xf3   :  { %v572_v26 = vadd.f32 %v889_v24, %v475_v21  ;;  %v478_v33 = vadd.f32 %v836_v20, %v117_v4  ;;  %v167_v24 = vpop.permute.xlu1 %166 }
  0xf4   :  { %v838_v28 = vpop.f32.mrf.mxu0  ;;  %v563_v29 = vpop.f32.mrf.mxu1 }
  0xf5   :  { %v628_v31 = vmax.f32 %v572_v26, 0.0  ;;  %v564_v32 = vadd.f32 %v563_v29, %v467_v27  ;;  %v839_v38 = vadd.f32 %v838_v28, %v837_v23 }
  0xf6   :  { %v840_v34 = vpop.f32.mrf.mxu0  ;;  %v890_v35 = vpop.f32.mrf.mxu1 }
  0xf7   :  { %v795_v37 = vpack.c.bf16 %v628_v31, %v628_v31  ;;  %v626_v39 = vmax.f32 %v564_v32, 0.0  ;;  %v575_v40 = vadd.f32 %v890_v35, %v478_v33  ;;  %v483_v53 = vadd.f32 %v839_v38, %v122_v7  ;;  %v162_v7 = vpop.permute.xlu0 %161  ;;  %v177_v38 = vpop.permute.xlu1 %176 }
  0xf8   :  { %v841_v41 = vpop.f32.mrf.mxu0  ;;  %v566_v42 = vpop.f32.mrf.mxu1 }
  0xf9   :  { %709 = vst.msk [vmem:[%s1278_s3 + $0x8] sm:$0xf] %vm706_vm1, %v795_v37  ;;  %v793_v44 = vpack.c.bf16 %v626_v39, %v626_v39  ;;  %v629_v45 = vmax.f32 %v575_v40, 0.0  ;;  %v567_v46 = vadd.f32 %v566_v42, %v470_v36  ;;  %v842_v51 = vadd.f32 %v841_v41, %v840_v34 }
  0xfa   :  { %v843_v47 = vpop.f32.mrf.mxu0  ;;  %v893_v48 = vpop.f32.mrf.mxu1  ;;  %v872_v34 = vadd.f32 %v1189_v19, %v1187_v15  ;;  %v866_v15 = vadd.f32 %v1181_v6, %v1179_v3 }
  0xfb   :  { %707 = vst.msk [vmem:[%s1278_s3] sm:$0xf] %vm706_vm1, %v793_v44  ;;  %v796_v50 = vpack.c.bf16 %v629_v45, %v629_v45  ;;  %v627_v52 = vmax.f32 %v567_v46, 0.0  ;;  %v486_v2 = vadd.f32 %v842_v51, %v127_v12  ;;  %v869_v12 = vadd.f32 %v1185_v11, %v1183_v9  ;;  %v172_v26 = vpop.permute.xlu0 %171 }
  0xfc   :  { %v844_v54 = vpop.f32.mrf.mxu0  ;;  %v579_v55 = vpop.f32.mrf.mxu1  ;;  %v863_v11 = vadd.f32 %v1177_v1, %v1175_v62  ;;  %v526_v19 = vadd.f32 %v872_v34, %v177_v38  ;;  %v518_v6 = vadd.f32 %v866_v15, %v167_v24 }
  0xfd   :  { %710 = vst.msk [vmem:[%s1278_s3 + $0xc] sm:$0xf] %vm706_vm1, %v796_v50  ;;  %v794_v56 = vpack.c.bf16 %v627_v52, %v627_v52  ;;  %v845_v57 = vadd.f32 %v844_v54, %v843_v47  ;;  %v580_v58 = vadd.f32 %v579_v55, %v483_v53  ;;  %v523_v37 = vadd.f32 %v869_v12, %v172_v26 }
  0xfe   :  { %v846_v59 = vpop.f32.mrf.mxu0  ;;  %v894_v60 = vpop.f32.mrf.mxu1  ;;  %v515_v45 = vadd.f32 %v863_v11, %v162_v7 }
  0xff   :  { %708 = vst.msk [vmem:[%s1278_s3 + $0x4] sm:$0xf] %vm706_vm1, %v794_v56  ;;  %v491_v63 = vadd.f32 %v845_v57, %v132_v16  ;;  %v630_v0 = vmax.f32 %v580_v58, 0.0 }
 0x100   :  { %v847_v4 = vpop.f32.mrf.mxu0  ;;  %v582_v5 = vpop.f32.mrf.mxu1 }
 0x101   :  { %v588_v8 = vadd.f32 %v893_v48, %v491_v63  ;;  %v797_v10 = vpack.c.bf16 %v630_v0, %v630_v0  ;;  %v848_v13 = vadd.f32 %v847_v4, %v846_v59  ;;  %v583_v14 = vadd.f32 %v582_v5, %v486_v2 }
 0x102   :  { %v849_v17 = vpop.f32.mrf.mxu0  ;;  %v897_v18 = vpop.f32.mrf.mxu1 }
 0x103   :  { %v632_v20 = vmax.f32 %v588_v8, 0.0  ;;  %711 = vst.msk [vmem:[%s1278_s3 + $0x10] sm:$0xf] %vm706_vm1, %v797_v10  ;;  %v494_v21 = vadd.f32 %v848_v13, %v137_v25  ;;  %v631_v22 = vmax.f32 %v583_v14, 0.0 }
 0x104   :  { %v850_v16 = vpop.f32.mrf.mxu0  ;;  %v595_v23 = vpop.f32.mrf.mxu1 }
 0x105   :  { %v799_v27 = vpack.c.bf16 %v632_v20, %v632_v20  ;;  %v591_v28 = vadd.f32 %v894_v60, %v494_v21  ;;  %v798_v29 = vpack.c.bf16 %v631_v22, %v631_v22  ;;  %v851_v31 = vadd.f32 %v850_v16, %v849_v17 }
 0x106   :  { %v852_v32 = vpop.f32.mrf.mxu0  ;;  %v898_v33 = vpop.f32.mrf.mxu1 }
 0x107   :  { %713 = vst.msk [vmem:[%s1278_s3 + $0x18] sm:$0xf] %vm706_vm1, %v799_v27  ;;  %v633_v25 = vmax.f32 %v591_v28, 0.0  ;;  %712 = vst.msk [vmem:[%s1278_s3 + $0x14] sm:$0xf] %vm706_vm1, %v798_v29  ;;  %v499_v9 = vadd.f32 %v851_v31, %v1191_v30 }
 0x108   :  { %v853_v35 = vpop.f32.mrf.mxu0  ;;  %v598_v36 = vpop.f32.mrf.mxu1 }
 0x109   :  { %v800_v39 = vpack.c.bf16 %v633_v25, %v633_v25  ;;  %v596_v40 = vadd.f32 %v595_v23, %v499_v9  ;;  %v854_v41 = vadd.f32 %v853_v35, %v852_v32 }
 0x10a   :  { %v855_v42 = vpop.f32.mrf.mxu0  ;;  %v901_v44 = vpop.f32.mrf.mxu1 }
 0x10b   :  { %714 = vst.msk [vmem:[%s1278_s3 + $0x1c] sm:$0xf] %vm706_vm1, %v800_v39  ;;  %v634_v30 = vmax.f32 %v596_v40, 0.0  ;;  %v502_v62 = vadd.f32 %v854_v41, %v1193_v43  ;;  %v620_v1 = vadd.f32 %v901_v44, %v523_v37 }
 0x10c   :  { %v856_v46 = vpop.f32.mrf.mxu0  ;;  %v611_v47 = vpop.f32.mrf.mxu1 }
 0x10d   :  { %v801_v48 = vpack.c.bf16 %v634_v30, %v634_v30  ;;  %v599_v50 = vadd.f32 %v598_v36, %v502_v62  ;;  %v640_v51 = vmax.f32 %v620_v1, 0.0  ;;  %v857_v52 = vadd.f32 %v856_v46, %v855_v42 }
 0x10e   :  { %v612_v53 = vadd.f32 %v611_v47, %v515_v45  ;;  %v858_v54 = vpop.f32.mrf.mxu0  ;;  %v902_v55 = vpop.f32.mrf.mxu1 }
 0x10f   :  { %715 = vst.msk [vmem:[%s1278_s3 + $0x20] sm:$0xf] %vm706_vm1, %v801_v48  ;;  %v635_v43 = vmax.f32 %v599_v50, 0.0  ;;  %v807_v56 = vpack.c.bf16 %v640_v51, %v640_v51  ;;  %v507_v57 = vadd.f32 %v857_v52, %v1199_v49  ;;  %v623_v3 = vadd.f32 %v902_v55, %v526_v19 }
 0x110   :  { %v638_v58 = vmax.f32 %v612_v53, 0.0  ;;  %v859_v59 = vpop.f32.mrf.mxu0  ;;  %v614_v60 = vpop.f32.mrf.mxu1 }
 0x111   :  { %v802_v63 = vpack.c.bf16 %v635_v43, %v635_v43  ;;  %721 = vst.msk [vmem:[%s1278_s3 + $0x38] sm:$0xf] %vm706_vm1, %v807_v56  ;;  %v604_v0 = vadd.f32 %v897_v18, %v507_v57  ;;  %v641_v2 = vmax.f32 %v623_v3, 0.0  ;;  %v860_v4 = vadd.f32 %v859_v59, %v858_v54 }
 0x112   :  { %v805_v5 = vpack.c.bf16 %v638_v58, %v638_v58  ;;  %v615_v7 = vadd.f32 %v614_v60, %v518_v6 }
 0x113   :  { %716 = vst.msk [vmem:[%s1278_s3 + $0x24] sm:$0xf] %vm706_vm1, %v802_v63  ;;  %v636_v49 = vmax.f32 %v604_v0, 0.0  ;;  %v808_v8 = vpack.c.bf16 %v641_v2, %v641_v2  ;;  %v510_v10 = vadd.f32 %v860_v4, %v1209_v61 }
 0x114   :  { %719 = vst.msk [vmem:[%s1278_s3 + $0x30] sm:$0xf] %vm706_vm1, %v805_v5  ;;  %v639_v13 = vmax.f32 %v615_v7, 0.0 }
 0x115   :  { %v803_v14 = vpack.c.bf16 %v636_v49, %v636_v49  ;;  %722 = vst.msk [vmem:[%s1278_s3 + $0x3c] sm:$0xf] %vm706_vm1, %v808_v8  ;;  %v607_v17 = vadd.f32 %v898_v33, %v510_v10 }
 0x116   :  { %v806_v18 = vpack.c.bf16 %v639_v13, %v639_v13 }
 0x117   :  { %717 = vst.msk [vmem:[%s1278_s3 + $0x28] sm:$0xf] %vm706_vm1, %v803_v14  ;;  %v637_v61 = vmax.f32 %v607_v17, 0.0 }
 0x118   :  { %720 = vst.msk [vmem:[%s1278_s3 + $0x34] sm:$0xf] %vm706_vm1, %v806_v18 }
 0x119   :  { %v804_v20 = vpack.c.bf16 %v637_v61, %v637_v61 }
 0x11b   :  { %718 = vst.msk [vmem:[%s1278_s3 + $0x2c] sm:$0xf] %vm706_vm1, %v804_v20 }

// kernel: mul.116
= control target key start
LH: loop header
LB: loop body
LE: loop exit
PB: predicated region body
PF: predicated region fallthrough
CT: control target
= control target key end

     0   :  { %v119_v3 = vmov 0.0   ;;  %s160_s0 = inlined_call_operand.vmem [shape: bf16[32,2], index: 0, kind: input, shape index: {}]   ;;  %s161_s1 = inlined_call_operand.vmem [shape: bf16[32,2,8,8], index: 1, kind: output, shape index: {}]  }
   0x1   :  { %v4_v0 = vld [vmem:[%s160_s0] ss:$0 sm:$0xff] }
   0x2   :  { %v5_v1 = vunpack.i.l.bf16 %v4_v0  ;;  %v14_v2 = vunpack.i.h.bf16 %v4_v0 }
   0x4   :  { %v9_v4 = vpack.c.bf16 %v119_v3, %v5_v1  ;;  %v79_v5 = vpack.c.bf16 %v14_v2, %v14_v2  ;;  %v84_v6 = vpack.c.bf16 %v5_v1, %v5_v1 }
   0x6   :  { %10 = vst [vmem:[%s161_s1] sm:$0xf] %v9_v4  ;;  %62 = vst [vmem:[%s161_s1 + $0x4] sm:$0xf] %v9_v4 }
   0x7   :  { %111 = vst [vmem:[%s161_s1 + $0x20] sm:$0xff] %v79_v5   ;;  %112 = vst [vmem:[%s161_s1 + $0x8] sm:$0xff] %v84_v6  }
   0x8   :  { %113 = vst [vmem:[%s161_s1 + $0x28] sm:$0xff] %v79_v5   ;;  %114 = vst [vmem:[%s161_s1 + $0x10] sm:$0xff] %v84_v6  }
   0x9   :  { %115 = vst [vmem:[%s161_s1 + $0x30] sm:$0xff] %v79_v5   ;;  %116 = vst [vmem:[%s161_s1 + $0x18] sm:$0xff] %v84_v6  }
   0xa   :  { %117 = vst [vmem:[%s161_s1 + $0x38] sm:$0xff] %v79_v5  }

// kernel: subnet_apply.50
= control target key start
LH: loop header
LB: loop body
LE: loop exit
PB: predicated region body
PF: predicated region fallthrough
CT: control target
= control target key end

     0   :  { %v468_v1 = vmov 0   ;;  %vm221_vm0 = vcmask 261120   ;;  %s581_s1 = inlined_call_operand.vmem [shape: bf16[288,128], index: 1, kind: input, shape index: {}]   ;;  %s582_s0 = inlined_call_operand.vmem [shape: bf16[32,288], index: 0, kind: input, shape index: {}]   ;;  %s583_s2 = inlined_call_operand.vmem [shape: f32[32,1], index: 2, kind: input, shape index: {}]   ;;  %s584_s3 = inlined_call_operand.vmem [shape: bf16[32,128], index: 3, kind: output, shape index: {}]  }
   0x1   :  { %v442_v0 = vld [vmem:[%s581_s1 + $0x78] sm:$0xff]   ;;  %440 = vset.pattern.permute.xlu0 %v468_v1  ;;  %441 = vset.pattern.permute.xlu1 %v468_v1  ;;  %v444_v3 = vld [vmem:[%s581_s1 + $0x70] sm:$0xff]   ;;  %v446_v5 = vld [vmem:[%s581_s1 + $0x68] sm:$0xff]  }
   0x2   :  { %v443_v2 = vld [vmem:[%s581_s1 + $0x38] sm:$0xff]   ;;  %399 = vmatprep.subr.bf16.mxu0 %v442_v0  ;;  %v445_v4 = vld [vmem:[%s581_s1 + $0x30] sm:$0xff]   ;;  %v447_v6 = vld [vmem:[%s581_s1 + $0x28] sm:$0xff]  }
   0x3   :  { %400 = vmatpush3.bf16.msra.mxu0 %v443_v2  ;;  %v448_v7 = vld [vmem:[%s581_s1 + $0x60] sm:$0xff]   ;;  %v450_v9 = vld [vmem:[%s581_s1 + $0x58] sm:$0xff]   ;;  %v457_v11 = vld [vmem:[%s581_s1 + $0x88] sm:$0xff]  }
   0x4   :  { %401 = vmatprep.subr.bf16.mxu0 %v444_v3  ;;  %v449_v8 = vld [vmem:[%s581_s1 + $0x20] sm:$0xff]   ;;  %v451_v10 = vld [vmem:[%s581_s1 + $0x18] sm:$0xff]   ;;  %v452_v12 = vld [vmem:[%s581_s1 + $0x50] sm:$0xff]   ;;  %431 = vmatprep.subr.bf16.mxu1 %v457_v11 }
   0x5   :  { %v453_v13 = vld [vmem:[%s581_s1 + $0x10] sm:$0xff]   ;;  %v454_v14 = vld [vmem:[%s581_s1 + $0x48] sm:$0xff]   ;;  %432 = vmatpush3.bf16.msra.mxu1 %v457_v11  ;;  %v462_v16 = vld [vmem:[%s581_s1 + $0x80] sm:$0xff]  }
   0x6   :  { %v461_v15 = vld [vmem:[%s582_s0 + $0x4] ss:$12 sps:$4 sm:$0xff]   ;;  %v463_v17 = vld [vmem:[%s582_s0 + $0x8] ss:$12 sps:$4 sm:$0xff]   ;;  %433 = vmatprep.subr.bf16.mxu1 %v462_v16  ;;  %v464_v18 = vld [vmem:[%s582_s0 + $0x20] ss:$12 sps:$4 sm:$0xff]  }
   0x7   :  { %402 = vmatpush3.bf16.msra.mxu0 %v445_v4  ;;  %260 = vmatprep.mubr.bf16.mxu0 %v461_v15  ;;  %v59_v19 = vld [vmem:[%s583_s2] sm:$0xff]  ;;  %v455_v20 = vld [vmem:[%s581_s1 + $0x8] sm:$0xff]   ;;  %v61_v21 = vld [vmem:[%s583_s2 + $0x10] sm:$0xff] }
   0x8   :  { %403 = vmatprep.subr.bf16.mxu0 %v446_v5  ;;  %435 = vmatprep.mubr.msk.bf16.mxu1 %vm221_vm0, %v463_v17  ;;  %v456_v22 = vld [vmem:[%s581_s1 + $0x40] sm:$0xff]   ;;  %v60_v23 = vld [vmem:[%s583_s2 + $0x8] sm:$0xff]  ;;  %v62_v24 = vld [vmem:[%s583_s2 + $0x18] sm:$0xff] }
   0x9   :  { %434 = vmatpush3.bf16.msra.mxu1 %v462_v16  ;;  %65 = vperm.xlu0 %440, %v59_v19   ;;  %v458_v25 = vld [vmem:[%s581_s1] sm:$0xff]   ;;  %v465_v27 = vld [vmem:[%s582_s0 + $0x1c] ss:$12 sps:$4 sm:$0xff]  }
   0xa   :  { %75 = vperm.xlu1 %441, %v61_v21   ;;  %v459_v26 = vld [vmem:[%s582_s0] ss:$12 sps:$4 sm:$0xff]   ;;  %v467_v28 = vld [vmem:[%s582_s0 + $0x18] ss:$12 sps:$4 sm:$0xff]  }
   0xb   :  { %404 = vmatpush3.bf16.msra.mxu0 %v447_v6 }
   0xc   :  { %405 = vmatprep.subr.bf16.mxu0 %v448_v7  ;;  %436 = vmatmul.mubr.msk.bf16.vlgmr.msra.gmra.mxu1 %vm221_vm0, %v464_v18 }
   0xd   :  { %70 = vperm.xlu0 %440, %v60_v23  }
   0xe   :  { %80 = vperm.xlu1 %441, %v62_v24  }
   0xf   :  { %406 = vmatpush3.bf16.msra.mxu0 %v449_v8 }
  0x10   :  { %407 = vmatprep.subr.bf16.mxu0 %v450_v9 }
  0x13   :  { %408 = vmatpush3.bf16.msra.mxu0 %v451_v10 }
  0x14   :  { %409 = vmatprep.subr.bf16.mxu0 %v452_v12 }
  0x17   :  { %410 = vmatpush3.bf16.msra.mxu0 %v453_v13 }
  0x18   :  { %411 = vmatprep.subr.bf16.mxu0 %v454_v14 }
  0x1b   :  { %412 = vmatpush3.bf16.msra.mxu0 %v455_v20 }
  0x1c   :  { %413 = vmatprep.subr.bf16.mxu0 %v456_v22 }
  0x1f   :  { %414 = vmatpush3.bf16.msra.mxu0 %v458_v25 }
  0x22   :  { %261 = vmatmul.mubr.bf16.vlgmr.msra.gmra.mxu0 %v459_v26 }
  0x23   :  { %268 = vmatprep.mubr.bf16.mxu0 %v465_v27 }
  0x2a   :  { %269 = vmatmul.mubr.bf16.gmra.mxu0 %v467_v28 }
  0x84   :  { %v66_v30 = vpop.permute.xlu0 %65 }
  0x85   :  { %v76_v45 = vpop.permute.xlu1 %75 }
  0x88   :  { %v71_v39 = vpop.permute.xlu0 %70 }
  0x89   :  { %v81_v56 = vpop.permute.xlu1 %80 }
  0xcc   :  { %v437_v29 = vpop.f32.mrf.mxu1 }
  0xce   :  { %v311_v32 = vpop.f32.mrf.mxu1 }
  0xd0   :  { %v438_v36 = vpop.f32.mrf.mxu1 }
  0xd2   :  { %v314_v42 = vpop.f32.mrf.mxu1 }
  0xe2   :  { %v415_v31 = vpop.f32.mrf.mxu0 }
  0xe4   :  { %v416_v33 = vpop.f32.mrf.mxu0 }
  0xe5   :  { %v417_v34 = vadd.f32 %v416_v33, %v415_v31 }
  0xe6   :  { %v418_v35 = vpop.f32.mrf.mxu0 }
  0xe7   :  { %v263_v37 = vadd.f32 %v417_v34, %v66_v30 }
  0xe8   :  { %v419_v38 = vpop.f32.mrf.mxu0 }
  0xe9   :  { %v420_v40 = vadd.f32 %v419_v38, %v418_v35  ;;  %v312_v43 = vadd.f32 %v311_v32, %v263_v37 }
  0xea   :  { %v421_v41 = vpop.f32.mrf.mxu0 }
  0xeb   :  { %v266_v44 = vadd.f32 %v420_v40, %v71_v39  ;;  %v326_v50 = vmax.f32 %v312_v43, 0.0 }
  0xec   :  { %v422_v46 = vpop.f32.mrf.mxu0 }
  0xed   :  { %v423_v47 = vadd.f32 %v422_v46, %v421_v41  ;;  %v315_v48 = vadd.f32 %v314_v42, %v266_v44 }
  0xee   :  { %v424_v49 = vpop.f32.mrf.mxu0 }
  0xef   :  { %v271_v51 = vadd.f32 %v423_v47, %v76_v45  ;;  %v327_v52 = vmax.f32 %v315_v48, 0.0 }
  0xf0   :  { %v425_v53 = vpop.f32.mrf.mxu0 }
  0xf1   :  { %v391_v54 = vpack.c.bf16 %v327_v52, %v326_v50  ;;  %v426_v55 = vadd.f32 %v425_v53, %v424_v49  ;;  %v320_v57 = vadd.f32 %v437_v29, %v271_v51 }
  0xf3   :  { %392 = vst [vmem:[%s584_s3] sm:$0xff] %v391_v54   ;;  %v274_v58 = vadd.f32 %v426_v55, %v81_v56  ;;  %v328_v60 = vmax.f32 %v320_v57, 0.0 }
  0xf5   :  { %v323_v59 = vadd.f32 %v438_v36, %v274_v58 }
  0xf7   :  { %v329_v61 = vmax.f32 %v323_v59, 0.0 }
  0xf9   :  { %v396_v62 = vpack.c.bf16 %v329_v61, %v328_v60 }
  0xfb   :  { %398 = vst [vmem:[%s584_s3 + $0x8] sm:$0xff] %v396_v62  }

// kernel: subnet_apply.52
= control target key start
LH: loop header
LB: loop body
LE: loop exit
PB: predicated region body
PF: predicated region fallthrough
CT: control target
= control target key end

     0   :  { %v492_v1 = vmov 0   ;;  %vm224_vm0 = vcmask 261120   ;;  %s616_s1 = inlined_call_operand.vmem [shape: bf16[288,128], index: 1, kind: input, shape index: {}]   ;;  %s617_s0 = inlined_call_operand.vmem [shape: bf16[32,288], index: 0, kind: input, shape index: {}]   ;;  %s618_s2 = inlined_call_operand.vmem [shape: f32[32,1], index: 2, kind: input, shape index: {}]   ;;  %s619_s3 = inlined_call_operand.vmem [shape: bf16[32,128], index: 3, kind: input, shape index: {}]   ;;  %s620_s4 = inlined_call_operand.vmem [shape: bf16[32,128], index: 4, kind: output, shape index: {}]  }
   0x1   :  { %v466_v0 = vld [vmem:[%s616_s1 + $0x78] sm:$0xff]   ;;  %464 = vset.pattern.permute.xlu0 %v492_v1  ;;  %465 = vset.pattern.permute.xlu1 %v492_v1  ;;  %v468_v3 = vld [vmem:[%s616_s1 + $0x70] sm:$0xff]   ;;  %v470_v5 = vld [vmem:[%s616_s1 + $0x68] sm:$0xff]  }
   0x2   :  { %v467_v2 = vld [vmem:[%s616_s1 + $0x38] sm:$0xff]   ;;  %423 = vmatprep.subr.bf16.mxu0 %v466_v0  ;;  %v469_v4 = vld [vmem:[%s616_s1 + $0x30] sm:$0xff]   ;;  %v471_v6 = vld [vmem:[%s616_s1 + $0x28] sm:$0xff]  }
   0x3   :  { %424 = vmatpush3.bf16.msra.mxu0 %v467_v2  ;;  %v472_v7 = vld [vmem:[%s616_s1 + $0x60] sm:$0xff]   ;;  %v474_v9 = vld [vmem:[%s616_s1 + $0x58] sm:$0xff]   ;;  %v481_v11 = vld [vmem:[%s616_s1 + $0x88] sm:$0xff]  }
   0x4   :  { %425 = vmatprep.subr.bf16.mxu0 %v468_v3  ;;  %v473_v8 = vld [vmem:[%s616_s1 + $0x20] sm:$0xff]   ;;  %v475_v10 = vld [vmem:[%s616_s1 + $0x18] sm:$0xff]   ;;  %v476_v12 = vld [vmem:[%s616_s1 + $0x50] sm:$0xff]   ;;  %455 = vmatprep.subr.bf16.mxu1 %v481_v11 }
   0x5   :  { %v477_v13 = vld [vmem:[%s616_s1 + $0x10] sm:$0xff]   ;;  %v478_v14 = vld [vmem:[%s616_s1 + $0x48] sm:$0xff]   ;;  %456 = vmatpush3.bf16.msra.mxu1 %v481_v11  ;;  %v486_v16 = vld [vmem:[%s616_s1 + $0x80] sm:$0xff]  }
   0x6   :  { %v485_v15 = vld [vmem:[%s617_s0 + $0x4] ss:$12 sps:$4 sm:$0xff]   ;;  %v487_v17 = vld [vmem:[%s617_s0 + $0x8] ss:$12 sps:$4 sm:$0xff]   ;;  %457 = vmatprep.subr.bf16.mxu1 %v486_v16  ;;  %v488_v18 = vld [vmem:[%s617_s0 + $0x20] ss:$12 sps:$4 sm:$0xff]  }
   0x7   :  { %426 = vmatpush3.bf16.msra.mxu0 %v469_v4  ;;  %263 = vmatprep.mubr.bf16.mxu0 %v485_v15  ;;  %v62_v19 = vld [vmem:[%s618_s2] sm:$0xff]  ;;  %v479_v20 = vld [vmem:[%s616_s1 + $0x8] sm:$0xff]   ;;  %v64_v21 = vld [vmem:[%s618_s2 + $0x10] sm:$0xff] }
   0x8   :  { %427 = vmatprep.subr.bf16.mxu0 %v470_v5  ;;  %459 = vmatprep.mubr.msk.bf16.mxu1 %vm224_vm0, %v487_v17  ;;  %v480_v22 = vld [vmem:[%s616_s1 + $0x40] sm:$0xff]   ;;  %v63_v23 = vld [vmem:[%s618_s2 + $0x8] sm:$0xff]  ;;  %v65_v24 = vld [vmem:[%s618_s2 + $0x18] sm:$0xff] }
   0x9   :  { %458 = vmatpush3.bf16.msra.mxu1 %v486_v16  ;;  %68 = vperm.xlu0 %464, %v62_v19   ;;  %v482_v25 = vld [vmem:[%s616_s1] sm:$0xff]   ;;  %v489_v27 = vld [vmem:[%s617_s0 + $0x1c] ss:$12 sps:$4 sm:$0xff]  }
   0xa   :  { %78 = vperm.xlu1 %465, %v64_v21   ;;  %v483_v26 = vld [vmem:[%s617_s0] ss:$12 sps:$4 sm:$0xff]   ;;  %v491_v28 = vld [vmem:[%s617_s0 + $0x18] ss:$12 sps:$4 sm:$0xff]  }
   0xb   :  { %428 = vmatpush3.bf16.msra.mxu0 %v471_v6  ;;  %v404_v36 = vld [vmem:[%s619_s3] sm:$0xff]   ;;  %v421_v50 = vld [vmem:[%s619_s3 + $0x8] sm:$0xff]  }
   0xc   :  { %429 = vmatprep.subr.bf16.mxu0 %v472_v7  ;;  %460 = vmatmul.mubr.msk.bf16.vlgmr.msra.gmra.mxu1 %vm224_vm0, %v488_v18  ;;  %v405_v43 = vunpack.c.l.bf16 %v404_v36  ;;  %v406_v47 = vunpack.c.h.bf16 %v404_v36  ;;  %v409_v57 = vunpack.c.l.bf16 %v421_v50  ;;  %v410_v2 = vunpack.c.h.bf16 %v421_v50 }
   0xd   :  { %73 = vperm.xlu0 %464, %v63_v23  }
   0xe   :  { %83 = vperm.xlu1 %465, %v65_v24  }
   0xf   :  { %430 = vmatpush3.bf16.msra.mxu0 %v473_v8 }
  0x10   :  { %431 = vmatprep.subr.bf16.mxu0 %v474_v9 }
  0x13   :  { %432 = vmatpush3.bf16.msra.mxu0 %v475_v10 }
  0x14   :  { %433 = vmatprep.subr.bf16.mxu0 %v476_v12 }
  0x17   :  { %434 = vmatpush3.bf16.msra.mxu0 %v477_v13 }
  0x18   :  { %435 = vmatprep.subr.bf16.mxu0 %v478_v14 }
  0x1b   :  { %436 = vmatpush3.bf16.msra.mxu0 %v479_v20 }
  0x1c   :  { %437 = vmatprep.subr.bf16.mxu0 %v480_v22 }
  0x1f   :  { %438 = vmatpush3.bf16.msra.mxu0 %v482_v25 }
  0x22   :  { %264 = vmatmul.mubr.bf16.vlgmr.msra.gmra.mxu0 %v483_v26 }
  0x23   :  { %271 = vmatprep.mubr.bf16.mxu0 %v489_v27 }
  0x2a   :  { %272 = vmatmul.mubr.bf16.gmra.mxu0 %v491_v28 }
  0x84   :  { %v69_v30 = vpop.permute.xlu0 %68 }
  0x85   :  { %v79_v48 = vpop.permute.xlu1 %78 }
  0x88   :  { %v74_v40 = vpop.permute.xlu0 %73 }
  0x89   :  { %v84_v63 = vpop.permute.xlu1 %83 }
  0xcc   :  { %v461_v29 = vpop.f32.mrf.mxu1 }
  0xce   :  { %v314_v32 = vpop.f32.mrf.mxu1 }
  0xd0   :  { %v462_v37 = vpop.f32.mrf.mxu1 }
  0xd2   :  { %v317_v45 = vpop.f32.mrf.mxu1 }
  0xe2   :  { %v439_v31 = vpop.f32.mrf.mxu0 }
  0xe4   :  { %v440_v33 = vpop.f32.mrf.mxu0 }
  0xe5   :  { %v441_v34 = vadd.f32 %v440_v33, %v439_v31 }
  0xe6   :  { %v442_v35 = vpop.f32.mrf.mxu0 }
  0xe7   :  { %v266_v38 = vadd.f32 %v441_v34, %v69_v30 }
  0xe8   :  { %v443_v39 = vpop.f32.mrf.mxu0 }
  0xe9   :  { %v444_v41 = vadd.f32 %v443_v39, %v442_v35  ;;  %v315_v42 = vadd.f32 %v314_v32, %v266_v38 }
  0xea   :  { %v445_v44 = vpop.f32.mrf.mxu0 }
  0xeb   :  { %v269_v46 = vadd.f32 %v444_v41, %v74_v40  ;;  %v337_v51 = vadd.f32 %v405_v43, %v315_v42 }
  0xec   :  { %v446_v49 = vpop.f32.mrf.mxu0 }
  0xed   :  { %v447_v52 = vadd.f32 %v446_v49, %v445_v44  ;;  %v318_v53 = vadd.f32 %v317_v45, %v269_v46  ;;  %v341_v59 = vmax.f32 %v337_v51, 0.0 }
  0xee   :  { %v448_v54 = vpop.f32.mrf.mxu0 }
  0xef   :  { %v274_v55 = vadd.f32 %v447_v52, %v79_v48  ;;  %v338_v56 = vadd.f32 %v406_v47, %v318_v53 }
  0xf0   :  { %v449_v58 = vpop.f32.mrf.mxu0 }
  0xf1   :  { %v323_v60 = vadd.f32 %v461_v29, %v274_v55  ;;  %v342_v61 = vmax.f32 %v338_v56, 0.0  ;;  %v450_v62 = vadd.f32 %v449_v58, %v448_v54 }
  0xf3   :  { %v414_v0 = vpack.c.bf16 %v342_v61, %v341_v59  ;;  %v277_v1 = vadd.f32 %v450_v62, %v84_v63  ;;  %v339_v3 = vadd.f32 %v409_v57, %v323_v60 }
  0xf5   :  { %415 = vst [vmem:[%s620_s4] sm:$0xff] %v414_v0   ;;  %v326_v4 = vadd.f32 %v462_v37, %v277_v1  ;;  %v343_v6 = vmax.f32 %v339_v3, 0.0 }
  0xf7   :  { %v340_v5 = vadd.f32 %v410_v2, %v326_v4 }
  0xf9   :  { %v344_v7 = vmax.f32 %v340_v5, 0.0 }
  0xfb   :  { %v419_v8 = vpack.c.bf16 %v344_v7, %v343_v6 }
  0xfd   :  { %422 = vst [vmem:[%s620_s4 + $0x8] sm:$0xff] %v419_v8  }

// kernel: subnet_apply.47
= control target key start
LH: loop header
LB: loop body
LE: loop exit
PB: predicated region body
PF: predicated region fallthrough
CT: control target
= control target key end

     0   :  { %v1021_v1 = vmov 0   ;;  %vm509_vm0 = vcmask 261120   ;;  %s1330_s1 = inlined_call_operand.vmem [shape: bf16[288,512], index: 1, kind: input, shape index: {}]   ;;  %s1331_s0 = inlined_call_operand.vmem [shape: bf16[32,288], index: 0, kind: input, shape index: {}]   ;;  %s1332_s2 = inlined_call_operand.vmem [shape: f32[32,1], index: 2, kind: input, shape index: {}]   ;;  %s1333_s3 = inlined_call_operand.vmem [shape: bf16[32,512], index: 3, kind: output, shape index: {}]  }
   0x1   :  { %v905_v0 = vld [vmem:[%s1330_s1 + $0xe4] ss:$16 sps:$4 sm:$0xff]   ;;  %601 = vmatprep.mubr.bf16.mxu1 %v1021_v1  ;;  %903 = vset.pattern.permute.xlu0 %v1021_v1  ;;  %v907_v2 = vld [vmem:[%s1330_s1 + $0xe0] ss:$16 sps:$4 sm:$0xff]   ;;  %v920_v11 = vld [vmem:[%s1330_s1 + $0xe8] ss:$16 sps:$4 sm:$0xff]  }
   0x2   :  { %904 = vset.pattern.permute.xlu1 %v1021_v1  ;;  %516 = vmatprep.subr.bf16.mxu0 %v905_v0  ;;  %v908_v3 = vld [vmem:[%s1330_s1 + $0x224] ss:$16 sps:$4 sm:$0xff]   ;;  %v910_v4 = vld [vmem:[%s1330_s1 + $0x220] ss:$16 sps:$4 sm:$0xff]   ;;  %v922_v12 = vld [vmem:[%s1330_s1 + $0xec] ss:$16 sps:$4 sm:$0xff]  }
   0x3   :  { %517 = vmatpush1.bf16.msra.mxu0 %v907_v2  ;;  %v911_v5 = vld [vmem:[%s1330_s1 + $0xc4] ss:$16 sps:$4 sm:$0xff]   ;;  %v913_v6 = vld [vmem:[%s1330_s1 + $0xc0] ss:$16 sps:$4 sm:$0xff]   ;;  %581 = vmatprep.subr.bf16.mxu1 %v908_v3  ;;  %v929_v16 = vld [vmem:[%s1330_s1 + $0xcc] ss:$16 sps:$4 sm:$0xff]  }
   0x4   :  { %v914_v7 = vld [vmem:[%s1330_s1 + $0x204] ss:$16 sps:$4 sm:$0xff]   ;;  %582 = vmatpush1.bf16.msra.mxu1 %v910_v4  ;;  %518 = vmatprep.subr.bf16.mxu0 %v911_v5  ;;  %v916_v8 = vld [vmem:[%s1330_s1 + $0x200] ss:$16 sps:$4 sm:$0xff]   ;;  %v927_v18 = vld [vmem:[%s1330_s1 + $0xc8] ss:$16 sps:$4 sm:$0xff]  }
   0x5   :  { %583 = vmatprep.subr.bf16.mxu1 %v914_v7  ;;  %v917_v9 = vld [vmem:[%s1330_s1 + $0xa4] ss:$16 sps:$4 sm:$0xff]   ;;  %v919_v10 = vld [vmem:[%s1330_s1 + $0xa0] ss:$16 sps:$4 sm:$0xff]   ;;  %v935_v19 = vld [vmem:[%s1330_s1 + $0xac] ss:$16 sps:$4 sm:$0xff]  }
   0x6   :  { %v1084_v13 = vld [vmem:[%s1331_s0 + $0x8] ss:$12 sps:$4 sm:$0xff]   ;;  %v926_v15 = vld [vmem:[%s1330_s1 + $0x80] ss:$16 sps:$4 sm:$0xff]   ;;  %v941_v23 = vld [vmem:[%s1330_s1 + $0x8c] ss:$16 sps:$4 sm:$0xff]  }
   0x7   :  { %519 = vmatpush1.bf16.msra.mxu0 %v913_v6  ;;  %v924_v14 = vld [vmem:[%s1330_s1 + $0x84] ss:$16 sps:$4 sm:$0xff]   ;;  %v932_v20 = vld [vmem:[%s1330_s1 + $0x60] ss:$16 sps:$4 sm:$0xff]   ;;  %v933_v22 = vld [vmem:[%s1330_s1 + $0xa8] ss:$16 sps:$4 sm:$0xff]  }
   0x8   :  { %520 = vmatprep.subr.bf16.mxu0 %v917_v9  ;;  %584 = vmatpush1.bf16.msra.mxu1 %v916_v8  ;;  %v930_v17 = vld [vmem:[%s1330_s1 + $0x64] ss:$16 sps:$4 sm:$0xff]   ;;  %v938_v24 = vld [vmem:[%s1330_s1 + $0x40] ss:$16 sps:$4 sm:$0xff]   ;;  %v939_v26 = vld [vmem:[%s1330_s1 + $0x88] ss:$16 sps:$4 sm:$0xff]  }
   0x9   :  { %622 = vmatprep.subr.bf16.mxu1 %v922_v12  ;;  %v936_v21 = vld [vmem:[%s1330_s1 + $0x44] ss:$16 sps:$4 sm:$0xff]   ;;  %v947_v27 = vld [vmem:[%s1330_s1 + $0x6c] ss:$16 sps:$4 sm:$0xff]   ;;  %v944_v28 = vld [vmem:[%s1330_s1 + $0x20] ss:$16 sps:$4 sm:$0xff]  }
   0xa   :  { %v942_v25 = vld [vmem:[%s1330_s1 + $0x24] ss:$16 sps:$4 sm:$0xff]   ;;  %v945_v30 = vld [vmem:[%s1330_s1 + $0x68] ss:$16 sps:$4 sm:$0xff]   ;;  %v953_v31 = vld [vmem:[%s1330_s1 + $0x4c] ss:$16 sps:$4 sm:$0xff]  }
   0xb   :  { %521 = vmatpush1.bf16.msra.mxu0 %v919_v10  ;;  %882 = vmatmul.mubr.msk.bf16.vlgmr.msra.gmra.mxu1 %vm509_vm0, %v1084_v13  ;;  %v948_v29 = vld [vmem:[%s1330_s1 + $0x4] ss:$16 sps:$4 sm:$0xff]   ;;  %v950_v32 = vld [vmem:[%s1330_s1] ss:$16 sps:$4 sm:$0xff]   ;;  %v951_v34 = vld [vmem:[%s1330_s1 + $0x48] ss:$16 sps:$4 sm:$0xff]  }
   0xc   :  { %522 = vmatprep.subr.bf16.mxu0 %v924_v14  ;;  %623 = vmatpush1.bf16.msra.mxu1 %v920_v11  ;;  %v954_v33 = vld [vmem:[%s1330_s1 + $0x1e4] ss:$16 sps:$4 sm:$0xff]   ;;  %v959_v35 = vld [vmem:[%s1330_s1 + $0x2c] ss:$16 sps:$4 sm:$0xff]   ;;  %v956_v36 = vld [vmem:[%s1330_s1 + $0x1e0] ss:$16 sps:$4 sm:$0xff]  }
   0xd   :  { %611 = vmatprep.mubr.bf16.mxu1 %v1021_v1  ;;  %624 = vmatprep.subr.bf16.mxu1 %v929_v16  ;;  %v960_v37 = vld [vmem:[%s1330_s1 + $0x1c4] ss:$16 sps:$4 sm:$0xff]   ;;  %v957_v38 = vld [vmem:[%s1330_s1 + $0x28] ss:$16 sps:$4 sm:$0xff]   ;;  %v965_v39 = vld [vmem:[%s1330_s1 + $0xc] ss:$16 sps:$4 sm:$0xff]  }
   0xe   :  { %v962_v40 = vld [vmem:[%s1330_s1 + $0x1c0] ss:$16 sps:$4 sm:$0xff]   ;;  %v966_v41 = vld [vmem:[%s1330_s1 + $0x1a4] ss:$16 sps:$4 sm:$0xff]   ;;  %v963_v42 = vld [vmem:[%s1330_s1 + $0x8] ss:$16 sps:$4 sm:$0xff]  }
   0xf   :  { %523 = vmatpush1.bf16.msra.mxu0 %v926_v15  ;;  %v971_v43 = vld [vmem:[%s1330_s1 + $0x1ec] ss:$16 sps:$4 sm:$0xff]   ;;  %v968_v44 = vld [vmem:[%s1330_s1 + $0x1a0] ss:$16 sps:$4 sm:$0xff]   ;;  %v972_v45 = vld [vmem:[%s1330_s1 + $0x184] ss:$16 sps:$4 sm:$0xff]  }
  0x10   :  { %524 = vmatprep.subr.bf16.mxu0 %v930_v17  ;;  %625 = vmatpush1.bf16.msra.mxu1 %v927_v18  ;;  %v969_v46 = vld [vmem:[%s1330_s1 + $0x1e8] ss:$16 sps:$4 sm:$0xff]   ;;  %v977_v47 = vld [vmem:[%s1330_s1 + $0x1cc] ss:$16 sps:$4 sm:$0xff]   ;;  %v974_v48 = vld [vmem:[%s1330_s1 + $0x180] ss:$16 sps:$4 sm:$0xff]  }
  0x11   :  { %626 = vmatprep.subr.bf16.mxu1 %v935_v19  ;;  %v975_v49 = vld [vmem:[%s1330_s1 + $0x1c8] ss:$16 sps:$4 sm:$0xff]   ;;  %v978_v50 = vld [vmem:[%s1330_s1 + $0x164] ss:$16 sps:$4 sm:$0xff]   ;;  %v980_v52 = vld [vmem:[%s1330_s1 + $0x160] ss:$16 sps:$4 sm:$0xff]  }
  0x12   :  { %v1004_v51 = vld [vmem:[%s1331_s0 + $0x4] ss:$12 sps:$4 sm:$0xff]   ;;  %v983_v53 = vld [vmem:[%s1330_s1 + $0x1ac] ss:$16 sps:$4 sm:$0xff]   ;;  %v981_v56 = vld [vmem:[%s1330_s1 + $0x1a8] ss:$16 sps:$4 sm:$0xff]  }
  0x13   :  { %525 = vmatpush1.bf16.msra.mxu0 %v932_v20  ;;  %548 = vmatprep.mubr.bf16.mxu0 %v1004_v51  ;;  %v1212_v54 = vld [vmem:[%s1331_s0 + $0x20] ss:$12 sps:$4 sm:$0xff]   ;;  %v984_v55 = vld [vmem:[%s1330_s1 + $0x144] ss:$16 sps:$4 sm:$0xff]   ;;  %v987_v61 = vld [vmem:[%s1330_s1 + $0x188] ss:$16 sps:$4 sm:$0xff]  }
  0x14   :  { %526 = vmatprep.subr.bf16.mxu0 %v936_v21  ;;  %627 = vmatpush1.bf16.msra.mxu1 %v933_v22  ;;  %v989_v57 = vld [vmem:[%s1330_s1 + $0x18c] ss:$16 sps:$4 sm:$0xff]   ;;  %v986_v58 = vld [vmem:[%s1330_s1 + $0x140] ss:$16 sps:$4 sm:$0xff]   ;;  %v990_v59 = vld [vmem:[%s1330_s1 + $0x124] ss:$16 sps:$4 sm:$0xff]  }
  0x15   :  { %628 = vmatprep.subr.bf16.mxu1 %v941_v23  ;;  %883 = vmatmul.mubr.msk.bf16.gmra.mxu1 %vm509_vm0, %v1212_v54  ;;  %v95_v60 = vld [vmem:[%s1332_s2] sm:$0xff]  ;;  %v97_v62 = vld [vmem:[%s1332_s2 + $0x10] sm:$0xff]  ;;  %v995_v63 = vld [vmem:[%s1330_s1 + $0x16c] ss:$16 sps:$4 sm:$0xff]  }
  0x16   :  { %654 = vmatprep.mubr.bf16.mxu1 %v1004_v51  ;;  %101 = vperm.xlu0 %903, %v95_v60   ;;  %v96_v0 = vld [vmem:[%s1332_s2 + $0x8] sm:$0xff]  ;;  %v992_v2 = vld [vmem:[%s1330_s1 + $0x120] ss:$16 sps:$4 sm:$0xff]   ;;  %v98_v3 = vld [vmem:[%s1332_s2 + $0x18] sm:$0xff] }
  0x17   :  { %527 = vmatpush1.bf16.msra.mxu0 %v938_v24  ;;  %111 = vperm.xlu1 %904, %v97_v62   ;;  %v996_v4 = vld [vmem:[%s1330_s1 + $0x104] ss:$16 sps:$4 sm:$0xff]   ;;  %v993_v5 = vld [vmem:[%s1330_s1 + $0x168] ss:$16 sps:$4 sm:$0xff]   ;;  %v1001_v6 = vld [vmem:[%s1330_s1 + $0x14c] ss:$16 sps:$4 sm:$0xff]  }
  0x18   :  { %528 = vmatprep.subr.bf16.mxu0 %v942_v25  ;;  %629 = vmatpush1.bf16.msra.mxu1 %v939_v26  ;;  %v998_v7 = vld [vmem:[%s1330_s1 + $0x100] ss:$16 sps:$4 sm:$0xff]   ;;  %v1007_v8 = vld [vmem:[%s1330_s1 + $0x22c] ss:$16 sps:$4 sm:$0xff]   ;;  %v999_v9 = vld [vmem:[%s1330_s1 + $0x148] ss:$16 sps:$4 sm:$0xff]  }
  0x19   :  { %630 = vmatprep.subr.bf16.mxu1 %v947_v27  ;;  %v1002_v10 = vld [vmem:[%s1331_s0] ss:$12 sps:$4 sm:$0xff]   ;;  %v1005_v12 = vld [vmem:[%s1330_s1 + $0x228] ss:$16 sps:$4 sm:$0xff]  }
  0x1a   :  { %106 = vperm.xlu0 %903, %v96_v0   ;;  %v1011_v11 = vld [vmem:[%s1330_s1 + $0x12c] ss:$16 sps:$4 sm:$0xff]   ;;  %v1009_v16 = vld [vmem:[%s1330_s1 + $0x128] ss:$16 sps:$4 sm:$0xff]  }
  0x1b   :  { %529 = vmatpush1.bf16.msra.mxu0 %v944_v28  ;;  %116 = vperm.xlu1 %904, %v98_v3   ;;  %v1015_v14 = vld [vmem:[%s1331_s0 + $0x1c] ss:$12 sps:$4 sm:$0xff]   ;;  %v1017_v20 = vld [vmem:[%s1331_s0 + $0x18] ss:$12 sps:$4 sm:$0xff]  }
  0x1c   :  { %530 = vmatprep.subr.bf16.mxu0 %v948_v29  ;;  %631 = vmatpush1.bf16.msra.mxu1 %v945_v30  ;;  %v1020_v15 = vld [vmem:[%s1330_s1 + $0x20c] ss:$16 sps:$4 sm:$0xff]   ;;  %v1018_v18 = vld [vmem:[%s1330_s1 + $0x208] ss:$16 sps:$4 sm:$0xff]  }
  0x1d   :  { %632 = vmatprep.subr.bf16.mxu1 %v953_v31  ;;  %v1014_v17 = vld [vmem:[%s1330_s1 + $0x10c] ss:$16 sps:$4 sm:$0xff]   ;;  %v1012_v19 = vld [vmem:[%s1330_s1 + $0x108] ss:$16 sps:$4 sm:$0xff]  }
  0x1f   :  { %531 = vmatpush1.bf16.msra.mxu0 %v950_v32 }
  0x20   :  { %532 = vmatprep.subr.bf16.mxu0 %v954_v33  ;;  %633 = vmatpush1.bf16.msra.mxu1 %v951_v34 }
  0x21   :  { %634 = vmatprep.subr.bf16.mxu1 %v959_v35 }
  0x23   :  { %533 = vmatpush2.bf16.msra.mxu0 %v956_v36 }
  0x24   :  { %534 = vmatprep.subr.bf16.mxu0 %v960_v37  ;;  %635 = vmatpush1.bf16.msra.mxu1 %v957_v38 }
  0x25   :  { %636 = vmatprep.subr.bf16.mxu1 %v965_v39 }
  0x27   :  { %535 = vmatpush2.bf16.msra.mxu0 %v962_v40 }
  0x28   :  { %536 = vmatprep.subr.bf16.mxu0 %v966_v41  ;;  %637 = vmatpush1.bf16.msra.mxu1 %v963_v42 }
  0x29   :  { %638 = vmatprep.subr.bf16.mxu1 %v971_v43 }
  0x2b   :  { %537 = vmatpush2.bf16.msra.mxu0 %v968_v44 }
  0x2c   :  { %538 = vmatprep.subr.bf16.mxu0 %v972_v45  ;;  %639 = vmatpush2.bf16.msra.mxu1 %v969_v46 }
  0x2d   :  { %640 = vmatprep.subr.bf16.mxu1 %v977_v47 }
  0x2f   :  { %539 = vmatpush2.bf16.msra.mxu0 %v974_v48 }
  0x30   :  { %540 = vmatprep.subr.bf16.mxu0 %v978_v50  ;;  %641 = vmatpush2.bf16.msra.mxu1 %v975_v49 }
  0x31   :  { %642 = vmatprep.subr.bf16.mxu1 %v983_v53 }
  0x33   :  { %541 = vmatpush2.bf16.msra.mxu0 %v980_v52 }
  0x34   :  { %542 = vmatprep.subr.bf16.mxu0 %v984_v55  ;;  %643 = vmatpush2.bf16.msra.mxu1 %v981_v56 }
  0x35   :  { %644 = vmatprep.subr.bf16.mxu1 %v989_v57 }
  0x37   :  { %543 = vmatpush2.bf16.msra.mxu0 %v986_v58 }
  0x38   :  { %544 = vmatprep.subr.bf16.mxu0 %v990_v59  ;;  %645 = vmatpush2.bf16.msra.mxu1 %v987_v61 }
  0x39   :  { %646 = vmatprep.subr.bf16.mxu1 %v995_v63 }
  0x3b   :  { %545 = vmatpush2.bf16.msra.mxu0 %v992_v2 }
  0x3c   :  { %546 = vmatprep.subr.bf16.mxu0 %v996_v4  ;;  %647 = vmatpush2.bf16.msra.mxu1 %v993_v5 }
  0x3d   :  { %648 = vmatprep.subr.bf16.mxu1 %v1001_v6 }
  0x3f   :  { %547 = vmatpush2.bf16.msra.mxu0 %v998_v7 }
  0x40   :  { %687 = vmatprep.subr.bf16.mxu0 %v1007_v8  ;;  %649 = vmatpush2.bf16.msra.mxu1 %v999_v9 }
  0x41   :  { %650 = vmatprep.subr.bf16.mxu1 %v1011_v11 }
  0x42   :  { %549 = vmatmul.mubr.bf16.vlgmr.msra.gmra.mxu0 %v1002_v10 }
  0x43   :  { %688 = vmatpush1.bf16.msra.mxu0 %v1005_v12  ;;  %558 = vmatprep.mubr.bf16.mxu0 %v1015_v14 }
  0x44   :  { %689 = vmatprep.subr.bf16.mxu0 %v1020_v15  ;;  %651 = vmatpush2.bf16.msra.mxu1 %v1009_v16 }
  0x45   :  { %652 = vmatprep.subr.bf16.mxu1 %v1014_v17 }
  0x47   :  { %690 = vmatpush1.bf16.msra.mxu0 %v1018_v18 }
  0x48   :  { %653 = vmatpush2.bf16.msra.mxu1 %v1012_v19 }
  0x4a   :  { %559 = vmatmul.mubr.bf16.gmra.mxu0 %v1017_v20 }
  0x4b   :  { %707 = vmatprep.mubr.bf16.mxu0 %v1021_v1  ;;  %655 = vmatmul.mubr.bf16.vlgmr.msra.gmra.mxu1 %v1002_v10 }
  0x4c   :  { %664 = vmatprep.mubr.bf16.mxu1 %v1015_v14 }
  0x52   :  { %884 = vmatmul.mubr.msk.bf16.vlgmr.msra.gmra.mxu0 %vm509_vm0, %v1084_v13 }
  0x53   :  { %717 = vmatprep.mubr.bf16.mxu0 %v1021_v1  ;;  %665 = vmatmul.mubr.bf16.gmra.mxu1 %v1017_v20 }
  0x5a   :  { %885 = vmatmul.mubr.msk.bf16.gmra.mxu0 %vm509_vm0, %v1212_v54 }
  0x91   :  { %v102_v26 = vpop.permute.xlu0 %101 }
  0x92   :  { %v112_v36 = vpop.permute.xlu1 %111 }
  0x95   :  { %v107_v30 = vpop.permute.xlu0 %106 }
  0x96   :  { %v117_v53 = vpop.permute.xlu1 %116 }
  0xcb   :  { %v603_v21 = vpop.f32.mrf.mxu1 }
  0xcd   :  { %v605_v22 = vpop.f32.mrf.mxu1 }
  0xcf   :  { %v607_v23 = vpop.f32.mrf.mxu1 }
  0xd1   :  { %v609_v24 = vpop.f32.mrf.mxu1 }
  0xd5   :  { %v613_v25 = vpop.f32.mrf.mxu1 }
  0xd7   :  { %v615_v27 = vpop.f32.mrf.mxu1 }
  0xd9   :  { %v617_v32 = vpop.f32.mrf.mxu1 }
  0xdb   :  { %v619_v38 = vpop.f32.mrf.mxu1 }
 0x102   :  { %v550_v28 = vpop.f32.mrf.mxu0 }
 0x103   :  { %v551_v29 = vadd.f32 %v550_v28, %v102_v26 }
 0x104   :  { %v552_v31 = vpop.f32.mrf.mxu0 }
 0x105   :  { %v604_v33 = vadd.f32 %v603_v21, %v551_v29  ;;  %v553_v13 = vadd.f32 %v552_v31, %v102_v26 }
 0x106   :  { %v554_v34 = vpop.f32.mrf.mxu0 }
 0x107   :  { %v606_v1 = vadd.f32 %v605_v22, %v553_v13  ;;  %v555_v35 = vadd.f32 %v554_v34, %v107_v30  ;;  %v728_v39 = vmax.f32 %v604_v33, 0.0 }
 0x108   :  { %v556_v37 = vpop.f32.mrf.mxu0 }
 0x109   :  { %v729_v40 = vmax.f32 %v606_v1, 0.0  ;;  %v608_v41 = vadd.f32 %v607_v23, %v555_v35  ;;  %v557_v42 = vadd.f32 %v556_v37, %v107_v30 }
 0x10a   :  { %v560_v43 = vpop.f32.mrf.mxu0 }
 0x10b   :  { %v894_v44 = vpack.c.bf16 %v729_v40, %v728_v39  ;;  %v610_v45 = vadd.f32 %v609_v24, %v557_v42  ;;  %v561_v46 = vadd.f32 %v560_v43, %v112_v36  ;;  %v656_v47 = vpop.f32.mrf.mxu1  ;;  %v732_v49 = vmax.f32 %v608_v41, 0.0 }
 0x10c   :  { %v562_v48 = vpop.f32.mrf.mxu0  ;;  %v657_v57 = vadd.f32 %v656_v47, %v102_v26 }
 0x10d   :  { %792 = vst [vmem:[%s1333_s3] sm:$0xff] %v894_v44  ;;  %v733_v50 = vmax.f32 %v610_v45, 0.0  ;;  %v614_v51 = vadd.f32 %v613_v25, %v561_v46  ;;  %v563_v52 = vadd.f32 %v562_v48, %v112_v36  ;;  %v658_v54 = vpop.f32.mrf.mxu1 }
 0x10e   :  { %v564_v55 = vpop.f32.mrf.mxu0  ;;  %v659_v6 = vadd.f32 %v658_v54, %v102_v26 }
 0x10f   :  { %v896_v56 = vpack.c.bf16 %v733_v50, %v732_v49  ;;  %v616_v58 = vadd.f32 %v615_v27, %v563_v52  ;;  %v565_v59 = vadd.f32 %v564_v55, %v117_v53  ;;  %v660_v60 = vpop.f32.mrf.mxu1  ;;  %v736_v62 = vmax.f32 %v614_v51, 0.0 }
 0x110   :  { %v566_v61 = vpop.f32.mrf.mxu0  ;;  %v661_v12 = vadd.f32 %v660_v60, %v107_v30 }
 0x111   :  { %794 = vst [vmem:[%s1333_s3 + $0x10] sm:$0xff] %v896_v56  ;;  %v737_v63 = vmax.f32 %v616_v58, 0.0  ;;  %v567_v0 = vadd.f32 %v566_v61, %v117_v53  ;;  %v618_v2 = vadd.f32 %v617_v32, %v565_v59  ;;  %v662_v3 = vpop.f32.mrf.mxu1 }
 0x112   :  { %v709_v4 = vpop.f32.mrf.mxu0  ;;  %v663_v16 = vadd.f32 %v662_v3, %v107_v30 }
 0x113   :  { %v898_v5 = vpack.c.bf16 %v737_v63, %v736_v62  ;;  %v620_v7 = vadd.f32 %v619_v38, %v567_v0  ;;  %v710_v8 = vadd.f32 %v709_v4, %v657_v57  ;;  %v666_v9 = vpop.f32.mrf.mxu1  ;;  %v740_v11 = vmax.f32 %v618_v2, 0.0 }
 0x114   :  { %v711_v10 = vpop.f32.mrf.mxu0  ;;  %v667_v21 = vadd.f32 %v666_v9, %v112_v36 }
 0x115   :  { %796 = vst [vmem:[%s1333_s3 + $0x20] sm:$0xff] %v898_v5  ;;  %v741_v14 = vmax.f32 %v620_v7, 0.0  ;;  %v712_v15 = vadd.f32 %v711_v10, %v659_v6  ;;  %v730_v17 = vmax.f32 %v710_v8, 0.0  ;;  %v668_v18 = vpop.f32.mrf.mxu1 }
 0x116   :  { %v713_v19 = vpop.f32.mrf.mxu0  ;;  %v669_v29 = vadd.f32 %v668_v18, %v112_v36 }
 0x117   :  { %v900_v20 = vpack.c.bf16 %v741_v14, %v740_v11  ;;  %v731_v22 = vmax.f32 %v712_v15, 0.0  ;;  %v714_v23 = vadd.f32 %v713_v19, %v661_v12  ;;  %v670_v24 = vpop.f32.mrf.mxu1 }
 0x118   :  { %v715_v25 = vpop.f32.mrf.mxu0  ;;  %v671_v34 = vadd.f32 %v670_v24, %v117_v53 }
 0x119   :  { %798 = vst [vmem:[%s1333_s3 + $0x30] sm:$0xff] %v900_v20  ;;  %v895_v26 = vpack.c.bf16 %v731_v22, %v730_v17  ;;  %v716_v27 = vadd.f32 %v715_v25, %v663_v16  ;;  %v734_v30 = vmax.f32 %v714_v23, 0.0  ;;  %v672_v33 = vpop.f32.mrf.mxu1 }
 0x11a   :  { %v719_v28 = vpop.f32.mrf.mxu0  ;;  %v673_v38 = vadd.f32 %v672_v33, %v117_v53 }
 0x11b   :  { %793 = vst [vmem:[%s1333_s3 + $0x8] sm:$0xff] %v895_v26  ;;  %v735_v31 = vmax.f32 %v716_v27, 0.0  ;;  %v720_v32 = vadd.f32 %v719_v28, %v667_v21 }
 0x11c   :  { %v721_v13 = vpop.f32.mrf.mxu0 }
 0x11d   :  { %v897_v1 = vpack.c.bf16 %v735_v31, %v734_v30  ;;  %v722_v35 = vadd.f32 %v721_v13, %v669_v29  ;;  %v738_v39 = vmax.f32 %v720_v32, 0.0 }
 0x11e   :  { %v723_v37 = vpop.f32.mrf.mxu0 }
 0x11f   :  { %795 = vst [vmem:[%s1333_s3 + $0x18] sm:$0xff] %v897_v1  ;;  %v739_v40 = vmax.f32 %v722_v35, 0.0  ;;  %v724_v41 = vadd.f32 %v723_v37, %v671_v34 }
 0x120   :  { %v725_v42 = vpop.f32.mrf.mxu0 }
 0x121   :  { %v899_v43 = vpack.c.bf16 %v739_v40, %v738_v39  ;;  %v726_v36 = vadd.f32 %v725_v42, %v673_v38  ;;  %v742_v44 = vmax.f32 %v724_v41, 0.0 }
 0x123   :  { %797 = vst [vmem:[%s1333_s3 + $0x28] sm:$0xff] %v899_v43  ;;  %v743_v45 = vmax.f32 %v726_v36, 0.0 }
 0x125   :  { %v901_v46 = vpack.c.bf16 %v743_v45, %v742_v44 }
 0x127   :  { %799 = vst [vmem:[%s1333_s3 + $0x38] sm:$0xff] %v901_v46 }

// kernel: mul.112
= control target key start
LH: loop header
LB: loop body
LE: loop exit
PB: predicated region body
PF: predicated region fallthrough
CT: control target
= control target key end

     0   :  { %v269_v3 = vmov 0.0   ;;  %s543_s0 = inlined_call_operand.vmem [shape: bf16[32,2], index: 0, kind: input, shape index: {}]   ;;  %s544_s1 = inlined_call_operand.vmem [shape: bf16[32,2,16,16], index: 1, kind: output, shape index: {}]  }
   0x1   :  { %v4_v0 = vld [vmem:[%s543_s0] ss:$0 sm:$0xff] }
   0x2   :  { %v5_v1 = vunpack.i.l.bf16 %v4_v0  ;;  %v14_v2 = vunpack.i.h.bf16 %v4_v0 }
   0x4   :  { %v283_v4 = vpack.c.bf16 %v269_v3, %v5_v1  ;;  %v285_v5 = vpack.c.bf16 %v269_v3, %v14_v2 }
   0x6   :  { %10 = vst [vmem:[%s544_s1] sm:$0xf] %v283_v4  ;;  %205 = vst [vmem:[%s544_s1 + $0x80] sm:$0xf] %v285_v5 }
   0x7   :  { %206 = vst [vmem:[%s544_s1 + $0x8] sm:$0xf] %v283_v4  ;;  %207 = vst [vmem:[%s544_s1 + $0x88] sm:$0xf] %v285_v5 }
   0x8   :  { %208 = vst [vmem:[%s544_s1 + $0x10] sm:$0xf] %v283_v4  ;;  %209 = vst [vmem:[%s544_s1 + $0x90] sm:$0xf] %v285_v5 }
   0x9   :  { %210 = vst [vmem:[%s544_s1 + $0x18] sm:$0xf] %v283_v4  ;;  %211 = vst [vmem:[%s544_s1 + $0x98] sm:$0xf] %v285_v5 }
   0xa   :  { %212 = vst [vmem:[%s544_s1 + $0x20] sm:$0xf] %v283_v4  ;;  %213 = vst [vmem:[%s544_s1 + $0xa0] sm:$0xf] %v285_v5 }
   0xb   :  { %214 = vst [vmem:[%s544_s1 + $0x28] sm:$0xf] %v283_v4  ;;  %215 = vst [vmem:[%s544_s1 + $0xa8] sm:$0xf] %v285_v5 }
   0xc   :  { %216 = vst [vmem:[%s544_s1 + $0x30] sm:$0xf] %v283_v4  ;;  %217 = vst [vmem:[%s544_s1 + $0xb0] sm:$0xf] %v285_v5 }
   0xd   :  { %218 = vst [vmem:[%s544_s1 + $0x38] sm:$0xf] %v283_v4  ;;  %219 = vst [vmem:[%s544_s1 + $0xb8] sm:$0xf] %v285_v5 }
   0xe   :  { %220 = vst [vmem:[%s544_s1 + $0x40] sm:$0xf] %v283_v4  ;;  %221 = vst [vmem:[%s544_s1 + $0xc0] sm:$0xf] %v285_v5 }
   0xf   :  { %222 = vst [vmem:[%s544_s1 + $0x48] sm:$0xf] %v283_v4  ;;  %223 = vst [vmem:[%s544_s1 + $0xc8] sm:$0xf] %v285_v5 }
  0x10   :  { %224 = vst [vmem:[%s544_s1 + $0x50] sm:$0xf] %v283_v4  ;;  %225 = vst [vmem:[%s544_s1 + $0xd0] sm:$0xf] %v285_v5 }
  0x11   :  { %226 = vst [vmem:[%s544_s1 + $0x58] sm:$0xf] %v283_v4  ;;  %227 = vst [vmem:[%s544_s1 + $0xd8] sm:$0xf] %v285_v5 }
  0x12   :  { %228 = vst [vmem:[%s544_s1 + $0x60] sm:$0xf] %v283_v4  ;;  %229 = vst [vmem:[%s544_s1 + $0xe0] sm:$0xf] %v285_v5 }
  0x13   :  { %230 = vst [vmem:[%s544_s1 + $0x68] sm:$0xf] %v283_v4  ;;  %231 = vst [vmem:[%s544_s1 + $0xe8] sm:$0xf] %v285_v5 }
  0x14   :  { %232 = vst [vmem:[%s544_s1 + $0x70] sm:$0xf] %v283_v4  ;;  %233 = vst [vmem:[%s544_s1 + $0xf0] sm:$0xf] %v285_v5 }
  0x15   :  { %234 = vst [vmem:[%s544_s1 + $0x78] sm:$0xf] %v283_v4  ;;  %235 = vst [vmem:[%s544_s1 + $0xf8] sm:$0xf] %v285_v5 }
  0x16   :  { %236 = vst [vmem:[%s544_s1 + $0x4] sm:$0xf] %v283_v4  ;;  %237 = vst [vmem:[%s544_s1 + $0x84] sm:$0xf] %v285_v5 }
  0x17   :  { %238 = vst [vmem:[%s544_s1 + $0xc] sm:$0xf] %v283_v4  ;;  %239 = vst [vmem:[%s544_s1 + $0x8c] sm:$0xf] %v285_v5 }
  0x18   :  { %240 = vst [vmem:[%s544_s1 + $0x14] sm:$0xf] %v283_v4  ;;  %241 = vst [vmem:[%s544_s1 + $0x94] sm:$0xf] %v285_v5 }
  0x19   :  { %242 = vst [vmem:[%s544_s1 + $0x1c] sm:$0xf] %v283_v4  ;;  %243 = vst [vmem:[%s544_s1 + $0x9c] sm:$0xf] %v285_v5 }
  0x1a   :  { %244 = vst [vmem:[%s544_s1 + $0x24] sm:$0xf] %v283_v4  ;;  %245 = vst [vmem:[%s544_s1 + $0xa4] sm:$0xf] %v285_v5 }
  0x1b   :  { %246 = vst [vmem:[%s544_s1 + $0x2c] sm:$0xf] %v283_v4  ;;  %247 = vst [vmem:[%s544_s1 + $0xac] sm:$0xf] %v285_v5 }
  0x1c   :  { %248 = vst [vmem:[%s544_s1 + $0x34] sm:$0xf] %v283_v4  ;;  %249 = vst [vmem:[%s544_s1 + $0xb4] sm:$0xf] %v285_v5 }
  0x1d   :  { %250 = vst [vmem:[%s544_s1 + $0x3c] sm:$0xf] %v283_v4  ;;  %251 = vst [vmem:[%s544_s1 + $0xbc] sm:$0xf] %v285_v5 }
  0x1e   :  { %252 = vst [vmem:[%s544_s1 + $0x44] sm:$0xf] %v283_v4  ;;  %253 = vst [vmem:[%s544_s1 + $0xc4] sm:$0xf] %v285_v5 }
  0x1f   :  { %254 = vst [vmem:[%s544_s1 + $0x4c] sm:$0xf] %v283_v4  ;;  %255 = vst [vmem:[%s544_s1 + $0xcc] sm:$0xf] %v285_v5 }
  0x20   :  { %256 = vst [vmem:[%s544_s1 + $0x54] sm:$0xf] %v283_v4  ;;  %257 = vst [vmem:[%s544_s1 + $0xd4] sm:$0xf] %v285_v5 }
  0x21   :  { %258 = vst [vmem:[%s544_s1 + $0x5c] sm:$0xf] %v283_v4  ;;  %259 = vst [vmem:[%s544_s1 + $0xdc] sm:$0xf] %v285_v5 }
  0x22   :  { %260 = vst [vmem:[%s544_s1 + $0x64] sm:$0xf] %v283_v4  ;;  %261 = vst [vmem:[%s544_s1 + $0xe4] sm:$0xf] %v285_v5 }
  0x23   :  { %262 = vst [vmem:[%s544_s1 + $0x6c] sm:$0xf] %v283_v4  ;;  %263 = vst [vmem:[%s544_s1 + $0xec] sm:$0xf] %v285_v5 }
  0x24   :  { %264 = vst [vmem:[%s544_s1 + $0x74] sm:$0xf] %v283_v4  ;;  %265 = vst [vmem:[%s544_s1 + $0xf4] sm:$0xf] %v285_v5 }
  0x25   :  { %266 = vst [vmem:[%s544_s1 + $0x7c] sm:$0xf] %v283_v4  ;;  %267 = vst [vmem:[%s544_s1 + $0xfc] sm:$0xf] %v285_v5 }

// kernel: subnet_apply.49
= control target key start
LH: loop header
LB: loop body
LE: loop exit
PB: predicated region body
PF: predicated region fallthrough
CT: control target
= control target key end

     0   :  { %v1064_v1 = vmov 0   ;;  %vm512_vm0 = vcmask 261120   ;;  %s1426_s1 = inlined_call_operand.vmem [shape: bf16[288,512], index: 1, kind: input, shape index: {}]   ;;  %s1427_s0 = inlined_call_operand.vmem [shape: bf16[32,288], index: 0, kind: input, shape index: {}]   ;;  %s1428_s2 = inlined_call_operand.vmem [shape: f32[32,1], index: 2, kind: input, shape index: {}]   ;;  %s1429_s3 = inlined_call_operand.vmem [shape: bf16[32,512], index: 3, kind: input, shape index: {}]   ;;  %s1430_s4 = inlined_call_operand.vmem [shape: bf16[32,512], index: 4, kind: output, shape index: {}]  }
   0x1   :  { %v948_v0 = vld [vmem:[%s1426_s1 + $0xe4] ss:$16 sps:$4 sm:$0xff]   ;;  %604 = vmatprep.mubr.bf16.mxu1 %v1064_v1  ;;  %946 = vset.pattern.permute.xlu0 %v1064_v1  ;;  %v950_v2 = vld [vmem:[%s1426_s1 + $0xe0] ss:$16 sps:$4 sm:$0xff]   ;;  %v963_v11 = vld [vmem:[%s1426_s1 + $0xe8] ss:$16 sps:$4 sm:$0xff]  }
   0x2   :  { %947 = vset.pattern.permute.xlu1 %v1064_v1  ;;  %519 = vmatprep.subr.bf16.mxu0 %v948_v0  ;;  %v951_v3 = vld [vmem:[%s1426_s1 + $0x224] ss:$16 sps:$4 sm:$0xff]   ;;  %v953_v4 = vld [vmem:[%s1426_s1 + $0x220] ss:$16 sps:$4 sm:$0xff]   ;;  %v965_v12 = vld [vmem:[%s1426_s1 + $0xec] ss:$16 sps:$4 sm:$0xff]  }
   0x3   :  { %520 = vmatpush1.bf16.msra.mxu0 %v950_v2  ;;  %v954_v5 = vld [vmem:[%s1426_s1 + $0xc4] ss:$16 sps:$4 sm:$0xff]   ;;  %v956_v6 = vld [vmem:[%s1426_s1 + $0xc0] ss:$16 sps:$4 sm:$0xff]   ;;  %584 = vmatprep.subr.bf16.mxu1 %v951_v3  ;;  %v972_v16 = vld [vmem:[%s1426_s1 + $0xcc] ss:$16 sps:$4 sm:$0xff]  }
   0x4   :  { %v957_v7 = vld [vmem:[%s1426_s1 + $0x204] ss:$16 sps:$4 sm:$0xff]   ;;  %585 = vmatpush1.bf16.msra.mxu1 %v953_v4  ;;  %521 = vmatprep.subr.bf16.mxu0 %v954_v5  ;;  %v959_v8 = vld [vmem:[%s1426_s1 + $0x200] ss:$16 sps:$4 sm:$0xff]   ;;  %v970_v18 = vld [vmem:[%s1426_s1 + $0xc8] ss:$16 sps:$4 sm:$0xff]  }
   0x5   :  { %586 = vmatprep.subr.bf16.mxu1 %v957_v7  ;;  %v960_v9 = vld [vmem:[%s1426_s1 + $0xa4] ss:$16 sps:$4 sm:$0xff]   ;;  %v962_v10 = vld [vmem:[%s1426_s1 + $0xa0] ss:$16 sps:$4 sm:$0xff]   ;;  %v978_v19 = vld [vmem:[%s1426_s1 + $0xac] ss:$16 sps:$4 sm:$0xff]  }
   0x6   :  { %v1132_v13 = vld [vmem:[%s1427_s0 + $0x8] ss:$12 sps:$4 sm:$0xff]   ;;  %v969_v15 = vld [vmem:[%s1426_s1 + $0x80] ss:$16 sps:$4 sm:$0xff]   ;;  %v984_v23 = vld [vmem:[%s1426_s1 + $0x8c] ss:$16 sps:$4 sm:$0xff]  }
   0x7   :  { %522 = vmatpush1.bf16.msra.mxu0 %v956_v6  ;;  %v967_v14 = vld [vmem:[%s1426_s1 + $0x84] ss:$16 sps:$4 sm:$0xff]   ;;  %v975_v20 = vld [vmem:[%s1426_s1 + $0x60] ss:$16 sps:$4 sm:$0xff]   ;;  %v976_v22 = vld [vmem:[%s1426_s1 + $0xa8] ss:$16 sps:$4 sm:$0xff]  }
   0x8   :  { %523 = vmatprep.subr.bf16.mxu0 %v960_v9  ;;  %587 = vmatpush1.bf16.msra.mxu1 %v959_v8  ;;  %v973_v17 = vld [vmem:[%s1426_s1 + $0x64] ss:$16 sps:$4 sm:$0xff]   ;;  %v981_v24 = vld [vmem:[%s1426_s1 + $0x40] ss:$16 sps:$4 sm:$0xff]   ;;  %v982_v26 = vld [vmem:[%s1426_s1 + $0x88] ss:$16 sps:$4 sm:$0xff]  }
   0x9   :  { %625 = vmatprep.subr.bf16.mxu1 %v965_v12  ;;  %v979_v21 = vld [vmem:[%s1426_s1 + $0x44] ss:$16 sps:$4 sm:$0xff]   ;;  %v990_v27 = vld [vmem:[%s1426_s1 + $0x6c] ss:$16 sps:$4 sm:$0xff]   ;;  %v987_v28 = vld [vmem:[%s1426_s1 + $0x20] ss:$16 sps:$4 sm:$0xff]  }
   0xa   :  { %v985_v25 = vld [vmem:[%s1426_s1 + $0x24] ss:$16 sps:$4 sm:$0xff]   ;;  %v988_v30 = vld [vmem:[%s1426_s1 + $0x68] ss:$16 sps:$4 sm:$0xff]   ;;  %v996_v31 = vld [vmem:[%s1426_s1 + $0x4c] ss:$16 sps:$4 sm:$0xff]  }
   0xb   :  { %524 = vmatpush1.bf16.msra.mxu0 %v962_v10  ;;  %925 = vmatmul.mubr.msk.bf16.vlgmr.msra.gmra.mxu1 %vm512_vm0, %v1132_v13  ;;  %v991_v29 = vld [vmem:[%s1426_s1 + $0x4] ss:$16 sps:$4 sm:$0xff]   ;;  %v993_v32 = vld [vmem:[%s1426_s1] ss:$16 sps:$4 sm:$0xff]   ;;  %v994_v34 = vld [vmem:[%s1426_s1 + $0x48] ss:$16 sps:$4 sm:$0xff]  }
   0xc   :  { %525 = vmatprep.subr.bf16.mxu0 %v967_v14  ;;  %626 = vmatpush1.bf16.msra.mxu1 %v963_v11  ;;  %v997_v33 = vld [vmem:[%s1426_s1 + $0x1e4] ss:$16 sps:$4 sm:$0xff]   ;;  %v1002_v35 = vld [vmem:[%s1426_s1 + $0x2c] ss:$16 sps:$4 sm:$0xff]   ;;  %v999_v36 = vld [vmem:[%s1426_s1 + $0x1e0] ss:$16 sps:$4 sm:$0xff]  }
   0xd   :  { %614 = vmatprep.mubr.bf16.mxu1 %v1064_v1  ;;  %627 = vmatprep.subr.bf16.mxu1 %v972_v16  ;;  %v1003_v37 = vld [vmem:[%s1426_s1 + $0x1c4] ss:$16 sps:$4 sm:$0xff]   ;;  %v1000_v38 = vld [vmem:[%s1426_s1 + $0x28] ss:$16 sps:$4 sm:$0xff]   ;;  %v1008_v39 = vld [vmem:[%s1426_s1 + $0xc] ss:$16 sps:$4 sm:$0xff]  }
   0xe   :  { %v1005_v40 = vld [vmem:[%s1426_s1 + $0x1c0] ss:$16 sps:$4 sm:$0xff]   ;;  %v1009_v41 = vld [vmem:[%s1426_s1 + $0x1a4] ss:$16 sps:$4 sm:$0xff]   ;;  %v1006_v42 = vld [vmem:[%s1426_s1 + $0x8] ss:$16 sps:$4 sm:$0xff]  }
   0xf   :  { %526 = vmatpush1.bf16.msra.mxu0 %v969_v15  ;;  %v1014_v43 = vld [vmem:[%s1426_s1 + $0x1ec] ss:$16 sps:$4 sm:$0xff]   ;;  %v1011_v44 = vld [vmem:[%s1426_s1 + $0x1a0] ss:$16 sps:$4 sm:$0xff]   ;;  %v1015_v45 = vld [vmem:[%s1426_s1 + $0x184] ss:$16 sps:$4 sm:$0xff]  }
  0x10   :  { %527 = vmatprep.subr.bf16.mxu0 %v973_v17  ;;  %628 = vmatpush1.bf16.msra.mxu1 %v970_v18  ;;  %v1012_v46 = vld [vmem:[%s1426_s1 + $0x1e8] ss:$16 sps:$4 sm:$0xff]   ;;  %v1020_v47 = vld [vmem:[%s1426_s1 + $0x1cc] ss:$16 sps:$4 sm:$0xff]   ;;  %v1017_v48 = vld [vmem:[%s1426_s1 + $0x180] ss:$16 sps:$4 sm:$0xff]  }
  0x11   :  { %629 = vmatprep.subr.bf16.mxu1 %v978_v19  ;;  %v1018_v49 = vld [vmem:[%s1426_s1 + $0x1c8] ss:$16 sps:$4 sm:$0xff]   ;;  %v1021_v50 = vld [vmem:[%s1426_s1 + $0x164] ss:$16 sps:$4 sm:$0xff]   ;;  %v1023_v52 = vld [vmem:[%s1426_s1 + $0x160] ss:$16 sps:$4 sm:$0xff]  }
  0x12   :  { %v1047_v51 = vld [vmem:[%s1427_s0 + $0x4] ss:$12 sps:$4 sm:$0xff]   ;;  %v1026_v53 = vld [vmem:[%s1426_s1 + $0x1ac] ss:$16 sps:$4 sm:$0xff]   ;;  %v1024_v56 = vld [vmem:[%s1426_s1 + $0x1a8] ss:$16 sps:$4 sm:$0xff]  }
  0x13   :  { %528 = vmatpush1.bf16.msra.mxu0 %v975_v20  ;;  %551 = vmatprep.mubr.bf16.mxu0 %v1047_v51  ;;  %v1260_v54 = vld [vmem:[%s1427_s0 + $0x20] ss:$12 sps:$4 sm:$0xff]   ;;  %v1027_v55 = vld [vmem:[%s1426_s1 + $0x144] ss:$16 sps:$4 sm:$0xff]   ;;  %v1030_v61 = vld [vmem:[%s1426_s1 + $0x188] ss:$16 sps:$4 sm:$0xff]  }
  0x14   :  { %529 = vmatprep.subr.bf16.mxu0 %v979_v21  ;;  %630 = vmatpush1.bf16.msra.mxu1 %v976_v22  ;;  %v1032_v57 = vld [vmem:[%s1426_s1 + $0x18c] ss:$16 sps:$4 sm:$0xff]   ;;  %v1029_v58 = vld [vmem:[%s1426_s1 + $0x140] ss:$16 sps:$4 sm:$0xff]   ;;  %v1033_v59 = vld [vmem:[%s1426_s1 + $0x124] ss:$16 sps:$4 sm:$0xff]  }
  0x15   :  { %631 = vmatprep.subr.bf16.mxu1 %v984_v23  ;;  %926 = vmatmul.mubr.msk.bf16.gmra.mxu1 %vm512_vm0, %v1260_v54  ;;  %v98_v60 = vld [vmem:[%s1428_s2] sm:$0xff]  ;;  %v100_v62 = vld [vmem:[%s1428_s2 + $0x10] sm:$0xff]  ;;  %v1038_v63 = vld [vmem:[%s1426_s1 + $0x16c] ss:$16 sps:$4 sm:$0xff]  }
  0x16   :  { %657 = vmatprep.mubr.bf16.mxu1 %v1047_v51  ;;  %104 = vperm.xlu0 %946, %v98_v60   ;;  %v99_v0 = vld [vmem:[%s1428_s2 + $0x8] sm:$0xff]  ;;  %v1035_v2 = vld [vmem:[%s1426_s1 + $0x120] ss:$16 sps:$4 sm:$0xff]   ;;  %v101_v3 = vld [vmem:[%s1428_s2 + $0x18] sm:$0xff] }
  0x17   :  { %530 = vmatpush1.bf16.msra.mxu0 %v981_v24  ;;  %114 = vperm.xlu1 %947, %v100_v62   ;;  %v1039_v4 = vld [vmem:[%s1426_s1 + $0x104] ss:$16 sps:$4 sm:$0xff]   ;;  %v1036_v5 = vld [vmem:[%s1426_s1 + $0x168] ss:$16 sps:$4 sm:$0xff]   ;;  %v1044_v6 = vld [vmem:[%s1426_s1 + $0x14c] ss:$16 sps:$4 sm:$0xff]  }
  0x18   :  { %531 = vmatprep.subr.bf16.mxu0 %v985_v25  ;;  %632 = vmatpush1.bf16.msra.mxu1 %v982_v26  ;;  %v1041_v7 = vld [vmem:[%s1426_s1 + $0x100] ss:$16 sps:$4 sm:$0xff]   ;;  %v1050_v8 = vld [vmem:[%s1426_s1 + $0x22c] ss:$16 sps:$4 sm:$0xff]   ;;  %v1042_v9 = vld [vmem:[%s1426_s1 + $0x148] ss:$16 sps:$4 sm:$0xff]  }
  0x19   :  { %633 = vmatprep.subr.bf16.mxu1 %v990_v27  ;;  %v1045_v10 = vld [vmem:[%s1427_s0] ss:$12 sps:$4 sm:$0xff]   ;;  %v1048_v12 = vld [vmem:[%s1426_s1 + $0x228] ss:$16 sps:$4 sm:$0xff]  }
  0x1a   :  { %109 = vperm.xlu0 %946, %v99_v0   ;;  %v1054_v11 = vld [vmem:[%s1426_s1 + $0x12c] ss:$16 sps:$4 sm:$0xff]   ;;  %v1052_v16 = vld [vmem:[%s1426_s1 + $0x128] ss:$16 sps:$4 sm:$0xff]   ;;  %v731_v27 = vld [vmem:[%s1429_s3] sm:$0xff] }
  0x1b   :  { %532 = vmatpush1.bf16.msra.mxu0 %v987_v28  ;;  %119 = vperm.xlu1 %947, %v101_v3   ;;  %v1058_v14 = vld [vmem:[%s1427_s0 + $0x1c] ss:$12 sps:$4 sm:$0xff]   ;;  %v1060_v20 = vld [vmem:[%s1427_s0 + $0x18] ss:$12 sps:$4 sm:$0xff]  }
  0x1c   :  { %533 = vmatprep.subr.bf16.mxu0 %v991_v29  ;;  %634 = vmatpush1.bf16.msra.mxu1 %v988_v30  ;;  %v1063_v15 = vld [vmem:[%s1426_s1 + $0x20c] ss:$16 sps:$4 sm:$0xff]   ;;  %v1061_v18 = vld [vmem:[%s1426_s1 + $0x208] ss:$16 sps:$4 sm:$0xff]  }
  0x1d   :  { %635 = vmatprep.subr.bf16.mxu1 %v996_v31  ;;  %v1057_v17 = vld [vmem:[%s1426_s1 + $0x10c] ss:$16 sps:$4 sm:$0xff]   ;;  %v1055_v19 = vld [vmem:[%s1426_s1 + $0x108] ss:$16 sps:$4 sm:$0xff]  }
  0x1f   :  { %534 = vmatpush1.bf16.msra.mxu0 %v993_v32  ;;  %v733_v32 = vld [vmem:[%s1429_s3 + $0x10] sm:$0xff] }
  0x20   :  { %535 = vmatprep.subr.bf16.mxu0 %v997_v33  ;;  %636 = vmatpush1.bf16.msra.mxu1 %v994_v34 }
  0x21   :  { %637 = vmatprep.subr.bf16.mxu1 %v1002_v35 }
  0x23   :  { %536 = vmatpush2.bf16.msra.mxu0 %v999_v36  ;;  %v740_v36 = vunpack.c.h.bf16 %v731_v27 }
  0x24   :  { %537 = vmatprep.subr.bf16.mxu0 %v1003_v37  ;;  %638 = vmatpush1.bf16.msra.mxu1 %v1000_v38 }
  0x25   :  { %639 = vmatprep.subr.bf16.mxu1 %v1008_v39 }
  0x27   :  { %538 = vmatpush2.bf16.msra.mxu0 %v1005_v40 }
  0x28   :  { %539 = vmatprep.subr.bf16.mxu0 %v1009_v41  ;;  %640 = vmatpush1.bf16.msra.mxu1 %v1006_v42  ;;  %v743_v42 = vunpack.c.l.bf16 %v733_v32 }
  0x29   :  { %641 = vmatprep.subr.bf16.mxu1 %v1014_v43 }
  0x2b   :  { %540 = vmatpush2.bf16.msra.mxu0 %v1011_v44 }
  0x2c   :  { %541 = vmatprep.subr.bf16.mxu0 %v1015_v45  ;;  %642 = vmatpush2.bf16.msra.mxu1 %v1012_v46 }
  0x2d   :  { %643 = vmatprep.subr.bf16.mxu1 %v1020_v47 }
  0x2f   :  { %542 = vmatpush2.bf16.msra.mxu0 %v1017_v48  ;;  %v744_v48 = vunpack.c.h.bf16 %v733_v32 }
  0x30   :  { %543 = vmatprep.subr.bf16.mxu0 %v1021_v50  ;;  %644 = vmatpush2.bf16.msra.mxu1 %v1018_v49  ;;  %v735_v49 = vld [vmem:[%s1429_s3 + $0x20] sm:$0xff] }
  0x31   :  { %645 = vmatprep.subr.bf16.mxu1 %v1026_v53 }
  0x33   :  { %544 = vmatpush2.bf16.msra.mxu0 %v1023_v52 }
  0x34   :  { %545 = vmatprep.subr.bf16.mxu0 %v1027_v55  ;;  %646 = vmatpush2.bf16.msra.mxu1 %v1024_v56 }
  0x35   :  { %647 = vmatprep.subr.bf16.mxu1 %v1032_v57  ;;  %v747_v57 = vunpack.c.l.bf16 %v735_v49 }
  0x37   :  { %546 = vmatpush2.bf16.msra.mxu0 %v1029_v58 }
  0x38   :  { %547 = vmatprep.subr.bf16.mxu0 %v1033_v59  ;;  %648 = vmatpush2.bf16.msra.mxu1 %v1030_v61 }
  0x39   :  { %649 = vmatprep.subr.bf16.mxu1 %v1038_v63  ;;  %v737_v63 = vld [vmem:[%s1429_s3 + $0x30] sm:$0xff] }
  0x3b   :  { %548 = vmatpush2.bf16.msra.mxu0 %v1035_v2  ;;  %v748_v2 = vunpack.c.h.bf16 %v735_v49 }
  0x3c   :  { %549 = vmatprep.subr.bf16.mxu0 %v1039_v4  ;;  %650 = vmatpush2.bf16.msra.mxu1 %v1036_v5  ;;  %v732_v5 = vld [vmem:[%s1429_s3 + $0x8] sm:$0xff] }
  0x3d   :  { %651 = vmatprep.subr.bf16.mxu1 %v1044_v6 }
  0x3f   :  { %550 = vmatpush2.bf16.msra.mxu0 %v1041_v7 }
  0x40   :  { %690 = vmatprep.subr.bf16.mxu0 %v1050_v8  ;;  %652 = vmatpush2.bf16.msra.mxu1 %v1042_v9 }
  0x41   :  { %653 = vmatprep.subr.bf16.mxu1 %v1054_v11 }
  0x42   :  { %552 = vmatmul.mubr.bf16.vlgmr.msra.gmra.mxu0 %v1045_v10 }
  0x43   :  { %691 = vmatpush1.bf16.msra.mxu0 %v1048_v12  ;;  %561 = vmatprep.mubr.bf16.mxu0 %v1058_v14  ;;  %v751_v12 = vunpack.c.l.bf16 %v737_v63 }
  0x44   :  { %692 = vmatprep.subr.bf16.mxu0 %v1063_v15  ;;  %654 = vmatpush2.bf16.msra.mxu1 %v1052_v16 }
  0x45   :  { %655 = vmatprep.subr.bf16.mxu1 %v1057_v17 }
  0x47   :  { %693 = vmatpush1.bf16.msra.mxu0 %v1061_v18  ;;  %v741_v18 = vunpack.c.l.bf16 %v732_v5 }
  0x48   :  { %656 = vmatpush2.bf16.msra.mxu1 %v1055_v19 }
  0x4a   :  { %562 = vmatmul.mubr.bf16.gmra.mxu0 %v1060_v20 }
  0x4b   :  { %710 = vmatprep.mubr.bf16.mxu0 %v1064_v1  ;;  %658 = vmatmul.mubr.bf16.vlgmr.msra.gmra.mxu1 %v1045_v10 }
  0x4c   :  { %667 = vmatprep.mubr.bf16.mxu1 %v1058_v14 }
  0x52   :  { %927 = vmatmul.mubr.msk.bf16.vlgmr.msra.gmra.mxu0 %vm512_vm0, %v1132_v13 }
  0x53   :  { %720 = vmatprep.mubr.bf16.mxu0 %v1064_v1  ;;  %668 = vmatmul.mubr.bf16.gmra.mxu1 %v1060_v20  ;;  %v739_v1 = vunpack.c.l.bf16 %v731_v27 }
  0x5a   :  { %928 = vmatmul.mubr.msk.bf16.gmra.mxu0 %vm512_vm0, %v1260_v54 }
  0x91   :  { %v1354_v26 = vpop.permute.xlu0 %104 }
  0x92   :  { %v1366_v37 = vpop.permute.xlu1 %114 }
  0x95   :  { %v1360_v30 = vpop.permute.xlu0 %109 }
  0x96   :  { %v1374_v56 = vpop.permute.xlu1 %119 }
  0xcb   :  { %v606_v21 = vpop.f32.mrf.mxu1 }
  0xcd   :  { %v608_v22 = vpop.f32.mrf.mxu1 }
  0xcf   :  { %v610_v23 = vpop.f32.mrf.mxu1 }
  0xd1   :  { %v612_v24 = vpop.f32.mrf.mxu1 }
  0xd5   :  { %v616_v25 = vpop.f32.mrf.mxu1 }
  0xd7   :  { %v618_v28 = vpop.f32.mrf.mxu1 }
  0xd9   :  { %v620_v33 = vpop.f32.mrf.mxu1 }
  0xdb   :  { %v622_v44 = vpop.f32.mrf.mxu1 }
 0x102   :  { %v553_v29 = vpop.f32.mrf.mxu0 }
 0x103   :  { %v554_v13 = vadd.f32 %v553_v29, %v1354_v26 }
 0x104   :  { %v555_v31 = vpop.f32.mrf.mxu0 }
 0x105   :  { %v607_v34 = vadd.f32 %v606_v21, %v554_v13  ;;  %v556_v35 = vadd.f32 %v555_v31, %v1354_v26  ;;  %v752_v21 = vunpack.c.h.bf16 %v737_v63 }
 0x106   :  { %v557_v38 = vpop.f32.mrf.mxu0 }
 0x107   :  { %v755_v39 = vadd.f32 %v739_v1, %v607_v34  ;;  %v609_v40 = vadd.f32 %v608_v22, %v556_v35  ;;  %v558_v41 = vadd.f32 %v557_v38, %v1360_v30 }
 0x108   :  { %v559_v43 = vpop.f32.mrf.mxu0 }
 0x109   :  { %v756_v45 = vadd.f32 %v740_v36, %v609_v40  ;;  %v611_v46 = vadd.f32 %v610_v23, %v558_v41  ;;  %v560_v47 = vadd.f32 %v559_v43, %v1360_v30  ;;  %v771_v50 = vmax.f32 %v755_v39, 0.0 }
 0x10a   :  { %v563_v51 = vpop.f32.mrf.mxu0 }
 0x10b   :  { %v772_v52 = vmax.f32 %v756_v45, 0.0  ;;  %v759_v53 = vadd.f32 %v743_v42, %v611_v46  ;;  %v613_v54 = vadd.f32 %v612_v24, %v560_v47  ;;  %v564_v55 = vadd.f32 %v563_v51, %v1366_v37  ;;  %v659_v58 = vpop.f32.mrf.mxu1  ;;  %v734_v24 = vld [vmem:[%s1429_s3 + $0x18] sm:$0xff] }
 0x10c   :  { %v565_v59 = vpop.f32.mrf.mxu0  ;;  %v660_v8 = vadd.f32 %v659_v58, %v1354_v26  ;;  %v745_v38 = vunpack.c.l.bf16 %v734_v24  ;;  %v746_v46 = vunpack.c.h.bf16 %v734_v24 }
 0x10d   :  { %v937_v60 = vpack.c.bf16 %v772_v52, %v771_v50  ;;  %v760_v61 = vadd.f32 %v744_v48, %v613_v54  ;;  %v617_v62 = vadd.f32 %v616_v25, %v564_v55  ;;  %v566_v0 = vadd.f32 %v565_v59, %v1366_v37  ;;  %v661_v3 = vpop.f32.mrf.mxu1  ;;  %v738_v55 = vld [vmem:[%s1429_s3 + $0x38] sm:$0xff] }
 0x10e   :  { %v567_v4 = vpop.f32.mrf.mxu0  ;;  %v775_v6 = vmax.f32 %v759_v53, 0.0  ;;  %v662_v25 = vadd.f32 %v661_v3, %v1354_v26 }
 0x10f   :  { %835 = vst [vmem:[%s1430_s4] sm:$0xff] %v937_v60  ;;  %v776_v7 = vmax.f32 %v760_v61, 0.0  ;;  %v568_v9 = vadd.f32 %v567_v4, %v1374_v56  ;;  %v763_v10 = vadd.f32 %v747_v57, %v617_v62  ;;  %v619_v11 = vadd.f32 %v618_v28, %v566_v0  ;;  %v663_v14 = vpop.f32.mrf.mxu1 }
 0x110   :  { %v569_v15 = vpop.f32.mrf.mxu0  ;;  %v742_v28 = vunpack.c.h.bf16 %v732_v5  ;;  %v664_v34 = vadd.f32 %v663_v14, %v1360_v30  ;;  %v753_v4 = vunpack.c.l.bf16 %v738_v55 }
 0x111   :  { %v939_v16 = vpack.c.bf16 %v776_v7, %v775_v6  ;;  %v621_v17 = vadd.f32 %v620_v33, %v568_v9  ;;  %v764_v19 = vadd.f32 %v748_v2, %v619_v11  ;;  %v570_v20 = vadd.f32 %v569_v15, %v1374_v56  ;;  %v665_v22 = vpop.f32.mrf.mxu1 }
 0x112   :  { %v712_v23 = vpop.f32.mrf.mxu0  ;;  %v779_v29 = vmax.f32 %v763_v10, 0.0  ;;  %v666_v43 = vadd.f32 %v665_v22, %v1360_v30  ;;  %v754_v10 = vunpack.c.h.bf16 %v738_v55 }
 0x113   :  { %837 = vst [vmem:[%s1430_s4 + $0x10] sm:$0xff] %v939_v16  ;;  %v713_v27 = vadd.f32 %v712_v23, %v660_v8  ;;  %v780_v13 = vmax.f32 %v764_v19, 0.0  ;;  %v767_v1 = vadd.f32 %v751_v12, %v621_v17  ;;  %v623_v31 = vadd.f32 %v622_v44, %v570_v20  ;;  %v669_v32 = vpop.f32.mrf.mxu1  ;;  %v736_v44 = vld [vmem:[%s1429_s3 + $0x28] sm:$0xff] }
 0x114   :  { %v714_v33 = vpop.f32.mrf.mxu0  ;;  %v670_v49 = vadd.f32 %v669_v32, %v1366_v37  ;;  %v749_v59 = vunpack.c.l.bf16 %v736_v44  ;;  %v750_v63 = vunpack.c.h.bf16 %v736_v44 }
 0x115   :  { %v757_v35 = vadd.f32 %v741_v18, %v713_v27  ;;  %v715_v36 = vadd.f32 %v714_v33, %v662_v25  ;;  %v941_v39 = vpack.c.bf16 %v780_v13, %v779_v29  ;;  %v768_v40 = vadd.f32 %v752_v21, %v623_v31  ;;  %v671_v41 = vpop.f32.mrf.mxu1 }
 0x116   :  { %v716_v42 = vpop.f32.mrf.mxu0  ;;  %v783_v47 = vmax.f32 %v767_v1, 0.0  ;;  %v672_v61 = vadd.f32 %v671_v41, %v1366_v37 }
 0x117   :  { %v758_v26 = vadd.f32 %v742_v28, %v715_v36  ;;  %v717_v45 = vadd.f32 %v716_v42, %v664_v34  ;;  %839 = vst [vmem:[%s1430_s4 + $0x20] sm:$0xff] %v941_v39  ;;  %v784_v48 = vmax.f32 %v768_v40, 0.0  ;;  %v673_v50 = vpop.f32.mrf.mxu1  ;;  %v773_v52 = vmax.f32 %v757_v35, 0.0 }
 0x118   :  { %v718_v51 = vpop.f32.mrf.mxu0  ;;  %v674_v6 = vadd.f32 %v673_v50, %v1374_v56 }
 0x119   :  { %v774_v53 = vmax.f32 %v758_v26, 0.0  ;;  %v761_v30 = vadd.f32 %v745_v38, %v717_v45  ;;  %v719_v54 = vadd.f32 %v718_v51, %v666_v43  ;;  %v943_v57 = vpack.c.bf16 %v784_v48, %v783_v47  ;;  %v675_v0 = vpop.f32.mrf.mxu1 }
 0x11a   :  { %v722_v58 = vpop.f32.mrf.mxu0  ;;  %v676_v12 = vadd.f32 %v675_v0, %v1374_v56 }
 0x11b   :  { %v938_v60 = vpack.c.bf16 %v774_v53, %v773_v52  ;;  %v762_v62 = vadd.f32 %v746_v46, %v719_v54  ;;  %841 = vst [vmem:[%s1430_s4 + $0x30] sm:$0xff] %v943_v57  ;;  %v723_v2 = vadd.f32 %v722_v58, %v670_v49  ;;  %v777_v5 = vmax.f32 %v761_v30, 0.0 }
 0x11c   :  { %v724_v3 = vpop.f32.mrf.mxu0 }
 0x11d   :  { %836 = vst [vmem:[%s1430_s4 + $0x8] sm:$0xff] %v938_v60  ;;  %v778_v7 = vmax.f32 %v762_v62, 0.0  ;;  %v725_v8 = vadd.f32 %v724_v3, %v672_v61  ;;  %v765_v37 = vadd.f32 %v749_v59, %v723_v2 }
 0x11e   :  { %v726_v9 = vpop.f32.mrf.mxu0 }
 0x11f   :  { %v940_v11 = vpack.c.bf16 %v778_v7, %v777_v5  ;;  %v766_v14 = vadd.f32 %v750_v63, %v725_v8  ;;  %v727_v15 = vadd.f32 %v726_v9, %v674_v6  ;;  %v781_v17 = vmax.f32 %v765_v37, 0.0 }
 0x120   :  { %v728_v16 = vpop.f32.mrf.mxu0 }
 0x121   :  { %838 = vst [vmem:[%s1430_s4 + $0x18] sm:$0xff] %v940_v11  ;;  %v782_v18 = vmax.f32 %v766_v14, 0.0  ;;  %v769_v19 = vadd.f32 %v753_v4, %v727_v15  ;;  %v729_v20 = vadd.f32 %v728_v16, %v676_v12 }
 0x123   :  { %v942_v21 = vpack.c.bf16 %v782_v18, %v781_v17  ;;  %v770_v22 = vadd.f32 %v754_v10, %v729_v20  ;;  %v785_v23 = vmax.f32 %v769_v19, 0.0 }
 0x125   :  { %840 = vst [vmem:[%s1430_s4 + $0x28] sm:$0xff] %v942_v21  ;;  %v786_v24 = vmax.f32 %v770_v22, 0.0 }
 0x127   :  { %v944_v56 = vpack.c.bf16 %v786_v24, %v785_v23 }
 0x129   :  { %842 = vst [vmem:[%s1430_s4 + $0x38] sm:$0xff] %v944_v56 }

// kernel: subnet_apply.75
= control target key start
LH: loop header
LB: loop body
LE: loop exit
PB: predicated region body
PF: predicated region fallthrough
CT: control target
= control target key end

     0   :  { %v1832_v1 = vmov 0   ;;  %vm869_vm0 = vcmask 261120   ;;  %vm1411_vm1 = vcmask 928768   ;;  %s2407_s1 = inlined_call_operand.vmem [shape: bf16[288,882], index: 1, kind: input, shape index: {}]   ;;  %s2408_s0 = inlined_call_operand.vmem [shape: bf16[32,288], index: 0, kind: input, shape index: {}]   ;;  %s2409_s2 = inlined_call_operand.vmem [shape: f32[32,1], index: 2, kind: input, shape index: {}]   ;;  %s2410_s3 = inlined_call_operand.vmem [shape: bf16[32,882], index: 3, kind: output, shape index: {}]  }
   0x1   :  { %v1644_v0 = vld [vmem:[%s2407_s1 + $0x18c] ss:$28 sps:$4 sm:$0xff]   ;;  %961 = vmatprep.mubr.bf16.mxu1 %v1832_v1  ;;  %1642 = vset.pattern.permute.xlu0 %v1832_v1  ;;  %v1646_v2 = vld [vmem:[%s2407_s1 + $0x3bc] ss:$28 sps:$4 sm:$0xff]   ;;  %v1650_v5 = vld [vmem:[%s2407_s1 + $0x154] ss:$28 sps:$4 sm:$0xff]  }
   0x2   :  { %1643 = vset.pattern.permute.xlu1 %v1832_v1  ;;  %876 = vmatprep.subr.bf16.mxu0 %v1644_v0  ;;  %v1648_v3 = vld [vmem:[%s2407_s1 + $0x188] ss:$28 sps:$4 sm:$0xff]   ;;  %v1649_v4 = vld [vmem:[%s2407_s1 + $0x3b8] ss:$28 sps:$4 sm:$0xff]   ;;  %v1654_v7 = vld [vmem:[%s2407_s1 + $0x150] ss:$28 sps:$4 sm:$0xff]  }
   0x3   :  { %941 = vmatprep.subr.bf16.mxu1 %v1646_v2  ;;  %877 = vmatpush1.bf16.msra.mxu0 %v1648_v3  ;;  %v1652_v6 = vld [vmem:[%s2407_s1 + $0x384] ss:$28 sps:$4 sm:$0xff]   ;;  %v1656_v9 = vld [vmem:[%s2407_s1 + $0x11c] ss:$28 sps:$4 sm:$0xff]   ;;  %v1886_v10 = vld [vmem:[%s2408_s0 + $0x8] ss:$12 sps:$4 sm:$0xff]  }
   0x4   :  { %942 = vmatpush1.bf16.msra.mxu1 %v1649_v4  ;;  %878 = vmatprep.subr.bf16.mxu0 %v1650_v5  ;;  %v1655_v8 = vld [vmem:[%s2407_s1 + $0x380] ss:$28 sps:$4 sm:$0xff]   ;;  %v1659_v11 = vld [vmem:[%s2407_s1 + $0x190] ss:$28 sps:$4 sm:$0xff]   ;;  %v1662_v13 = vld [vmem:[%s2407_s1 + $0x118] ss:$28 sps:$4 sm:$0xff]  }
   0x5   :  { %943 = vmatprep.subr.bf16.mxu1 %v1652_v6  ;;  %v1661_v12 = vld [vmem:[%s2407_s1 + $0x194] ss:$28 sps:$4 sm:$0xff]   ;;  %v1663_v14 = vld [vmem:[%s2407_s1 + $0xe4] ss:$28 sps:$4 sm:$0xff]   ;;  %v1667_v16 = vld [vmem:[%s2407_s1 + $0x15c] ss:$28 sps:$4 sm:$0xff]  }
   0x6   :  { %v1665_v15 = vld [vmem:[%s2407_s1 + $0x158] ss:$28 sps:$4 sm:$0xff]   ;;  %v1668_v17 = vld [vmem:[%s2407_s1 + $0xe0] ss:$28 sps:$4 sm:$0xff]   ;;  %v1669_v18 = vld [vmem:[%s2407_s1 + $0xac] ss:$28 sps:$4 sm:$0xff]  }
   0x7   :  { %879 = vmatpush1.bf16.msra.mxu0 %v1654_v7  ;;  %v1673_v19 = vld [vmem:[%s2407_s1 + $0x124] ss:$28 sps:$4 sm:$0xff]   ;;  %v1675_v22 = vld [vmem:[%s2407_s1 + $0x74] ss:$28 sps:$4 sm:$0xff]   ;;  %v1679_v23 = vld [vmem:[%s2407_s1 + $0xec] ss:$28 sps:$4 sm:$0xff]  }
   0x8   :  { %944 = vmatpush1.bf16.msra.mxu1 %v1655_v8  ;;  %880 = vmatprep.subr.bf16.mxu0 %v1656_v9  ;;  %v1671_v20 = vld [vmem:[%s2407_s1 + $0x120] ss:$28 sps:$4 sm:$0xff]   ;;  %v1674_v21 = vld [vmem:[%s2407_s1 + $0xa8] ss:$28 sps:$4 sm:$0xff]   ;;  %v1680_v25 = vld [vmem:[%s2407_s1 + $0x70] ss:$28 sps:$4 sm:$0xff]  }
   0x9   :  { %982 = vmatprep.subr.bf16.mxu1 %v1661_v12  ;;  %v1677_v24 = vld [vmem:[%s2407_s1 + $0xe8] ss:$28 sps:$4 sm:$0xff]   ;;  %v1681_v26 = vld [vmem:[%s2407_s1 + $0x3c] ss:$28 sps:$4 sm:$0xff]   ;;  %v1685_v27 = vld [vmem:[%s2407_s1 + $0xb4] ss:$28 sps:$4 sm:$0xff]  }
   0xa   :  { %v1683_v28 = vld [vmem:[%s2407_s1 + $0xb0] ss:$28 sps:$4 sm:$0xff]   ;;  %v1686_v29 = vld [vmem:[%s2407_s1 + $0x38] ss:$28 sps:$4 sm:$0xff]   ;;  %v1687_v30 = vld [vmem:[%s2407_s1 + $0x4] ss:$28 sps:$4 sm:$0xff]  }
   0xb   :  { %1561 = vmatmul.mubr.msk.bf16.vlgmr.msra.gmra.mxu1 %vm869_vm0, %v1886_v10  ;;  %881 = vmatpush1.bf16.msra.mxu0 %v1662_v13  ;;  %v1691_v31 = vld [vmem:[%s2407_s1 + $0x7c] ss:$28 sps:$4 sm:$0xff]   ;;  %v1693_v34 = vld [vmem:[%s2407_s1 + $0x34c] ss:$28 sps:$4 sm:$0xff]   ;;  %v1697_v35 = vld [vmem:[%s2407_s1 + $0x44] ss:$28 sps:$4 sm:$0xff]  }
   0xc   :  { %983 = vmatpush1.bf16.msra.mxu1 %v1659_v11  ;;  %882 = vmatprep.subr.bf16.mxu0 %v1663_v14  ;;  %v1689_v32 = vld [vmem:[%s2407_s1 + $0x78] ss:$28 sps:$4 sm:$0xff]   ;;  %v1692_v33 = vld [vmem:[%s2407_s1] ss:$28 sps:$4 sm:$0xff]   ;;  %v1698_v37 = vld [vmem:[%s2407_s1 + $0x348] ss:$28 sps:$4 sm:$0xff]  }
   0xd   :  { %984 = vmatprep.subr.bf16.mxu1 %v1667_v16  ;;  %971 = vmatprep.mubr.bf16.mxu1 %v1832_v1  ;;  %v1695_v36 = vld [vmem:[%s2407_s1 + $0x40] ss:$28 sps:$4 sm:$0xff]   ;;  %v1699_v38 = vld [vmem:[%s2407_s1 + $0x314] ss:$28 sps:$4 sm:$0xff]   ;;  %v1703_v39 = vld [vmem:[%s2407_s1 + $0xc] ss:$28 sps:$4 sm:$0xff]  }
   0xe   :  { %v1701_v40 = vld [vmem:[%s2407_s1 + $0x8] ss:$28 sps:$4 sm:$0xff]   ;;  %v1704_v41 = vld [vmem:[%s2407_s1 + $0x310] ss:$28 sps:$4 sm:$0xff]   ;;  %v1705_v42 = vld [vmem:[%s2407_s1 + $0x2dc] ss:$28 sps:$4 sm:$0xff]  }
   0xf   :  { %883 = vmatpush1.bf16.msra.mxu0 %v1668_v17  ;;  %v1709_v43 = vld [vmem:[%s2407_s1 + $0x354] ss:$28 sps:$4 sm:$0xff]   ;;  %v1711_v46 = vld [vmem:[%s2407_s1 + $0x2a4] ss:$28 sps:$4 sm:$0xff]   ;;  %v1715_v47 = vld [vmem:[%s2407_s1 + $0x31c] ss:$28 sps:$4 sm:$0xff]  }
  0x10   :  { %985 = vmatpush1.bf16.msra.mxu1 %v1665_v15  ;;  %884 = vmatprep.subr.bf16.mxu0 %v1669_v18  ;;  %v1707_v44 = vld [vmem:[%s2407_s1 + $0x350] ss:$28 sps:$4 sm:$0xff]   ;;  %v1710_v45 = vld [vmem:[%s2407_s1 + $0x2d8] ss:$28 sps:$4 sm:$0xff]   ;;  %v1716_v50 = vld [vmem:[%s2407_s1 + $0x2a0] ss:$28 sps:$4 sm:$0xff]  }
  0x11   :  { %986 = vmatprep.subr.bf16.mxu1 %v1673_v19  ;;  %v2005_v48 = vld [vmem:[%s2408_s0 + $0x20] ss:$12 sps:$4 sm:$0xff]   ;;  %v1713_v49 = vld [vmem:[%s2407_s1 + $0x318] ss:$28 sps:$4 sm:$0xff]   ;;  %v2024_v53 = vld [vmem:[%s2408_s0 + $0x4] ss:$12 sps:$4 sm:$0xff]  }
  0x12   :  { %v1717_v51 = vld [vmem:[%s2407_s1 + $0x26c] ss:$28 sps:$4 sm:$0xff]   ;;  %v1721_v52 = vld [vmem:[%s2407_s1 + $0x2e4] ss:$28 sps:$4 sm:$0xff]   ;;  %908 = vmatprep.mubr.bf16.mxu0 %v2024_v53  ;;  %v1723_v56 = vld [vmem:[%s2407_s1 + $0x234] ss:$28 sps:$4 sm:$0xff]  }
  0x13   :  { %885 = vmatpush1.bf16.msra.mxu0 %v1674_v21  ;;  %1562 = vmatmul.mubr.msk.bf16.gmra.mxu1 %vm869_vm0, %v2005_v48  ;;  %v1719_v54 = vld [vmem:[%s2407_s1 + $0x2e0] ss:$28 sps:$4 sm:$0xff]   ;;  %v1722_v55 = vld [vmem:[%s2407_s1 + $0x268] ss:$28 sps:$4 sm:$0xff]   ;;  %v1728_v59 = vld [vmem:[%s2407_s1 + $0x230] ss:$28 sps:$4 sm:$0xff]  }
  0x14   :  { %987 = vmatpush1.bf16.msra.mxu1 %v1671_v20  ;;  %886 = vmatprep.subr.bf16.mxu0 %v1675_v22  ;;  %v1727_v57 = vld [vmem:[%s2407_s1 + $0x2ac] ss:$28 sps:$4 sm:$0xff]   ;;  %v1729_v60 = vld [vmem:[%s2407_s1 + $0x1fc] ss:$28 sps:$4 sm:$0xff]   ;;  %v1733_v61 = vld [vmem:[%s2407_s1 + $0x274] ss:$28 sps:$4 sm:$0xff]  }
  0x15   :  { %988 = vmatprep.subr.bf16.mxu1 %v1679_v23  ;;  %1014 = vmatprep.mubr.bf16.mxu1 %v2024_v53  ;;  %v1725_v58 = vld [vmem:[%s2407_s1 + $0x2a8] ss:$28 sps:$4 sm:$0xff]   ;;  %v1731_v62 = vld [vmem:[%s2407_s1 + $0x270] ss:$28 sps:$4 sm:$0xff]   ;;  %v1734_v63 = vld [vmem:[%s2407_s1 + $0x1f8] ss:$28 sps:$4 sm:$0xff]  }
  0x16   :  { %v1736_v0 = vld [vmem:[%s2407_s1 + $0x1c4] ss:$28 sps:$4 sm:$0xff]   ;;  %v1740_v2 = vld [vmem:[%s2407_s1 + $0x23c] ss:$28 sps:$4 sm:$0xff]   ;;  %v1753_v11 = vld [vmem:[%s2407_s1 + $0x1cc] ss:$28 sps:$4 sm:$0xff]  }
  0x17   :  { %887 = vmatpush1.bf16.msra.mxu0 %v1680_v25  ;;  %v1738_v3 = vld [vmem:[%s2407_s1 + $0x238] ss:$28 sps:$4 sm:$0xff]   ;;  %v1741_v4 = vld [vmem:[%s2407_s1 + $0x1c0] ss:$28 sps:$4 sm:$0xff]   ;;  %v1762_v13 = vld [vmem:[%s2407_s1 + $0x38c] ss:$28 sps:$4 sm:$0xff]  }
  0x18   :  { %989 = vmatpush1.bf16.msra.mxu1 %v1677_v24  ;;  %888 = vmatprep.subr.bf16.mxu0 %v1681_v26  ;;  %v1747_v5 = vld [vmem:[%s2407_s1 + $0x204] ss:$28 sps:$4 sm:$0xff]   ;;  %v2093_v12 = vld [vmem:[%s2408_s0 + $0x1c] ss:$12 sps:$4 sm:$0xff]   ;;  %v1757_v19 = vld [vmem:[%s2407_s1 + $0x198] ss:$28 sps:$4 sm:$0xff]  }
  0x19   :  { %990 = vmatprep.subr.bf16.mxu1 %v1685_v27  ;;  %v1750_v6 = vld [vmem:[%s2407_s1 + $0x3c4] ss:$28 sps:$4 sm:$0xff]   ;;  %v1759_v15 = vld [vmem:[%s2407_s1 + $0x19c] ss:$28 sps:$4 sm:$0xff]   ;;  %v1771_v17 = vld [vmem:[%s2407_s1 + $0x3cc] ss:$28 sps:$4 sm:$0xff]  }
  0x1a   :  { %v2079_v7 = vld [vmem:[%s2408_s0] ss:$12 sps:$4 sm:$0xff]   ;;  %v1751_v14 = vld [vmem:[%s2407_s1 + $0x1c8] ss:$28 sps:$4 sm:$0xff]   ;;  %v1774_v25 = vld [vmem:[%s2407_s1 + $0xf4] ss:$28 sps:$4 sm:$0xff]  }
  0x1b   :  { %889 = vmatpush1.bf16.msra.mxu0 %v1686_v29  ;;  %v1745_v8 = vld [vmem:[%s2407_s1 + $0x200] ss:$28 sps:$4 sm:$0xff]   ;;  %v1760_v16 = vld [vmem:[%s2407_s1 + $0x388] ss:$28 sps:$4 sm:$0xff]   ;;  %v1780_v26 = vld [vmem:[%s2407_s1 + $0x394] ss:$28 sps:$4 sm:$0xff]  }
  0x1c   :  { %991 = vmatpush1.bf16.msra.mxu1 %v1683_v28  ;;  %890 = vmatprep.subr.bf16.mxu0 %v1687_v30  ;;  %v1748_v9 = vld [vmem:[%s2407_s1 + $0x3c0] ss:$28 sps:$4 sm:$0xff]   ;;  %v2115_v18 = vld [vmem:[%s2408_s0 + $0x18] ss:$12 sps:$4 sm:$0xff]   ;;  %v1768_v22 = vld [vmem:[%s2407_s1 + $0x12c] ss:$28 sps:$4 sm:$0xff]  }
  0x1d   :  { %992 = vmatprep.subr.bf16.mxu1 %v1691_v31  ;;  %v1765_v20 = vld [vmem:[%s2407_s1 + $0x164] ss:$28 sps:$4 sm:$0xff]   ;;  %v1772_v27 = vld [vmem:[%s2407_s1 + $0xf0] ss:$28 sps:$4 sm:$0xff]   ;;  %v1777_v29 = vld [vmem:[%s2407_s1 + $0xbc] ss:$28 sps:$4 sm:$0xff]  }
  0x1e   :  { %v1763_v21 = vld [vmem:[%s2407_s1 + $0x160] ss:$28 sps:$4 sm:$0xff]   ;;  %v1766_v23 = vld [vmem:[%s2407_s1 + $0x128] ss:$28 sps:$4 sm:$0xff]   ;;  %v1778_v28 = vld [vmem:[%s2407_s1 + $0x390] ss:$28 sps:$4 sm:$0xff]  }
  0x1f   :  { %891 = vmatpush1.bf16.msra.mxu0 %v1692_v33  ;;  %v1769_v24 = vld [vmem:[%s2407_s1 + $0x3c8] ss:$28 sps:$4 sm:$0xff]   ;;  %v1784_v30 = vld [vmem:[%s2407_s1 + $0x360] ss:$28 sps:$4 sm:$0xff]   ;;  %v1775_v31 = vld [vmem:[%s2407_s1 + $0xb8] ss:$28 sps:$4 sm:$0xff]  }
  0x20   :  { %993 = vmatpush1.bf16.msra.mxu1 %v1689_v32  ;;  %892 = vmatprep.subr.bf16.mxu0 %v1693_v34  ;;  %v1783_v32 = vld [vmem:[%s2407_s1 + $0x84] ss:$28 sps:$4 sm:$0xff]   ;;  %v1787_v34 = vld [vmem:[%s2407_s1 + $0x4c] ss:$28 sps:$4 sm:$0xff]  }
  0x21   :  { %994 = vmatprep.subr.bf16.mxu1 %v1697_v35  ;;  %v1781_v33 = vld [vmem:[%s2407_s1 + $0x80] ss:$28 sps:$4 sm:$0xff]  }
  0x22   :  { %v167_v35 = vld [vmem:[%s2409_s2] sm:$0xff] }
  0x23   :  { %893 = vmatpush2.bf16.msra.mxu0 %v1698_v37  ;;  %173 = vperm.xlu0 %1642, %v167_v35   ;;  %v169_v37 = vld [vmem:[%s2409_s2 + $0x10] sm:$0xff] }
  0x24   :  { %995 = vmatpush1.bf16.msra.mxu1 %v1695_v36  ;;  %894 = vmatprep.subr.bf16.mxu0 %v1699_v38  ;;  %v168_v36 = vld [vmem:[%s2409_s2 + $0x8] sm:$0xff] }
  0x25   :  { %996 = vmatprep.subr.bf16.mxu1 %v1703_v39  ;;  %v1785_v38 = vld [vmem:[%s2407_s1 + $0x48] ss:$28 sps:$4 sm:$0xff]   ;;  %v1788_v39 = vld [vmem:[%s2407_s1 + $0x1a0] ss:$28 sps:$4 sm:$0xff]   ;;  %183 = vperm.xlu1 %1643, %v169_v37  }
  0x27   :  { %895 = vmatpush2.bf16.msra.mxu0 %v1704_v41  ;;  %v1792_v41 = vld [vmem:[%s2407_s1 + $0x14] ss:$28 sps:$4 sm:$0xff]   ;;  %178 = vperm.xlu0 %1642, %v168_v36  }
  0x28   :  { %997 = vmatpush1.bf16.msra.mxu1 %v1701_v40  ;;  %896 = vmatprep.subr.bf16.mxu0 %v1705_v42  ;;  %v1789_v40 = vld [vmem:[%s2407_s1 + $0x328] ss:$28 sps:$4 sm:$0xff]   ;;  %v170_v42 = vld [vmem:[%s2409_s2 + $0x18] sm:$0xff] }
  0x29   :  { %998 = vmatprep.subr.bf16.mxu1 %v1709_v43  ;;  %v1790_v43 = vld [vmem:[%s2407_s1 + $0x10] ss:$28 sps:$4 sm:$0xff]   ;;  %188 = vperm.xlu1 %1643, %v170_v42  }
  0x2b   :  { %897 = vmatpush2.bf16.msra.mxu0 %v1710_v45  ;;  %v1794_v45 = vld [vmem:[%s2407_s1 + $0x2f0] ss:$28 sps:$4 sm:$0xff]  }
  0x2c   :  { %999 = vmatpush2.bf16.msra.mxu1 %v1707_v44  ;;  %898 = vmatprep.subr.bf16.mxu0 %v1711_v46  ;;  %v1793_v44 = vld [vmem:[%s2407_s1 + $0x168] ss:$28 sps:$4 sm:$0xff]   ;;  %v1797_v46 = vld [vmem:[%s2407_s1 + $0x35c] ss:$28 sps:$4 sm:$0xff]  }
  0x2d   :  { %1000 = vmatprep.subr.bf16.mxu1 %v1715_v47  ;;  %v1795_v47 = vld [vmem:[%s2407_s1 + $0x358] ss:$28 sps:$4 sm:$0xff]  }
  0x2f   :  { %899 = vmatpush2.bf16.msra.mxu0 %v1716_v50  ;;  %v1799_v50 = vld [vmem:[%s2407_s1 + $0x2b8] ss:$28 sps:$4 sm:$0xff]  }
  0x30   :  { %1001 = vmatpush2.bf16.msra.mxu1 %v1713_v49  ;;  %900 = vmatprep.subr.bf16.mxu0 %v1717_v51  ;;  %v1798_v49 = vld [vmem:[%s2407_s1 + $0x130] ss:$28 sps:$4 sm:$0xff]   ;;  %v1800_v51 = vld [vmem:[%s2407_s1 + $0x320] ss:$28 sps:$4 sm:$0xff]  }
  0x31   :  { %1002 = vmatprep.subr.bf16.mxu1 %v1721_v52  ;;  %v1803_v52 = vld [vmem:[%s2407_s1 + $0xf8] ss:$28 sps:$4 sm:$0xff]  }
  0x33   :  { %901 = vmatpush2.bf16.msra.mxu0 %v1722_v55  ;;  %v1807_v55 = vld [vmem:[%s2407_s1 + $0x2ec] ss:$28 sps:$4 sm:$0xff]  }
  0x34   :  { %1003 = vmatpush2.bf16.msra.mxu1 %v1719_v54  ;;  %902 = vmatprep.subr.bf16.mxu0 %v1723_v56  ;;  %v1804_v54 = vld [vmem:[%s2407_s1 + $0x280] ss:$28 sps:$4 sm:$0xff]   ;;  %v1805_v56 = vld [vmem:[%s2407_s1 + $0x2e8] ss:$28 sps:$4 sm:$0xff]  }
  0x35   :  { %1004 = vmatprep.subr.bf16.mxu1 %v1727_v57  ;;  %v1808_v57 = vld [vmem:[%s2407_s1 + $0xc0] ss:$28 sps:$4 sm:$0xff]  }
  0x37   :  { %903 = vmatpush2.bf16.msra.mxu0 %v1728_v59  ;;  %v1810_v59 = vld [vmem:[%s2407_s1 + $0x2b0] ss:$28 sps:$4 sm:$0xff]  }
  0x38   :  { %1005 = vmatpush2.bf16.msra.mxu1 %v1725_v58  ;;  %904 = vmatprep.subr.bf16.mxu0 %v1729_v60  ;;  %v1809_v58 = vld [vmem:[%s2407_s1 + $0x248] ss:$28 sps:$4 sm:$0xff]  }
  0x39   :  { %1006 = vmatprep.subr.bf16.mxu1 %v1733_v61  ;;  %v1813_v60 = vld [vmem:[%s2407_s1 + $0x88] ss:$28 sps:$4 sm:$0xff]   ;;  %v1814_v61 = vld [vmem:[%s2407_s1 + $0x210] ss:$28 sps:$4 sm:$0xff]  }
  0x3b   :  { %905 = vmatpush2.bf16.msra.mxu0 %v1734_v63  ;;  %v1815_v63 = vld [vmem:[%s2407_s1 + $0x278] ss:$28 sps:$4 sm:$0xff]  }
  0x3c   :  { %1007 = vmatpush2.bf16.msra.mxu1 %v1731_v62  ;;  %906 = vmatprep.subr.bf16.mxu0 %v1736_v0  ;;  %v1817_v62 = vld [vmem:[%s2407_s1 + $0x27c] ss:$28 sps:$4 sm:$0xff]   ;;  %v1818_v0 = vld [vmem:[%s2407_s1 + $0x50] ss:$28 sps:$4 sm:$0xff]  }
  0x3d   :  { %1008 = vmatprep.subr.bf16.mxu1 %v1740_v2  ;;  %v1819_v2 = vld [vmem:[%s2407_s1 + $0x1d8] ss:$28 sps:$4 sm:$0xff]  }
  0x3f   :  { %907 = vmatpush2.bf16.msra.mxu0 %v1741_v4  ;;  %v1820_v4 = vld [vmem:[%s2407_s1 + $0x240] ss:$28 sps:$4 sm:$0xff]  }
  0x40   :  { %1009 = vmatpush2.bf16.msra.mxu1 %v1738_v3  ;;  %1047 = vmatprep.subr.bf16.mxu0 %v1750_v6  ;;  %v1822_v3 = vld [vmem:[%s2407_s1 + $0x244] ss:$28 sps:$4 sm:$0xff]   ;;  %v1826_v6 = vld [vmem:[%s2407_s1 + $0x20c] ss:$28 sps:$4 sm:$0xff]  }
  0x41   :  { %1010 = vmatprep.subr.bf16.mxu1 %v1747_v5  ;;  %v1823_v5 = vld [vmem:[%s2407_s1 + $0x18] ss:$28 sps:$4 sm:$0xff]  }
  0x42   :  { %909 = vmatmul.mubr.bf16.vlgmr.msra.gmra.mxu0 %v2079_v7 }
  0x43   :  { %1048 = vmatpush1.bf16.msra.mxu0 %v1748_v9  ;;  %918 = vmatprep.mubr.bf16.mxu0 %v2093_v12  ;;  %v1824_v9 = vld [vmem:[%s2407_s1 + $0x208] ss:$28 sps:$4 sm:$0xff]  }
  0x44   :  { %1011 = vmatpush2.bf16.msra.mxu1 %v1745_v8  ;;  %1049 = vmatprep.subr.bf16.mxu0 %v1762_v13  ;;  %v1827_v8 = vld [vmem:[%s2407_s1 + $0x3d0] ss:$28 sps:$4 sm:$0xff]   ;;  %v1831_v13 = vld [vmem:[%s2407_s1 + $0x398] ss:$28 sps:$4 sm:$0xff]  }
  0x45   :  { %1012 = vmatprep.subr.bf16.mxu1 %v1753_v11  ;;  %v1830_v11 = vld [vmem:[%s2407_s1 + $0x1d4] ss:$28 sps:$4 sm:$0xff]  }
  0x47   :  { %1050 = vmatpush1.bf16.msra.mxu0 %v1760_v16 }
  0x48   :  { %1013 = vmatpush2.bf16.msra.mxu1 %v1751_v14  ;;  %1153 = vmatprep.subr.bf16.mxu0 %v1771_v17  ;;  %v1828_v14 = vld [vmem:[%s2407_s1 + $0x1d0] ss:$28 sps:$4 sm:$0xff]  }
  0x49   :  { %1088 = vmatprep.subr.bf16.mxu1 %v1759_v15 }
  0x4a   :  { %919 = vmatmul.mubr.bf16.gmra.mxu0 %v2115_v18 }
  0x4b   :  { %1015 = vmatmul.mubr.bf16.vlgmr.msra.gmra.mxu1 %v2079_v7  ;;  %1067 = vmatprep.mubr.bf16.mxu0 %v1832_v1 }
  0x4c   :  { %1089 = vmatpush1.bf16.msra.mxu1 %v1757_v19  ;;  %1024 = vmatprep.mubr.bf16.mxu1 %v2093_v12 }
  0x4d   :  { %1090 = vmatprep.subr.bf16.mxu1 %v1765_v20 }
  0x50   :  { %1091 = vmatpush1.bf16.msra.mxu1 %v1763_v21 }
  0x51   :  { %1092 = vmatprep.subr.bf16.mxu1 %v1768_v22 }
  0x52   :  { %1563 = vmatmul.mubr.msk.bf16.vlgmr.msra.gmra.mxu0 %vm869_vm0, %v1886_v10 }
  0x53   :  { %1025 = vmatmul.mubr.bf16.gmra.mxu1 %v2115_v18  ;;  %1154 = vmatpush1.bf16.msra.mxu0 %v1769_v24 }
  0x54   :  { %1093 = vmatpush1.bf16.msra.mxu1 %v1766_v23  ;;  %1077 = vmatprep.mubr.bf16.mxu0 %v1832_v1 }
  0x55   :  { %1094 = vmatprep.subr.bf16.mxu1 %v1774_v25  ;;  %1155 = vmatprep.subr.bf16.mxu0 %v1780_v26 }
  0x56   :  { %1120 = vmatprep.mubr.bf16.mxu1 %v2024_v53 }
  0x57   :  { %1156 = vmatpush1.bf16.msra.mxu0 %v1778_v28 }
  0x58   :  { %1095 = vmatpush1.bf16.msra.mxu1 %v1772_v27  ;;  %1601 = vmatprep.subr.bf16.mxu0 %v1784_v30 }
  0x59   :  { %1096 = vmatprep.subr.bf16.mxu1 %v1777_v29 }
  0x5a   :  { %1564 = vmatmul.mubr.msk.bf16.gmra.mxu0 %vm869_vm0, %v2005_v48 }
  0x5b   :  { %1173 = vmatprep.mubr.bf16.mxu0 %v1832_v1 }
  0x5c   :  { %1097 = vmatpush1.bf16.msra.mxu1 %v1775_v31 }
  0x5d   :  { %1098 = vmatprep.subr.bf16.mxu1 %v1783_v32 }
  0x60   :  { %1099 = vmatpush1.bf16.msra.mxu1 %v1781_v33 }
  0x61   :  { %1100 = vmatprep.subr.bf16.mxu1 %v1787_v34 }
  0x62   :  { %1565 = vmatmul.mubr.msk.bf16.vlgmr.msra.gmra.mxu0 %vm869_vm0, %v1886_v10 }
  0x63   :  { %1602 = vmatpush3.bf16.msra.mxu0 %v1788_v39  ;;  %1183 = vmatprep.mubr.bf16.mxu0 %v1832_v1  ;;  %v1802_v1 = vld [vmem:[%s2407_s1 + $0x324] ss:$28 sps:$4 sm:$0xff]  }
  0x64   :  { %1101 = vmatpush1.bf16.msra.mxu1 %v1785_v38  ;;  %1603 = vmatprep.subr.bf16.mxu0 %v1789_v40 }
  0x65   :  { %1102 = vmatprep.subr.bf16.mxu1 %v1792_v41 }
  0x67   :  { %1604 = vmatpush3.bf16.msra.mxu0 %v1793_v44 }
  0x68   :  { %1103 = vmatpush1.bf16.msra.mxu1 %v1790_v43  ;;  %1605 = vmatprep.subr.bf16.mxu0 %v1794_v45 }
  0x69   :  { %1104 = vmatprep.subr.bf16.mxu1 %v1797_v46 }
  0x6a   :  { %1566 = vmatmul.mubr.msk.bf16.gmra.mxu0 %vm869_vm0, %v2005_v48 }
  0x6b   :  { %1606 = vmatpush3.bf16.msra.mxu0 %v1798_v49  ;;  %1226 = vmatprep.mubr.bf16.mxu0 %v2024_v53  ;;  %v1812_v53 = vld [vmem:[%s2407_s1 + $0x2b4] ss:$28 sps:$4 sm:$0xff]  }
  0x6c   :  { %1105 = vmatpush2.bf16.msra.mxu1 %v1795_v47  ;;  %1607 = vmatprep.subr.bf16.mxu0 %v1799_v50 }
  0x6d   :  { %1106 = vmatprep.subr.bf16.mxu1 %v1802_v1 }
  0x6f   :  { %1608 = vmatpush3.bf16.msra.mxu0 %v1803_v52 }
  0x70   :  { %1107 = vmatpush2.bf16.msra.mxu1 %v1800_v51  ;;  %1609 = vmatprep.subr.bf16.mxu0 %v1804_v54 }
  0x71   :  { %1108 = vmatprep.subr.bf16.mxu1 %v1807_v55 }
  0x73   :  { %1610 = vmatpush3.bf16.msra.mxu0 %v1808_v57 }
  0x74   :  { %1109 = vmatpush2.bf16.msra.mxu1 %v1805_v56  ;;  %1611 = vmatprep.subr.bf16.mxu0 %v1809_v58 }
  0x75   :  { %1110 = vmatprep.subr.bf16.mxu1 %v1812_v53 }
  0x77   :  { %1612 = vmatpush3.bf16.msra.mxu0 %v1813_v60 }
  0x78   :  { %1111 = vmatpush2.bf16.msra.mxu1 %v1810_v59  ;;  %1613 = vmatprep.subr.bf16.mxu0 %v1814_v61 }
  0x79   :  { %1112 = vmatprep.subr.bf16.mxu1 %v1817_v62 }
  0x7b   :  { %1614 = vmatpush3.bf16.msra.mxu0 %v1818_v0 }
  0x7c   :  { %1113 = vmatpush2.bf16.msra.mxu1 %v1815_v63  ;;  %1615 = vmatprep.subr.bf16.mxu0 %v1819_v2 }
  0x7d   :  { %1114 = vmatprep.subr.bf16.mxu1 %v1822_v3 }
  0x7f   :  { %1616 = vmatpush3.bf16.msra.mxu0 %v1823_v5 }
  0x80   :  { %1115 = vmatpush2.bf16.msra.mxu1 %v1820_v4  ;;  %1633 = vmatprep.subr.bf16.mxu0 %v1827_v8 }
  0x81   :  { %1116 = vmatprep.subr.bf16.mxu1 %v1826_v6 }
  0x82   :  { %1227 = vmatmul.mubr.bf16.vlgmr.msra.gmra.mxu0 %v2079_v7 }
  0x83   :  { %1634 = vmatpush3.bf16.msra.mxu0 %v1827_v8  ;;  %1234 = vmatprep.mubr.bf16.mxu0 %v2093_v12 }
  0x84   :  { %1117 = vmatpush2.bf16.msra.mxu1 %v1824_v9  ;;  %1635 = vmatprep.subr.bf16.mxu0 %v1831_v13 }
  0x85   :  { %1118 = vmatprep.subr.bf16.mxu1 %v1830_v11 }
  0x87   :  { %1636 = vmatpush3.bf16.msra.mxu0 %v1831_v13 }
  0x88   :  { %1119 = vmatpush2.bf16.msra.mxu1 %v1828_v14 }
  0x8a   :  { %1235 = vmatmul.mubr.bf16.gmra.mxu0 %v2115_v18 }
  0x8b   :  { %1121 = vmatmul.mubr.bf16.vlgmr.msra.gmra.mxu1 %v2079_v7  ;;  %1637 = vmatprep.mubr.msk.bf16.mxu0 %vm869_vm0, %v1886_v10 }
  0x8c   :  { %1130 = vmatprep.mubr.bf16.mxu1 %v2093_v12 }
  0x92   :  { %1638 = vmatmul.mubr.msk.bf16.vlgmr.msra.gmra.mxu0 %vm869_vm0, %v2005_v48 }
  0x93   :  { %1131 = vmatmul.mubr.bf16.gmra.mxu1 %v2115_v18 }
  0x9e   :  { %v2313_v21 = vpop.permute.xlu0 %173 }
  0xa0   :  { %v2319_v26 = vpop.permute.xlu1 %183 }
  0xa2   :  { %v2316_v24 = vpop.permute.xlu0 %178 }
  0xa4   :  { %v2324_v40 = vpop.permute.xlu1 %188 }
  0xcb   :  { %v963_v15 = vpop.f32.mrf.mxu1 }
  0xcd   :  { %v965_v16 = vpop.f32.mrf.mxu1 }
  0xcf   :  { %v967_v17 = vpop.f32.mrf.mxu1 }
  0xd1   :  { %v969_v19 = vpop.f32.mrf.mxu1 }
  0xd3   :  { %v973_v20 = vpop.f32.mrf.mxu1 }
  0xd5   :  { %v975_v22 = vpop.f32.mrf.mxu1 }
  0xd7   :  { %v977_v10 = vpop.f32.mrf.mxu1 }
  0xd9   :  { %v979_v29 = vpop.f32.mrf.mxu1 }
 0x102   :  { %v910_v23 = vpop.f32.mrf.mxu0 }
 0x103   :  { %v911_v7 = vadd.f32 %v910_v23, %v2313_v21 }
 0x104   :  { %v912_v12 = vpop.f32.mrf.mxu0 }
 0x105   :  { %v964_v25 = vadd.f32 %v963_v15, %v911_v7  ;;  %v913_v48 = vadd.f32 %v912_v12, %v2313_v21 }
 0x106   :  { %v914_v18 = vpop.f32.mrf.mxu0 }
 0x107   :  { %v966_v27 = vadd.f32 %v965_v16, %v913_v48  ;;  %v915_v28 = vadd.f32 %v914_v18, %v2316_v24  ;;  %v1292_v31 = vmax.f32 %v964_v25, 0.0 }
 0x108   :  { %v916_v30 = vpop.f32.mrf.mxu0 }
 0x109   :  { %v1293_v32 = vmax.f32 %v966_v27, 0.0  ;;  %v968_v33 = vadd.f32 %v967_v17, %v915_v28  ;;  %v917_v34 = vadd.f32 %v916_v30, %v2316_v24 }
 0x10a   :  { %v920_v35 = vpop.f32.mrf.mxu0 }
 0x10b   :  { %v1016_v36 = vpop.f32.mrf.mxu1  ;;  %v1585_v37 = vpack.c.bf16 %v1293_v32, %v1292_v31  ;;  %v970_v38 = vadd.f32 %v969_v19, %v917_v34  ;;  %v921_v39 = vadd.f32 %v920_v35, %v2319_v26  ;;  %v1299_v43 = vmax.f32 %v968_v33, 0.0 }
 0x10c   :  { %v922_v41 = vpop.f32.mrf.mxu0  ;;  %v1017_v52 = vadd.f32 %v1016_v36, %v2313_v21 }
 0x10d   :  { %v1018_v42 = vpop.f32.mrf.mxu1  ;;  %1408 = vst [vmem:[%s2410_s3] sm:$0xff] %v1585_v37  ;;  %v1300_v44 = vmax.f32 %v970_v38, 0.0  ;;  %v974_v45 = vadd.f32 %v973_v20, %v921_v39  ;;  %v923_v46 = vadd.f32 %v922_v41, %v2319_v26 }
 0x10e   :  { %v924_v47 = vpop.f32.mrf.mxu0  ;;  %v1019_v62 = vadd.f32 %v1018_v42, %v2313_v21 }
 0x10f   :  { %v1020_v49 = vpop.f32.mrf.mxu1  ;;  %v1589_v50 = vpack.c.bf16 %v1300_v44, %v1299_v43  ;;  %v976_v1 = vadd.f32 %v975_v22, %v923_v46  ;;  %v925_v51 = vadd.f32 %v924_v47, %v2324_v40  ;;  %v1306_v56 = vmax.f32 %v974_v45, 0.0 }
 0x110   :  { %v926_v54 = vpop.f32.mrf.mxu0  ;;  %v1021_v5 = vadd.f32 %v1020_v49, %v2316_v24 }
 0x111   :  { %v1022_v55 = vpop.f32.mrf.mxu1  ;;  %1413 = vst [vmem:[%s2410_s3 + $0x1c] sm:$0xff] %v1589_v50  ;;  %v1307_v57 = vmax.f32 %v976_v1, 0.0  ;;  %v978_v58 = vadd.f32 %v977_v10, %v925_v51  ;;  %v927_v53 = vadd.f32 %v926_v54, %v2324_v40 }
 0x112   :  { %v1069_v59 = vpop.f32.mrf.mxu0  ;;  %v1023_v9 = vadd.f32 %v1022_v55, %v2316_v24 }
 0x113   :  { %v1026_v60 = vpop.f32.mrf.mxu1  ;;  %v1593_v61 = vpack.c.bf16 %v1307_v57, %v1306_v56  ;;  %v980_v63 = vadd.f32 %v979_v29, %v927_v53  ;;  %v1070_v0 = vadd.f32 %v1069_v59, %v1017_v52  ;;  %v1313_v4 = vmax.f32 %v978_v58, 0.0 }
 0x114   :  { %v1071_v2 = vpop.f32.mrf.mxu0  ;;  %v1027_v13 = vadd.f32 %v1026_v60, %v2319_v26 }
 0x115   :  { %v1028_v3 = vpop.f32.mrf.mxu1  ;;  %1417 = vst [vmem:[%s2410_s3 + $0x38] sm:$0xff] %v1593_v61  ;;  %v1314_v6 = vmax.f32 %v980_v63, 0.0  ;;  %v1072_v8 = vadd.f32 %v1071_v2, %v1019_v62  ;;  %v1294_v16 = vmax.f32 %v1070_v0, 0.0 }
 0x116   :  { %v1073_v11 = vpop.f32.mrf.mxu0  ;;  %v1029_v7 = vadd.f32 %v1028_v3, %v2319_v26 }
 0x117   :  { %v1030_v14 = vpop.f32.mrf.mxu1  ;;  %v1597_v15 = vpack.c.bf16 %v1314_v6, %v1313_v4  ;;  %v1295_v17 = vmax.f32 %v1072_v8, 0.0  ;;  %v1074_v19 = vadd.f32 %v1073_v11, %v1021_v5 }
 0x118   :  { %v1075_v20 = vpop.f32.mrf.mxu0  ;;  %v1031_v27 = vadd.f32 %v1030_v14, %v2324_v40 }
 0x119   :  { %1421 = vst [vmem:[%s2410_s3 + $0x54] sm:$0xff] %v1597_v15  ;;  %v1586_v22 = vpack.c.bf16 %v1295_v17, %v1294_v16  ;;  %v1076_v23 = vadd.f32 %v1075_v20, %v1023_v9  ;;  %v1032_v12 = vpop.f32.mrf.mxu1  ;;  %v1301_v25 = vmax.f32 %v1074_v19, 0.0 }
 0x11a   :  { %v1079_v10 = vpop.f32.mrf.mxu0  ;;  %v1033_v32 = vadd.f32 %v1032_v12, %v2324_v40 }
 0x11b   :  { %1409 = vst [vmem:[%s2410_s3 + $0x8] sm:$0xff] %v1586_v22  ;;  %v1302_v48 = vmax.f32 %v1076_v23, 0.0  ;;  %v1080_v18 = vadd.f32 %v1079_v10, %v1027_v13 }
 0x11c   :  { %v1081_v28 = vpop.f32.mrf.mxu0 }
 0x11d   :  { %v1590_v29 = vpack.c.bf16 %v1302_v48, %v1301_v25  ;;  %v1308_v30 = vmax.f32 %v1080_v18, 0.0  ;;  %v1082_v31 = vadd.f32 %v1081_v28, %v1029_v7 }
 0x11e   :  { %v1083_v33 = vpop.f32.mrf.mxu0 }
 0x11f   :  { %1414 = vst [vmem:[%s2410_s3 + $0x24] sm:$0xff] %v1590_v29  ;;  %v1309_v34 = vmax.f32 %v1082_v31, 0.0  ;;  %v1084_v35 = vadd.f32 %v1083_v33, %v1031_v27 }
 0x120   :  { %v1085_v36 = vpop.f32.mrf.mxu0 }
 0x121   :  { %v1594_v37 = vpack.c.bf16 %v1309_v34, %v1308_v30  ;;  %v1086_v38 = vadd.f32 %v1085_v36, %v1033_v32  ;;  %v1315_v39 = vmax.f32 %v1084_v35, 0.0 }
 0x122   :  { %v1175_v43 = vpop.f32.mrf.mxu0 }
 0x123   :  { %1418 = vst [vmem:[%s2410_s3 + $0x40] sm:$0xff] %v1594_v37  ;;  %v1316_v41 = vmax.f32 %v1086_v38, 0.0 }
 0x124   :  { %v1177_v44 = vpop.f32.mrf.mxu0 }
 0x125   :  { %v1598_v42 = vpack.c.bf16 %v1316_v41, %v1315_v39 }
 0x126   :  { %v1179_v45 = vpop.f32.mrf.mxu0 }
 0x127   :  { %1422 = vst [vmem:[%s2410_s3 + $0x5c] sm:$0xff] %v1598_v42 }
 0x128   :  { %v1181_v46 = vpop.f32.mrf.mxu0 }
 0x12a   :  { %v1185_v47 = vpop.f32.mrf.mxu0 }
 0x12c   :  { %v1187_v49 = vpop.f32.mrf.mxu0 }
 0x12e   :  { %v2361_v50 = vpop.f32.mrf.mxu0 }
 0x130   :  { %v2363_v1 = vpop.f32.mrf.mxu0 }
 0x142   :  { %v1617_v51 = vpop.f32.mrf.mxu0 }
 0x144   :  { %v1618_v52 = vpop.f32.mrf.mxu0 }
 0x145   :  { %v1619_v2 = vadd.f32 %v1618_v52, %v1617_v51 }
 0x146   :  { %v1620_v54 = vpop.f32.mrf.mxu0 }
 0x147   :  { %v1229_v7 = vadd.f32 %v1619_v2, %v2313_v21 }
 0x148   :  { %v1621_v55 = vpop.f32.mrf.mxu0 }
 0x149   :  { %v1622_v15 = vadd.f32 %v1621_v55, %v1620_v54 }
 0x14a   :  { %v1623_v56 = vpop.f32.mrf.mxu0 }
 0x14b   :  { %v1122_v57 = vpop.f32.mrf.mxu1  ;;  %v1232_v33 = vadd.f32 %v1622_v15, %v2316_v24 }
 0x14c   :  { %v1123_v58 = vadd.f32 %v1122_v57, %v2313_v21  ;;  %v1624_v53 = vpop.f32.mrf.mxu0 }
 0x14d   :  { %v1124_v59 = vpop.f32.mrf.mxu1  ;;  %v1625_v61 = vadd.f32 %v1624_v53, %v1623_v56 }
 0x14e   :  { %v1176_v60 = vadd.f32 %v1175_v43, %v1123_v58  ;;  %v1125_v62 = vadd.f32 %v1124_v59, %v2313_v21  ;;  %v1626_v63 = vpop.f32.mrf.mxu0 }
 0x14f   :  { %v1126_v0 = vpop.f32.mrf.mxu1  ;;  %v1237_v5 = vadd.f32 %v1625_v61, %v2319_v26 }
 0x150   :  { %v1178_v3 = vadd.f32 %v1177_v44, %v1125_v62  ;;  %v1127_v4 = vadd.f32 %v1126_v0, %v2316_v24  ;;  %v1627_v6 = vpop.f32.mrf.mxu0  ;;  %v1296_v9 = vmax.f32 %v1176_v60, 0.0 }
 0x151   :  { %v1128_v8 = vpop.f32.mrf.mxu1  ;;  %v1628_v16 = vadd.f32 %v1627_v6, %v1626_v63 }
 0x152   :  { %v1297_v11 = vmax.f32 %v1178_v3, 0.0  ;;  %v1180_v13 = vadd.f32 %v1179_v45, %v1127_v4  ;;  %v1129_v14 = vadd.f32 %v1128_v8, %v2316_v24  ;;  %v1639_v17 = vpop.f32.mrf.mxu0 }
 0x153   :  { %v1132_v19 = vpop.f32.mrf.mxu1  ;;  %v1286_v23 = vadd.f32 %v1639_v17, %v1237_v5  ;;  %v1240_v31 = vadd.f32 %v1628_v16, %v2324_v40 }
 0x154   :  { %v1587_v20 = vpack.c.bf16 %v1297_v11, %v1296_v9  ;;  %v1182_v22 = vadd.f32 %v1181_v46, %v1129_v14  ;;  %v1303_v10 = vmax.f32 %v1180_v13, 0.0  ;;  %v1133_v12 = vadd.f32 %v1132_v19, %v2319_v26  ;;  %v1277_v25 = vpop.f32.mrf.mxu0 }
 0x155   :  { %v1134_v48 = vpop.f32.mrf.mxu1  ;;  %v1312_v27 = vmax.f32 %v1286_v23, 0.0  ;;  %v1278_v28 = vadd.f32 %v1277_v25, %v1229_v7 }
 0x156   :  { %1410 = vst [vmem:[%s2410_s3 + $0x10] sm:$0xff] %v1587_v20  ;;  %v1304_v18 = vmax.f32 %v1182_v22, 0.0  ;;  %v1135_v29 = vadd.f32 %v1134_v48, %v2319_v26  ;;  %v1186_v30 = vadd.f32 %v1185_v47, %v1133_v12  ;;  %v1640_v32 = vpop.f32.mrf.mxu0 }
 0x157   :  { %v1136_v21 = vpop.f32.mrf.mxu1  ;;  %v1596_v35 = vpack.c.bf16 %v1312_v27, %v1312_v27  ;;  %v1298_v36 = vmax.f32 %v1278_v28, 0.0  ;;  %v1289_v39 = vadd.f32 %v1640_v32, %v1240_v31 }
 0x158   :  { %v1591_v34 = vpack.c.bf16 %v1304_v18, %v1303_v10  ;;  %v1188_v37 = vadd.f32 %v1187_v49, %v1135_v29  ;;  %v1310_v38 = vmax.f32 %v1186_v30, 0.0  ;;  %v1137_v41 = vadd.f32 %v1136_v21, %v2324_v40  ;;  %v1280_v42 = vpop.f32.mrf.mxu0 }
 0x159   :  { %v1138_v43 = vpop.f32.mrf.mxu1  ;;  %1420 = vst.msk [vmem:[%s2410_s3 + $0x50] sm:$0xf] %vm1411_vm1, %v1596_v35  ;;  %v1588_v24 = vpack.c.bf16 %v1298_v36, %v1298_v36  ;;  %v1281_v44 = vadd.f32 %v1280_v42, %v1232_v33  ;;  %v1319_v46 = vmax.f32 %v1289_v39, 0.0 }
 0x15a   :  { %1415 = vst [vmem:[%s2410_s3 + $0x2c] sm:$0xff] %v1591_v34  ;;  %v1311_v26 = vmax.f32 %v1188_v37, 0.0  ;;  %v1139_v45 = vadd.f32 %v1138_v43, %v2324_v40  ;;  %v1190_v47 = vadd.f32 %v2361_v50, %v1137_v41 }
 0x15b   :  { %1412 = vst.msk [vmem:[%s2410_s3 + $0x18] sm:$0xf] %vm1411_vm1, %v1588_v24  ;;  %v1305_v51 = vmax.f32 %v1281_v44, 0.0  ;;  %v1600_v54 = vpack.c.bf16 %v1319_v46, %v1319_v46 }
 0x15c   :  { %v1595_v49 = vpack.c.bf16 %v1311_v26, %v1310_v38  ;;  %v1192_v52 = vadd.f32 %v2363_v1, %v1139_v45  ;;  %v1317_v55 = vmax.f32 %v1190_v47, 0.0 }
 0x15d   :  { %v1592_v56 = vpack.c.bf16 %v1305_v51, %v1305_v51  ;;  %1424 = vst.msk [vmem:[%s2410_s3 + $0x6c] sm:$0xf] %vm1411_vm1, %v1600_v54 }
 0x15e   :  { %1419 = vst [vmem:[%s2410_s3 + $0x48] sm:$0xff] %v1595_v49  ;;  %v1318_v40 = vmax.f32 %v1192_v52, 0.0 }
 0x15f   :  { %1416 = vst.msk [vmem:[%s2410_s3 + $0x34] sm:$0xf] %vm1411_vm1, %v1592_v56 }
 0x160   :  { %v1599_v50 = vpack.c.bf16 %v1318_v40, %v1317_v55 }
 0x162   :  { %1423 = vst [vmem:[%s2410_s3 + $0x64] sm:$0xff] %v1599_v50 }

// kernel: subnet_apply.76
= control target key start
LH: loop header
LB: loop body
LE: loop exit
PB: predicated region body
PF: predicated region fallthrough
CT: control target
= control target key end

     0   :  { %v492_v1 = vmov 0   ;;  %vm224_vm0 = vcmask 261120   ;;  %s616_s1 = inlined_call_operand.vmem [shape: bf16[288,128], index: 1, kind: input, shape index: {}]   ;;  %s617_s0 = inlined_call_operand.vmem [shape: bf16[32,288], index: 0, kind: input, shape index: {}]   ;;  %s618_s2 = inlined_call_operand.vmem [shape: f32[32,1], index: 2, kind: input, shape index: {}]   ;;  %s619_s3 = inlined_call_operand.vmem [shape: bf16[32,128], index: 3, kind: input, shape index: {}]   ;;  %s620_s4 = inlined_call_operand.vmem [shape: bf16[32,128], index: 4, kind: output, shape index: {}]  }
   0x1   :  { %v466_v0 = vld [vmem:[%s616_s1 + $0x78] sm:$0xff]   ;;  %464 = vset.pattern.permute.xlu0 %v492_v1  ;;  %465 = vset.pattern.permute.xlu1 %v492_v1  ;;  %v468_v3 = vld [vmem:[%s616_s1 + $0x70] sm:$0xff]   ;;  %v470_v5 = vld [vmem:[%s616_s1 + $0x68] sm:$0xff]  }
   0x2   :  { %v467_v2 = vld [vmem:[%s616_s1 + $0x38] sm:$0xff]   ;;  %423 = vmatprep.subr.bf16.mxu0 %v466_v0  ;;  %v469_v4 = vld [vmem:[%s616_s1 + $0x30] sm:$0xff]   ;;  %v471_v6 = vld [vmem:[%s616_s1 + $0x28] sm:$0xff]  }
   0x3   :  { %424 = vmatpush3.bf16.msra.mxu0 %v467_v2  ;;  %v472_v7 = vld [vmem:[%s616_s1 + $0x60] sm:$0xff]   ;;  %v474_v9 = vld [vmem:[%s616_s1 + $0x58] sm:$0xff]   ;;  %v481_v11 = vld [vmem:[%s616_s1 + $0x88] sm:$0xff]  }
   0x4   :  { %425 = vmatprep.subr.bf16.mxu0 %v468_v3  ;;  %v473_v8 = vld [vmem:[%s616_s1 + $0x20] sm:$0xff]   ;;  %v475_v10 = vld [vmem:[%s616_s1 + $0x18] sm:$0xff]   ;;  %v476_v12 = vld [vmem:[%s616_s1 + $0x50] sm:$0xff]   ;;  %455 = vmatprep.subr.bf16.mxu1 %v481_v11 }
   0x5   :  { %v477_v13 = vld [vmem:[%s616_s1 + $0x10] sm:$0xff]   ;;  %v478_v14 = vld [vmem:[%s616_s1 + $0x48] sm:$0xff]   ;;  %456 = vmatpush3.bf16.msra.mxu1 %v481_v11  ;;  %v486_v16 = vld [vmem:[%s616_s1 + $0x80] sm:$0xff]  }
   0x6   :  { %v485_v15 = vld [vmem:[%s617_s0 + $0x4] ss:$12 sps:$4 sm:$0xff]   ;;  %v487_v17 = vld [vmem:[%s617_s0 + $0x8] ss:$12 sps:$4 sm:$0xff]   ;;  %457 = vmatprep.subr.bf16.mxu1 %v486_v16  ;;  %v488_v18 = vld [vmem:[%s617_s0 + $0x20] ss:$12 sps:$4 sm:$0xff]  }
   0x7   :  { %426 = vmatpush3.bf16.msra.mxu0 %v469_v4  ;;  %263 = vmatprep.mubr.bf16.mxu0 %v485_v15  ;;  %v62_v19 = vld [vmem:[%s618_s2] sm:$0xff]  ;;  %v479_v20 = vld [vmem:[%s616_s1 + $0x8] sm:$0xff]   ;;  %v64_v21 = vld [vmem:[%s618_s2 + $0x10] sm:$0xff] }
   0x8   :  { %427 = vmatprep.subr.bf16.mxu0 %v470_v5  ;;  %459 = vmatprep.mubr.msk.bf16.mxu1 %vm224_vm0, %v487_v17  ;;  %v480_v22 = vld [vmem:[%s616_s1 + $0x40] sm:$0xff]   ;;  %v63_v23 = vld [vmem:[%s618_s2 + $0x8] sm:$0xff]  ;;  %v65_v24 = vld [vmem:[%s618_s2 + $0x18] sm:$0xff] }
   0x9   :  { %458 = vmatpush3.bf16.msra.mxu1 %v486_v16  ;;  %68 = vperm.xlu0 %464, %v62_v19   ;;  %v482_v25 = vld [vmem:[%s616_s1] sm:$0xff]   ;;  %v489_v27 = vld [vmem:[%s617_s0 + $0x1c] ss:$12 sps:$4 sm:$0xff]  }
   0xa   :  { %78 = vperm.xlu1 %465, %v64_v21   ;;  %v483_v26 = vld [vmem:[%s617_s0] ss:$12 sps:$4 sm:$0xff]   ;;  %v491_v28 = vld [vmem:[%s617_s0 + $0x18] ss:$12 sps:$4 sm:$0xff]  }
   0xb   :  { %428 = vmatpush3.bf16.msra.mxu0 %v471_v6  ;;  %v404_v42 = vld [vmem:[%s619_s3] sm:$0xff]   ;;  %v421_v61 = vld [vmem:[%s619_s3 + $0x8] sm:$0xff]  }
   0xc   :  { %429 = vmatprep.subr.bf16.mxu0 %v472_v7  ;;  %460 = vmatmul.mubr.msk.bf16.vlgmr.msra.gmra.mxu1 %vm224_vm0, %v488_v18  ;;  %v405_v46 = vunpack.c.l.bf16 %v404_v42  ;;  %v406_v52 = vunpack.c.h.bf16 %v404_v42  ;;  %v409_v1 = vunpack.c.l.bf16 %v421_v61  ;;  %v410_v4 = vunpack.c.h.bf16 %v421_v61 }
   0xd   :  { %73 = vperm.xlu0 %464, %v63_v23  }
   0xe   :  { %83 = vperm.xlu1 %465, %v65_v24  }
   0xf   :  { %430 = vmatpush3.bf16.msra.mxu0 %v473_v8 }
  0x10   :  { %431 = vmatprep.subr.bf16.mxu0 %v474_v9 }
  0x13   :  { %432 = vmatpush3.bf16.msra.mxu0 %v475_v10 }
  0x14   :  { %433 = vmatprep.subr.bf16.mxu0 %v476_v12 }
  0x17   :  { %434 = vmatpush3.bf16.msra.mxu0 %v477_v13 }
  0x18   :  { %435 = vmatprep.subr.bf16.mxu0 %v478_v14 }
  0x1b   :  { %436 = vmatpush3.bf16.msra.mxu0 %v479_v20 }
  0x1c   :  { %437 = vmatprep.subr.bf16.mxu0 %v480_v22 }
  0x1f   :  { %438 = vmatpush3.bf16.msra.mxu0 %v482_v25 }
  0x22   :  { %264 = vmatmul.mubr.bf16.vlgmr.msra.gmra.mxu0 %v483_v26 }
  0x23   :  { %271 = vmatprep.mubr.bf16.mxu0 %v489_v27 }
  0x2a   :  { %272 = vmatmul.mubr.bf16.gmra.mxu0 %v491_v28 }
  0x84   :  { %v69_v30 = vpop.permute.xlu0 %68 }
  0x85   :  { %v79_v47 = vpop.permute.xlu1 %78 }
  0x88   :  { %v74_v39 = vpop.permute.xlu0 %73 }
  0x89   :  { %v84_v62 = vpop.permute.xlu1 %83 }
  0xcc   :  { %v461_v29 = vpop.f32.mrf.mxu1 }
  0xce   :  { %v314_v32 = vpop.f32.mrf.mxu1 }
  0xd0   :  { %v462_v36 = vpop.f32.mrf.mxu1 }
  0xd2   :  { %v317_v44 = vpop.f32.mrf.mxu1 }
  0xe2   :  { %v439_v31 = vpop.f32.mrf.mxu0 }
  0xe4   :  { %v440_v33 = vpop.f32.mrf.mxu0 }
  0xe5   :  { %v441_v34 = vadd.f32 %v440_v33, %v439_v31 }
  0xe6   :  { %v442_v35 = vpop.f32.mrf.mxu0 }
  0xe7   :  { %v266_v37 = vadd.f32 %v441_v34, %v69_v30 }
  0xe8   :  { %v443_v38 = vpop.f32.mrf.mxu0 }
  0xe9   :  { %v444_v40 = vadd.f32 %v443_v38, %v442_v35  ;;  %v315_v41 = vadd.f32 %v314_v32, %v266_v37 }
  0xea   :  { %v445_v43 = vpop.f32.mrf.mxu0 }
  0xeb   :  { %v269_v45 = vadd.f32 %v444_v40, %v74_v39  ;;  %v337_v49 = vmax.f32 %v315_v41, 0.0 }
  0xec   :  { %v446_v48 = vpop.f32.mrf.mxu0 }
  0xed   :  { %v447_v50 = vadd.f32 %v446_v48, %v445_v43  ;;  %v318_v51 = vadd.f32 %v317_v44, %v269_v45  ;;  %v341_v57 = vadd.f32 %v405_v46, %v337_v49 }
  0xee   :  { %v448_v53 = vpop.f32.mrf.mxu0 }
  0xef   :  { %v274_v54 = vadd.f32 %v447_v50, %v79_v47  ;;  %v338_v55 = vmax.f32 %v318_v51, 0.0 }
  0xf0   :  { %v449_v56 = vpop.f32.mrf.mxu0 }
  0xf1   :  { %v323_v58 = vadd.f32 %v461_v29, %v274_v54  ;;  %v342_v59 = vadd.f32 %v406_v52, %v338_v55  ;;  %v450_v60 = vadd.f32 %v449_v56, %v448_v53 }
  0xf3   :  { %v414_v63 = vpack.c.bf16 %v342_v59, %v341_v57  ;;  %v277_v0 = vadd.f32 %v450_v60, %v84_v62  ;;  %v339_v2 = vmax.f32 %v323_v58, 0.0 }
  0xf5   :  { %415 = vst [vmem:[%s620_s4] sm:$0xff] %v414_v63   ;;  %v326_v3 = vadd.f32 %v462_v36, %v277_v0  ;;  %v343_v6 = vadd.f32 %v409_v1, %v339_v2 }
  0xf7   :  { %v340_v5 = vmax.f32 %v326_v3, 0.0 }
  0xf9   :  { %v344_v7 = vadd.f32 %v410_v4, %v340_v5 }
  0xfb   :  { %v419_v8 = vpack.c.bf16 %v344_v7, %v343_v6 }
  0xfd   :  { %422 = vst [vmem:[%s620_s4 + $0x8] sm:$0xff] %v419_v8  }

// kernel: subnet_apply.79
= control target key start
LH: loop header
LB: loop body
LE: loop exit
PB: predicated region body
PF: predicated region fallthrough
CT: control target
= control target key end

     0   :  { %v1018_v1 = vmov 0   ;;  %vm407_vm0 = vcmask 261120   ;;  %s1275_s1 = inlined_call_operand.vmem [shape: bf16[288,128], index: 1, kind: input, shape index: {}]   ;;  %s1276_s0 = inlined_call_operand.vmem [shape: bf16[128,288], index: 0, kind: input, shape index: {}]   ;;  %s1277_s2 = inlined_call_operand.vmem [shape: f32[128,1], index: 2, kind: input, shape index: {}]   ;;  %s1278_s3 = inlined_call_operand.vmem [shape: bf16[128,128], index: 3, kind: output, shape index: {}]  }
   0x1   :  { %v968_v0 = vld [vmem:[%s1275_s1 + $0x78] sm:$0xff]   ;;  %966 = vset.pattern.permute.xlu0 %v1018_v1  ;;  %967 = vset.pattern.permute.xlu1 %v1018_v1  ;;  %v970_v3 = vld [vmem:[%s1275_s1 + $0x70] sm:$0xff]   ;;  %v972_v5 = vld [vmem:[%s1275_s1 + $0x68] sm:$0xff]  }
   0x2   :  { %v969_v2 = vld [vmem:[%s1275_s1 + $0x38] sm:$0xff]   ;;  %855 = vmatprep.subr.bf16.mxu0 %v968_v0  ;;  %949 = vmatprep.subr.bf16.mxu1 %v968_v0  ;;  %v971_v4 = vld [vmem:[%s1275_s1 + $0x30] sm:$0xff]   ;;  %v973_v6 = vld [vmem:[%s1275_s1 + $0x28] sm:$0xff]  }
   0x3   :  { %856 = vmatpush3.bf16.msra.mxu0 %v969_v2  ;;  %957 = vmatpush3.bf16.msra.mxu1 %v969_v2  ;;  %v974_v7 = vld [vmem:[%s1275_s1 + $0x60] sm:$0xff]   ;;  %v976_v9 = vld [vmem:[%s1275_s1 + $0x58] sm:$0xff]   ;;  %v978_v11 = vld [vmem:[%s1275_s1 + $0x50] sm:$0xff]  }
   0x4   :  { %857 = vmatprep.subr.bf16.mxu0 %v970_v3  ;;  %950 = vmatprep.subr.bf16.mxu1 %v970_v3  ;;  %v975_v8 = vld [vmem:[%s1275_s1 + $0x20] sm:$0xff]   ;;  %v977_v10 = vld [vmem:[%s1275_s1 + $0x18] sm:$0xff]   ;;  %v979_v14 = vld [vmem:[%s1275_s1 + $0x10] sm:$0xff]  }
   0x5   :  { %v986_v12 = vld [vmem:[%s1276_s0 + $0x4] ss:$12 sps:$4 sm:$0xff]   ;;  %v989_v13 = vld [vmem:[%s1276_s0 + $0x94] ss:$12 sps:$4 sm:$0xff]   ;;  %v980_v15 = vld [vmem:[%s1275_s1 + $0x48] sm:$0xff]  }
   0x6   :  { %464 = vmatprep.mubr.bf16.mxu0 %v986_v12  ;;  %512 = vmatprep.mubr.bf16.mxu1 %v989_v13  ;;  %v981_v16 = vld [vmem:[%s1275_s1 + $0x8] sm:$0xff]   ;;  %v982_v17 = vld [vmem:[%s1275_s1 + $0x40] sm:$0xff]   ;;  %v987_v21 = vld [vmem:[%s1276_s0 + $0x90] ss:$12 sps:$4 sm:$0xff]  }
   0x7   :  { %858 = vmatpush3.bf16.msra.mxu0 %v971_v4  ;;  %958 = vmatpush3.bf16.msra.mxu1 %v971_v4  ;;  %v983_v18 = vld [vmem:[%s1275_s1] sm:$0xff]   ;;  %v990_v20 = vld [vmem:[%s1275_s1 + $0x88] sm:$0xff]   ;;  %v85_v26 = vld [vmem:[%s1277_s2 + $0x10] sm:$0xff] }
   0x8   :  { %859 = vmatprep.subr.bf16.mxu0 %v972_v5  ;;  %951 = vmatprep.subr.bf16.mxu1 %v972_v5  ;;  %v984_v19 = vld [vmem:[%s1276_s0] ss:$12 sps:$4 sm:$0xff]   ;;  %v991_v22 = vld [vmem:[%s1276_s0 + $0x1c] ss:$12 sps:$4 sm:$0xff]   ;;  %v995_v27 = vld [vmem:[%s1276_s0 + $0x18] ss:$12 sps:$4 sm:$0xff]  }
   0x9   :  { %v993_v23 = vld [vmem:[%s1276_s0 + $0xac] ss:$12 sps:$4 sm:$0xff]   ;;  %v997_v24 = vld [vmem:[%s1275_s1 + $0x80] sm:$0xff]   ;;  %v996_v28 = vld [vmem:[%s1276_s0 + $0xa8] ss:$12 sps:$4 sm:$0xff]   ;;  %111 = vperm.xlu1 %967, %v85_v26  }
   0xa   :  { %v83_v25 = vld [vmem:[%s1277_s2] sm:$0xff]  ;;  %v84_v29 = vld [vmem:[%s1277_s2 + $0x8] sm:$0xff]  ;;  %v86_v32 = vld [vmem:[%s1277_s2 + $0x18] sm:$0xff] }
   0xb   :  { %860 = vmatpush3.bf16.msra.mxu0 %v973_v6  ;;  %959 = vmatpush3.bf16.msra.mxu1 %v973_v6  ;;  %v998_v30 = vld [vmem:[%s1276_s0 + $0x34] ss:$12 sps:$4 sm:$0xff]   ;;  %v88_v34 = vld [vmem:[%s1277_s2 + $0x28] sm:$0xff]  ;;  %v1001_v35 = vld [vmem:[%s1276_s0 + $0x30] ss:$12 sps:$4 sm:$0xff]  }
   0xc   :  { %861 = vmatprep.subr.bf16.mxu0 %v974_v7  ;;  %952 = vmatprep.subr.bf16.mxu1 %v974_v7  ;;  %v1000_v31 = vld [vmem:[%s1276_s0 + $0x8] ss:$12 sps:$4 sm:$0xff]   ;;  %v87_v33 = vld [vmem:[%s1277_s2 + $0x20] sm:$0xff]  ;;  %v1003_v38 = vld [vmem:[%s1276_s0 + $0x4c] ss:$12 sps:$4 sm:$0xff]  }
   0xd   :  { %101 = vperm.xlu0 %966, %v83_v25   ;;  %116 = vperm.xlu1 %967, %v86_v32   ;;  %v1002_v36 = vld [vmem:[%s1276_s0 + $0x20] ss:$12 sps:$4 sm:$0xff]   ;;  %v89_v37 = vld [vmem:[%s1277_s2 + $0x30] sm:$0xff]  ;;  %v1005_v39 = vld [vmem:[%s1276_s0 + $0x38] ss:$12 sps:$4 sm:$0xff]  }
   0xe   :  { %v90_v40 = vld [vmem:[%s1277_s2 + $0x38] sm:$0xff]  ;;  %v91_v41 = vld [vmem:[%s1277_s2 + $0x40] sm:$0xff]  ;;  %v92_v42 = vld [vmem:[%s1277_s2 + $0x48] sm:$0xff] }
   0xf   :  { %862 = vmatpush3.bf16.msra.mxu0 %v975_v8  ;;  %960 = vmatpush3.bf16.msra.mxu1 %v975_v8  ;;  %v1006_v43 = vld [vmem:[%s1276_s0 + $0x48] ss:$12 sps:$4 sm:$0xff]   ;;  %v1007_v44 = vld [vmem:[%s1276_s0 + $0x50] ss:$12 sps:$4 sm:$0xff]   ;;  %v95_v49 = vld [vmem:[%s1277_s2 + $0x60] sm:$0xff] }
  0x10   :  { %863 = vmatprep.subr.bf16.mxu0 %v976_v9  ;;  %953 = vmatprep.subr.bf16.mxu1 %v976_v9  ;;  %v93_v45 = vld [vmem:[%s1277_s2 + $0x50] sm:$0xff]  ;;  %v94_v48 = vld [vmem:[%s1277_s2 + $0x58] sm:$0xff]  ;;  %v96_v50 = vld [vmem:[%s1277_s2 + $0x68] sm:$0xff] }
  0x11   :  { %106 = vperm.xlu0 %966, %v84_v29   ;;  %126 = vperm.xlu1 %967, %v88_v34   ;;  %v1008_v46 = vld [vmem:[%s1276_s0 + $0x64] ss:$12 sps:$4 sm:$0xff]   ;;  %v1010_v47 = vld [vmem:[%s1276_s0 + $0x68] ss:$12 sps:$4 sm:$0xff]   ;;  %v1011_v51 = vld [vmem:[%s1276_s0 + $0x60] ss:$12 sps:$4 sm:$0xff]  }
  0x12   :  { %v1012_v52 = vld [vmem:[%s1276_s0 + $0x80] ss:$12 sps:$4 sm:$0xff]   ;;  %v97_v53 = vld [vmem:[%s1277_s2 + $0x70] sm:$0xff]  ;;  %v1013_v54 = vld [vmem:[%s1276_s0 + $0x7c] ss:$12 sps:$4 sm:$0xff]  }
  0x13   :  { %864 = vmatpush3.bf16.msra.mxu0 %v977_v10  ;;  %961 = vmatpush3.bf16.msra.mxu1 %v977_v10  ;;  %v1015_v55 = vld [vmem:[%s1276_s0 + $0x98] ss:$12 sps:$4 sm:$0xff]   ;;  %v1017_v58 = vld [vmem:[%s1276_s0 + $0xb0] ss:$12 sps:$4 sm:$0xff]  }
  0x14   :  { %865 = vmatprep.subr.bf16.mxu0 %v978_v11  ;;  %954 = vmatprep.subr.bf16.mxu1 %v978_v11  ;;  %v98_v56 = vld [vmem:[%s1277_s2 + $0x78] sm:$0xff] }
  0x15   :  { %121 = vperm.xlu0 %966, %v87_v33   ;;  %136 = vperm.xlu1 %967, %v90_v40   ;;  %v1016_v57 = vld [vmem:[%s1276_s0 + $0x78] ss:$12 sps:$4 sm:$0xff]  }
  0x17   :  { %866 = vmatpush3.bf16.msra.mxu0 %v979_v14  ;;  %962 = vmatpush3.bf16.msra.mxu1 %v979_v14 }
  0x18   :  { %867 = vmatprep.subr.bf16.mxu0 %v980_v15  ;;  %955 = vmatprep.subr.bf16.mxu1 %v980_v15 }
  0x19   :  { %131 = vperm.xlu0 %966, %v89_v37   ;;  %146 = vperm.xlu1 %967, %v92_v42  }
  0x1b   :  { %868 = vmatpush3.bf16.msra.mxu0 %v981_v16  ;;  %963 = vmatpush3.bf16.msra.mxu1 %v981_v16 }
  0x1c   :  { %869 = vmatprep.subr.bf16.mxu0 %v982_v17  ;;  %956 = vmatprep.subr.bf16.mxu1 %v982_v17 }
  0x1d   :  { %141 = vperm.xlu0 %966, %v91_v41   ;;  %156 = vperm.xlu1 %967, %v94_v48  }
  0x1f   :  { %870 = vmatpush3.bf16.msra.mxu0 %v983_v18  ;;  %964 = vmatpush3.bf16.msra.mxu1 %v983_v18 }
  0x20   :  { %929 = vmatprep.subr.bf16.mxu1 %v990_v20 }
  0x21   :  { %151 = vperm.xlu0 %966, %v93_v45   ;;  %166 = vperm.xlu1 %967, %v96_v50  }
  0x22   :  { %465 = vmatmul.mubr.bf16.vlgmr.msra.gmra.mxu0 %v984_v19  ;;  %513 = vmatmul.mubr.bf16.vlgmr.msra.gmra.mxu1 %v987_v21 }
  0x23   :  { %930 = vmatpush3.bf16.msra.mxu1 %v990_v20  ;;  %472 = vmatprep.mubr.bf16.mxu0 %v991_v22 }
  0x24   :  { %520 = vmatprep.mubr.bf16.mxu1 %v993_v23  ;;  %931 = vmatprep.subr.bf16.mxu1 %v997_v24 }
  0x25   :  { %161 = vperm.xlu0 %966, %v95_v49   ;;  %176 = vperm.xlu1 %967, %v98_v56  }
  0x27   :  { %932 = vmatpush3.bf16.msra.mxu1 %v997_v24 }
  0x29   :  { %171 = vperm.xlu0 %966, %v97_v53  }
  0x2a   :  { %473 = vmatmul.mubr.bf16.gmra.mxu0 %v995_v27  ;;  %521 = vmatmul.mubr.bf16.gmra.mxu1 %v996_v28 }
  0x2b   :  { %480 = vmatprep.mubr.bf16.mxu0 %v998_v30  ;;  %933 = vmatprep.mubr.msk.bf16.mxu1 %vm407_vm0, %v1000_v31 }
  0x32   :  { %481 = vmatmul.mubr.bf16.gmra.mxu0 %v1001_v35  ;;  %934 = vmatmul.mubr.msk.bf16.vlgmr.msra.gmra.mxu1 %vm407_vm0, %v1002_v36 }
  0x33   :  { %488 = vmatprep.mubr.bf16.mxu0 %v1003_v38  ;;  %937 = vmatprep.mubr.msk.bf16.mxu1 %vm407_vm0, %v1005_v39 }
  0x3a   :  { %489 = vmatmul.mubr.bf16.gmra.mxu0 %v1006_v43  ;;  %938 = vmatmul.mubr.msk.bf16.gmra.mxu1 %vm407_vm0, %v1007_v44 }
  0x3b   :  { %496 = vmatprep.mubr.bf16.mxu0 %v1008_v46  ;;  %941 = vmatprep.mubr.msk.bf16.mxu1 %vm407_vm0, %v1010_v47 }
  0x42   :  { %497 = vmatmul.mubr.bf16.gmra.mxu0 %v1011_v51  ;;  %942 = vmatmul.mubr.msk.bf16.gmra.mxu1 %vm407_vm0, %v1012_v52 }
  0x43   :  { %504 = vmatprep.mubr.bf16.mxu0 %v1013_v54  ;;  %945 = vmatprep.mubr.msk.bf16.mxu1 %vm407_vm0, %v1015_v55 }
  0x4a   :  { %505 = vmatmul.mubr.bf16.gmra.mxu0 %v1016_v57  ;;  %946 = vmatmul.mubr.msk.bf16.gmra.mxu1 %vm407_vm0, %v1017_v58 }
  0x84   :  { %v112_v60 = vpop.permute.xlu1 %111 }
  0x88   :  { %v102_v59 = vpop.permute.xlu0 %101  ;;  %v117_v4 = vpop.permute.xlu1 %116 }
  0x8c   :  { %v107_v1 = vpop.permute.xlu0 %106  ;;  %v127_v12 = vpop.permute.xlu1 %126 }
  0x90   :  { %v122_v9 = vpop.permute.xlu0 %121  ;;  %v137_v23 = vpop.permute.xlu1 %136 }
  0x94   :  { %v132_v18 = vpop.permute.xlu0 %131  ;;  %v1237_v39 = vpop.permute.xlu1 %146 }
  0x98   :  { %v142_v33 = vpop.permute.xlu0 %141  ;;  %v1242_v58 = vpop.permute.xlu1 %156 }
  0x9c   :  { %v152_v52 = vpop.permute.xlu0 %151 }
  0xe2   :  { %v871_v61 = vpop.f32.mrf.mxu0  ;;  %v1221_v62 = vpop.f32.mrf.mxu1 }
  0xe4   :  { %v872_v63 = vpop.f32.mrf.mxu0  ;;  %v1223_v0 = vpop.f32.mrf.mxu1 }
  0xe5   :  { %v873_v19 = vadd.f32 %v872_v63, %v871_v61 }
  0xe6   :  { %v874_v2 = vpop.f32.mrf.mxu0  ;;  %v1225_v3 = vpop.f32.mrf.mxu1 }
  0xe7   :  { %v467_v29 = vadd.f32 %v873_v19, %v102_v59 }
  0xe8   :  { %v875_v5 = vpop.f32.mrf.mxu0  ;;  %v1227_v6 = vpop.f32.mrf.mxu1 }
  0xe9   :  { %v876_v24 = vadd.f32 %v875_v5, %v874_v2 }
  0xea   :  { %v877_v7 = vpop.f32.mrf.mxu0  ;;  %v1229_v8 = vpop.f32.mrf.mxu1 }
  0xeb   :  { %v470_v36 = vadd.f32 %v876_v24, %v107_v1 }
  0xec   :  { %v878_v10 = vpop.f32.mrf.mxu0  ;;  %v1231_v11 = vpop.f32.mrf.mxu1 }
  0xed   :  { %v879_v15 = vadd.f32 %v878_v10, %v877_v7  ;;  %v162_v10 = vpop.permute.xlu0 %161 }
  0xee   :  { %v880_v13 = vpop.f32.mrf.mxu0  ;;  %v1233_v14 = vpop.f32.mrf.mxu1 }
  0xef   :  { %v475_v25 = vadd.f32 %v879_v15, %v112_v60 }
  0xf0   :  { %v881_v16 = vpop.f32.mrf.mxu0  ;;  %v1235_v17 = vpop.f32.mrf.mxu1 }
  0xf1   :  { %v882_v20 = vadd.f32 %v881_v16, %v880_v13 }
  0xf2   :  { %v883_v21 = vpop.f32.mrf.mxu0  ;;  %v935_v22 = vpop.f32.mrf.mxu1 }
  0xf3   :  { %v572_v28 = vadd.f32 %v935_v22, %v475_v25  ;;  %v478_v30 = vadd.f32 %v882_v20, %v117_v4 }
  0xf4   :  { %v884_v26 = vpop.f32.mrf.mxu0  ;;  %v563_v27 = vpop.f32.mrf.mxu1 }
  0xf5   :  { %v564_v34 = vadd.f32 %v563_v27, %v467_v29  ;;  %v628_v40 = vmax.f32 %v572_v28, 0.0  ;;  %v885_v41 = vadd.f32 %v884_v26, %v883_v21  ;;  %v167_v21 = vpop.permute.xlu1 %166  ;;  %v172_v27 = vpop.permute.xlu0 %171 }
  0xf6   :  { %v886_v31 = vpop.f32.mrf.mxu0  ;;  %v936_v32 = vpop.f32.mrf.mxu1 }
  0xf7   :  { %v575_v35 = vadd.f32 %v936_v32, %v478_v30  ;;  %v626_v46 = vmax.f32 %v564_v34, 0.0  ;;  %v483_v55 = vadd.f32 %v885_v41, %v122_v9  ;;  %v918_v32 = vadd.f32 %v1235_v17, %v1233_v14 }
  0xf8   :  { %v887_v37 = vpop.f32.mrf.mxu0  ;;  %v566_v38 = vpop.f32.mrf.mxu1  ;;  %v912_v41 = vadd.f32 %v1227_v6, %v1225_v3 }
  0xf9   :  { %v629_v42 = vmax.f32 %v575_v35, 0.0  ;;  %v567_v43 = vadd.f32 %v566_v38, %v470_v36  ;;  %v888_v48 = vadd.f32 %v887_v37, %v886_v31  ;;  %v177_v34 = vpop.permute.xlu1 %176  ;;  %v909_v37 = vadd.f32 %v1223_v0, %v1221_v62 }
  0xfa   :  { %v889_v44 = vpop.f32.mrf.mxu0  ;;  %v939_v45 = vpop.f32.mrf.mxu1 }
  0xfb   :  { %v816_v47 = vpack.c.bf16 %v629_v42, %v628_v40  ;;  %v627_v49 = vmax.f32 %v567_v43, 0.0  ;;  %v486_v61 = vadd.f32 %v888_v48, %v127_v12  ;;  %v915_v12 = vadd.f32 %v1231_v11, %v1229_v8 }
  0xfc   :  { %v890_v50 = vpop.f32.mrf.mxu0  ;;  %v579_v51 = vpop.f32.mrf.mxu1  ;;  %v526_v42 = vadd.f32 %v918_v32, %v177_v34  ;;  %v515_v62 = vadd.f32 %v909_v37, %v162_v10 }
  0xfd   :  { %848 = vst [vmem:[%s1278_s3 + $0x8] sm:$0xff] %v816_v47   ;;  %v811_v53 = vpack.c.bf16 %v627_v49, %v626_v46  ;;  %v891_v54 = vadd.f32 %v890_v50, %v889_v44  ;;  %v580_v60 = vadd.f32 %v579_v51, %v483_v55  ;;  %v523_v38 = vadd.f32 %v915_v12, %v172_v27 }
  0xfe   :  { %v892_v56 = vpop.f32.mrf.mxu0  ;;  %v940_v57 = vpop.f32.mrf.mxu1  ;;  %v518_v51 = vadd.f32 %v912_v41, %v167_v21 }
  0xff   :  { %812 = vst [vmem:[%s1278_s3] sm:$0xff] %v811_v53   ;;  %v491_v59 = vadd.f32 %v891_v54, %v132_v18  ;;  %v630_v9 = vmax.f32 %v580_v60, 0.0 }
 0x100   :  { %v893_v63 = vpop.f32.mrf.mxu0  ;;  %v582_v1 = vpop.f32.mrf.mxu1 }
 0x101   :  { %v894_v2 = vadd.f32 %v893_v63, %v892_v56  ;;  %v583_v4 = vadd.f32 %v582_v1, %v486_v61  ;;  %v588_v13 = vadd.f32 %v939_v45, %v491_v59 }
 0x102   :  { %v895_v5 = vpop.f32.mrf.mxu0  ;;  %v943_v7 = vpop.f32.mrf.mxu1 }
 0x103   :  { %v494_v15 = vadd.f32 %v894_v2, %v137_v23  ;;  %v631_v16 = vmax.f32 %v583_v4, 0.0  ;;  %v632_v28 = vmax.f32 %v588_v13, 0.0 }
 0x104   :  { %v896_v19 = vpop.f32.mrf.mxu0  ;;  %v595_v20 = vpop.f32.mrf.mxu1 }
 0x105   :  { %v591_v22 = vadd.f32 %v940_v57, %v494_v15  ;;  %v821_v24 = vpack.c.bf16 %v631_v16, %v630_v9  ;;  %v897_v25 = vadd.f32 %v896_v19, %v895_v5 }
 0x106   :  { %v898_v18 = vpop.f32.mrf.mxu0  ;;  %v944_v26 = vpop.f32.mrf.mxu1 }
 0x107   :  { %v633_v29 = vmax.f32 %v591_v22, 0.0  ;;  %849 = vst [vmem:[%s1278_s3 + $0x10] sm:$0xff] %v821_v24   ;;  %v499_v23 = vadd.f32 %v897_v25, %v142_v33 }
 0x108   :  { %v899_v30 = vpop.f32.mrf.mxu0  ;;  %v598_v31 = vpop.f32.mrf.mxu1 }
 0x109   :  { %v826_v35 = vpack.c.bf16 %v633_v29, %v632_v28  ;;  %v900_v36 = vadd.f32 %v899_v30, %v898_v18  ;;  %v596_v40 = vadd.f32 %v595_v20, %v499_v23 }
 0x10a   :  { %v901_v8 = vpop.f32.mrf.mxu0  ;;  %v947_v11 = vpop.f32.mrf.mxu1 }
 0x10b   :  { %850 = vst [vmem:[%s1278_s3 + $0x18] sm:$0xff] %v826_v35   ;;  %v502_v33 = vadd.f32 %v900_v36, %v1237_v39  ;;  %v620_v44 = vadd.f32 %v947_v11, %v523_v38  ;;  %v634_v47 = vmax.f32 %v596_v40, 0.0 }
 0x10c   :  { %v902_v14 = vpop.f32.mrf.mxu0  ;;  %v611_v17 = vpop.f32.mrf.mxu1 }
 0x10d   :  { %v599_v43 = vadd.f32 %v598_v31, %v502_v33  ;;  %v903_v45 = vadd.f32 %v902_v14, %v901_v8  ;;  %v612_v53 = vadd.f32 %v611_v17, %v515_v62  ;;  %v640_v56 = vmax.f32 %v620_v44, 0.0 }
 0x10e   :  { %v904_v0 = vpop.f32.mrf.mxu0  ;;  %v948_v46 = vpop.f32.mrf.mxu1 }
 0x10f   :  { %v635_v48 = vmax.f32 %v599_v43, 0.0  ;;  %v507_v49 = vadd.f32 %v903_v45, %v152_v52  ;;  %v623_v50 = vadd.f32 %v948_v46, %v526_v42  ;;  %v638_v63 = vmax.f32 %v612_v53, 0.0 }
 0x110   :  { %v905_v54 = vpop.f32.mrf.mxu0  ;;  %v614_v39 = vpop.f32.mrf.mxu1 }
 0x111   :  { %v831_v55 = vpack.c.bf16 %v635_v48, %v634_v47  ;;  %v641_v3 = vmax.f32 %v623_v50, 0.0  ;;  %v906_v6 = vadd.f32 %v905_v54, %v904_v0  ;;  %v615_v57 = vadd.f32 %v614_v39, %v518_v51 }
 0x112   :  { %v604_v59 = vadd.f32 %v943_v7, %v507_v49 }
 0x113   :  { %851 = vst [vmem:[%s1278_s3 + $0x20] sm:$0xff] %v831_v55   ;;  %v846_v60 = vpack.c.bf16 %v641_v3, %v640_v56  ;;  %v510_v61 = vadd.f32 %v906_v6, %v1242_v58  ;;  %v639_v52 = vmax.f32 %v615_v57, 0.0 }
 0x114   :  { %v636_v4 = vmax.f32 %v604_v59, 0.0 }
 0x115   :  { %854 = vst [vmem:[%s1278_s3 + $0x38] sm:$0xff] %v846_v60   ;;  %v607_v1 = vadd.f32 %v944_v26, %v510_v61  ;;  %v841_v2 = vpack.c.bf16 %v639_v52, %v638_v63 }
 0x117   :  { %v637_v5 = vmax.f32 %v607_v1, 0.0  ;;  %853 = vst [vmem:[%s1278_s3 + $0x30] sm:$0xff] %v841_v2  }
 0x119   :  { %v836_v10 = vpack.c.bf16 %v637_v5, %v636_v4 }
 0x11b   :  { %852 = vst [vmem:[%s1278_s3 + $0x28] sm:$0xff] %v836_v10  }

// kernel: subnet_apply.80
= control target key start
LH: loop header
LB: loop body
LE: loop exit
PB: predicated region body
PF: predicated region fallthrough
CT: control target
= control target key end

     0   :  { %v5158_v1 = vmov 0   ;;  %vm2453_vm0 = vcmask 261120   ;;  %vm3988_vm1 = vcmask 1043456   ;;  %vm3989_vm2 = vcmask 408580   ;;  %s6818_s1 = inlined_call_operand.vmem [shape: bf16[288,2738], index: 1, kind: input, shape index: {}]   ;;  %s6819_s0 = inlined_call_operand.vmem [shape: bf16[32,288], index: 0, kind: input, shape index: {}]   ;;  %s6820_s2 = inlined_call_operand.vmem [shape: f32[32,1], index: 2, kind: input, shape index: {}]   ;;  %s6821_s3 = inlined_call_operand.vmem [shape: bf16[32,2738], index: 3, kind: output, shape index: {}]  }
   0x1   :  { %v4544_v0 = vld [vmem:[%s6818_s1 + $0x4d4] ss:$88 sps:$4 sm:$0xff]   ;;  %2545 = vmatprep.mubr.bf16.mxu1 %v5158_v1  ;;  %4542 = vset.pattern.permute.xlu0 %v5158_v1  ;;  %v4548_v3 = vld [vmem:[%s6818_s1 + $0x4d0] ss:$88 sps:$4 sm:$0xff]   ;;  %v4550_v5 = vld [vmem:[%s6818_s1 + $0x424] ss:$88 sps:$4 sm:$0xff]  }
   0x2   :  { %v4546_v2 = vld [vmem:[%s6818_s1 + $0xbb4] ss:$88 sps:$4 sm:$0xff]   ;;  %4543 = vset.pattern.permute.xlu1 %v5158_v1  ;;  %2460 = vmatprep.subr.bf16.mxu0 %v4544_v0  ;;  %v4549_v4 = vld [vmem:[%s6818_s1 + $0xbb0] ss:$88 sps:$4 sm:$0xff]   ;;  %v4552_v6 = vld [vmem:[%s6818_s1 + $0xb04] ss:$88 sps:$4 sm:$0xff]  }
   0x3   :  { %2525 = vmatprep.subr.bf16.mxu1 %v4546_v2  ;;  %2461 = vmatpush1.bf16.msra.mxu0 %v4548_v3  ;;  %v4554_v7 = vld [vmem:[%s6818_s1 + $0x420] ss:$88 sps:$4 sm:$0xff]   ;;  %v4556_v9 = vld [vmem:[%s6818_s1 + $0x374] ss:$88 sps:$4 sm:$0xff]   ;;  %v4562_v13 = vld [vmem:[%s6818_s1 + $0x370] ss:$88 sps:$4 sm:$0xff]  }
   0x4   :  { %2526 = vmatpush1.bf16.msra.mxu1 %v4549_v4  ;;  %2462 = vmatprep.subr.bf16.mxu0 %v4550_v5  ;;  %v4555_v8 = vld [vmem:[%s6818_s1 + $0xb00] ss:$88 sps:$4 sm:$0xff]   ;;  %v5212_v10 = vld [vmem:[%s6819_s0 + $0x8] ss:$12 sps:$4 sm:$0xff]   ;;  %v4563_v14 = vld [vmem:[%s6818_s1 + $0x2c4] ss:$88 sps:$4 sm:$0xff]  }
   0x5   :  { %2527 = vmatprep.subr.bf16.mxu1 %v4552_v6  ;;  %v4559_v11 = vld [vmem:[%s6818_s1 + $0x4d8] ss:$88 sps:$4 sm:$0xff]   ;;  %v4561_v12 = vld [vmem:[%s6818_s1 + $0x4dc] ss:$88 sps:$4 sm:$0xff]   ;;  %v4565_v15 = vld [vmem:[%s6818_s1 + $0x428] ss:$88 sps:$4 sm:$0xff]  }
   0x6   :  { %v4567_v16 = vld [vmem:[%s6818_s1 + $0x42c] ss:$88 sps:$4 sm:$0xff]   ;;  %v4568_v17 = vld [vmem:[%s6818_s1 + $0x2c0] ss:$88 sps:$4 sm:$0xff]   ;;  %v4573_v19 = vld [vmem:[%s6818_s1 + $0x37c] ss:$88 sps:$4 sm:$0xff]  }
   0x7   :  { %2463 = vmatpush1.bf16.msra.mxu0 %v4554_v7  ;;  %v4569_v18 = vld [vmem:[%s6818_s1 + $0x214] ss:$88 sps:$4 sm:$0xff]   ;;  %v4571_v20 = vld [vmem:[%s6818_s1 + $0x378] ss:$88 sps:$4 sm:$0xff]   ;;  %v4575_v22 = vld [vmem:[%s6818_s1 + $0x164] ss:$88 sps:$4 sm:$0xff]  }
   0x8   :  { %2528 = vmatpush1.bf16.msra.mxu1 %v4555_v8  ;;  %2464 = vmatprep.subr.bf16.mxu0 %v4556_v9  ;;  %v4574_v21 = vld [vmem:[%s6818_s1 + $0x210] ss:$88 sps:$4 sm:$0xff]   ;;  %v4579_v23 = vld [vmem:[%s6818_s1 + $0x2cc] ss:$88 sps:$4 sm:$0xff]   ;;  %v4580_v25 = vld [vmem:[%s6818_s1 + $0x160] ss:$88 sps:$4 sm:$0xff]  }
   0x9   :  { %2566 = vmatprep.subr.bf16.mxu1 %v4561_v12  ;;  %v4577_v24 = vld [vmem:[%s6818_s1 + $0x2c8] ss:$88 sps:$4 sm:$0xff]   ;;  %v4581_v26 = vld [vmem:[%s6818_s1 + $0xb4] ss:$88 sps:$4 sm:$0xff]   ;;  %v4583_v28 = vld [vmem:[%s6818_s1 + $0x218] ss:$88 sps:$4 sm:$0xff]  }
   0xa   :  { %v4585_v27 = vld [vmem:[%s6818_s1 + $0x21c] ss:$88 sps:$4 sm:$0xff]   ;;  %v4586_v29 = vld [vmem:[%s6818_s1 + $0xb0] ss:$88 sps:$4 sm:$0xff]   ;;  %v4591_v31 = vld [vmem:[%s6818_s1 + $0x16c] ss:$88 sps:$4 sm:$0xff]  }
   0xb   :  { %4431 = vmatmul.mubr.msk.bf16.vlgmr.msra.gmra.mxu1 %vm2453_vm0, %v5212_v10  ;;  %2465 = vmatpush1.bf16.msra.mxu0 %v4562_v13  ;;  %v4587_v30 = vld [vmem:[%s6818_s1 + $0x4] ss:$88 sps:$4 sm:$0xff]   ;;  %v4589_v32 = vld [vmem:[%s6818_s1 + $0x168] ss:$88 sps:$4 sm:$0xff]   ;;  %v4593_v34 = vld [vmem:[%s6818_s1 + $0xa54] ss:$88 sps:$4 sm:$0xff]  }
   0xc   :  { %2567 = vmatpush1.bf16.msra.mxu1 %v4559_v11  ;;  %2466 = vmatprep.subr.bf16.mxu0 %v4563_v14  ;;  %v4592_v33 = vld [vmem:[%s6818_s1] ss:$88 sps:$4 sm:$0xff]   ;;  %v4597_v35 = vld [vmem:[%s6818_s1 + $0xbc] ss:$88 sps:$4 sm:$0xff]   ;;  %v4598_v37 = vld [vmem:[%s6818_s1 + $0xa50] ss:$88 sps:$4 sm:$0xff]  }
   0xd   :  { %2568 = vmatprep.subr.bf16.mxu1 %v4567_v16  ;;  %2555 = vmatprep.mubr.bf16.mxu1 %v5158_v1  ;;  %v4595_v36 = vld [vmem:[%s6818_s1 + $0xb8] ss:$88 sps:$4 sm:$0xff]   ;;  %v4599_v38 = vld [vmem:[%s6818_s1 + $0x9a4] ss:$88 sps:$4 sm:$0xff]   ;;  %v4601_v40 = vld [vmem:[%s6818_s1 + $0x8] ss:$88 sps:$4 sm:$0xff]  }
   0xe   :  { %v4603_v39 = vld [vmem:[%s6818_s1 + $0xc] ss:$88 sps:$4 sm:$0xff]   ;;  %v4604_v41 = vld [vmem:[%s6818_s1 + $0x9a0] ss:$88 sps:$4 sm:$0xff]   ;;  %v4609_v43 = vld [vmem:[%s6818_s1 + $0xa5c] ss:$88 sps:$4 sm:$0xff]  }
   0xf   :  { %2467 = vmatpush1.bf16.msra.mxu0 %v4568_v17  ;;  %v4605_v42 = vld [vmem:[%s6818_s1 + $0x8f4] ss:$88 sps:$4 sm:$0xff]   ;;  %v4607_v44 = vld [vmem:[%s6818_s1 + $0xa58] ss:$88 sps:$4 sm:$0xff]   ;;  %v4611_v46 = vld [vmem:[%s6818_s1 + $0x844] ss:$88 sps:$4 sm:$0xff]  }
  0x10   :  { %2569 = vmatpush1.bf16.msra.mxu1 %v4565_v15  ;;  %2468 = vmatprep.subr.bf16.mxu0 %v4569_v18  ;;  %v4610_v45 = vld [vmem:[%s6818_s1 + $0x8f0] ss:$88 sps:$4 sm:$0xff]   ;;  %v4615_v47 = vld [vmem:[%s6818_s1 + $0x9ac] ss:$88 sps:$4 sm:$0xff]   ;;  %v4616_v50 = vld [vmem:[%s6818_s1 + $0x840] ss:$88 sps:$4 sm:$0xff]  }
  0x11   :  { %2570 = vmatprep.subr.bf16.mxu1 %v4573_v19  ;;  %v5331_v48 = vld [vmem:[%s6819_s0 + $0x20] ss:$12 sps:$4 sm:$0xff]   ;;  %v4621_v52 = vld [vmem:[%s6818_s1 + $0x8fc] ss:$88 sps:$4 sm:$0xff]   ;;  %v5350_v53 = vld [vmem:[%s6819_s0 + $0x4] ss:$12 sps:$4 sm:$0xff]  }
  0x12   :  { %v4613_v49 = vld [vmem:[%s6818_s1 + $0x9a8] ss:$88 sps:$4 sm:$0xff]   ;;  %v4617_v51 = vld [vmem:[%s6818_s1 + $0x794] ss:$88 sps:$4 sm:$0xff]   ;;  %2492 = vmatprep.mubr.bf16.mxu0 %v5350_v53  ;;  %v4619_v54 = vld [vmem:[%s6818_s1 + $0x8f8] ss:$88 sps:$4 sm:$0xff]  }
  0x13   :  { %2469 = vmatpush1.bf16.msra.mxu0 %v4574_v21  ;;  %4432 = vmatmul.mubr.msk.bf16.gmra.mxu1 %vm2453_vm0, %v5331_v48  ;;  %v4622_v55 = vld [vmem:[%s6818_s1 + $0x790] ss:$88 sps:$4 sm:$0xff]   ;;  %v4623_v56 = vld [vmem:[%s6818_s1 + $0x6e4] ss:$88 sps:$4 sm:$0xff]   ;;  %v4628_v59 = vld [vmem:[%s6818_s1 + $0x6e0] ss:$88 sps:$4 sm:$0xff]  }
  0x14   :  { %2571 = vmatpush1.bf16.msra.mxu1 %v4571_v20  ;;  %2470 = vmatprep.subr.bf16.mxu0 %v4575_v22  ;;  %v4627_v57 = vld [vmem:[%s6818_s1 + $0x84c] ss:$88 sps:$4 sm:$0xff]   ;;  %v4625_v58 = vld [vmem:[%s6818_s1 + $0x848] ss:$88 sps:$4 sm:$0xff]   ;;  %v4633_v61 = vld [vmem:[%s6818_s1 + $0x79c] ss:$88 sps:$4 sm:$0xff]  }
  0x15   :  { %2572 = vmatprep.subr.bf16.mxu1 %v4579_v23  ;;  %2598 = vmatprep.mubr.bf16.mxu1 %v5350_v53  ;;  %v4629_v60 = vld [vmem:[%s6818_s1 + $0x634] ss:$88 sps:$4 sm:$0xff]   ;;  %v4631_v62 = vld [vmem:[%s6818_s1 + $0x798] ss:$88 sps:$4 sm:$0xff]   ;;  %v4636_v0 = vld [vmem:[%s6818_s1 + $0x584] ss:$88 sps:$4 sm:$0xff]  }
  0x16   :  { %v4634_v63 = vld [vmem:[%s6818_s1 + $0x630] ss:$88 sps:$4 sm:$0xff]   ;;  %v4640_v2 = vld [vmem:[%s6818_s1 + $0x6ec] ss:$88 sps:$4 sm:$0xff]   ;;  %v4641_v4 = vld [vmem:[%s6818_s1 + $0x580] ss:$88 sps:$4 sm:$0xff]  }
  0x17   :  { %2471 = vmatpush1.bf16.msra.mxu0 %v4580_v25  ;;  %v4638_v3 = vld [vmem:[%s6818_s1 + $0x6e8] ss:$88 sps:$4 sm:$0xff]   ;;  %v4647_v5 = vld [vmem:[%s6818_s1 + $0x63c] ss:$88 sps:$4 sm:$0xff]   ;;  %v4645_v8 = vld [vmem:[%s6818_s1 + $0x638] ss:$88 sps:$4 sm:$0xff]  }
  0x18   :  { %2573 = vmatpush1.bf16.msra.mxu1 %v4577_v24  ;;  %2472 = vmatprep.subr.bf16.mxu0 %v4581_v26  ;;  %v4656_v6 = vld [vmem:[%s6818_s1 + $0xbbc] ss:$88 sps:$4 sm:$0xff]   ;;  %v5405_v7 = vld [vmem:[%s6819_s0] ss:$12 sps:$4 sm:$0xff]   ;;  %v4654_v12 = vld [vmem:[%s6818_s1 + $0xbb8] ss:$88 sps:$4 sm:$0xff]  }
  0x19   :  { %2574 = vmatprep.subr.bf16.mxu1 %v4585_v27  ;;  %v5413_v9 = vld [vmem:[%s6819_s0 + $0x1c] ss:$12 sps:$4 sm:$0xff]   ;;  %v4650_v11 = vld [vmem:[%s6818_s1 + $0x58c] ss:$88 sps:$4 sm:$0xff]   ;;  %v4657_v19 = vld [vmem:[%s6818_s1 + $0x4e0] ss:$88 sps:$4 sm:$0xff]  }
  0x1a   :  { %v4662_v13 = vld [vmem:[%s6818_s1 + $0xb0c] ss:$88 sps:$4 sm:$0xff]   ;;  %v4648_v14 = vld [vmem:[%s6818_s1 + $0x588] ss:$88 sps:$4 sm:$0xff]   ;;  %vm6790_vm3 = vmor %vm3989_vm2, %vm3988_vm1 }
  0x1b   :  { %2473 = vmatpush1.bf16.msra.mxu0 %v4586_v29  ;;  %v4659_v15 = vld [vmem:[%s6818_s1 + $0x4e4] ss:$88 sps:$4 sm:$0xff]   ;;  %v4660_v16 = vld [vmem:[%s6818_s1 + $0xb08] ss:$88 sps:$4 sm:$0xff]   ;;  %v4665_v20 = vld [vmem:[%s6818_s1 + $0x434] ss:$88 sps:$4 sm:$0xff]  }
  0x1c   :  { %2575 = vmatpush1.bf16.msra.mxu1 %v4583_v28  ;;  %2474 = vmatprep.subr.bf16.mxu0 %v4587_v30  ;;  %v4674_v17 = vld [vmem:[%s6818_s1 + $0xbc4] ss:$88 sps:$4 sm:$0xff]   ;;  %v4663_v21 = vld [vmem:[%s6818_s1 + $0x430] ss:$88 sps:$4 sm:$0xff]   ;;  %v4666_v23 = vld [vmem:[%s6818_s1 + $0x380] ss:$88 sps:$4 sm:$0xff]  }
  0x1d   :  { %2576 = vmatprep.subr.bf16.mxu1 %v4591_v31  ;;  %v5441_v18 = vld [vmem:[%s6819_s0 + $0x18] ss:$12 sps:$4 sm:$0xff]   ;;  %v4671_v24 = vld [vmem:[%s6818_s1 + $0x2d4] ss:$88 sps:$4 sm:$0xff]   ;;  %v4669_v27 = vld [vmem:[%s6818_s1 + $0x2d0] ss:$88 sps:$4 sm:$0xff]  }
  0x1e   :  { %v4668_v22 = vld [vmem:[%s6818_s1 + $0x384] ss:$88 sps:$4 sm:$0xff]   ;;  %v4672_v25 = vld [vmem:[%s6818_s1 + $0xbc0] ss:$88 sps:$4 sm:$0xff]   ;;  %v4680_v26 = vld [vmem:[%s6818_s1 + $0xb14] ss:$88 sps:$4 sm:$0xff]  }
  0x1f   :  { %2475 = vmatpush1.bf16.msra.mxu0 %v4592_v33  ;;  %v4677_v28 = vld [vmem:[%s6818_s1 + $0x224] ss:$88 sps:$4 sm:$0xff]   ;;  %v4678_v29 = vld [vmem:[%s6818_s1 + $0xb10] ss:$88 sps:$4 sm:$0xff]   ;;  %v4675_v31 = vld [vmem:[%s6818_s1 + $0x220] ss:$88 sps:$4 sm:$0xff]  }
  0x20   :  { %2577 = vmatpush1.bf16.msra.mxu1 %v4589_v32  ;;  %2476 = vmatprep.subr.bf16.mxu0 %v4593_v34  ;;  %v4686_v30 = vld [vmem:[%s6818_s1 + $0x4ec] ss:$88 sps:$4 sm:$0xff]   ;;  %v4681_v34 = vld [vmem:[%s6818_s1 + $0x170] ss:$88 sps:$4 sm:$0xff]  }
  0x21   :  { %2578 = vmatprep.subr.bf16.mxu1 %v4597_v35  ;;  %v4683_v32 = vld [vmem:[%s6818_s1 + $0x174] ss:$88 sps:$4 sm:$0xff]   ;;  %v419_v33 = vld [vmem:[%s6820_s2] sm:$0xff] }
  0x22   :  { %425 = vperm.xlu0 %4542, %v419_v33   ;;  %v4689_v35 = vld [vmem:[%s6818_s1 + $0xc4] ss:$88 sps:$4 sm:$0xff]   ;;  %v4765_v33 = vld [vmem:[%s6818_s1 + $0x2e0] ss:$88 sps:$4 sm:$0xff]  }
  0x23   :  { %2477 = vmatpush2.bf16.msra.mxu0 %v4598_v37  ;;  %v4684_v37 = vld [vmem:[%s6818_s1 + $0x4e8] ss:$88 sps:$4 sm:$0xff]  }
  0x24   :  { %2579 = vmatpush1.bf16.msra.mxu1 %v4595_v36  ;;  %2478 = vmatprep.subr.bf16.mxu0 %v4599_v38  ;;  %v420_v36 = vld [vmem:[%s6820_s2 + $0x8] sm:$0xff]  ;;  %v4687_v38 = vld [vmem:[%s6818_s1 + $0xc0] ss:$88 sps:$4 sm:$0xff]  }
  0x25   :  { %2580 = vmatprep.subr.bf16.mxu1 %v4603_v39  ;;  %v421_v39 = vld [vmem:[%s6820_s2 + $0x10] sm:$0xff] }
  0x26   :  { %430 = vperm.xlu0 %4542, %v420_v36   ;;  %435 = vperm.xlu1 %4543, %v421_v39   ;;  %v4768_v36 = vld [vmem:[%s6818_s1 + $0x648] ss:$88 sps:$4 sm:$0xff]   ;;  %v4774_v39 = vld [vmem:[%s6818_s1 + $0x598] ss:$88 sps:$4 sm:$0xff]  }
  0x27   :  { %2479 = vmatpush2.bf16.msra.mxu0 %v4604_v41  ;;  %v4695_v41 = vld [vmem:[%s6818_s1 + $0x14] ss:$88 sps:$4 sm:$0xff]  }
  0x28   :  { %2581 = vmatpush1.bf16.msra.mxu1 %v4601_v40  ;;  %2480 = vmatprep.subr.bf16.mxu0 %v4605_v42  ;;  %v4692_v40 = vld [vmem:[%s6818_s1 + $0x43c] ss:$88 sps:$4 sm:$0xff]  }
  0x29   :  { %2582 = vmatprep.subr.bf16.mxu1 %v4609_v43  ;;  %v422_v42 = vld [vmem:[%s6820_s2 + $0x18] sm:$0xff] }
  0x2a   :  { %v4690_v43 = vld [vmem:[%s6818_s1 + $0x438] ss:$88 sps:$4 sm:$0xff]   ;;  %440 = vperm.xlu1 %4543, %v422_v42   ;;  %v4788_v42 = vld [vmem:[%s6818_s1 + $0xbcc] ss:$88 sps:$4 sm:$0xff]  }
  0x2b   :  { %2481 = vmatpush2.bf16.msra.mxu0 %v4610_v45  ;;  %v4701_v45 = vld [vmem:[%s6818_s1 + $0xa64] ss:$88 sps:$4 sm:$0xff]  }
  0x2c   :  { %2583 = vmatpush2.bf16.msra.mxu1 %v4607_v44  ;;  %2482 = vmatprep.subr.bf16.mxu0 %v4611_v46  ;;  %v4693_v44 = vld [vmem:[%s6818_s1 + $0x10] ss:$88 sps:$4 sm:$0xff]  }
  0x2d   :  { %2584 = vmatprep.subr.bf16.mxu1 %v4615_v47  ;;  %v4696_v46 = vld [vmem:[%s6818_s1 + $0x388] ss:$88 sps:$4 sm:$0xff]  }
  0x2e   :  { %v4699_v47 = vld [vmem:[%s6818_s1 + $0xa60] ss:$88 sps:$4 sm:$0xff]  }
  0x2f   :  { %2483 = vmatpush2.bf16.msra.mxu0 %v4616_v50  ;;  %v4707_v50 = vld [vmem:[%s6818_s1 + $0x9b4] ss:$88 sps:$4 sm:$0xff]  }
  0x30   :  { %2585 = vmatpush2.bf16.msra.mxu1 %v4613_v49  ;;  %2484 = vmatprep.subr.bf16.mxu0 %v4617_v51  ;;  %v4704_v49 = vld [vmem:[%s6818_s1 + $0x2dc] ss:$88 sps:$4 sm:$0xff]   ;;  %v4702_v51 = vld [vmem:[%s6818_s1 + $0x2d8] ss:$88 sps:$4 sm:$0xff]  }
  0x31   :  { %2586 = vmatprep.subr.bf16.mxu1 %v4621_v52  ;;  %v4705_v52 = vld [vmem:[%s6818_s1 + $0x9b0] ss:$88 sps:$4 sm:$0xff]  }
  0x33   :  { %2485 = vmatpush2.bf16.msra.mxu0 %v4622_v55  ;;  %v4708_v55 = vld [vmem:[%s6818_s1 + $0x228] ss:$88 sps:$4 sm:$0xff]  }
  0x34   :  { %2587 = vmatpush2.bf16.msra.mxu1 %v4619_v54  ;;  %2486 = vmatprep.subr.bf16.mxu0 %v4623_v56  ;;  %v4710_v54 = vld [vmem:[%s6818_s1 + $0x22c] ss:$88 sps:$4 sm:$0xff]   ;;  %v4711_v56 = vld [vmem:[%s6818_s1 + $0x900] ss:$88 sps:$4 sm:$0xff]  }
  0x35   :  { %2588 = vmatprep.subr.bf16.mxu1 %v4627_v57  ;;  %v4716_v57 = vld [vmem:[%s6818_s1 + $0x17c] ss:$88 sps:$4 sm:$0xff]  }
  0x37   :  { %2487 = vmatpush2.bf16.msra.mxu0 %v4628_v59  ;;  %v4714_v59 = vld [vmem:[%s6818_s1 + $0x178] ss:$88 sps:$4 sm:$0xff]  }
  0x38   :  { %2589 = vmatpush2.bf16.msra.mxu1 %v4625_v58  ;;  %2488 = vmatprep.subr.bf16.mxu0 %v4629_v60  ;;  %v4719_v58 = vld [vmem:[%s6818_s1 + $0x854] ss:$88 sps:$4 sm:$0xff]   ;;  %v4717_v60 = vld [vmem:[%s6818_s1 + $0x850] ss:$88 sps:$4 sm:$0xff]  }
  0x39   :  { %2590 = vmatprep.subr.bf16.mxu1 %v4633_v61  ;;  %v4722_v61 = vld [vmem:[%s6818_s1 + $0xcc] ss:$88 sps:$4 sm:$0xff]  }
  0x3b   :  { %2489 = vmatpush2.bf16.msra.mxu0 %v4634_v63  ;;  %v4720_v63 = vld [vmem:[%s6818_s1 + $0xc8] ss:$88 sps:$4 sm:$0xff]  }
  0x3c   :  { %2591 = vmatpush2.bf16.msra.mxu1 %v4631_v62  ;;  %2490 = vmatprep.subr.bf16.mxu0 %v4636_v0  ;;  %v4725_v62 = vld [vmem:[%s6818_s1 + $0x7a4] ss:$88 sps:$4 sm:$0xff]   ;;  %v4723_v0 = vld [vmem:[%s6818_s1 + $0x7a0] ss:$88 sps:$4 sm:$0xff]  }
  0x3d   :  { %2592 = vmatprep.subr.bf16.mxu1 %v4640_v2  ;;  %v4728_v2 = vld [vmem:[%s6818_s1 + $0x1c] ss:$88 sps:$4 sm:$0xff]  }
  0x3f   :  { %2491 = vmatpush2.bf16.msra.mxu0 %v4641_v4  ;;  %v4726_v4 = vld [vmem:[%s6818_s1 + $0x18] ss:$88 sps:$4 sm:$0xff]  }
  0x40   :  { %2593 = vmatpush2.bf16.msra.mxu1 %v4638_v3  ;;  %2631 = vmatprep.subr.bf16.mxu0 %v4656_v6  ;;  %v4731_v3 = vld [vmem:[%s6818_s1 + $0x6f4] ss:$88 sps:$4 sm:$0xff]  }
  0x41   :  { %2594 = vmatprep.subr.bf16.mxu1 %v4647_v5  ;;  %v4729_v5 = vld [vmem:[%s6818_s1 + $0x6f0] ss:$88 sps:$4 sm:$0xff]   ;;  %v4734_v6 = vld [vmem:[%s6818_s1 + $0xa6c] ss:$88 sps:$4 sm:$0xff]  }
  0x42   :  { %2493 = vmatmul.mubr.bf16.vlgmr.msra.gmra.mxu0 %v5405_v7 }
  0x43   :  { %2502 = vmatprep.mubr.bf16.mxu0 %v5413_v9  ;;  %2632 = vmatpush1.bf16.msra.mxu0 %v4654_v12  ;;  %v4735_v12 = vld [vmem:[%s6818_s1 + $0x640] ss:$88 sps:$4 sm:$0xff]  }
  0x44   :  { %2595 = vmatpush2.bf16.msra.mxu1 %v4645_v8  ;;  %2633 = vmatprep.subr.bf16.mxu0 %v4662_v13  ;;  %v4737_v8 = vld [vmem:[%s6818_s1 + $0x644] ss:$88 sps:$4 sm:$0xff]  }
  0x45   :  { %2596 = vmatprep.subr.bf16.mxu1 %v4650_v11  ;;  %v4732_v11 = vld [vmem:[%s6818_s1 + $0xa68] ss:$88 sps:$4 sm:$0xff]   ;;  %v4740_v13 = vld [vmem:[%s6818_s1 + $0x9bc] ss:$88 sps:$4 sm:$0xff]  }
  0x47   :  { %2634 = vmatpush1.bf16.msra.mxu0 %v4660_v16  ;;  %v4741_v16 = vld [vmem:[%s6818_s1 + $0x590] ss:$88 sps:$4 sm:$0xff]  }
  0x48   :  { %2597 = vmatpush2.bf16.msra.mxu1 %v4648_v14  ;;  %2737 = vmatprep.subr.bf16.mxu0 %v4674_v17  ;;  %v4743_v14 = vld [vmem:[%s6818_s1 + $0x594] ss:$88 sps:$4 sm:$0xff]  }
  0x49   :  { %2672 = vmatprep.subr.bf16.mxu1 %v4659_v15  ;;  %v4738_v15 = vld [vmem:[%s6818_s1 + $0x9b8] ss:$88 sps:$4 sm:$0xff]   ;;  %v4746_v17 = vld [vmem:[%s6818_s1 + $0x90c] ss:$88 sps:$4 sm:$0xff]  }
  0x4a   :  { %2503 = vmatmul.mubr.bf16.gmra.mxu0 %v5441_v18 }
  0x4b   :  { %2599 = vmatmul.mubr.bf16.vlgmr.msra.gmra.mxu1 %v5405_v7  ;;  %2651 = vmatprep.mubr.bf16.mxu0 %v5158_v1 }
  0x4c   :  { %2673 = vmatpush1.bf16.msra.mxu1 %v4657_v19  ;;  %2608 = vmatprep.mubr.bf16.mxu1 %v5413_v9  ;;  %v4749_v19 = vld [vmem:[%s6818_s1 + $0x4f4] ss:$88 sps:$4 sm:$0xff]  }
  0x4d   :  { %2674 = vmatprep.subr.bf16.mxu1 %v4665_v20  ;;  %v4744_v20 = vld [vmem:[%s6818_s1 + $0x908] ss:$88 sps:$4 sm:$0xff]  }
  0x50   :  { %2675 = vmatpush1.bf16.msra.mxu1 %v4663_v21  ;;  %v4747_v21 = vld [vmem:[%s6818_s1 + $0x4f0] ss:$88 sps:$4 sm:$0xff]  }
  0x51   :  { %2676 = vmatprep.subr.bf16.mxu1 %v4668_v22  ;;  %v4752_v22 = vld [vmem:[%s6818_s1 + $0x85c] ss:$88 sps:$4 sm:$0xff]  }
  0x52   :  { %4433 = vmatmul.mubr.msk.bf16.vlgmr.msra.gmra.mxu0 %vm2453_vm0, %v5212_v10 }
  0x53   :  { %2609 = vmatmul.mubr.bf16.gmra.mxu1 %v5441_v18  ;;  %2661 = vmatprep.mubr.bf16.mxu0 %v5158_v1 }
  0x54   :  { %2677 = vmatpush1.bf16.msra.mxu1 %v4666_v23  ;;  %2738 = vmatpush1.bf16.msra.mxu0 %v4672_v25  ;;  %v4755_v23 = vld [vmem:[%s6818_s1 + $0x444] ss:$88 sps:$4 sm:$0xff]   ;;  %v4753_v25 = vld [vmem:[%s6818_s1 + $0x440] ss:$88 sps:$4 sm:$0xff]  }
  0x55   :  { %2678 = vmatprep.subr.bf16.mxu1 %v4671_v24  ;;  %2739 = vmatprep.subr.bf16.mxu0 %v4680_v26  ;;  %v4750_v24 = vld [vmem:[%s6818_s1 + $0x858] ss:$88 sps:$4 sm:$0xff]   ;;  %v4758_v26 = vld [vmem:[%s6818_s1 + $0x7ac] ss:$88 sps:$4 sm:$0xff]  }
  0x56   :  { %2704 = vmatprep.mubr.bf16.mxu1 %v5350_v53 }
  0x58   :  { %2679 = vmatpush1.bf16.msra.mxu1 %v4669_v27  ;;  %2740 = vmatpush1.bf16.msra.mxu0 %v4678_v29  ;;  %v4761_v27 = vld [vmem:[%s6818_s1 + $0x394] ss:$88 sps:$4 sm:$0xff]   ;;  %v4759_v29 = vld [vmem:[%s6818_s1 + $0x390] ss:$88 sps:$4 sm:$0xff]  }
  0x59   :  { %2680 = vmatprep.subr.bf16.mxu1 %v4677_v28  ;;  %2778 = vmatprep.subr.bf16.mxu0 %v4686_v30  ;;  %v4756_v28 = vld [vmem:[%s6818_s1 + $0x7a8] ss:$88 sps:$4 sm:$0xff]   ;;  %v4764_v30 = vld [vmem:[%s6818_s1 + $0x6fc] ss:$88 sps:$4 sm:$0xff]  }
  0x5a   :  { %4434 = vmatmul.mubr.msk.bf16.gmra.mxu0 %vm2453_vm0, %v5331_v48 }
  0x5b   :  { %2757 = vmatprep.mubr.bf16.mxu0 %v5158_v1 }
  0x5c   :  { %2681 = vmatpush1.bf16.msra.mxu1 %v4675_v31  ;;  %v4767_v31 = vld [vmem:[%s6818_s1 + $0x2e4] ss:$88 sps:$4 sm:$0xff]  }
  0x5d   :  { %2682 = vmatprep.subr.bf16.mxu1 %v4683_v32  ;;  %v4762_v32 = vld [vmem:[%s6818_s1 + $0x6f8] ss:$88 sps:$4 sm:$0xff]  }
  0x60   :  { %2683 = vmatpush1.bf16.msra.mxu1 %v4681_v34  ;;  %v4770_v34 = vld [vmem:[%s6818_s1 + $0x64c] ss:$88 sps:$4 sm:$0xff]  }
  0x61   :  { %2684 = vmatprep.subr.bf16.mxu1 %v4689_v35  ;;  %v4773_v35 = vld [vmem:[%s6818_s1 + $0x234] ss:$88 sps:$4 sm:$0xff]  }
  0x62   :  { %4435 = vmatmul.mubr.msk.bf16.vlgmr.msra.gmra.mxu0 %vm2453_vm0, %v5212_v10  ;;  %v4698_v10 = vld [vmem:[%s6818_s1 + $0x38c] ss:$88 sps:$4 sm:$0xff]  }
  0x63   :  { %2779 = vmatpush1.bf16.msra.mxu0 %v4684_v37  ;;  %2767 = vmatprep.mubr.bf16.mxu0 %v5158_v1  ;;  %v4771_v37 = vld [vmem:[%s6818_s1 + $0x230] ss:$88 sps:$4 sm:$0xff]  }
  0x64   :  { %2685 = vmatpush1.bf16.msra.mxu1 %v4687_v38  ;;  %2780 = vmatprep.subr.bf16.mxu0 %v4692_v40  ;;  %v4776_v38 = vld [vmem:[%s6818_s1 + $0x59c] ss:$88 sps:$4 sm:$0xff]   ;;  %v4777_v40 = vld [vmem:[%s6818_s1 + $0x180] ss:$88 sps:$4 sm:$0xff]  }
  0x65   :  { %2686 = vmatprep.subr.bf16.mxu1 %v4695_v41  ;;  %v4782_v41 = vld [vmem:[%s6818_s1 + $0xd4] ss:$88 sps:$4 sm:$0xff]  }
  0x67   :  { %2781 = vmatpush1.bf16.msra.mxu0 %v4690_v43  ;;  %v4780_v43 = vld [vmem:[%s6818_s1 + $0xd0] ss:$88 sps:$4 sm:$0xff]  }
  0x68   :  { %2687 = vmatpush1.bf16.msra.mxu1 %v4693_v44  ;;  %2782 = vmatprep.subr.bf16.mxu0 %v4698_v10  ;;  %v4785_v44 = vld [vmem:[%s6818_s1 + $0x24] ss:$88 sps:$4 sm:$0xff]   ;;  %v4786_v10 = vld [vmem:[%s6818_s1 + $0xbc8] ss:$88 sps:$4 sm:$0xff]  }
  0x69   :  { %2688 = vmatprep.subr.bf16.mxu1 %v4701_v45  ;;  %v4794_v45 = vld [vmem:[%s6818_s1 + $0xb1c] ss:$88 sps:$4 sm:$0xff]  }
  0x6a   :  { %4436 = vmatmul.mubr.msk.bf16.gmra.mxu0 %vm2453_vm0, %v5331_v48  ;;  %v4713_v48 = vld [vmem:[%s6818_s1 + $0x904] ss:$88 sps:$4 sm:$0xff]  }
  0x6b   :  { %2783 = vmatpush1.bf16.msra.mxu0 %v4696_v46  ;;  %2810 = vmatprep.mubr.bf16.mxu0 %v5350_v53  ;;  %v4783_v46 = vld [vmem:[%s6818_s1 + $0x20] ss:$88 sps:$4 sm:$0xff]  }
  0x6c   :  { %2689 = vmatpush2.bf16.msra.mxu1 %v4699_v47  ;;  %2784 = vmatprep.subr.bf16.mxu0 %v4704_v49  ;;  %v4791_v47 = vld [vmem:[%s6818_s1 + $0xa74] ss:$88 sps:$4 sm:$0xff]   ;;  %v4792_v49 = vld [vmem:[%s6818_s1 + $0xb18] ss:$88 sps:$4 sm:$0xff]  }
  0x6d   :  { %2690 = vmatprep.subr.bf16.mxu1 %v4707_v50  ;;  %v4806_v50 = vld [vmem:[%s6818_s1 + $0xbd4] ss:$88 sps:$4 sm:$0xff]  }
  0x6f   :  { %2785 = vmatpush1.bf16.msra.mxu0 %v4702_v51  ;;  %v4789_v51 = vld [vmem:[%s6818_s1 + $0xa70] ss:$88 sps:$4 sm:$0xff]  }
  0x70   :  { %2691 = vmatpush2.bf16.msra.mxu1 %v4705_v52  ;;  %2786 = vmatprep.subr.bf16.mxu0 %v4710_v54  ;;  %v4797_v52 = vld [vmem:[%s6818_s1 + $0x9c4] ss:$88 sps:$4 sm:$0xff]   ;;  %v4795_v54 = vld [vmem:[%s6818_s1 + $0x9c0] ss:$88 sps:$4 sm:$0xff]  }
  0x71   :  { %2692 = vmatprep.subr.bf16.mxu1 %v4713_v48  ;;  %v4800_v48 = vld [vmem:[%s6818_s1 + $0x914] ss:$88 sps:$4 sm:$0xff]  }
  0x73   :  { %2787 = vmatpush1.bf16.msra.mxu0 %v4708_v55  ;;  %v4798_v55 = vld [vmem:[%s6818_s1 + $0x910] ss:$88 sps:$4 sm:$0xff]  }
  0x74   :  { %2693 = vmatpush2.bf16.msra.mxu1 %v4711_v56  ;;  %2788 = vmatprep.subr.bf16.mxu0 %v4716_v57  ;;  %v4803_v56 = vld [vmem:[%s6818_s1 + $0x864] ss:$88 sps:$4 sm:$0xff]   ;;  %v4804_v57 = vld [vmem:[%s6818_s1 + $0xbd0] ss:$88 sps:$4 sm:$0xff]  }
  0x75   :  { %2694 = vmatprep.subr.bf16.mxu1 %v4719_v58  ;;  %v4812_v58 = vld [vmem:[%s6818_s1 + $0xb24] ss:$88 sps:$4 sm:$0xff]  }
  0x77   :  { %2789 = vmatpush1.bf16.msra.mxu0 %v4714_v59  ;;  %v5772_v59 = vld [vmem:[%s6819_s0 + $0x8] ss:$12 sps:$4 sm:$0xff]  }
  0x78   :  { %2695 = vmatpush2.bf16.msra.mxu1 %v4717_v60  ;;  %2790 = vmatprep.subr.bf16.mxu0 %v4722_v61  ;;  %v4801_v60 = vld [vmem:[%s6818_s1 + $0x860] ss:$88 sps:$4 sm:$0xff]   ;;  %v4809_v61 = vld [vmem:[%s6818_s1 + $0x7b4] ss:$88 sps:$4 sm:$0xff]  }
  0x79   :  { %2696 = vmatprep.subr.bf16.mxu1 %v4725_v62  ;;  %v4810_v62 = vld [vmem:[%s6818_s1 + $0xb20] ss:$88 sps:$4 sm:$0xff]  }
  0x7b   :  { %2791 = vmatpush1.bf16.msra.mxu0 %v4720_v63  ;;  %v4818_v63 = vld [vmem:[%s6818_s1 + $0x4fc] ss:$88 sps:$4 sm:$0xff]  }
  0x7c   :  { %2697 = vmatpush2.bf16.msra.mxu1 %v4723_v0  ;;  %2792 = vmatprep.subr.bf16.mxu0 %v4728_v2  ;;  %v4807_v0 = vld [vmem:[%s6818_s1 + $0x7b0] ss:$88 sps:$4 sm:$0xff]   ;;  %v4815_v2 = vld [vmem:[%s6818_s1 + $0x704] ss:$88 sps:$4 sm:$0xff]  }
  0x7d   :  { %2698 = vmatprep.subr.bf16.mxu1 %v4731_v3  ;;  %v5798_v3 = vld [vmem:[%s6819_s0 + $0x20] ss:$12 sps:$4 sm:$0xff]  }
  0x7f   :  { %2793 = vmatpush1.bf16.msra.mxu0 %v4726_v4  ;;  %v4813_v4 = vld [vmem:[%s6818_s1 + $0x700] ss:$88 sps:$4 sm:$0xff]  }
  0x80   :  { %2699 = vmatpush2.bf16.msra.mxu1 %v4729_v5  ;;  %2794 = vmatprep.subr.bf16.mxu0 %v4734_v6  ;;  %v4821_v5 = vld [vmem:[%s6818_s1 + $0x654] ss:$88 sps:$4 sm:$0xff]   ;;  %v4816_v6 = vld [vmem:[%s6818_s1 + $0x4f8] ss:$88 sps:$4 sm:$0xff]  }
  0x81   :  { %2700 = vmatprep.subr.bf16.mxu1 %v4737_v8  ;;  %v4819_v8 = vld [vmem:[%s6818_s1 + $0x650] ss:$88 sps:$4 sm:$0xff]  }
  0x83   :  { %2795 = vmatpush2.bf16.msra.mxu0 %v4732_v11  ;;  %v4824_v11 = vld [vmem:[%s6818_s1 + $0x44c] ss:$88 sps:$4 sm:$0xff]  }
  0x84   :  { %2701 = vmatpush2.bf16.msra.mxu1 %v4735_v12  ;;  %2796 = vmatprep.subr.bf16.mxu0 %v4740_v13  ;;  %v4827_v12 = vld [vmem:[%s6818_s1 + $0x5a4] ss:$88 sps:$4 sm:$0xff]   ;;  %v4822_v13 = vld [vmem:[%s6818_s1 + $0x448] ss:$88 sps:$4 sm:$0xff]  }
  0x85   :  { %2702 = vmatprep.subr.bf16.mxu1 %v4743_v14  ;;  %v4825_v14 = vld [vmem:[%s6818_s1 + $0x5a0] ss:$88 sps:$4 sm:$0xff]  }
  0x87   :  { %2797 = vmatpush2.bf16.msra.mxu0 %v4738_v15  ;;  %v4830_v15 = vld [vmem:[%s6818_s1 + $0x39c] ss:$88 sps:$4 sm:$0xff]  }
  0x88   :  { %2703 = vmatpush2.bf16.msra.mxu1 %v4741_v16  ;;  %2798 = vmatprep.subr.bf16.mxu0 %v4746_v17  ;;  %v4833_v16 = vld [vmem:[%s6818_s1 + $0xbdc] ss:$88 sps:$4 sm:$0xff]   ;;  %v4828_v17 = vld [vmem:[%s6818_s1 + $0x398] ss:$88 sps:$4 sm:$0xff]  }
  0x89   :  { %2884 = vmatprep.subr.bf16.mxu1 %v4749_v19  ;;  %v4831_v19 = vld [vmem:[%s6818_s1 + $0xbd8] ss:$88 sps:$4 sm:$0xff]  }
  0x8b   :  { %2705 = vmatmul.mubr.bf16.vlgmr.msra.gmra.mxu1 %v5405_v7  ;;  %2799 = vmatpush2.bf16.msra.mxu0 %v4744_v20  ;;  %v4836_v20 = vld [vmem:[%s6818_s1 + $0x2ec] ss:$88 sps:$4 sm:$0xff]  }
  0x8c   :  { %2885 = vmatpush1.bf16.msra.mxu1 %v4747_v21  ;;  %2800 = vmatprep.subr.bf16.mxu0 %v4752_v22  ;;  %v4842_v21 = vld [vmem:[%s6818_s1 + $0xb2c] ss:$88 sps:$4 sm:$0xff]   ;;  %v4834_v22 = vld [vmem:[%s6818_s1 + $0x2e8] ss:$88 sps:$4 sm:$0xff]  }
  0x8d   :  { %2886 = vmatprep.subr.bf16.mxu1 %v4755_v23  ;;  %2714 = vmatprep.mubr.bf16.mxu1 %v5413_v9  ;;  %v4840_v23 = vld [vmem:[%s6818_s1 + $0xb28] ss:$88 sps:$4 sm:$0xff]  }
  0x8f   :  { %2801 = vmatpush2.bf16.msra.mxu0 %v4750_v24  ;;  %v4839_v24 = vld [vmem:[%s6818_s1 + $0x23c] ss:$88 sps:$4 sm:$0xff]  }
  0x90   :  { %2887 = vmatpush1.bf16.msra.mxu1 %v4753_v25  ;;  %2802 = vmatprep.subr.bf16.mxu0 %v4758_v26  ;;  %v5867_v25 = vld [vmem:[%s6819_s0 + $0x4] ss:$12 sps:$4 sm:$0xff]  }
  0x91   :  { %2888 = vmatprep.subr.bf16.mxu1 %v4761_v27  ;;  %v4837_v26 = vld [vmem:[%s6818_s1 + $0x238] ss:$88 sps:$4 sm:$0xff]   ;;  %v4843_v27 = vld [vmem:[%s6818_s1 + $0x188] ss:$88 sps:$4 sm:$0xff]  }
  0x93   :  { %2715 = vmatmul.mubr.bf16.gmra.mxu1 %v5441_v18  ;;  %2803 = vmatpush2.bf16.msra.mxu0 %v4756_v28  ;;  %v4848_v28 = vld [vmem:[%s6818_s1 + $0xdc] ss:$88 sps:$4 sm:$0xff]  }
  0x94   :  { %2889 = vmatpush1.bf16.msra.mxu1 %v4759_v29  ;;  %2804 = vmatprep.subr.bf16.mxu0 %v4764_v30  ;;  %v4846_v29 = vld [vmem:[%s6818_s1 + $0xd8] ss:$88 sps:$4 sm:$0xff]   ;;  %v4854_v30 = vld [vmem:[%s6818_s1 + $0x2c] ss:$88 sps:$4 sm:$0xff]  }
  0x95   :  { %2890 = vmatprep.subr.bf16.mxu1 %v4767_v31  ;;  %2916 = vmatprep.mubr.bf16.mxu1 %v5350_v53  ;;  %v4779_v53 = vld [vmem:[%s6818_s1 + $0x184] ss:$88 sps:$4 sm:$0xff]   ;;  %v4857_v31 = vld [vmem:[%s6818_s1 + $0x454] ss:$88 sps:$4 sm:$0xff]  }
  0x97   :  { %2805 = vmatpush2.bf16.msra.mxu0 %v4762_v32  ;;  %v4852_v32 = vld [vmem:[%s6818_s1 + $0x28] ss:$88 sps:$4 sm:$0xff]  }
  0x98   :  { %2891 = vmatpush1.bf16.msra.mxu1 %v4765_v33  ;;  %2806 = vmatprep.subr.bf16.mxu0 %v4770_v34  ;;  %v4855_v33 = vld [vmem:[%s6818_s1 + $0x450] ss:$88 sps:$4 sm:$0xff]   ;;  %v4860_v34 = vld [vmem:[%s6818_s1 + $0xa7c] ss:$88 sps:$4 sm:$0xff]  }
  0x99   :  { %2892 = vmatprep.subr.bf16.mxu1 %v4773_v35  ;;  %v4863_v35 = vld [vmem:[%s6818_s1 + $0x3a4] ss:$88 sps:$4 sm:$0xff]  }
  0x9b   :  { %2807 = vmatpush2.bf16.msra.mxu0 %v4768_v36  ;;  %v4858_v36 = vld [vmem:[%s6818_s1 + $0xa78] ss:$88 sps:$4 sm:$0xff]  }
  0x9c   :  { %2893 = vmatpush1.bf16.msra.mxu1 %v4771_v37  ;;  %2808 = vmatprep.subr.bf16.mxu0 %v4776_v38  ;;  %v4861_v37 = vld [vmem:[%s6818_s1 + $0x3a0] ss:$88 sps:$4 sm:$0xff]   ;;  %v4866_v38 = vld [vmem:[%s6818_s1 + $0x9cc] ss:$88 sps:$4 sm:$0xff]  }
  0x9d   :  { %2894 = vmatprep.subr.bf16.mxu1 %v4779_v53  ;;  %v4869_v53 = vld [vmem:[%s6818_s1 + $0x2f4] ss:$88 sps:$4 sm:$0xff]  }
  0x9f   :  { %2809 = vmatpush2.bf16.msra.mxu0 %v4774_v39  ;;  %v4864_v39 = vld [vmem:[%s6818_s1 + $0x9c8] ss:$88 sps:$4 sm:$0xff]  }
  0xa0   :  { %2895 = vmatpush1.bf16.msra.mxu1 %v4777_v40  ;;  %2843 = vmatprep.subr.bf16.mxu0 %v4788_v42  ;;  %v4867_v40 = vld [vmem:[%s6818_s1 + $0x2f0] ss:$88 sps:$4 sm:$0xff]   ;;  %v4875_v42 = vld [vmem:[%s6818_s1 + $0x244] ss:$88 sps:$4 sm:$0xff]  }
  0xa1   :  { %2896 = vmatprep.subr.bf16.mxu1 %v4782_v41  ;;  %v4872_v41 = vld [vmem:[%s6818_s1 + $0x91c] ss:$88 sps:$4 sm:$0xff]  }
  0xa2   :  { %2811 = vmatmul.mubr.bf16.vlgmr.msra.gmra.mxu0 %v5405_v7 }
  0xa3   :  { %2820 = vmatprep.mubr.bf16.mxu0 %v5413_v9  ;;  %2844 = vmatpush1.bf16.msra.mxu0 %v4786_v10  ;;  %v4878_v10 = vld [vmem:[%s6818_s1 + $0x86c] ss:$88 sps:$4 sm:$0xff]  }
  0xa4   :  { %2897 = vmatpush1.bf16.msra.mxu1 %v4780_v43  ;;  %2845 = vmatprep.subr.bf16.mxu0 %v4794_v45  ;;  %v4870_v43 = vld [vmem:[%s6818_s1 + $0x918] ss:$88 sps:$4 sm:$0xff]   ;;  %v4881_v45 = vld [vmem:[%s6818_s1 + $0x194] ss:$88 sps:$4 sm:$0xff]  }
  0xa5   :  { %2898 = vmatprep.subr.bf16.mxu1 %v4785_v44  ;;  %v4873_v44 = vld [vmem:[%s6818_s1 + $0x240] ss:$88 sps:$4 sm:$0xff]  }
  0xa7   :  { %2846 = vmatpush1.bf16.msra.mxu0 %v4792_v49  ;;  %v4884_v49 = vld [vmem:[%s6818_s1 + $0x7bc] ss:$88 sps:$4 sm:$0xff]  }
  0xa8   :  { %2899 = vmatpush1.bf16.msra.mxu1 %v4783_v46  ;;  %2949 = vmatprep.subr.bf16.mxu0 %v4806_v50  ;;  %v4876_v46 = vld [vmem:[%s6818_s1 + $0x868] ss:$88 sps:$4 sm:$0xff]   ;;  %v4887_v50 = vld [vmem:[%s6818_s1 + $0xe4] ss:$88 sps:$4 sm:$0xff]  }
  0xa9   :  { %2900 = vmatprep.subr.bf16.mxu1 %v4791_v47  ;;  %v4879_v47 = vld [vmem:[%s6818_s1 + $0x190] ss:$88 sps:$4 sm:$0xff]  }
  0xaa   :  { %2821 = vmatmul.mubr.bf16.gmra.mxu0 %v5441_v18 }
  0xab   :  { %2863 = vmatprep.mubr.bf16.mxu0 %v5158_v1 }
  0xac   :  { %2901 = vmatpush2.bf16.msra.mxu1 %v4789_v51  ;;  %v4882_v51 = vld [vmem:[%s6818_s1 + $0x7b8] ss:$88 sps:$4 sm:$0xff]  }
  0xad   :  { %2902 = vmatprep.subr.bf16.mxu1 %v4797_v52  ;;  %v4885_v52 = vld [vmem:[%s6818_s1 + $0xe0] ss:$88 sps:$4 sm:$0xff]  }
  0xb0   :  { %2903 = vmatpush2.bf16.msra.mxu1 %v4795_v54 }
  0xb1   :  { %2904 = vmatprep.subr.bf16.mxu1 %v4800_v48  ;;  %v4890_v48 = vld [vmem:[%s6818_s1 + $0x70c] ss:$88 sps:$4 sm:$0xff]  }
  0xb2   :  { %4437 = vmatmul.mubr.msk.bf16.vlgmr.msra.gmra.mxu0 %vm2453_vm0, %v5772_v59 }
  0xb3   :  { %2873 = vmatprep.mubr.bf16.mxu0 %v5158_v1  ;;  %2950 = vmatpush1.bf16.msra.mxu0 %v4804_v57 }
  0xb4   :  { %2905 = vmatpush2.bf16.msra.mxu1 %v4798_v55  ;;  %2951 = vmatprep.subr.bf16.mxu0 %v4812_v58  ;;  %v4893_v55 = vld [vmem:[%s6818_s1 + $0x34] ss:$88 sps:$4 sm:$0xff]   ;;  %v4891_v58 = vld [vmem:[%s6818_s1 + $0x30] ss:$88 sps:$4 sm:$0xff]  }
  0xb5   :  { %2906 = vmatprep.subr.bf16.mxu1 %v4803_v56  ;;  %v4888_v56 = vld [vmem:[%s6818_s1 + $0x708] ss:$88 sps:$4 sm:$0xff]  }
  0xb7   :  { %2952 = vmatpush1.bf16.msra.mxu0 %v4810_v62  ;;  %v4894_v62 = vld [vmem:[%s6818_s1 + $0x658] ss:$88 sps:$4 sm:$0xff]  }
  0xb8   :  { %2907 = vmatpush2.bf16.msra.mxu1 %v4801_v60  ;;  %2990 = vmatprep.subr.bf16.mxu0 %v4818_v63  ;;  %v4896_v60 = vld [vmem:[%s6818_s1 + $0x65c] ss:$88 sps:$4 sm:$0xff]   ;;  %v4897_v63 = vld [vmem:[%s6818_s1 + $0xa80] ss:$88 sps:$4 sm:$0xff]  }
  0xb9   :  { %2908 = vmatprep.subr.bf16.mxu1 %v4809_v61  ;;  %v4899_v61 = vld [vmem:[%s6818_s1 + $0xa84] ss:$88 sps:$4 sm:$0xff]  }
  0xba   :  { %4438 = vmatmul.mubr.msk.bf16.gmra.mxu0 %vm2453_vm0, %v5798_v3 }
  0xbb   :  { %2969 = vmatprep.mubr.bf16.mxu0 %v5158_v1 }
  0xbc   :  { %2909 = vmatpush2.bf16.msra.mxu1 %v4807_v0 }
  0xbd   :  { %2910 = vmatprep.subr.bf16.mxu1 %v4815_v2  ;;  %v4902_v2 = vld [vmem:[%s6818_s1 + $0x5ac] ss:$88 sps:$4 sm:$0xff]  }
  0xc0   :  { %2911 = vmatpush2.bf16.msra.mxu1 %v4813_v4  ;;  %v4905_v4 = vld [vmem:[%s6818_s1 + $0x9d4] ss:$88 sps:$4 sm:$0xff]  }
  0xc1   :  { %2912 = vmatprep.subr.bf16.mxu1 %v4821_v5 }
  0xc2   :  { %4439 = vmatmul.mubr.msk.bf16.vlgmr.msra.gmra.mxu0 %vm2453_vm0, %v5772_v59 }
  0xc3   :  { %2991 = vmatpush1.bf16.msra.mxu0 %v4816_v6  ;;  %2979 = vmatprep.mubr.bf16.mxu0 %v5158_v1  ;;  %v4900_v6 = vld [vmem:[%s6818_s1 + $0x5a8] ss:$88 sps:$4 sm:$0xff]  }
  0xc4   :  { %2913 = vmatpush2.bf16.msra.mxu1 %v4819_v8  ;;  %2992 = vmatprep.subr.bf16.mxu0 %v4824_v11  ;;  %v4903_v8 = vld [vmem:[%s6818_s1 + $0x9d0] ss:$88 sps:$4 sm:$0xff]  }
  0xc5   :  { %2914 = vmatprep.subr.bf16.mxu1 %v4827_v12  ;;  %v4908_v12 = vld [vmem:[%s6818_s1 + $0x924] ss:$88 sps:$4 sm:$0xff]  }
  0xc7   :  { %2993 = vmatpush1.bf16.msra.mxu0 %v4822_v13  ;;  %v4914_v13 = vld [vmem:[%s6818_s1 + $0xbe4] ss:$88 sps:$4 sm:$0xff]  }
  0xc8   :  { %2915 = vmatpush2.bf16.msra.mxu1 %v4825_v14  ;;  %2994 = vmatprep.subr.bf16.mxu0 %v4830_v15  ;;  %v6012_v14 = vpop.permute.xlu0 %425  ;;  %v4906_v15 = vld [vmem:[%s6818_s1 + $0x920] ss:$88 sps:$4 sm:$0xff]  }
  0xc9   :  { %3055 = vmatprep.subr.bf16.mxu1 %v4833_v16 }
  0xca   :  { %4440 = vmatmul.mubr.msk.bf16.gmra.mxu0 %vm2453_vm0, %v5798_v3 }
  0xcb   :  { %2917 = vmatmul.mubr.bf16.vlgmr.msra.gmra.mxu1 %v5405_v7  ;;  %2995 = vmatpush1.bf16.msra.mxu0 %v4828_v17  ;;  %v4851_v7 = vld [vmem:[%s6818_s1 + $0x504] ss:$88 sps:$4 sm:$0xff]   ;;  %v2547_v54 = vpop.f32.mrf.mxu1  ;;  %v4911_v17 = vld [vmem:[%s6818_s1 + $0x874] ss:$88 sps:$4 sm:$0xff]  }
  0xcc   :  { %3056 = vmatpush1.bf16.msra.mxu1 %v4831_v19  ;;  %2996 = vmatprep.subr.bf16.mxu0 %v4836_v20  ;;  %v4912_v19 = vld [vmem:[%s6818_s1 + $0xbe0] ss:$88 sps:$4 sm:$0xff]   ;;  %v4920_v20 = vld [vmem:[%s6818_s1 + $0xb34] ss:$88 sps:$4 sm:$0xff]  }
  0xcd   :  { %2926 = vmatprep.mubr.bf16.mxu1 %v5413_v9  ;;  %3057 = vmatprep.subr.bf16.mxu1 %v4842_v21  ;;  %v4845_v9 = vld [vmem:[%s6818_s1 + $0x18c] ss:$88 sps:$4 sm:$0xff]   ;;  %v2549_v57 = vpop.f32.mrf.mxu1 }
  0xce   :  { %3022 = vmatprep.mubr.bf16.mxu0 %v5867_v25  ;;  %v6031_v21 = vld [vmem:[%s6819_s0] ss:$12 sps:$4 sm:$0xff]  }
  0xcf   :  { %2997 = vmatpush1.bf16.msra.mxu0 %v4834_v22  ;;  %v2551_v0 = vpop.f32.mrf.mxu1 }
  0xd0   :  { %3058 = vmatpush1.bf16.msra.mxu1 %v4840_v23  ;;  %2998 = vmatprep.subr.bf16.mxu0 %v4839_v24  ;;  %v4909_v24 = vld [vmem:[%s6818_s1 + $0x870] ss:$88 sps:$4 sm:$0xff]  }
  0xd1   :  { %3096 = vmatprep.subr.bf16.mxu1 %v4851_v7  ;;  %v2553_v5 = vpop.f32.mrf.mxu1  ;;  %v6038_v7 = vpop.permute.xlu0 %430 }
  0xd3   :  { %2927 = vmatmul.mubr.bf16.gmra.mxu1 %v5441_v18  ;;  %2999 = vmatpush1.bf16.msra.mxu0 %v4837_v26  ;;  %v4849_v18 = vld [vmem:[%s6818_s1 + $0x500] ss:$88 sps:$4 sm:$0xff]   ;;  %v6004_v11 = vpop.f32.mrf.mxu1  ;;  %v6043_v26 = vld [vmem:[%s6819_s0 + $0x1c] ss:$12 sps:$4 sm:$0xff]  }
  0xd4   :  { %3075 = vmatprep.mubr.bf16.mxu1 %v5158_v1  ;;  %3000 = vmatprep.subr.bf16.mxu0 %v4845_v9 }
  0xd5   :  { %v6017_v16 = vpop.f32.mrf.mxu1 }
  0xd7   :  { %3001 = vmatpush1.bf16.msra.mxu0 %v4843_v27  ;;  %v6046_v9 = vpop.f32.mrf.mxu1 }
  0xd8   :  { %3002 = vmatprep.subr.bf16.mxu0 %v4848_v28  ;;  %v4917_v28 = vld [vmem:[%s6818_s1 + $0x7c4] ss:$88 sps:$4 sm:$0xff]  }
  0xdb   :  { %4441 = vmatmul.mubr.msk.bf16.vlgmr.msra.gmra.mxu1 %vm2453_vm0, %v5772_v59  ;;  %3003 = vmatpush1.bf16.msra.mxu0 %v4846_v29  ;;  %v4918_v29 = vld [vmem:[%s6818_s1 + $0xb30] ss:$88 sps:$4 sm:$0xff]  }
  0xdc   :  { %3097 = vmatpush1.bf16.msra.mxu1 %v4849_v18  ;;  %3004 = vmatprep.subr.bf16.mxu0 %v4854_v30 }
  0xdd   :  { %3098 = vmatprep.subr.bf16.mxu1 %v4857_v31  ;;  %3085 = vmatprep.mubr.bf16.mxu1 %v5158_v1  ;;  %v6055_v31 = vpop.permute.xlu1 %435 }
  0xdf   :  { %3005 = vmatpush1.bf16.msra.mxu0 %v4852_v32  ;;  %v4926_v32 = vld [vmem:[%s6818_s1 + $0x50c] ss:$88 sps:$4 sm:$0xff]  }
  0xe0   :  { %3099 = vmatpush1.bf16.msra.mxu1 %v4855_v33  ;;  %3006 = vmatprep.subr.bf16.mxu0 %v4860_v34 }
  0xe1   :  { %3100 = vmatprep.subr.bf16.mxu1 %v4863_v35 }
  0xe3   :  { %4442 = vmatmul.mubr.msk.bf16.gmra.mxu1 %vm2453_vm0, %v5798_v3  ;;  %3007 = vmatpush2.bf16.msra.mxu0 %v4858_v36  ;;  %v4915_v36 = vld [vmem:[%s6818_s1 + $0x7c0] ss:$88 sps:$4 sm:$0xff]  }
  0xe4   :  { %3101 = vmatpush1.bf16.msra.mxu1 %v4861_v37  ;;  %3008 = vmatprep.subr.bf16.mxu0 %v4866_v38  ;;  %v2563_v37 = vpop.f32.mrf.mxu1 }
  0xe5   :  { %3102 = vmatprep.subr.bf16.mxu1 %v4869_v53  ;;  %3128 = vmatprep.mubr.bf16.mxu1 %v5867_v25  ;;  %v4923_v53 = vld [vmem:[%s6818_s1 + $0x714] ss:$88 sps:$4 sm:$0xff]  }
  0xe7   :  { %3009 = vmatpush2.bf16.msra.mxu0 %v4864_v39 }
  0xe8   :  { %3103 = vmatpush1.bf16.msra.mxu1 %v4867_v40  ;;  %3010 = vmatprep.subr.bf16.mxu0 %v4872_v41 }
  0xe9   :  { %3104 = vmatprep.subr.bf16.mxu1 %v4875_v42 }
  0xeb   :  { %3011 = vmatpush2.bf16.msra.mxu0 %v4870_v43  ;;  %v6071_v43 = vld [vmem:[%s6819_s0 + $0x18] ss:$12 sps:$4 sm:$0xff]  }
  0xec   :  { %3105 = vmatpush1.bf16.msra.mxu1 %v4873_v44  ;;  %3012 = vmatprep.subr.bf16.mxu0 %v4878_v10 }
  0xed   :  { %3106 = vmatprep.subr.bf16.mxu1 %v4881_v45 }
  0xef   :  { %3013 = vmatpush2.bf16.msra.mxu0 %v4876_v46 }
  0xf0   :  { %3107 = vmatpush1.bf16.msra.mxu1 %v4879_v47  ;;  %3014 = vmatprep.subr.bf16.mxu0 %v4884_v49  ;;  %v4921_v49 = vld [vmem:[%s6818_s1 + $0x710] ss:$88 sps:$4 sm:$0xff]  }
  0xf1   :  { %3108 = vmatprep.subr.bf16.mxu1 %v4887_v50  ;;  %v6078_v50 = vpop.permute.xlu1 %440 }
  0xf3   :  { %3015 = vmatpush2.bf16.msra.mxu0 %v4882_v51 }
  0xf4   :  { %3109 = vmatpush1.bf16.msra.mxu1 %v4885_v52  ;;  %3016 = vmatprep.subr.bf16.mxu0 %v4890_v48 }
  0xf5   :  { %3110 = vmatprep.subr.bf16.mxu1 %v4893_v55 }
  0xf7   :  { %3017 = vmatpush2.bf16.msra.mxu0 %v4888_v56 }
  0xf8   :  { %3111 = vmatpush1.bf16.msra.mxu1 %v4891_v58  ;;  %3018 = vmatprep.subr.bf16.mxu0 %v4896_v60 }
  0xf9   :  { %3112 = vmatprep.subr.bf16.mxu1 %v4899_v61 }
  0xfb   :  { %3019 = vmatpush2.bf16.msra.mxu0 %v4894_v62 }
  0xfc   :  { %3113 = vmatpush2.bf16.msra.mxu1 %v4897_v63  ;;  %3020 = vmatprep.subr.bf16.mxu0 %v4902_v2  ;;  %v4927_v2 = vld [vmem:[%s6818_s1 + $0x660] ss:$88 sps:$4 sm:$0xff]  }
  0xfd   :  { %3114 = vmatprep.subr.bf16.mxu1 %v4905_v4 }
  0xff   :  { %3021 = vmatpush2.bf16.msra.mxu0 %v4900_v6 }
 0x100   :  { %3115 = vmatpush2.bf16.msra.mxu1 %v4903_v8  ;;  %3161 = vmatprep.subr.bf16.mxu0 %v4914_v13  ;;  %v4932_v8 = vld [vmem:[%s6818_s1 + $0x45c] ss:$88 sps:$4 sm:$0xff]  }
 0x101   :  { %3116 = vmatprep.subr.bf16.mxu1 %v4908_v12 }
 0x102   :  { %3023 = vmatmul.mubr.bf16.vlgmr.msra.gmra.mxu0 %v6031_v21  ;;  %v2494_v22 = vpop.f32.mrf.mxu0 }
 0x103   :  { %v2495_v23 = vadd.f32 %v2494_v22, %v6012_v14  ;;  %3032 = vmatprep.mubr.bf16.mxu0 %v6043_v26  ;;  %3162 = vmatpush1.bf16.msra.mxu0 %v4912_v19 }
 0x104   :  { %3117 = vmatpush2.bf16.msra.mxu1 %v4906_v15  ;;  %v2496_v27 = vpop.f32.mrf.mxu0  ;;  %3163 = vmatprep.subr.bf16.mxu0 %v4920_v20 }
 0x105   :  { %3118 = vmatprep.subr.bf16.mxu1 %v4911_v17  ;;  %v2548_v18 = vadd.f32 %v2547_v54, %v2495_v23  ;;  %v2497_v30 = vadd.f32 %v2496_v27, %v6012_v14  ;;  %v4929_v54 = vld [vmem:[%s6818_s1 + $0x664] ss:$88 sps:$4 sm:$0xff]   ;;  %v4930_v27 = vld [vmem:[%s6818_s1 + $0x458] ss:$88 sps:$4 sm:$0xff]  }
 0x106   :  { %v2498_v33 = vpop.f32.mrf.mxu0 }
 0x107   :  { %v2550_v34 = vadd.f32 %v2549_v57, %v2497_v30  ;;  %v2499_v35 = vadd.f32 %v2498_v33, %v6038_v7  ;;  %3164 = vmatpush1.bf16.msra.mxu0 %v4918_v29  ;;  %v3626_v39 = vmax.f32 %v2548_v18, 0.0  ;;  %v4938_v29 = vld [vmem:[%s6818_s1 + $0x3ac] ss:$88 sps:$4 sm:$0xff]  }
 0x108   :  { %3119 = vmatpush2.bf16.msra.mxu1 %v4909_v24  ;;  %v2500_v38 = vpop.f32.mrf.mxu0  ;;  %3202 = vmatprep.subr.bf16.mxu0 %v4926_v32  ;;  %v4941_v18 = vld [vmem:[%s6818_s1 + $0xbec] ss:$88 sps:$4 sm:$0xff]  }
 0x109   :  { %3120 = vmatprep.subr.bf16.mxu1 %v4917_v28  ;;  %v3627_v40 = vmax.f32 %v2550_v34, 0.0  ;;  %v2552_v41 = vadd.f32 %v2551_v0, %v2499_v35  ;;  %v2501_v42 = vadd.f32 %v2500_v38, %v6038_v7  ;;  %v4924_v0 = vld [vmem:[%s6818_s1 + $0x508] ss:$88 sps:$4 sm:$0xff]  }
 0x10a   :  { %3033 = vmatmul.mubr.bf16.gmra.mxu0 %v6071_v43  ;;  %v2504_v44 = vpop.f32.mrf.mxu0 }
 0x10b   :  { %v2600_v10 = vpop.f32.mrf.mxu1  ;;  %v4497_v45 = vpack.c.bf16 %v3627_v40, %v3626_v39  ;;  %v2554_v46 = vadd.f32 %v2553_v5, %v2501_v42  ;;  %v2505_v47 = vadd.f32 %v2504_v44, %v6055_v31  ;;  %3181 = vmatprep.mubr.bf16.mxu0 %v5158_v1  ;;  %v3648_v48 = vmax.f32 %v2552_v41, 0.0  ;;  %v4936_v44 = vld [vmem:[%s6818_s1 + $0x3a8] ss:$88 sps:$4 sm:$0xff]  }
 0x10c   :  { %3121 = vmatpush2.bf16.msra.mxu1 %v4915_v36  ;;  %v2506_v51 = vpop.f32.mrf.mxu0  ;;  %v2601_v4 = vadd.f32 %v2600_v10, %v6012_v14  ;;  %v4939_v10 = vld [vmem:[%s6818_s1 + $0xbe8] ss:$88 sps:$4 sm:$0xff]  }
 0x10d   :  { %v2602_v52 = vpop.f32.mrf.mxu1  ;;  %3122 = vmatprep.subr.bf16.mxu1 %v4923_v53  ;;  %3978 = vst [vmem:[%s6821_s3] sm:$0xff] %v4497_v45  ;;  %v3649_v55 = vmax.f32 %v2554_v46, 0.0  ;;  %v2558_v56 = vadd.f32 %v6004_v11, %v2505_v47  ;;  %v2507_v57 = vadd.f32 %v2506_v51, %v6055_v31  ;;  %v4935_v11 = vld [vmem:[%s6818_s1 + $0x5b4] ss:$88 sps:$4 sm:$0xff]  }
 0x10e   :  { %v2508_v58 = vpop.f32.mrf.mxu0  ;;  %v2603_v17 = vadd.f32 %v2602_v52, %v6012_v14  ;;  %v4944_v46 = vld [vmem:[%s6818_s1 + $0x2fc] ss:$88 sps:$4 sm:$0xff]  }
 0x10f   :  { %v2604_v60 = vpop.f32.mrf.mxu1  ;;  %v4508_v61 = vpack.c.bf16 %v3649_v55, %v3648_v48  ;;  %v2560_v62 = vadd.f32 %v6017_v16, %v2507_v57  ;;  %v2509_v63 = vadd.f32 %v2508_v58, %v6078_v50  ;;  %v3670_v12 = vmax.f32 %v2558_v56, 0.0  ;;  %v4950_v52 = vld [vmem:[%s6818_s1 + $0xb3c] ss:$88 sps:$4 sm:$0xff]   ;;  %v4942_v57 = vld [vmem:[%s6818_s1 + $0x2f8] ss:$88 sps:$4 sm:$0xff]  }
 0x110   :  { %3123 = vmatpush2.bf16.msra.mxu1 %v4921_v49  ;;  %v2510_v5 = vpop.f32.mrf.mxu0  ;;  %v2605_v33 = vadd.f32 %v2604_v60, %v6038_v7 }
 0x111   :  { %v2606_v6 = vpop.f32.mrf.mxu1  ;;  %3124 = vmatprep.subr.bf16.mxu1 %v4929_v54  ;;  %3992 = vst [vmem:[%s6821_s3 + $0x58] sm:$0xff] %v4508_v61  ;;  %v3671_v13 = vmax.f32 %v2560_v62, 0.0  ;;  %v2562_v15 = vadd.f32 %v6046_v9, %v2509_v63  ;;  %v2511_v16 = vadd.f32 %v2510_v5, %v6078_v50  ;;  %v4933_v9 = vld [vmem:[%s6818_s1 + $0x5b0] ss:$88 sps:$4 sm:$0xff]   ;;  %v4947_v62 = vld [vmem:[%s6818_s1 + $0x24c] ss:$88 sps:$4 sm:$0xff]  }
 0x112   :  { %4443 = vmatmul.mubr.msk.bf16.vlgmr.msra.gmra.mxu0 %vm2453_vm0, %v5772_v59  ;;  %v2653_v19 = vpop.f32.mrf.mxu0  ;;  %v2607_v36 = vadd.f32 %v2606_v6, %v6038_v7  ;;  %v4948_v61 = vld [vmem:[%s6818_s1 + $0xb38] ss:$88 sps:$4 sm:$0xff]  }
 0x113   :  { %v2610_v20 = vpop.f32.mrf.mxu1  ;;  %v4519_v22 = vpack.c.bf16 %v3671_v13, %v3670_v12  ;;  %v2564_v23 = vadd.f32 %v2563_v37, %v2511_v16  ;;  %3203 = vmatpush1.bf16.msra.mxu0 %v4924_v0  ;;  %v2654_v24 = vadd.f32 %v2653_v19, %v2601_v4  ;;  %v3692_v32 = vmax.f32 %v2562_v15, 0.0  ;;  %3191 = vmatprep.mubr.bf16.mxu0 %v5158_v1  ;;  %v4959_v0 = vld [vmem:[%s6818_s1 + $0x514] ss:$88 sps:$4 sm:$0xff]  }
 0x114   :  { %3125 = vmatpush2.bf16.msra.mxu1 %v4927_v2  ;;  %3204 = vmatprep.subr.bf16.mxu0 %v4932_v8  ;;  %v2655_v28 = vpop.f32.mrf.mxu0  ;;  %v2611_v38 = vadd.f32 %v2610_v20, %v6055_v31  ;;  %v4953_v15 = vld [vmem:[%s6818_s1 + $0x19c] ss:$88 sps:$4 sm:$0xff]  }
 0x115   :  { %3126 = vmatprep.subr.bf16.mxu1 %v4935_v11  ;;  %v2612_v30 = vpop.f32.mrf.mxu1  ;;  %4003 = vst [vmem:[%s6821_s3 + $0xb0] sm:$0xff] %v4519_v22  ;;  %v3693_v34 = vmax.f32 %v2564_v23, 0.0  ;;  %v2656_v35 = vadd.f32 %v2655_v28, %v2603_v17  ;;  %v3628_v40 = vmax.f32 %v2654_v24, 0.0  ;;  %v4945_v11 = vld [vmem:[%s6818_s1 + $0x248] ss:$88 sps:$4 sm:$0xff]  }
 0x116   :  { %v2657_v37 = vpop.f32.mrf.mxu0  ;;  %v2613_v51 = vadd.f32 %v2612_v30, %v6055_v31  ;;  %v4951_v22 = vld [vmem:[%s6818_s1 + $0x198] ss:$88 sps:$4 sm:$0xff]   ;;  %v4956_v24 = vld [vmem:[%s6818_s1 + $0xec] ss:$88 sps:$4 sm:$0xff]  }
 0x117   :  { %v2614_v53 = vpop.f32.mrf.mxu1  ;;  %v4530_v39 = vpack.c.bf16 %v3693_v34, %v3692_v32  ;;  %v3629_v41 = vmax.f32 %v2656_v35, 0.0  ;;  %3205 = vmatpush1.bf16.msra.mxu0 %v4930_v27  ;;  %v2658_v42 = vadd.f32 %v2657_v37, %v2605_v33  ;;  %v4957_v28 = vld [vmem:[%s6818_s1 + $0x510] ss:$88 sps:$4 sm:$0xff]   ;;  %v4963_v32 = vld [vmem:[%s6818_s1 + $0x460] ss:$88 sps:$4 sm:$0xff]  }
 0x118   :  { %3127 = vmatpush2.bf16.msra.mxu1 %v4933_v9  ;;  %3206 = vmatprep.subr.bf16.mxu0 %v4938_v29  ;;  %v2659_v45 = vpop.f32.mrf.mxu0  ;;  %v2615_v60 = vadd.f32 %v2614_v53, %v6078_v50  ;;  %v4954_v9 = vld [vmem:[%s6818_s1 + $0xe8] ss:$88 sps:$4 sm:$0xff]   ;;  %v4962_v29 = vld [vmem:[%s6818_s1 + $0x3c] ss:$88 sps:$4 sm:$0xff]   ;;  %v4960_v30 = vld [vmem:[%s6818_s1 + $0x38] ss:$88 sps:$4 sm:$0xff]  }
 0x119   :  { %3267 = vmatprep.subr.bf16.mxu1 %v4941_v18  ;;  %4014 = vst [vmem:[%s6821_s3 + $0x108] sm:$0xff] %v4530_v39  ;;  %v4498_v47 = vpack.c.bf16 %v3629_v41, %v3628_v40  ;;  %v2660_v49 = vadd.f32 %v2659_v45, %v2607_v36  ;;  %v2616_v48 = vpop.f32.mrf.mxu1  ;;  %v3650_v55 = vmax.f32 %v2658_v42, 0.0  ;;  %v4965_v18 = vld [vmem:[%s6818_s1 + $0x464] ss:$88 sps:$4 sm:$0xff]   ;;  %v4966_v34 = vld [vmem:[%s6818_s1 + $0xa88] ss:$88 sps:$4 sm:$0xff]  }
 0x11a   :  { %v2663_v54 = vpop.f32.mrf.mxu0  ;;  %4444 = vmatmul.mubr.msk.bf16.gmra.mxu0 %vm2453_vm0, %v5798_v3  ;;  %v2617_v6 = vadd.f32 %v2616_v48, %v6078_v50  ;;  %v4968_v33 = vld [vmem:[%s6818_s1 + $0xa8c] ss:$88 sps:$4 sm:$0xff]   ;;  %v4969_v35 = vld [vmem:[%s6818_s1 + $0x3b0] ss:$88 sps:$4 sm:$0xff]   ;;  %v4974_v36 = vld [vmem:[%s6818_s1 + $0x9dc] ss:$88 sps:$4 sm:$0xff]  }
 0x11b   :  { %3129 = vmatmul.mubr.bf16.vlgmr.msra.gmra.mxu1 %v6031_v21  ;;  %3979 = vst [vmem:[%s6821_s3 + $0x8] sm:$0xff] %v4498_v47  ;;  %v3651_v56 = vmax.f32 %v2660_v49, 0.0  ;;  %3207 = vmatpush1.bf16.msra.mxu0 %v4936_v44  ;;  %v2664_v58 = vadd.f32 %v2663_v54, %v2611_v38  ;;  %v4977_v37 = vld [vmem:[%s6818_s1 + $0x304] ss:$88 sps:$4 sm:$0xff]   ;;  %v4972_v38 = vld [vmem:[%s6818_s1 + $0x9d8] ss:$88 sps:$4 sm:$0xff]  }
 0x11c   :  { %3268 = vmatpush1.bf16.msra.mxu1 %v4939_v10  ;;  %3208 = vmatprep.subr.bf16.mxu0 %v4944_v46  ;;  %v2665_v63 = vpop.f32.mrf.mxu0  ;;  %v4975_v53 = vld [vmem:[%s6818_s1 + $0x300] ss:$88 sps:$4 sm:$0xff]   ;;  %v4980_v39 = vld [vmem:[%s6818_s1 + $0x92c] ss:$88 sps:$4 sm:$0xff]   ;;  %v4981_v41 = vld [vmem:[%s6818_s1 + $0x250] ss:$88 sps:$4 sm:$0xff]  }
 0x11d   :  { %3138 = vmatprep.mubr.bf16.mxu1 %v6043_v26  ;;  %v4509_v2 = vpack.c.bf16 %v3651_v56, %v3650_v55  ;;  %v3672_v4 = vmax.f32 %v2664_v58, 0.0  ;;  %v2666_v5 = vadd.f32 %v2665_v63, %v2613_v51  ;;  %3269 = vmatprep.subr.bf16.mxu1 %v4950_v52  ;;  %v4978_v40 = vld [vmem:[%s6818_s1 + $0x928] ss:$88 sps:$4 sm:$0xff]   ;;  %v4986_v42 = vld [vmem:[%s6818_s1 + $0x87c] ss:$88 sps:$4 sm:$0xff]  }
 0x11e   :  { %3234 = vmatprep.mubr.bf16.mxu0 %v5867_v25  ;;  %v2667_v8 = vpop.f32.mrf.mxu0  ;;  %v4984_v44 = vld [vmem:[%s6818_s1 + $0x878] ss:$88 sps:$4 sm:$0xff]   ;;  %v4992_v45 = vld [vmem:[%s6818_s1 + $0x7cc] ss:$88 sps:$4 sm:$0xff]   ;;  %v4990_v47 = vld [vmem:[%s6818_s1 + $0x7c8] ss:$88 sps:$4 sm:$0xff]  }
 0x11f   :  { %3993 = vst [vmem:[%s6821_s3 + $0x60] sm:$0xff] %v4509_v2  ;;  %3209 = vmatpush1.bf16.msra.mxu0 %v4942_v57  ;;  %v3673_v12 = vmax.f32 %v2666_v5, 0.0  ;;  %v2668_v13 = vadd.f32 %v2667_v8, %v2615_v60  ;;  %v4987_v10 = vld [vmem:[%s6818_s1 + $0x1a0] ss:$88 sps:$4 sm:$0xff]   ;;  %v4995_v46 = vld [vmem:[%s6818_s1 + $0xf4] ss:$88 sps:$4 sm:$0xff]  }
 0x120   :  { %3270 = vmatpush1.bf16.msra.mxu1 %v4948_v61  ;;  %3210 = vmatprep.subr.bf16.mxu0 %v4947_v62  ;;  %v2669_v16 = vpop.f32.mrf.mxu0  ;;  %v4993_v49 = vld [vmem:[%s6818_s1 + $0xf0] ss:$88 sps:$4 sm:$0xff]   ;;  %v4998_v52 = vld [vmem:[%s6818_s1 + $0x71c] ss:$88 sps:$4 sm:$0xff]   ;;  %v4999_v55 = vld [vmem:[%s6818_s1 + $0x40] ss:$88 sps:$4 sm:$0xff]  }
 0x121   :  { %3308 = vmatprep.subr.bf16.mxu1 %v4959_v0  ;;  %v4520_v17 = vpack.c.bf16 %v3673_v12, %v3672_v4  ;;  %v3694_v19 = vmax.f32 %v2668_v13, 0.0  ;;  %v2670_v20 = vadd.f32 %v2669_v16, %v2617_v6  ;;  %v5001_v54 = vld [vmem:[%s6818_s1 + $0x44] ss:$88 sps:$4 sm:$0xff]   ;;  %v4996_v48 = vld [vmem:[%s6818_s1 + $0x718] ss:$88 sps:$4 sm:$0xff]  }
 0x122   :  { %v2759_v51 = vpop.f32.mrf.mxu0  ;;  %v5004_v57 = vld [vmem:[%s6818_s1 + $0x66c] ss:$88 sps:$4 sm:$0xff]   ;;  %v5002_v60 = vld [vmem:[%s6818_s1 + $0x668] ss:$88 sps:$4 sm:$0xff]   ;;  %v5010_v63 = vld [vmem:[%s6818_s1 + $0x5bc] ss:$88 sps:$4 sm:$0xff]  }
 0x123   :  { %3139 = vmatmul.mubr.bf16.gmra.mxu1 %v6071_v43  ;;  %3211 = vmatpush1.bf16.msra.mxu0 %v4945_v11  ;;  %4004 = vst [vmem:[%s6821_s3 + $0xb8] sm:$0xff] %v4520_v17  ;;  %v3695_v23 = vmax.f32 %v2670_v20, 0.0  ;;  %v5007_v58 = vld [vmem:[%s6818_s1 + $0xa94] ss:$88 sps:$4 sm:$0xff]   ;;  %v5005_v61 = vld [vmem:[%s6818_s1 + $0xa90] ss:$88 sps:$4 sm:$0xff]  }
 0x124   :  { %3287 = vmatprep.mubr.bf16.mxu1 %v5158_v1  ;;  %3212 = vmatprep.subr.bf16.mxu0 %v4953_v15  ;;  %v2761_v56 = vpop.f32.mrf.mxu0  ;;  %v5013_v0 = vld [vmem:[%s6818_s1 + $0x9e4] ss:$88 sps:$4 sm:$0xff]   ;;  %v5008_v5 = vld [vmem:[%s6818_s1 + $0x5b8] ss:$88 sps:$4 sm:$0xff]   ;;  %v5016_v12 = vld [vmem:[%s6818_s1 + $0x934] ss:$88 sps:$4 sm:$0xff]  }
 0x125   :  { %v4531_v27 = vpack.c.bf16 %v3695_v23, %v3694_v19  ;;  %v5011_v6 = vld [vmem:[%s6818_s1 + $0x9e0] ss:$88 sps:$4 sm:$0xff]   ;;  %v5022_v13 = vld [vmem:[%s6818_s1 + $0xbf4] ss:$88 sps:$4 sm:$0xff]   ;;  %v5014_v23 = vld [vmem:[%s6818_s1 + $0x930] ss:$88 sps:$4 sm:$0xff]  }
 0x126   :  { %v2763_v62 = vpop.f32.mrf.mxu0 }
 0x127   :  { %3213 = vmatpush1.bf16.msra.mxu0 %v4951_v22  ;;  %4015 = vst [vmem:[%s6821_s3 + $0x110] sm:$0xff] %v4531_v27  ;;  %v5019_v27 = vld [vmem:[%s6818_s1 + $0x884] ss:$88 sps:$4 sm:$0xff]  }
 0x128   :  { %3214 = vmatprep.subr.bf16.mxu0 %v4956_v24  ;;  %v2765_v8 = vpop.f32.mrf.mxu0 }
 0x12a   :  { %v2769_v19 = vpop.f32.mrf.mxu0 }
 0x12b   :  { %4445 = vmatmul.mubr.msk.bf16.vlgmr.msra.gmra.mxu1 %vm2453_vm0, %v5772_v59  ;;  %3215 = vmatpush1.bf16.msra.mxu0 %v4954_v9  ;;  %v4971_v59 = vld [vmem:[%s6818_s1 + $0x3b4] ss:$88 sps:$4 sm:$0xff]   ;;  %v5020_v9 = vld [vmem:[%s6818_s1 + $0xbf0] ss:$88 sps:$4 sm:$0xff]  }
 0x12c   :  { %3309 = vmatpush1.bf16.msra.mxu1 %v4957_v28  ;;  %3216 = vmatprep.subr.bf16.mxu0 %v4962_v29 }
 0x12d   :  { %3310 = vmatprep.subr.bf16.mxu1 %v4965_v18  ;;  %3297 = vmatprep.mubr.bf16.mxu1 %v5158_v1 }
 0x12f   :  { %3217 = vmatpush1.bf16.msra.mxu0 %v4960_v30 }
 0x130   :  { %3311 = vmatpush1.bf16.msra.mxu1 %v4963_v32  ;;  %3218 = vmatprep.subr.bf16.mxu0 %v4968_v33  ;;  %v5028_v32 = vld [vmem:[%s6818_s1 + $0xb44] ss:$88 sps:$4 sm:$0xff]   ;;  %v2771_v33 = vpop.f32.mrf.mxu0 }
 0x131   :  { %3312 = vmatprep.subr.bf16.mxu1 %v4971_v59 }
 0x133   :  { %4446 = vmatmul.mubr.msk.bf16.gmra.mxu1 %vm2453_vm0, %v5798_v3  ;;  %3219 = vmatpush2.bf16.msra.mxu0 %v4966_v34  ;;  %v4983_v3 = vld [vmem:[%s6818_s1 + $0x254] ss:$88 sps:$4 sm:$0xff]  }
 0x134   :  { %3313 = vmatpush1.bf16.msra.mxu1 %v4969_v35  ;;  %3220 = vmatprep.subr.bf16.mxu0 %v4974_v36  ;;  %v5017_v36 = vld [vmem:[%s6818_s1 + $0x880] ss:$88 sps:$4 sm:$0xff]  }
 0x135   :  { %3314 = vmatprep.subr.bf16.mxu1 %v4977_v37  ;;  %3340 = vmatprep.mubr.bf16.mxu1 %v5867_v25  ;;  %v4989_v25 = vld [vmem:[%s6818_s1 + $0x1a4] ss:$88 sps:$4 sm:$0xff]  }
 0x137   :  { %3221 = vmatpush2.bf16.msra.mxu0 %v4972_v38  ;;  %v5025_v38 = vld [vmem:[%s6818_s1 + $0x7d4] ss:$88 sps:$4 sm:$0xff]  }
 0x138   :  { %3315 = vmatpush1.bf16.msra.mxu1 %v4975_v53  ;;  %3222 = vmatprep.subr.bf16.mxu0 %v4980_v39  ;;  %v5026_v53 = vld [vmem:[%s6818_s1 + $0xb40] ss:$88 sps:$4 sm:$0xff]  }
 0x139   :  { %3316 = vmatprep.subr.bf16.mxu1 %v4983_v3 }
 0x13b   :  { %3223 = vmatpush2.bf16.msra.mxu0 %v4978_v40 }
 0x13c   :  { %3317 = vmatpush1.bf16.msra.mxu1 %v4981_v41  ;;  %3224 = vmatprep.subr.bf16.mxu0 %v4986_v42 }
 0x13d   :  { %3318 = vmatprep.subr.bf16.mxu1 %v4989_v25  ;;  %v5034_v25 = vld [vmem:[%s6818_s1 + $0x51c] ss:$88 sps:$4 sm:$0xff]  }
 0x13f   :  { %3225 = vmatpush2.bf16.msra.mxu0 %v4984_v44  ;;  %v2773_v44 = vpop.f32.mrf.mxu0 }
 0x140   :  { %3319 = vmatpush1.bf16.msra.mxu1 %v4987_v10  ;;  %3226 = vmatprep.subr.bf16.mxu0 %v4992_v45 }
 0x141   :  { %3320 = vmatprep.subr.bf16.mxu1 %v4995_v46  ;;  %v5023_v46 = vld [vmem:[%s6818_s1 + $0x7d0] ss:$88 sps:$4 sm:$0xff]  }
 0x143   :  { %3227 = vmatpush2.bf16.msra.mxu0 %v4990_v47 }
 0x144   :  { %3321 = vmatpush1.bf16.msra.mxu1 %v4993_v49  ;;  %3228 = vmatprep.subr.bf16.mxu0 %v4998_v52  ;;  %v5031_v52 = vld [vmem:[%s6818_s1 + $0x724] ss:$88 sps:$4 sm:$0xff]  }
 0x145   :  { %3322 = vmatprep.subr.bf16.mxu1 %v5001_v54 }
 0x147   :  { %3229 = vmatpush2.bf16.msra.mxu0 %v4996_v48 }
 0x148   :  { %3323 = vmatpush1.bf16.msra.mxu1 %v4999_v55  ;;  %3230 = vmatprep.subr.bf16.mxu0 %v5004_v57  ;;  %v2775_v57 = vpop.f32.mrf.mxu0 }
 0x149   :  { %3324 = vmatprep.subr.bf16.mxu1 %v5007_v58  ;;  %v5029_v58 = vld [vmem:[%s6818_s1 + $0x720] ss:$88 sps:$4 sm:$0xff]  }
 0x14b   :  { %v2706_v2 = vpop.f32.mrf.mxu1  ;;  %3231 = vmatpush2.bf16.msra.mxu0 %v5002_v60 }
 0x14c   :  { %3325 = vmatpush2.bf16.msra.mxu1 %v5005_v61  ;;  %v2707_v4 = vadd.f32 %v2706_v2, %v6012_v14  ;;  %3232 = vmatprep.subr.bf16.mxu0 %v5010_v63  ;;  %v5037_v63 = vld [vmem:[%s6818_s1 + $0x674] ss:$88 sps:$4 sm:$0xff]   ;;  %v5032_v2 = vld [vmem:[%s6818_s1 + $0x518] ss:$88 sps:$4 sm:$0xff]  }
 0x14d   :  { %v2708_v11 = vpop.f32.mrf.mxu1  ;;  %3326 = vmatprep.subr.bf16.mxu1 %v5013_v0 }
 0x14e   :  { %v2760_v15 = vadd.f32 %v2759_v51, %v2707_v4  ;;  %v2709_v16 = vadd.f32 %v2708_v11, %v6012_v14  ;;  %v5035_v4 = vld [vmem:[%s6818_s1 + $0x670] ss:$88 sps:$4 sm:$0xff]  }
 0x14f   :  { %v2710_v17 = vpop.f32.mrf.mxu1  ;;  %3233 = vmatpush2.bf16.msra.mxu0 %v5008_v5  ;;  %v6393_v11 = vld [vmem:[%s6819_s0 + $0x8] ss:$12 sps:$4 sm:$0xff]  }
 0x150   :  { %v2762_v20 = vadd.f32 %v2761_v56, %v2709_v16  ;;  %3327 = vmatpush2.bf16.msra.mxu1 %v5011_v6  ;;  %v2711_v22 = vadd.f32 %v2710_v17, %v6038_v7  ;;  %3373 = vmatprep.subr.bf16.mxu0 %v5022_v13  ;;  %v3630_v28 = vmax.f32 %v2760_v15, 0.0  ;;  %v5040_v6 = vld [vmem:[%s6818_s1 + $0x46c] ss:$88 sps:$4 sm:$0xff]   ;;  %v5038_v13 = vld [vmem:[%s6818_s1 + $0x468] ss:$88 sps:$4 sm:$0xff]  }
 0x151   :  { %v2712_v24 = vpop.f32.mrf.mxu1  ;;  %3328 = vmatprep.subr.bf16.mxu1 %v5016_v12  ;;  %v5041_v15 = vld [vmem:[%s6818_s1 + $0x5c0] ss:$88 sps:$4 sm:$0xff]   ;;  %v5046_v17 = vld [vmem:[%s6818_s1 + $0x3bc] ss:$88 sps:$4 sm:$0xff]  }
 0x152   :  { %v3631_v29 = vmax.f32 %v2762_v20, 0.0  ;;  %v2764_v18 = vadd.f32 %v2763_v62, %v2711_v22  ;;  %v2713_v30 = vadd.f32 %v2712_v24, %v6038_v7  ;;  %3235 = vmatmul.mubr.bf16.vlgmr.msra.gmra.mxu0 %v6031_v21  ;;  %v5044_v22 = vld [vmem:[%s6818_s1 + $0x3b8] ss:$88 sps:$4 sm:$0xff]  }
 0x153   :  { %v2716_v59 = vpop.f32.mrf.mxu1  ;;  %3244 = vmatprep.mubr.bf16.mxu0 %v6043_v26  ;;  %3374 = vmatpush1.bf16.msra.mxu0 %v5020_v9  ;;  %v5058_v9 = vld [vmem:[%s6818_s1 + $0xb4c] ss:$88 sps:$4 sm:$0xff]  }
 0x154   :  { %v4499_v34 = vpack.c.bf16 %v3631_v29, %v3630_v28  ;;  %v2766_v35 = vadd.f32 %v2765_v8, %v2713_v30  ;;  %3329 = vmatpush2.bf16.msra.mxu1 %v5014_v23  ;;  %v2717_v37 = vadd.f32 %v2716_v59, %v6055_v31  ;;  %v3652_v3 = vmax.f32 %v2764_v18, 0.0  ;;  %3375 = vmatprep.subr.bf16.mxu0 %v5028_v32  ;;  %v5043_v8 = vld [vmem:[%s6818_s1 + $0x5c4] ss:$88 sps:$4 sm:$0xff]   ;;  %v5047_v23 = vld [vmem:[%s6818_s1 + $0xbf8] ss:$88 sps:$4 sm:$0xff]  }
 0x155   :  { %3330 = vmatprep.subr.bf16.mxu1 %v5019_v27  ;;  %v2718_v39 = vpop.f32.mrf.mxu1  ;;  %v5052_v27 = vld [vmem:[%s6818_s1 + $0x30c] ss:$88 sps:$4 sm:$0xff]   ;;  %v5050_v18 = vld [vmem:[%s6818_s1 + $0x308] ss:$88 sps:$4 sm:$0xff]   ;;  %v5055_v32 = vld [vmem:[%s6818_s1 + $0x25c] ss:$88 sps:$4 sm:$0xff]  }
 0x156   :  { %3980 = vst [vmem:[%s6821_s3 + $0x10] sm:$0xff] %v4499_v34  ;;  %v3653_v40 = vmax.f32 %v2766_v35, 0.0  ;;  %v2770_v41 = vadd.f32 %v2769_v19, %v2717_v37  ;;  %v2719_v42 = vadd.f32 %v2718_v39, %v6055_v31  ;;  %v5049_v19 = vld [vmem:[%s6818_s1 + $0xbfc] ss:$88 sps:$4 sm:$0xff]   ;;  %v6426_v29 = vld [vmem:[%s6819_s0 + $0x20] ss:$12 sps:$4 sm:$0xff]  }
 0x157   :  { %v2720_v10 = vpop.f32.mrf.mxu1  ;;  %3376 = vmatpush1.bf16.msra.mxu0 %v5026_v53  ;;  %v5056_v30 = vld [vmem:[%s6818_s1 + $0xb48] ss:$88 sps:$4 sm:$0xff]   ;;  %v6446_v59 = vld [vmem:[%s6819_s0 + $0x4] ss:$12 sps:$4 sm:$0xff]  }
 0x158   :  { %v4510_v45 = vpack.c.bf16 %v3653_v40, %v3652_v3  ;;  %3331 = vmatpush2.bf16.msra.mxu1 %v5017_v36  ;;  %v3674_v47 = vmax.f32 %v2770_v41, 0.0  ;;  %v2772_v49 = vadd.f32 %v2771_v33, %v2719_v42  ;;  %v2721_v51 = vadd.f32 %v2720_v10, %v6078_v50  ;;  %3414 = vmatprep.subr.bf16.mxu0 %v5034_v25  ;;  %v5067_v33 = vld [vmem:[%s6818_s1 + $0x524] ss:$88 sps:$4 sm:$0xff]   ;;  %v5053_v35 = vld [vmem:[%s6818_s1 + $0x258] ss:$88 sps:$4 sm:$0xff]  }
 0x159   :  { %3332 = vmatprep.subr.bf16.mxu1 %v5025_v38  ;;  %v2722_v54 = vpop.f32.mrf.mxu1  ;;  %v5061_v36 = vld [vmem:[%s6818_s1 + $0x1ac] ss:$88 sps:$4 sm:$0xff]   ;;  %v5059_v3 = vld [vmem:[%s6818_s1 + $0x1a8] ss:$88 sps:$4 sm:$0xff]   ;;  %v5064_v41 = vld [vmem:[%s6818_s1 + $0xfc] ss:$88 sps:$4 sm:$0xff]  }
 0x15a   :  { %3994 = vst [vmem:[%s6821_s3 + $0x68] sm:$0xff] %v4510_v45  ;;  %v3675_v48 = vmax.f32 %v2772_v49, 0.0  ;;  %v2774_v55 = vadd.f32 %v2773_v44, %v2721_v51  ;;  %v2723_v56 = vadd.f32 %v2722_v54, %v6078_v50  ;;  %3245 = vmatmul.mubr.bf16.gmra.mxu0 %v6071_v43  ;;  %v5065_v49 = vld [vmem:[%s6818_s1 + $0x520] ss:$88 sps:$4 sm:$0xff]   ;;  %v5073_v54 = vld [vmem:[%s6818_s1 + $0x474] ss:$88 sps:$4 sm:$0xff]  }
 0x15b   :  { %3393 = vmatprep.mubr.bf16.mxu0 %v5158_v1 }
 0x15c   :  { %3333 = vmatpush2.bf16.msra.mxu1 %v5023_v46  ;;  %v4521_v60 = vpack.c.bf16 %v3675_v48, %v3674_v47  ;;  %v3696_v61 = vmax.f32 %v2774_v55, 0.0  ;;  %v2776_v62 = vadd.f32 %v2775_v57, %v2723_v56  ;;  %v5062_v47 = vld [vmem:[%s6818_s1 + $0xf8] ss:$88 sps:$4 sm:$0xff]  }
 0x15d   :  { %3334 = vmatprep.subr.bf16.mxu1 %v5031_v52  ;;  %v5070_v52 = vld [vmem:[%s6818_s1 + $0x4c] ss:$88 sps:$4 sm:$0xff]  }
 0x15e   :  { %4005 = vst [vmem:[%s6821_s3 + $0xc0] sm:$0xff] %v4521_v60  ;;  %v3697_v0 = vmax.f32 %v2776_v62, 0.0 }
 0x160   :  { %3335 = vmatpush2.bf16.msra.mxu1 %v5029_v58  ;;  %v4532_v5 = vpack.c.bf16 %v3697_v0, %v3696_v61  ;;  %v5071_v0 = vld [vmem:[%s6818_s1 + $0x470] ss:$88 sps:$4 sm:$0xff]  }
 0x161   :  { %3336 = vmatprep.subr.bf16.mxu1 %v5037_v63  ;;  %v5068_v63 = vld [vmem:[%s6818_s1 + $0x48] ss:$88 sps:$4 sm:$0xff]  }
 0x162   :  { %4016 = vst [vmem:[%s6821_s3 + $0x118] sm:$0xff] %v4532_v5  ;;  %4447 = vmatmul.mubr.msk.bf16.vlgmr.msra.gmra.mxu0 %vm2453_vm0, %v6393_v11  ;;  %v2812_v12 = vpop.f32.mrf.mxu0  ;;  %v5079_v5 = vld [vmem:[%s6818_s1 + $0x3c4] ss:$88 sps:$4 sm:$0xff]  }
 0x163   :  { %3415 = vmatpush1.bf16.msra.mxu0 %v5032_v2  ;;  %3403 = vmatprep.mubr.bf16.mxu0 %v5158_v1  ;;  %v2813_v37 = vadd.f32 %v2812_v12, %v6012_v14 }
 0x164   :  { %3337 = vmatpush2.bf16.msra.mxu1 %v5035_v4  ;;  %3416 = vmatprep.subr.bf16.mxu0 %v5040_v6  ;;  %v2814_v16 = vpop.f32.mrf.mxu0  ;;  %v5076_v4 = vld [vmem:[%s6818_s1 + $0xa9c] ss:$88 sps:$4 sm:$0xff]  }
 0x165   :  { %3338 = vmatprep.subr.bf16.mxu1 %v5043_v8  ;;  %v2815_v53 = vadd.f32 %v2814_v16, %v6012_v14 }
 0x166   :  { %v2816_v20 = vpop.f32.mrf.mxu0 }
 0x167   :  { %3417 = vmatpush1.bf16.msra.mxu0 %v5038_v13  ;;  %v2817_v42 = vadd.f32 %v2816_v20, %v6038_v7  ;;  %v5074_v20 = vld [vmem:[%s6818_s1 + $0xa98] ss:$88 sps:$4 sm:$0xff]  }
 0x168   :  { %3339 = vmatpush2.bf16.msra.mxu1 %v5041_v15  ;;  %3418 = vmatprep.subr.bf16.mxu0 %v5046_v17  ;;  %v2818_v24 = vpop.f32.mrf.mxu0 }
 0x169   :  { %3479 = vmatprep.subr.bf16.mxu1 %v5049_v19  ;;  %v2819_v44 = vadd.f32 %v2818_v24, %v6038_v7  ;;  %v5082_v24 = vld [vmem:[%s6818_s1 + $0x9ec] ss:$88 sps:$4 sm:$0xff]  }
 0x16a   :  { %v2822_v28 = vpop.f32.mrf.mxu0  ;;  %4448 = vmatmul.mubr.msk.bf16.gmra.mxu0 %vm2453_vm0, %v6426_v29 }
 0x16b   :  { %3341 = vmatmul.mubr.bf16.vlgmr.msra.gmra.mxu1 %v6031_v21  ;;  %3419 = vmatpush1.bf16.msra.mxu0 %v5044_v22  ;;  %v2823_v48 = vadd.f32 %v2822_v28, %v6055_v31  ;;  %v5077_v22 = vld [vmem:[%s6818_s1 + $0x3c0] ss:$88 sps:$4 sm:$0xff]  }
 0x16c   :  { %3480 = vmatpush1.bf16.msra.mxu1 %v5047_v23  ;;  %3420 = vmatprep.subr.bf16.mxu0 %v5052_v27  ;;  %v2824_v21 = vpop.f32.mrf.mxu0  ;;  %v5085_v27 = vld [vmem:[%s6818_s1 + $0x314] ss:$88 sps:$4 sm:$0xff]  }
 0x16d   :  { %3350 = vmatprep.mubr.bf16.mxu1 %v6043_v26  ;;  %3481 = vmatprep.subr.bf16.mxu1 %v5058_v9  ;;  %v2825_v58 = vadd.f32 %v2824_v21, %v6055_v31 }
 0x16e   :  { %3446 = vmatprep.mubr.bf16.mxu0 %v6446_v59  ;;  %v2826_v34 = vpop.f32.mrf.mxu0 }
 0x16f   :  { %3421 = vmatpush1.bf16.msra.mxu0 %v5050_v18  ;;  %v2827_v6 = vadd.f32 %v2826_v34, %v6078_v50  ;;  %v5088_v34 = vld [vmem:[%s6818_s1 + $0x93c] ss:$88 sps:$4 sm:$0xff]  }
 0x170   :  { %3482 = vmatpush1.bf16.msra.mxu1 %v5056_v30  ;;  %3422 = vmatprep.subr.bf16.mxu0 %v5055_v32  ;;  %v2828_v26 = vpop.f32.mrf.mxu0  ;;  %v5080_v32 = vld [vmem:[%s6818_s1 + $0x9e8] ss:$88 sps:$4 sm:$0xff]  }
 0x171   :  { %3520 = vmatprep.subr.bf16.mxu1 %v5067_v33  ;;  %v2829_v15 = vadd.f32 %v2828_v26, %v6078_v50  ;;  %v5083_v33 = vld [vmem:[%s6818_s1 + $0x310] ss:$88 sps:$4 sm:$0xff]  }
 0x172   :  { %v2865_v38 = vpop.f32.mrf.mxu0 }
 0x173   :  { %3351 = vmatmul.mubr.bf16.gmra.mxu1 %v6071_v43  ;;  %3423 = vmatpush1.bf16.msra.mxu0 %v5053_v35  ;;  %v2866_v39 = vadd.f32 %v2865_v38, %v2813_v37  ;;  %v5091_v35 = vld [vmem:[%s6818_s1 + $0x264] ss:$88 sps:$4 sm:$0xff]   ;;  %v5086_v38 = vld [vmem:[%s6818_s1 + $0x938] ss:$88 sps:$4 sm:$0xff]  }
 0x174   :  { %3499 = vmatprep.mubr.bf16.mxu1 %v5158_v1  ;;  %3424 = vmatprep.subr.bf16.mxu0 %v5061_v36  ;;  %v2867_v40 = vpop.f32.mrf.mxu0 }
 0x175   :  { %v2868_v43 = vadd.f32 %v2867_v40, %v2815_v53  ;;  %v3632_v10 = vmax.f32 %v2866_v39, 0.0  ;;  %v5089_v53 = vld [vmem:[%s6818_s1 + $0x260] ss:$88 sps:$4 sm:$0xff]   ;;  %v5097_v39 = vld [vmem:[%s6818_s1 + $0x1b4] ss:$88 sps:$4 sm:$0xff]  }
 0x176   :  { %v2869_v25 = vpop.f32.mrf.mxu0 }
 0x177   :  { %v3633_v45 = vmax.f32 %v2868_v43, 0.0  ;;  %3425 = vmatpush1.bf16.msra.mxu0 %v5059_v3  ;;  %v2870_v46 = vadd.f32 %v2869_v25, %v2817_v42  ;;  %v5092_v42 = vld [vmem:[%s6818_s1 + $0x888] ss:$88 sps:$4 sm:$0xff]  }
 0x178   :  { %3426 = vmatprep.subr.bf16.mxu0 %v5064_v41  ;;  %v2871_v51 = vpop.f32.mrf.mxu0  ;;  %v5095_v43 = vld [vmem:[%s6818_s1 + $0x1b0] ss:$88 sps:$4 sm:$0xff]  }
 0x179   :  { %v4500_v55 = vpack.c.bf16 %v3633_v45, %v3632_v10  ;;  %v2872_v56 = vadd.f32 %v2871_v51, %v2819_v44  ;;  %v3654_v60 = vmax.f32 %v2870_v46, 0.0  ;;  %v5100_v44 = vld [vmem:[%s6818_s1 + $0x7dc] ss:$88 sps:$4 sm:$0xff]  }
 0x17a   :  { %v2875_v57 = vpop.f32.mrf.mxu0  ;;  %v5103_v10 = vld [vmem:[%s6818_s1 + $0x104] ss:$88 sps:$4 sm:$0xff]  }
 0x17b   :  { %4449 = vmatmul.mubr.msk.bf16.vlgmr.msra.gmra.mxu1 %vm2453_vm0, %v6393_v11  ;;  %3981 = vst [vmem:[%s6821_s3 + $0x18] sm:$0xff] %v4500_v55  ;;  %v3655_v61 = vmax.f32 %v2872_v56, 0.0  ;;  %3427 = vmatpush1.bf16.msra.mxu0 %v5062_v47  ;;  %v2876_v62 = vadd.f32 %v2875_v57, %v2823_v48  ;;  %v5101_v48 = vld [vmem:[%s6818_s1 + $0x100] ss:$88 sps:$4 sm:$0xff]   ;;  %v5106_v56 = vld [vmem:[%s6818_s1 + $0x72c] ss:$88 sps:$4 sm:$0xff]  }
 0x17c   :  { %3521 = vmatpush1.bf16.msra.mxu1 %v5065_v49  ;;  %3428 = vmatprep.subr.bf16.mxu0 %v5070_v52  ;;  %v2877_v2 = vpop.f32.mrf.mxu0  ;;  %v5109_v57 = vld [vmem:[%s6818_s1 + $0x54] ss:$88 sps:$4 sm:$0xff]  }
 0x17d   :  { %3522 = vmatprep.subr.bf16.mxu1 %v5073_v54  ;;  %v4511_v8 = vpack.c.bf16 %v3655_v61, %v3654_v60  ;;  %v2878_v12 = vadd.f32 %v2877_v2, %v2825_v58  ;;  %3509 = vmatprep.mubr.bf16.mxu1 %v5158_v1  ;;  %v3676_v16 = vmax.f32 %v2876_v62, 0.0  ;;  %v5098_v54 = vld [vmem:[%s6818_s1 + $0x7d8] ss:$88 sps:$4 sm:$0xff]  }
 0x17e   :  { %v2879_v13 = vpop.f32.mrf.mxu0 }
 0x17f   :  { %3995 = vst [vmem:[%s6821_s3 + $0x70] sm:$0xff] %v4511_v8  ;;  %v3677_v17 = vmax.f32 %v2878_v12, 0.0  ;;  %3429 = vmatpush1.bf16.msra.mxu0 %v5068_v63  ;;  %v2880_v19 = vadd.f32 %v2879_v13, %v2827_v6  ;;  %v5104_v6 = vld [vmem:[%s6818_s1 + $0x728] ss:$88 sps:$4 sm:$0xff]   ;;  %v5112_v13 = vld [vmem:[%s6818_s1 + $0x67c] ss:$88 sps:$4 sm:$0xff]  }
 0x180   :  { %3523 = vmatpush1.bf16.msra.mxu1 %v5071_v0  ;;  %3430 = vmatprep.subr.bf16.mxu0 %v5076_v4  ;;  %v2881_v23 = vpop.f32.mrf.mxu0  ;;  %v5107_v8 = vld [vmem:[%s6818_s1 + $0x50] ss:$88 sps:$4 sm:$0xff]  }
 0x181   :  { %3524 = vmatprep.subr.bf16.mxu1 %v5079_v5  ;;  %v4522_v9 = vpack.c.bf16 %v3677_v17, %v3676_v16  ;;  %v2882_v28 = vadd.f32 %v2881_v23, %v2829_v15  ;;  %v3698_v30 = vmax.f32 %v2880_v19, 0.0  ;;  %v5115_v15 = vld [vmem:[%s6818_s1 + $0xaa4] ss:$88 sps:$4 sm:$0xff]  }
 0x182   :  { %v2971_v18 = vpop.f32.mrf.mxu0 }
 0x183   :  { %4450 = vmatmul.mubr.msk.bf16.gmra.mxu1 %vm2453_vm0, %v6426_v29  ;;  %4006 = vst [vmem:[%s6821_s3 + $0xc8] sm:$0xff] %v4522_v9  ;;  %v3699_v21 = vmax.f32 %v2882_v28, 0.0  ;;  %3431 = vmatpush2.bf16.msra.mxu0 %v5074_v20  ;;  %v5110_v28 = vld [vmem:[%s6818_s1 + $0x678] ss:$88 sps:$4 sm:$0xff]  }
 0x184   :  { %3525 = vmatpush1.bf16.msra.mxu1 %v5077_v22  ;;  %3432 = vmatprep.subr.bf16.mxu0 %v5082_v24  ;;  %v2973_v26 = vpop.f32.mrf.mxu0 }
 0x185   :  { %3526 = vmatprep.subr.bf16.mxu1 %v5085_v27  ;;  %v4533_v36 = vpack.c.bf16 %v3699_v21, %v3698_v30  ;;  %3552 = vmatprep.mubr.bf16.mxu1 %v6446_v59  ;;  %v5094_v59 = vld [vmem:[%s6818_s1 + $0x88c] ss:$88 sps:$4 sm:$0xff]  }
 0x186   :  { %v2975_v37 = vpop.f32.mrf.mxu0 }
 0x187   :  { %4017 = vst [vmem:[%s6821_s3 + $0x120] sm:$0xff] %v4533_v36  ;;  %3433 = vmatpush2.bf16.msra.mxu0 %v5080_v32  ;;  %v5118_v32 = vld [vmem:[%s6818_s1 + $0x5cc] ss:$88 sps:$4 sm:$0xff]  }
 0x188   :  { %3527 = vmatpush1.bf16.msra.mxu1 %v5083_v33  ;;  %3434 = vmatprep.subr.bf16.mxu0 %v5088_v34  ;;  %v2977_v40 = vpop.f32.mrf.mxu0  ;;  %v5121_v33 = vld [vmem:[%s6818_s1 + $0x9f4] ss:$88 sps:$4 sm:$0xff]  }
 0x189   :  { %3528 = vmatprep.subr.bf16.mxu1 %v5091_v35 }
 0x18a   :  { %v2981_v45 = vpop.f32.mrf.mxu0 }
 0x18b   :  { %v2918_v3 = vpop.f32.mrf.mxu1  ;;  %3435 = vmatpush2.bf16.msra.mxu0 %v5086_v38 }
 0x18c   :  { %3529 = vmatpush1.bf16.msra.mxu1 %v5089_v53  ;;  %v2919_v41 = vadd.f32 %v2918_v3, %v6012_v14  ;;  %3436 = vmatprep.subr.bf16.mxu0 %v5094_v59  ;;  %v2983_v58 = vpop.f32.mrf.mxu0  ;;  %v5116_v53 = vld [vmem:[%s6818_s1 + $0x5c8] ss:$88 sps:$4 sm:$0xff]   ;;  %v5133_v3 = vld [vmem:[%s6818_s1 + $0xc04] ss:$88 sps:$4 sm:$0xff]  }
 0x18d   :  { %3530 = vmatprep.subr.bf16.mxu1 %v5097_v39  ;;  %v2920_v25 = vpop.f32.mrf.mxu1  ;;  %v5119_v59 = vld [vmem:[%s6818_s1 + $0x9f0] ss:$88 sps:$4 sm:$0xff]   ;;  %v5124_v39 = vld [vmem:[%s6818_s1 + $0x944] ss:$88 sps:$4 sm:$0xff]  }
 0x18e   :  { %v2972_v46 = vadd.f32 %v2971_v18, %v2919_v41  ;;  %v2921_v47 = vadd.f32 %v2920_v25, %v6012_v14  ;;  %v2985_v16 = vpop.f32.mrf.mxu0  ;;  %v5113_v18 = vld [vmem:[%s6818_s1 + $0xaa0] ss:$88 sps:$4 sm:$0xff]   ;;  %v5127_v25 = vld [vmem:[%s6818_s1 + $0x894] ss:$88 sps:$4 sm:$0xff]  }
 0x18f   :  { %v2922_v49 = vpop.f32.mrf.mxu1  ;;  %3437 = vmatpush2.bf16.msra.mxu0 %v5092_v42 }
 0x190   :  { %v2974_v51 = vadd.f32 %v2973_v26, %v2921_v47  ;;  %3531 = vmatpush1.bf16.msra.mxu1 %v5095_v43  ;;  %v2923_v52 = vadd.f32 %v2922_v49, %v6038_v7  ;;  %3438 = vmatprep.subr.bf16.mxu0 %v5100_v44  ;;  %v3634_v60 = vmax.f32 %v2972_v46, 0.0  ;;  %v2987_v21 = vpop.f32.mrf.mxu0  ;;  %v5122_v43 = vld [vmem:[%s6818_s1 + $0x940] ss:$88 sps:$4 sm:$0xff]   ;;  %v5125_v46 = vld [vmem:[%s6818_s1 + $0x890] ss:$88 sps:$4 sm:$0xff]  }
 0x191   :  { %3532 = vmatprep.subr.bf16.mxu1 %v5103_v10  ;;  %v2924_v55 = vpop.f32.mrf.mxu1  ;;  %v5131_v44 = vld [vmem:[%s6818_s1 + $0xc00] ss:$88 sps:$4 sm:$0xff]   ;;  %v5142_v10 = vld [vmem:[%s6818_s1 + $0xb54] ss:$88 sps:$4 sm:$0xff]   ;;  %v5156_v47 = vld [vmem:[%s6819_s0 + $0x1c] ss:$12 sps:$4 sm:$0xff]  }
 0x192   :  { %v3635_v61 = vmax.f32 %v2974_v51, 0.0  ;;  %v2976_v62 = vadd.f32 %v2975_v37, %v2923_v52  ;;  %v2925_v63 = vadd.f32 %v2924_v55, %v6038_v7  ;;  %v5130_v49 = vld [vmem:[%s6818_s1 + $0x7e4] ss:$88 sps:$4 sm:$0xff]   ;;  %v5140_v51 = vld [vmem:[%s6818_s1 + $0xb50] ss:$88 sps:$4 sm:$0xff]  }
 0x193   :  { %v2928_v0 = vpop.f32.mrf.mxu1  ;;  %3439 = vmatpush2.bf16.msra.mxu0 %v5098_v54  ;;  %v5128_v52 = vld [vmem:[%s6818_s1 + $0x7e0] ss:$88 sps:$4 sm:$0xff]   ;;  %v5136_v54 = vld [vmem:[%s6818_s1 + $0x734] ss:$88 sps:$4 sm:$0xff]   ;;  %v5134_v55 = vld [vmem:[%s6818_s1 + $0x730] ss:$88 sps:$4 sm:$0xff]  }
 0x194   :  { %v4501_v2 = vpack.c.bf16 %v3635_v61, %v3634_v60  ;;  %v2978_v4 = vadd.f32 %v2977_v40, %v2925_v63  ;;  %3533 = vmatpush1.bf16.msra.mxu1 %v5101_v48  ;;  %v2929_v5 = vadd.f32 %v2928_v0, %v6055_v31  ;;  %3440 = vmatprep.subr.bf16.mxu0 %v5106_v56  ;;  %v3656_v17 = vmax.f32 %v2976_v62, 0.0  ;;  %v5157_v48 = vld [vmem:[%s6819_s0 + $0x18] ss:$12 sps:$4 sm:$0xff]   ;;  %v5143_v60 = vld [vmem:[%s6818_s1 + $0x5d0] ss:$88 sps:$4 sm:$0xff]  }
 0x195   :  { %3534 = vmatprep.subr.bf16.mxu1 %v5109_v57  ;;  %v2930_v12 = vpop.f32.mrf.mxu1  ;;  %v5139_v56 = vld [vmem:[%s6818_s1 + $0x684] ss:$88 sps:$4 sm:$0xff]   ;;  %v5137_v57 = vld [vmem:[%s6818_s1 + $0x680] ss:$88 sps:$4 sm:$0xff]  }
 0x196   :  { %3982 = vst [vmem:[%s6821_s3 + $0x20] sm:$0xff] %v4501_v2  ;;  %v3657_v19 = vmax.f32 %v2978_v4, 0.0  ;;  %v2931_v20 = vadd.f32 %v2930_v12, %v6055_v31  ;;  %v2982_v22 = vadd.f32 %v2981_v45, %v2929_v5  ;;  %v5155_v45 = vld [vmem:[%s6819_s0] ss:$12 sps:$4 sm:$0xff]  }
 0x197   :  { %v2932_v23 = vpop.f32.mrf.mxu1  ;;  %3441 = vmatpush2.bf16.msra.mxu0 %v5104_v6 }
 0x198   :  { %v4512_v24 = vpack.c.bf16 %v3657_v19, %v3656_v17  ;;  %3535 = vmatpush1.bf16.msra.mxu1 %v5107_v8  ;;  %v2933_v27 = vadd.f32 %v2932_v23, %v6078_v50  ;;  %v2984_v9 = vadd.f32 %v2983_v58, %v2931_v20  ;;  %3442 = vmatprep.subr.bf16.mxu0 %v5112_v13  ;;  %v3678_v34 = vmax.f32 %v2982_v22, 0.0  ;;  %v5145_v58 = vld [vmem:[%s6818_s1 + $0x5d4] ss:$88 sps:$4 sm:$0xff]  }
 0x199   :  { %3536 = vmatprep.subr.bf16.mxu1 %v5115_v15  ;;  %v2934_v30 = vpop.f32.mrf.mxu1 }
 0x19a   :  { %3996 = vst [vmem:[%s6821_s3 + $0x78] sm:$0xff] %v4512_v24  ;;  %v3679_v35 = vmax.f32 %v2984_v9, 0.0  ;;  %v2935_v26 = vadd.f32 %v2934_v30, %v6078_v50  ;;  %v2986_v36 = vadd.f32 %v2985_v16, %v2933_v27 }
 0x19b   :  { %3443 = vmatpush2.bf16.msra.mxu0 %v5110_v28  ;;  %v3077_v61 = vpop.f32.mrf.mxu1 }
 0x19c   :  { %v4523_v37 = vpack.c.bf16 %v3679_v35, %v3678_v34  ;;  %3537 = vmatpush2.bf16.msra.mxu1 %v5113_v18  ;;  %v2988_v38 = vadd.f32 %v2987_v21, %v2935_v26  ;;  %3444 = vmatprep.subr.bf16.mxu0 %v5118_v32  ;;  %v3700_v40 = vmax.f32 %v2986_v36, 0.0 }
 0x19d   :  { %3538 = vmatprep.subr.bf16.mxu1 %v5121_v33  ;;  %v3079_v62 = vpop.f32.mrf.mxu1 }
 0x19e   :  { %4007 = vst [vmem:[%s6821_s3 + $0xd0] sm:$0xff] %v4523_v37  ;;  %v3701_v41 = vmax.f32 %v2988_v38, 0.0 }
 0x19f   :  { %3445 = vmatpush2.bf16.msra.mxu0 %v5116_v53  ;;  %v3081_v63 = vpop.f32.mrf.mxu1 }
 0x1a0   :  { %v4534_v42 = vpack.c.bf16 %v3701_v41, %v3700_v40  ;;  %3539 = vmatpush2.bf16.msra.mxu1 %v5119_v59  ;;  %3585 = vmatprep.subr.bf16.mxu0 %v5133_v3 }
 0x1a1   :  { %3540 = vmatprep.subr.bf16.mxu1 %v5124_v39  ;;  %v3083_v0 = vpop.f32.mrf.mxu1 }
 0x1a2   :  { %4018 = vst [vmem:[%s6821_s3 + $0x128] sm:$0xff] %v4534_v42  ;;  %3447 = vmatmul.mubr.bf16.vlgmr.msra.gmra.mxu0 %v5155_v45 }
 0x1a3   :  { %3456 = vmatprep.mubr.bf16.mxu0 %v5156_v47  ;;  %3586 = vmatpush1.bf16.msra.mxu0 %v5131_v44  ;;  %v3087_v5 = vpop.f32.mrf.mxu1 }
 0x1a4   :  { %3541 = vmatpush2.bf16.msra.mxu1 %v5122_v43  ;;  %3587 = vmatprep.subr.bf16.mxu0 %v5142_v10 }
 0x1a5   :  { %3542 = vmatprep.subr.bf16.mxu1 %v5127_v25  ;;  %v3089_v16 = vpop.f32.mrf.mxu1 }
 0x1a7   :  { %3588 = vmatpush1.bf16.msra.mxu0 %v5140_v51  ;;  %v3091_v28 = vpop.f32.mrf.mxu1 }
 0x1a8   :  { %3543 = vmatpush2.bf16.msra.mxu1 %v5125_v46 }
 0x1a9   :  { %3544 = vmatprep.subr.bf16.mxu1 %v5130_v49  ;;  %v3093_v38 = vpop.f32.mrf.mxu1 }
 0x1aa   :  { %3457 = vmatmul.mubr.bf16.gmra.mxu0 %v5157_v48 }
 0x1ab   :  { %3605 = vmatprep.mubr.bf16.mxu0 %v5158_v1 }
 0x1ac   :  { %3545 = vmatpush2.bf16.msra.mxu1 %v5128_v52 }
 0x1ad   :  { %3546 = vmatprep.subr.bf16.mxu1 %v5136_v54 }
 0x1b0   :  { %3547 = vmatpush2.bf16.msra.mxu1 %v5134_v55 }
 0x1b1   :  { %3548 = vmatprep.subr.bf16.mxu1 %v5139_v56 }
 0x1b2   :  { %4451 = vmatmul.mubr.msk.bf16.vlgmr.msra.gmra.mxu0 %vm2453_vm0, %v6393_v11 }
 0x1b3   :  { %3615 = vmatprep.mubr.bf16.mxu0 %v5158_v1 }
 0x1b4   :  { %3549 = vmatpush2.bf16.msra.mxu1 %v5137_v57 }
 0x1b5   :  { %3550 = vmatprep.subr.bf16.mxu1 %v5145_v58 }
 0x1b8   :  { %3551 = vmatpush2.bf16.msra.mxu1 %v5143_v60 }
 0x1ba   :  { %4452 = vmatmul.mubr.msk.bf16.gmra.mxu0 %vm2453_vm0, %v6426_v29 }
 0x1bb   :  { %3553 = vmatmul.mubr.bf16.vlgmr.msra.gmra.mxu1 %v5155_v45 }
 0x1bc   :  { %3562 = vmatprep.mubr.bf16.mxu1 %v5156_v47 }
 0x1c2   :  { %v3024_v11 = vpop.f32.mrf.mxu0 }
 0x1c3   :  { %3563 = vmatmul.mubr.bf16.gmra.mxu1 %v5157_v48  ;;  %v3025_v2 = vadd.f32 %v3024_v11, %v6012_v14 }
 0x1c4   :  { %v3026_v4 = vpop.f32.mrf.mxu0 }
 0x1c5   :  { %v3078_v6 = vadd.f32 %v3077_v61, %v3025_v2  ;;  %v3027_v1 = vadd.f32 %v3026_v4, %v6012_v14 }
 0x1c6   :  { %v3028_v8 = vpop.f32.mrf.mxu0 }
 0x1c7   :  { %v3080_v12 = vadd.f32 %v3079_v62, %v3027_v1  ;;  %v3029_v13 = vadd.f32 %v3028_v8, %v6038_v7  ;;  %v3636_v17 = vmax.f32 %v3078_v6, 0.0 }
 0x1c8   :  { %v3030_v15 = vpop.f32.mrf.mxu0 }
 0x1c9   :  { %v3637_v29 = vmax.f32 %v3080_v12, 0.0  ;;  %v3082_v19 = vadd.f32 %v3081_v63, %v3029_v13  ;;  %v3031_v20 = vadd.f32 %v3030_v15, %v6038_v7 }
 0x1ca   :  { %v3034_v22 = vpop.f32.mrf.mxu0 }
 0x1cb   :  { %v4502_v23 = vpack.c.bf16 %v3637_v29, %v3636_v17  ;;  %v3084_v24 = vadd.f32 %v3083_v0, %v3031_v20  ;;  %v3035_v27 = vadd.f32 %v3034_v22, %v6055_v31  ;;  %v3658_v18 = vmax.f32 %v3082_v19, 0.0 }
 0x1cc   :  { %v3036_v9 = vpop.f32.mrf.mxu0 }
 0x1cd   :  { %3983 = vst [vmem:[%s6821_s3 + $0x28] sm:$0xff] %v4502_v23  ;;  %v3659_v30 = vmax.f32 %v3084_v24, 0.0  ;;  %v3037_v21 = vadd.f32 %v3036_v9, %v6055_v31  ;;  %v3088_v32 = vadd.f32 %v3087_v5, %v3035_v27 }
 0x1ce   :  { %v3038_v33 = vpop.f32.mrf.mxu0 }
 0x1cf   :  { %v4513_v34 = vpack.c.bf16 %v3659_v30, %v3658_v18  ;;  %v3680_v35 = vmax.f32 %v3088_v32, 0.0  ;;  %v3039_v26 = vadd.f32 %v3038_v33, %v6078_v50  ;;  %v3090_v36 = vadd.f32 %v3089_v16, %v3037_v21 }
 0x1d0   :  { %v3040_v37 = vpop.f32.mrf.mxu0 }
 0x1d1   :  { %3997 = vst [vmem:[%s6821_s3 + $0x80] sm:$0xff] %v4513_v34  ;;  %v3681_v53 = vmax.f32 %v3090_v36, 0.0  ;;  %v3041_v59 = vadd.f32 %v3040_v37, %v6078_v50  ;;  %v3092_v39 = vadd.f32 %v3091_v28, %v3039_v26 }
 0x1d2   :  { %v3183_v3 = vpop.f32.mrf.mxu0 }
 0x1d3   :  { %v4524_v40 = vpack.c.bf16 %v3681_v53, %v3680_v35  ;;  %v3702_v41 = vmax.f32 %v3092_v39, 0.0  ;;  %v3094_v42 = vadd.f32 %v3093_v38, %v3041_v59 }
 0x1d4   :  { %v3185_v43 = vpop.f32.mrf.mxu0 }
 0x1d5   :  { %4008 = vst [vmem:[%s6821_s3 + $0xd8] sm:$0xff] %v4524_v40  ;;  %v3703_v25 = vmax.f32 %v3094_v42, 0.0 }
 0x1d6   :  { %v3187_v44 = vpop.f32.mrf.mxu0 }
 0x1d7   :  { %v4535_v10 = vpack.c.bf16 %v3703_v25, %v3702_v41 }
 0x1d8   :  { %v3189_v46 = vpop.f32.mrf.mxu0 }
 0x1d9   :  { %4019 = vst [vmem:[%s6821_s3 + $0x130] sm:$0xff] %v4535_v10 }
 0x1da   :  { %v3193_v51 = vpop.f32.mrf.mxu0 }
 0x1db   :  { %v3130_v45 = vpop.f32.mrf.mxu1 }
 0x1dc   :  { %v3131_v47 = vadd.f32 %v3130_v45, %v6012_v14  ;;  %v3195_v58 = vpop.f32.mrf.mxu0 }
 0x1dd   :  { %v3132_v49 = vpop.f32.mrf.mxu1 }
 0x1de   :  { %v3184_v52 = vadd.f32 %v3183_v3, %v3131_v47  ;;  %v3133_v54 = vadd.f32 %v3132_v49, %v6012_v14  ;;  %v3197_v6 = vpop.f32.mrf.mxu0 }
 0x1df   :  { %v3134_v48 = vpop.f32.mrf.mxu1 }
 0x1e0   :  { %v3186_v55 = vadd.f32 %v3185_v43, %v3133_v54  ;;  %v3135_v56 = vadd.f32 %v3134_v48, %v6038_v7  ;;  %v3638_v60 = vmax.f32 %v3184_v52, 0.0  ;;  %v3199_v20 = vpop.f32.mrf.mxu0 }
 0x1e1   :  { %v3136_v57 = vpop.f32.mrf.mxu1 }
 0x1e2   :  { %v3639_v61 = vmax.f32 %v3186_v55, 0.0  ;;  %v3188_v62 = vadd.f32 %v3187_v44, %v3135_v56  ;;  %v3137_v63 = vadd.f32 %v3136_v57, %v6038_v7 }
 0x1e3   :  { %v3140_v0 = vpop.f32.mrf.mxu1 }
 0x1e4   :  { %v4503_v11 = vpack.c.bf16 %v3639_v61, %v3638_v60  ;;  %v3190_v2 = vadd.f32 %v3189_v46, %v3137_v63  ;;  %v3141_v4 = vadd.f32 %v3140_v0, %v6055_v31  ;;  %v3660_v1 = vmax.f32 %v3188_v62, 0.0 }
 0x1e5   :  { %v3142_v5 = vpop.f32.mrf.mxu1 }
 0x1e6   :  { %3984 = vst [vmem:[%s6821_s3 + $0x30] sm:$0xff] %v4503_v11  ;;  %v3661_v8 = vmax.f32 %v3190_v2, 0.0  ;;  %v3143_v12 = vadd.f32 %v3142_v5, %v6055_v31  ;;  %v3194_v13 = vadd.f32 %v3193_v51, %v3141_v4 }
 0x1e7   :  { %v3144_v15 = vpop.f32.mrf.mxu1 }
 0x1e8   :  { %v4514_v16 = vpack.c.bf16 %v3661_v8, %v3660_v1  ;;  %v3145_v17 = vadd.f32 %v3144_v15, %v6078_v50  ;;  %v3196_v29 = vadd.f32 %v3195_v58, %v3143_v12  ;;  %v3682_v22 = vmax.f32 %v3194_v13, 0.0 }
 0x1e9   :  { %v3146_v19 = vpop.f32.mrf.mxu1 }
 0x1ea   :  { %3998 = vst [vmem:[%s6821_s3 + $0x88] sm:$0xff] %v4514_v16  ;;  %v3683_v23 = vmax.f32 %v3196_v29, 0.0  ;;  %v3147_v24 = vadd.f32 %v3146_v19, %v6078_v50  ;;  %v3198_v27 = vadd.f32 %v3197_v6, %v3145_v17 }
 0x1eb   :  { %v3289_v32 = vpop.f32.mrf.mxu1 }
 0x1ec   :  { %v4525_v9 = vpack.c.bf16 %v3683_v23, %v3682_v22  ;;  %v3200_v28 = vadd.f32 %v3199_v20, %v3147_v24  ;;  %v3704_v18 = vmax.f32 %v3198_v27, 0.0 }
 0x1ed   :  { %v3291_v33 = vpop.f32.mrf.mxu1 }
 0x1ee   :  { %4009 = vst [vmem:[%s6821_s3 + $0xe0] sm:$0xff] %v4525_v9  ;;  %v3705_v30 = vmax.f32 %v3200_v28, 0.0 }
 0x1ef   :  { %v3293_v34 = vpop.f32.mrf.mxu1 }
 0x1f0   :  { %v4536_v21 = vpack.c.bf16 %v3705_v30, %v3704_v18 }
 0x1f1   :  { %v3295_v35 = vpop.f32.mrf.mxu1 }
 0x1f2   :  { %4020 = vst [vmem:[%s6821_s3 + $0x138] sm:$0xff] %v4536_v21 }
 0x1f3   :  { %v3299_v38 = vpop.f32.mrf.mxu1 }
 0x1f5   :  { %v3301_v42 = vpop.f32.mrf.mxu1 }
 0x1f7   :  { %v3303_v52 = vpop.f32.mrf.mxu1 }
 0x1f9   :  { %v3305_v0 = vpop.f32.mrf.mxu1 }
 0x212   :  { %v3236_v26 = vpop.f32.mrf.mxu0 }
 0x213   :  { %v3237_v36 = vadd.f32 %v3236_v26, %v6012_v14 }
 0x214   :  { %v3238_v37 = vpop.f32.mrf.mxu0 }
 0x215   :  { %v3290_v53 = vadd.f32 %v3289_v32, %v3237_v36  ;;  %v3239_v59 = vadd.f32 %v3238_v37, %v6012_v14 }
 0x216   :  { %v3240_v39 = vpop.f32.mrf.mxu0 }
 0x217   :  { %v3292_v3 = vadd.f32 %v3291_v33, %v3239_v59  ;;  %v3241_v40 = vadd.f32 %v3240_v39, %v6038_v7  ;;  %v3640_v43 = vmax.f32 %v3290_v53, 0.0 }
 0x218   :  { %v3242_v41 = vpop.f32.mrf.mxu0 }
 0x219   :  { %v3641_v25 = vmax.f32 %v3292_v3, 0.0  ;;  %v3294_v44 = vadd.f32 %v3293_v34, %v3241_v40  ;;  %v3243_v10 = vadd.f32 %v3242_v41, %v6038_v7 }
 0x21a   :  { %v3246_v45 = vpop.f32.mrf.mxu0 }
 0x21b   :  { %v4504_v46 = vpack.c.bf16 %v3641_v25, %v3640_v43  ;;  %v3296_v47 = vadd.f32 %v3295_v35, %v3243_v10  ;;  %v3247_v49 = vadd.f32 %v3246_v45, %v6055_v31  ;;  %v3662_v54 = vmax.f32 %v3294_v44, 0.0 }
 0x21c   :  { %v3248_v51 = vpop.f32.mrf.mxu0 }
 0x21d   :  { %3985 = vst [vmem:[%s6821_s3 + $0x38] sm:$0xff] %v4504_v46  ;;  %v3663_v48 = vmax.f32 %v3296_v47, 0.0  ;;  %v3249_v55 = vadd.f32 %v3248_v51, %v6055_v31  ;;  %v3300_v56 = vadd.f32 %v3299_v38, %v3247_v49 }
 0x21e   :  { %v3250_v57 = vpop.f32.mrf.mxu0 }
 0x21f   :  { %v4515_v58 = vpack.c.bf16 %v3663_v48, %v3662_v54  ;;  %v3684_v60 = vmax.f32 %v3300_v56, 0.0  ;;  %v3251_v61 = vadd.f32 %v3250_v57, %v6078_v50  ;;  %v3302_v62 = vadd.f32 %v3301_v42, %v3249_v55 }
 0x220   :  { %v3252_v63 = vpop.f32.mrf.mxu0 }
 0x221   :  { %3999 = vst [vmem:[%s6821_s3 + $0x90] sm:$0xff] %v4515_v58  ;;  %v3685_v11 = vmax.f32 %v3302_v62, 0.0  ;;  %v3253_v2 = vadd.f32 %v3252_v63, %v6078_v50  ;;  %v3304_v4 = vadd.f32 %v3303_v52, %v3251_v61 }
 0x222   :  { %v3395_v5 = vpop.f32.mrf.mxu0 }
 0x223   :  { %v4526_v6 = vpack.c.bf16 %v3685_v11, %v3684_v60  ;;  %v3706_v1 = vmax.f32 %v3304_v4, 0.0  ;;  %v3306_v8 = vadd.f32 %v3305_v0, %v3253_v2 }
 0x224   :  { %v3397_v12 = vpop.f32.mrf.mxu0 }
 0x225   :  { %4010 = vst [vmem:[%s6821_s3 + $0xe8] sm:$0xff] %v4526_v6  ;;  %v3707_v13 = vmax.f32 %v3306_v8, 0.0 }
 0x226   :  { %v3399_v15 = vpop.f32.mrf.mxu0 }
 0x227   :  { %v4537_v16 = vpack.c.bf16 %v3707_v13, %v3706_v1 }
 0x228   :  { %v3401_v29 = vpop.f32.mrf.mxu0 }
 0x229   :  { %4021 = vst [vmem:[%s6821_s3 + $0x140] sm:$0xff] %v4537_v16 }
 0x22a   :  { %v3405_v22 = vpop.f32.mrf.mxu0 }
 0x22b   :  { %v3342_v17 = vpop.f32.mrf.mxu1 }
 0x22c   :  { %v3343_v19 = vadd.f32 %v3342_v17, %v6012_v14  ;;  %v3407_v30 = vpop.f32.mrf.mxu0 }
 0x22d   :  { %v3344_v20 = vpop.f32.mrf.mxu1 }
 0x22e   :  { %v3396_v23 = vadd.f32 %v3395_v5, %v3343_v19  ;;  %v3345_v24 = vadd.f32 %v3344_v20, %v6012_v14  ;;  %v3409_v53 = vpop.f32.mrf.mxu0 }
 0x22f   :  { %v3346_v27 = vpop.f32.mrf.mxu1 }
 0x230   :  { %v3398_v9 = vadd.f32 %v3397_v12, %v3345_v24  ;;  %v3347_v28 = vadd.f32 %v3346_v27, %v6038_v7  ;;  %v3642_v21 = vmax.f32 %v3396_v23, 0.0  ;;  %v3411_v10 = vpop.f32.mrf.mxu0 }
 0x231   :  { %v3348_v18 = vpop.f32.mrf.mxu1 }
 0x232   :  { %v3643_v32 = vmax.f32 %v3398_v9, 0.0  ;;  %v3400_v33 = vadd.f32 %v3399_v15, %v3347_v28  ;;  %v3349_v34 = vadd.f32 %v3348_v18, %v6038_v7 }
 0x233   :  { %v3352_v35 = vpop.f32.mrf.mxu1 }
 0x234   :  { %v4505_v26 = vpack.c.bf16 %v3643_v32, %v3642_v21  ;;  %v3402_v36 = vadd.f32 %v3401_v29, %v3349_v34  ;;  %v3353_v37 = vadd.f32 %v3352_v35, %v6055_v31  ;;  %v3664_v59 = vmax.f32 %v3400_v33, 0.0 }
 0x235   :  { %v3354_v38 = vpop.f32.mrf.mxu1 }
 0x236   :  { %3986 = vst [vmem:[%s6821_s3 + $0x40] sm:$0xff] %v4505_v26  ;;  %v3665_v39 = vmax.f32 %v3402_v36, 0.0  ;;  %v3355_v3 = vadd.f32 %v3354_v38, %v6055_v31  ;;  %v3406_v40 = vadd.f32 %v3405_v22, %v3353_v37 }
 0x237   :  { %v3356_v41 = vpop.f32.mrf.mxu1 }
 0x238   :  { %v4516_v42 = vpack.c.bf16 %v3665_v39, %v3664_v59  ;;  %v3357_v43 = vadd.f32 %v3356_v41, %v6078_v50  ;;  %v3408_v25 = vadd.f32 %v3407_v30, %v3355_v3  ;;  %v3686_v45 = vmax.f32 %v3406_v40, 0.0 }
 0x239   :  { %v3358_v44 = vpop.f32.mrf.mxu1 }
 0x23a   :  { %4000 = vst [vmem:[%s6821_s3 + $0x98] sm:$0xff] %v4516_v42  ;;  %v3687_v46 = vmax.f32 %v3408_v25, 0.0  ;;  %v3359_v47 = vadd.f32 %v3358_v44, %v6078_v50  ;;  %v3410_v49 = vadd.f32 %v3409_v53, %v3357_v43 }
 0x23b   :  { %v3501_v56 = vpop.f32.mrf.mxu1 }
 0x23c   :  { %v4527_v51 = vpack.c.bf16 %v3687_v46, %v3686_v45  ;;  %v3412_v52 = vadd.f32 %v3411_v10, %v3359_v47  ;;  %v3708_v54 = vmax.f32 %v3410_v49, 0.0 }
 0x23d   :  { %v3503_v57 = vpop.f32.mrf.mxu1 }
 0x23e   :  { %4011 = vst [vmem:[%s6821_s3 + $0xf0] sm:$0xff] %v4527_v51  ;;  %v3709_v48 = vmax.f32 %v3412_v52, 0.0 }
 0x23f   :  { %v3505_v58 = vpop.f32.mrf.mxu1 }
 0x240   :  { %v4538_v55 = vpack.c.bf16 %v3709_v48, %v3708_v54 }
 0x241   :  { %v3507_v60 = vpop.f32.mrf.mxu1 }
 0x242   :  { %4022 = vst [vmem:[%s6821_s3 + $0x148] sm:$0xff] %v4538_v55 }
 0x243   :  { %v3511_v0 = vpop.f32.mrf.mxu1 }
 0x245   :  { %v3513_v8 = vpop.f32.mrf.mxu1 }
 0x247   :  { %v3515_v23 = vpop.f32.mrf.mxu1 }
 0x249   :  { %v3517_v35 = vpop.f32.mrf.mxu1 }
 0x262   :  { %v3448_v61 = vpop.f32.mrf.mxu0 }
 0x263   :  { %v3449_v62 = vadd.f32 %v3448_v61, %v6012_v14 }
 0x264   :  { %v3450_v63 = vpop.f32.mrf.mxu0 }
 0x265   :  { %v3502_v11 = vadd.f32 %v3501_v56, %v3449_v62  ;;  %v3451_v2 = vadd.f32 %v3450_v63, %v6012_v14 }
 0x266   :  { %v3452_v4 = vpop.f32.mrf.mxu0 }
 0x267   :  { %v3504_v5 = vadd.f32 %v3503_v57, %v3451_v2  ;;  %v3453_v6 = vadd.f32 %v3452_v4, %v6038_v7  ;;  %v3644_v12 = vmax.f32 %v3502_v11, 0.0 }
 0x268   :  { %v3454_v1 = vpop.f32.mrf.mxu0 }
 0x269   :  { %v3645_v13 = vmax.f32 %v3504_v5, 0.0  ;;  %v3506_v15 = vadd.f32 %v3505_v58, %v3453_v6  ;;  %v3455_v16 = vadd.f32 %v3454_v1, %v6038_v7 }
 0x26a   :  { %v3458_v17 = vpop.f32.mrf.mxu0 }
 0x26b   :  { %v4506_v29 = vpack.c.bf16 %v3645_v13, %v3644_v12  ;;  %v3508_v19 = vadd.f32 %v3507_v60, %v3455_v16  ;;  %v3459_v20 = vadd.f32 %v3458_v17, %v6055_v31  ;;  %v3666_v24 = vmax.f32 %v3506_v15, 0.0 }
 0x26c   :  { %v3460_v22 = vpop.f32.mrf.mxu0 }
 0x26d   :  { %3987 = vst [vmem:[%s6821_s3 + $0x48] sm:$0xff] %v4506_v29  ;;  %v3667_v27 = vmax.f32 %v3508_v19, 0.0  ;;  %v3461_v9 = vadd.f32 %v3460_v22, %v6055_v31  ;;  %v3512_v28 = vadd.f32 %v3511_v0, %v3459_v20 }
 0x26e   :  { %v3462_v18 = vpop.f32.mrf.mxu0 }
 0x26f   :  { %v4517_v30 = vpack.c.bf16 %v3667_v27, %v3666_v24  ;;  %v3688_v21 = vmax.f32 %v3512_v28, 0.0  ;;  %v3463_v32 = vadd.f32 %v3462_v18, %v6078_v50  ;;  %v3514_v33 = vadd.f32 %v3513_v8, %v3461_v9 }
 0x270   :  { %v3464_v34 = vpop.f32.mrf.mxu0 }
 0x271   :  { %4001 = vst [vmem:[%s6821_s3 + $0xa0] sm:$0xff] %v4517_v30  ;;  %v3689_v26 = vmax.f32 %v3514_v33, 0.0  ;;  %v3465_v36 = vadd.f32 %v3464_v34, %v6078_v50  ;;  %v3516_v37 = vadd.f32 %v3515_v23, %v3463_v32 }
 0x272   :  { %v3607_v38 = vpop.f32.mrf.mxu0 }
 0x273   :  { %v4528_v53 = vpack.c.bf16 %v3689_v26, %v3688_v21  ;;  %v3710_v59 = vmax.f32 %v3516_v37, 0.0  ;;  %v3518_v39 = vadd.f32 %v3517_v35, %v3465_v36 }
 0x274   :  { %v3609_v3 = vpop.f32.mrf.mxu0 }
 0x275   :  { %4012 = vst [vmem:[%s6821_s3 + $0xf8] sm:$0xff] %v4528_v53  ;;  %v3711_v40 = vmax.f32 %v3518_v39, 0.0 }
 0x276   :  { %v3611_v41 = vpop.f32.mrf.mxu0 }
 0x277   :  { %v4539_v42 = vpack.c.bf16 %v3711_v40, %v3710_v59 }
 0x278   :  { %v3613_v25 = vpop.f32.mrf.mxu0 }
 0x279   :  { %4023 = vst [vmem:[%s6821_s3 + $0x150] sm:$0xff] %v4539_v42 }
 0x27a   :  { %v3617_v49 = vpop.f32.mrf.mxu0 }
 0x27b   :  { %v3554_v43 = vpop.f32.mrf.mxu1 }
 0x27c   :  { %v3555_v44 = vadd.f32 %v3554_v43, %v6012_v14  ;;  %v3619_v60 = vpop.f32.mrf.mxu0 }
 0x27d   :  { %v3556_v10 = vpop.f32.mrf.mxu1 }
 0x27e   :  { %v3608_v45 = vadd.f32 %v3607_v38, %v3555_v44  ;;  %v3557_v46 = vadd.f32 %v3556_v10, %v6012_v14  ;;  %v3621_v5 = vpop.f32.mrf.mxu0 }
 0x27f   :  { %v3558_v47 = vpop.f32.mrf.mxu1 }
 0x280   :  { %v3610_v51 = vadd.f32 %v3609_v3, %v3557_v46  ;;  %v3559_v52 = vadd.f32 %v3558_v47, %v6038_v7  ;;  %v3646_v48 = vmax.f32 %v3608_v45, 0.0  ;;  %v3623_v19 = vpop.f32.mrf.mxu0 }
 0x281   :  { %v3560_v54 = vpop.f32.mrf.mxu1 }
 0x282   :  { %v3647_v55 = vmax.f32 %v3610_v51, 0.0  ;;  %v3612_v56 = vadd.f32 %v3611_v41, %v3559_v52  ;;  %v3561_v57 = vadd.f32 %v3560_v54, %v6038_v7 }
 0x283   :  { %v3564_v61 = vpop.f32.mrf.mxu1 }
 0x284   :  { %v4507_v14 = vpack.c.bf16 %v3647_v55, %v3646_v48  ;;  %v3614_v62 = vadd.f32 %v3613_v25, %v3561_v57  ;;  %v3565_v63 = vadd.f32 %v3564_v61, %v6055_v31  ;;  %v3668_v11 = vmax.f32 %v3612_v56, 0.0 }
 0x285   :  { %v3566_v0 = vpop.f32.mrf.mxu1 }
 0x286   :  { %3991 = vst.msk [vmem:[%s6821_s3 + $0x50] sm:$0xff] %vm6790_vm3, %v4507_v14  ;;  %v3669_v2 = vmax.f32 %v3614_v62, 0.0  ;;  %v3618_v7 = vadd.f32 %v3617_v49, %v3565_v63  ;;  %v3567_v4 = vadd.f32 %v3566_v0, %v6055_v31 }
 0x287   :  { %v3568_v6 = vpop.f32.mrf.mxu1 }
 0x288   :  { %v4518_v1 = vpack.c.bf16 %v3669_v2, %v3668_v11  ;;  %v3620_v8 = vadd.f32 %v3619_v60, %v3567_v4  ;;  %v3569_v12 = vadd.f32 %v3568_v6, %v6078_v50  ;;  %v3690_v15 = vmax.f32 %v3618_v7, 0.0 }
 0x289   :  { %v3570_v13 = vpop.f32.mrf.mxu1 }
 0x28a   :  { %4002 = vst.msk [vmem:[%s6821_s3 + $0xa8] sm:$0xff] %vm6790_vm3, %v4518_v1  ;;  %v3691_v16 = vmax.f32 %v3620_v8, 0.0  ;;  %v3622_v17 = vadd.f32 %v3621_v5, %v3569_v12  ;;  %v3571_v29 = vadd.f32 %v3570_v13, %v6078_v50 }
 0x28c   :  { %v4529_v31 = vpack.c.bf16 %v3691_v16, %v3690_v15  ;;  %v3624_v20 = vadd.f32 %v3623_v19, %v3571_v29  ;;  %v3712_v22 = vmax.f32 %v3622_v17, 0.0 }
 0x28e   :  { %4013 = vst.msk [vmem:[%s6821_s3 + $0x100] sm:$0xff] %vm6790_vm3, %v4529_v31  ;;  %v3713_v23 = vmax.f32 %v3624_v20, 0.0 }
 0x290   :  { %v4540_v24 = vpack.c.bf16 %v3713_v23, %v3712_v22 }
 0x292   :  { %4024 = vst.msk [vmem:[%s6821_s3 + $0x158] sm:$0xff] %vm6790_vm3, %v4540_v24 }

// kernel: subnet_apply.81
= control target key start
LH: loop header
LB: loop body
LE: loop exit
PB: predicated region body
PF: predicated region fallthrough
CT: control target
= control target key end

     0   :  { %v1064_v1 = vmov 0   ;;  %vm512_vm0 = vcmask 261120   ;;  %s1426_s1 = inlined_call_operand.vmem [shape: bf16[288,512], index: 1, kind: input, shape index: {}]   ;;  %s1427_s0 = inlined_call_operand.vmem [shape: bf16[32,288], index: 0, kind: input, shape index: {}]   ;;  %s1428_s2 = inlined_call_operand.vmem [shape: f32[32,1], index: 2, kind: input, shape index: {}]   ;;  %s1429_s3 = inlined_call_operand.vmem [shape: bf16[32,512], index: 3, kind: input, shape index: {}]   ;;  %s1430_s4 = inlined_call_operand.vmem [shape: bf16[32,512], index: 4, kind: output, shape index: {}]  }
   0x1   :  { %v948_v0 = vld [vmem:[%s1426_s1 + $0xe4] ss:$16 sps:$4 sm:$0xff]   ;;  %604 = vmatprep.mubr.bf16.mxu1 %v1064_v1  ;;  %946 = vset.pattern.permute.xlu0 %v1064_v1  ;;  %v950_v2 = vld [vmem:[%s1426_s1 + $0xe0] ss:$16 sps:$4 sm:$0xff]   ;;  %v963_v11 = vld [vmem:[%s1426_s1 + $0xe8] ss:$16 sps:$4 sm:$0xff]  }
   0x2   :  { %947 = vset.pattern.permute.xlu1 %v1064_v1  ;;  %519 = vmatprep.subr.bf16.mxu0 %v948_v0  ;;  %v951_v3 = vld [vmem:[%s1426_s1 + $0x224] ss:$16 sps:$4 sm:$0xff]   ;;  %v953_v4 = vld [vmem:[%s1426_s1 + $0x220] ss:$16 sps:$4 sm:$0xff]   ;;  %v965_v12 = vld [vmem:[%s1426_s1 + $0xec] ss:$16 sps:$4 sm:$0xff]  }
   0x3   :  { %520 = vmatpush1.bf16.msra.mxu0 %v950_v2  ;;  %v954_v5 = vld [vmem:[%s1426_s1 + $0xc4] ss:$16 sps:$4 sm:$0xff]   ;;  %v956_v6 = vld [vmem:[%s1426_s1 + $0xc0] ss:$16 sps:$4 sm:$0xff]   ;;  %584 = vmatprep.subr.bf16.mxu1 %v951_v3  ;;  %v972_v16 = vld [vmem:[%s1426_s1 + $0xcc] ss:$16 sps:$4 sm:$0xff]  }
   0x4   :  { %v957_v7 = vld [vmem:[%s1426_s1 + $0x204] ss:$16 sps:$4 sm:$0xff]   ;;  %585 = vmatpush1.bf16.msra.mxu1 %v953_v4  ;;  %521 = vmatprep.subr.bf16.mxu0 %v954_v5  ;;  %v959_v8 = vld [vmem:[%s1426_s1 + $0x200] ss:$16 sps:$4 sm:$0xff]   ;;  %v970_v18 = vld [vmem:[%s1426_s1 + $0xc8] ss:$16 sps:$4 sm:$0xff]  }
   0x5   :  { %586 = vmatprep.subr.bf16.mxu1 %v957_v7  ;;  %v960_v9 = vld [vmem:[%s1426_s1 + $0xa4] ss:$16 sps:$4 sm:$0xff]   ;;  %v962_v10 = vld [vmem:[%s1426_s1 + $0xa0] ss:$16 sps:$4 sm:$0xff]   ;;  %v978_v19 = vld [vmem:[%s1426_s1 + $0xac] ss:$16 sps:$4 sm:$0xff]  }
   0x6   :  { %v1132_v13 = vld [vmem:[%s1427_s0 + $0x8] ss:$12 sps:$4 sm:$0xff]   ;;  %v969_v15 = vld [vmem:[%s1426_s1 + $0x80] ss:$16 sps:$4 sm:$0xff]   ;;  %v984_v23 = vld [vmem:[%s1426_s1 + $0x8c] ss:$16 sps:$4 sm:$0xff]  }
   0x7   :  { %522 = vmatpush1.bf16.msra.mxu0 %v956_v6  ;;  %v967_v14 = vld [vmem:[%s1426_s1 + $0x84] ss:$16 sps:$4 sm:$0xff]   ;;  %v975_v20 = vld [vmem:[%s1426_s1 + $0x60] ss:$16 sps:$4 sm:$0xff]   ;;  %v976_v22 = vld [vmem:[%s1426_s1 + $0xa8] ss:$16 sps:$4 sm:$0xff]  }
   0x8   :  { %523 = vmatprep.subr.bf16.mxu0 %v960_v9  ;;  %587 = vmatpush1.bf16.msra.mxu1 %v959_v8  ;;  %v973_v17 = vld [vmem:[%s1426_s1 + $0x64] ss:$16 sps:$4 sm:$0xff]   ;;  %v981_v24 = vld [vmem:[%s1426_s1 + $0x40] ss:$16 sps:$4 sm:$0xff]   ;;  %v982_v26 = vld [vmem:[%s1426_s1 + $0x88] ss:$16 sps:$4 sm:$0xff]  }
   0x9   :  { %625 = vmatprep.subr.bf16.mxu1 %v965_v12  ;;  %v979_v21 = vld [vmem:[%s1426_s1 + $0x44] ss:$16 sps:$4 sm:$0xff]   ;;  %v990_v27 = vld [vmem:[%s1426_s1 + $0x6c] ss:$16 sps:$4 sm:$0xff]   ;;  %v987_v28 = vld [vmem:[%s1426_s1 + $0x20] ss:$16 sps:$4 sm:$0xff]  }
   0xa   :  { %v985_v25 = vld [vmem:[%s1426_s1 + $0x24] ss:$16 sps:$4 sm:$0xff]   ;;  %v988_v30 = vld [vmem:[%s1426_s1 + $0x68] ss:$16 sps:$4 sm:$0xff]   ;;  %v996_v31 = vld [vmem:[%s1426_s1 + $0x4c] ss:$16 sps:$4 sm:$0xff]  }
   0xb   :  { %524 = vmatpush1.bf16.msra.mxu0 %v962_v10  ;;  %925 = vmatmul.mubr.msk.bf16.vlgmr.msra.gmra.mxu1 %vm512_vm0, %v1132_v13  ;;  %v991_v29 = vld [vmem:[%s1426_s1 + $0x4] ss:$16 sps:$4 sm:$0xff]   ;;  %v993_v32 = vld [vmem:[%s1426_s1] ss:$16 sps:$4 sm:$0xff]   ;;  %v994_v34 = vld [vmem:[%s1426_s1 + $0x48] ss:$16 sps:$4 sm:$0xff]  }
   0xc   :  { %525 = vmatprep.subr.bf16.mxu0 %v967_v14  ;;  %626 = vmatpush1.bf16.msra.mxu1 %v963_v11  ;;  %v997_v33 = vld [vmem:[%s1426_s1 + $0x1e4] ss:$16 sps:$4 sm:$0xff]   ;;  %v1002_v35 = vld [vmem:[%s1426_s1 + $0x2c] ss:$16 sps:$4 sm:$0xff]   ;;  %v999_v36 = vld [vmem:[%s1426_s1 + $0x1e0] ss:$16 sps:$4 sm:$0xff]  }
   0xd   :  { %614 = vmatprep.mubr.bf16.mxu1 %v1064_v1  ;;  %627 = vmatprep.subr.bf16.mxu1 %v972_v16  ;;  %v1003_v37 = vld [vmem:[%s1426_s1 + $0x1c4] ss:$16 sps:$4 sm:$0xff]   ;;  %v1000_v38 = vld [vmem:[%s1426_s1 + $0x28] ss:$16 sps:$4 sm:$0xff]   ;;  %v1008_v39 = vld [vmem:[%s1426_s1 + $0xc] ss:$16 sps:$4 sm:$0xff]  }
   0xe   :  { %v1005_v40 = vld [vmem:[%s1426_s1 + $0x1c0] ss:$16 sps:$4 sm:$0xff]   ;;  %v1009_v41 = vld [vmem:[%s1426_s1 + $0x1a4] ss:$16 sps:$4 sm:$0xff]   ;;  %v1006_v42 = vld [vmem:[%s1426_s1 + $0x8] ss:$16 sps:$4 sm:$0xff]  }
   0xf   :  { %526 = vmatpush1.bf16.msra.mxu0 %v969_v15  ;;  %v1014_v43 = vld [vmem:[%s1426_s1 + $0x1ec] ss:$16 sps:$4 sm:$0xff]   ;;  %v1011_v44 = vld [vmem:[%s1426_s1 + $0x1a0] ss:$16 sps:$4 sm:$0xff]   ;;  %v1015_v45 = vld [vmem:[%s1426_s1 + $0x184] ss:$16 sps:$4 sm:$0xff]  }
  0x10   :  { %527 = vmatprep.subr.bf16.mxu0 %v973_v17  ;;  %628 = vmatpush1.bf16.msra.mxu1 %v970_v18  ;;  %v1012_v46 = vld [vmem:[%s1426_s1 + $0x1e8] ss:$16 sps:$4 sm:$0xff]   ;;  %v1020_v47 = vld [vmem:[%s1426_s1 + $0x1cc] ss:$16 sps:$4 sm:$0xff]   ;;  %v1017_v48 = vld [vmem:[%s1426_s1 + $0x180] ss:$16 sps:$4 sm:$0xff]  }
  0x11   :  { %629 = vmatprep.subr.bf16.mxu1 %v978_v19  ;;  %v1018_v49 = vld [vmem:[%s1426_s1 + $0x1c8] ss:$16 sps:$4 sm:$0xff]   ;;  %v1021_v50 = vld [vmem:[%s1426_s1 + $0x164] ss:$16 sps:$4 sm:$0xff]   ;;  %v1023_v52 = vld [vmem:[%s1426_s1 + $0x160] ss:$16 sps:$4 sm:$0xff]  }
  0x12   :  { %v1047_v51 = vld [vmem:[%s1427_s0 + $0x4] ss:$12 sps:$4 sm:$0xff]   ;;  %v1026_v53 = vld [vmem:[%s1426_s1 + $0x1ac] ss:$16 sps:$4 sm:$0xff]   ;;  %v1024_v56 = vld [vmem:[%s1426_s1 + $0x1a8] ss:$16 sps:$4 sm:$0xff]  }
  0x13   :  { %528 = vmatpush1.bf16.msra.mxu0 %v975_v20  ;;  %551 = vmatprep.mubr.bf16.mxu0 %v1047_v51  ;;  %v1260_v54 = vld [vmem:[%s1427_s0 + $0x20] ss:$12 sps:$4 sm:$0xff]   ;;  %v1027_v55 = vld [vmem:[%s1426_s1 + $0x144] ss:$16 sps:$4 sm:$0xff]   ;;  %v1030_v61 = vld [vmem:[%s1426_s1 + $0x188] ss:$16 sps:$4 sm:$0xff]  }
  0x14   :  { %529 = vmatprep.subr.bf16.mxu0 %v979_v21  ;;  %630 = vmatpush1.bf16.msra.mxu1 %v976_v22  ;;  %v1032_v57 = vld [vmem:[%s1426_s1 + $0x18c] ss:$16 sps:$4 sm:$0xff]   ;;  %v1029_v58 = vld [vmem:[%s1426_s1 + $0x140] ss:$16 sps:$4 sm:$0xff]   ;;  %v1033_v59 = vld [vmem:[%s1426_s1 + $0x124] ss:$16 sps:$4 sm:$0xff]  }
  0x15   :  { %631 = vmatprep.subr.bf16.mxu1 %v984_v23  ;;  %926 = vmatmul.mubr.msk.bf16.gmra.mxu1 %vm512_vm0, %v1260_v54  ;;  %v98_v60 = vld [vmem:[%s1428_s2] sm:$0xff]  ;;  %v100_v62 = vld [vmem:[%s1428_s2 + $0x10] sm:$0xff]  ;;  %v1038_v63 = vld [vmem:[%s1426_s1 + $0x16c] ss:$16 sps:$4 sm:$0xff]  }
  0x16   :  { %657 = vmatprep.mubr.bf16.mxu1 %v1047_v51  ;;  %104 = vperm.xlu0 %946, %v98_v60   ;;  %v99_v0 = vld [vmem:[%s1428_s2 + $0x8] sm:$0xff]  ;;  %v1035_v2 = vld [vmem:[%s1426_s1 + $0x120] ss:$16 sps:$4 sm:$0xff]   ;;  %v101_v3 = vld [vmem:[%s1428_s2 + $0x18] sm:$0xff] }
  0x17   :  { %530 = vmatpush1.bf16.msra.mxu0 %v981_v24  ;;  %114 = vperm.xlu1 %947, %v100_v62   ;;  %v1039_v4 = vld [vmem:[%s1426_s1 + $0x104] ss:$16 sps:$4 sm:$0xff]   ;;  %v1036_v5 = vld [vmem:[%s1426_s1 + $0x168] ss:$16 sps:$4 sm:$0xff]   ;;  %v1044_v6 = vld [vmem:[%s1426_s1 + $0x14c] ss:$16 sps:$4 sm:$0xff]  }
  0x18   :  { %531 = vmatprep.subr.bf16.mxu0 %v985_v25  ;;  %632 = vmatpush1.bf16.msra.mxu1 %v982_v26  ;;  %v1041_v7 = vld [vmem:[%s1426_s1 + $0x100] ss:$16 sps:$4 sm:$0xff]   ;;  %v1050_v8 = vld [vmem:[%s1426_s1 + $0x22c] ss:$16 sps:$4 sm:$0xff]   ;;  %v1042_v9 = vld [vmem:[%s1426_s1 + $0x148] ss:$16 sps:$4 sm:$0xff]  }
  0x19   :  { %633 = vmatprep.subr.bf16.mxu1 %v990_v27  ;;  %v1045_v10 = vld [vmem:[%s1427_s0] ss:$12 sps:$4 sm:$0xff]   ;;  %v1048_v12 = vld [vmem:[%s1426_s1 + $0x228] ss:$16 sps:$4 sm:$0xff]  }
  0x1a   :  { %109 = vperm.xlu0 %946, %v99_v0   ;;  %v1054_v11 = vld [vmem:[%s1426_s1 + $0x12c] ss:$16 sps:$4 sm:$0xff]   ;;  %v1052_v16 = vld [vmem:[%s1426_s1 + $0x128] ss:$16 sps:$4 sm:$0xff]  }
  0x1b   :  { %532 = vmatpush1.bf16.msra.mxu0 %v987_v28  ;;  %119 = vperm.xlu1 %947, %v101_v3   ;;  %v1058_v14 = vld [vmem:[%s1427_s0 + $0x1c] ss:$12 sps:$4 sm:$0xff]   ;;  %v1060_v20 = vld [vmem:[%s1427_s0 + $0x18] ss:$12 sps:$4 sm:$0xff]  }
  0x1c   :  { %533 = vmatprep.subr.bf16.mxu0 %v991_v29  ;;  %634 = vmatpush1.bf16.msra.mxu1 %v988_v30  ;;  %v1063_v15 = vld [vmem:[%s1426_s1 + $0x20c] ss:$16 sps:$4 sm:$0xff]   ;;  %v1061_v18 = vld [vmem:[%s1426_s1 + $0x208] ss:$16 sps:$4 sm:$0xff]  }
  0x1d   :  { %635 = vmatprep.subr.bf16.mxu1 %v996_v31  ;;  %v1057_v17 = vld [vmem:[%s1426_s1 + $0x10c] ss:$16 sps:$4 sm:$0xff]   ;;  %v1055_v19 = vld [vmem:[%s1426_s1 + $0x108] ss:$16 sps:$4 sm:$0xff]  }
  0x1f   :  { %534 = vmatpush1.bf16.msra.mxu0 %v993_v32 }
  0x20   :  { %535 = vmatprep.subr.bf16.mxu0 %v997_v33  ;;  %636 = vmatpush1.bf16.msra.mxu1 %v994_v34 }
  0x21   :  { %637 = vmatprep.subr.bf16.mxu1 %v1002_v35 }
  0x23   :  { %536 = vmatpush2.bf16.msra.mxu0 %v999_v36 }
  0x24   :  { %537 = vmatprep.subr.bf16.mxu0 %v1003_v37  ;;  %638 = vmatpush1.bf16.msra.mxu1 %v1000_v38 }
  0x25   :  { %639 = vmatprep.subr.bf16.mxu1 %v1008_v39 }
  0x27   :  { %538 = vmatpush2.bf16.msra.mxu0 %v1005_v40 }
  0x28   :  { %539 = vmatprep.subr.bf16.mxu0 %v1009_v41  ;;  %640 = vmatpush1.bf16.msra.mxu1 %v1006_v42  ;;  %v733_v41 = vld [vmem:[%s1429_s3 + $0x10] sm:$0xff] }
  0x29   :  { %641 = vmatprep.subr.bf16.mxu1 %v1014_v43 }
  0x2b   :  { %540 = vmatpush2.bf16.msra.mxu0 %v1011_v44 }
  0x2c   :  { %541 = vmatprep.subr.bf16.mxu0 %v1015_v45  ;;  %642 = vmatpush2.bf16.msra.mxu1 %v1012_v46 }
  0x2d   :  { %643 = vmatprep.subr.bf16.mxu1 %v1020_v47 }
  0x2f   :  { %542 = vmatpush2.bf16.msra.mxu0 %v1017_v48  ;;  %v743_v48 = vunpack.c.l.bf16 %v733_v41 }
  0x30   :  { %543 = vmatprep.subr.bf16.mxu0 %v1021_v50  ;;  %644 = vmatpush2.bf16.msra.mxu1 %v1018_v49  ;;  %v744_v49 = vunpack.c.h.bf16 %v733_v41 }
  0x31   :  { %645 = vmatprep.subr.bf16.mxu1 %v1026_v53 }
  0x33   :  { %544 = vmatpush2.bf16.msra.mxu0 %v1023_v52 }
  0x34   :  { %545 = vmatprep.subr.bf16.mxu0 %v1027_v55  ;;  %646 = vmatpush2.bf16.msra.mxu1 %v1024_v56 }
  0x35   :  { %647 = vmatprep.subr.bf16.mxu1 %v1032_v57 }
  0x37   :  { %546 = vmatpush2.bf16.msra.mxu0 %v1029_v58 }
  0x38   :  { %547 = vmatprep.subr.bf16.mxu0 %v1033_v59  ;;  %648 = vmatpush2.bf16.msra.mxu1 %v1030_v61  ;;  %v735_v61 = vld [vmem:[%s1429_s3 + $0x20] sm:$0xff] }
  0x39   :  { %649 = vmatprep.subr.bf16.mxu1 %v1038_v63 }
  0x3b   :  { %548 = vmatpush2.bf16.msra.mxu0 %v1035_v2 }
  0x3c   :  { %549 = vmatprep.subr.bf16.mxu0 %v1039_v4  ;;  %650 = vmatpush2.bf16.msra.mxu1 %v1036_v5 }
  0x3d   :  { %651 = vmatprep.subr.bf16.mxu1 %v1044_v6  ;;  %v737_v6 = vld [vmem:[%s1429_s3 + $0x30] sm:$0xff] }
  0x3f   :  { %550 = vmatpush2.bf16.msra.mxu0 %v1041_v7  ;;  %v747_v7 = vunpack.c.l.bf16 %v735_v61 }
  0x40   :  { %690 = vmatprep.subr.bf16.mxu0 %v1050_v8  ;;  %652 = vmatpush2.bf16.msra.mxu1 %v1042_v9 }
  0x41   :  { %653 = vmatprep.subr.bf16.mxu1 %v1054_v11 }
  0x42   :  { %552 = vmatmul.mubr.bf16.vlgmr.msra.gmra.mxu0 %v1045_v10 }
  0x43   :  { %691 = vmatpush1.bf16.msra.mxu0 %v1048_v12  ;;  %561 = vmatprep.mubr.bf16.mxu0 %v1058_v14 }
  0x44   :  { %692 = vmatprep.subr.bf16.mxu0 %v1063_v15  ;;  %654 = vmatpush2.bf16.msra.mxu1 %v1052_v16 }
  0x45   :  { %655 = vmatprep.subr.bf16.mxu1 %v1057_v17 }
  0x47   :  { %693 = vmatpush1.bf16.msra.mxu0 %v1061_v18  ;;  %v751_v18 = vunpack.c.l.bf16 %v737_v6 }
  0x48   :  { %656 = vmatpush2.bf16.msra.mxu1 %v1055_v19 }
  0x4a   :  { %562 = vmatmul.mubr.bf16.gmra.mxu0 %v1060_v20 }
  0x4b   :  { %710 = vmatprep.mubr.bf16.mxu0 %v1064_v1  ;;  %658 = vmatmul.mubr.bf16.vlgmr.msra.gmra.mxu1 %v1045_v10  ;;  %v748_v10 = vunpack.c.h.bf16 %v735_v61 }
  0x4c   :  { %667 = vmatprep.mubr.bf16.mxu1 %v1058_v14  ;;  %v732_v14 = vld [vmem:[%s1429_s3 + $0x8] sm:$0xff] }
  0x52   :  { %927 = vmatmul.mubr.msk.bf16.vlgmr.msra.gmra.mxu0 %vm512_vm0, %v1132_v13  ;;  %v731_v13 = vld [vmem:[%s1429_s3] sm:$0xff] }
  0x53   :  { %720 = vmatprep.mubr.bf16.mxu0 %v1064_v1  ;;  %668 = vmatmul.mubr.bf16.gmra.mxu1 %v1060_v20  ;;  %v739_v35 = vunpack.c.l.bf16 %v731_v13  ;;  %v740_v39 = vunpack.c.h.bf16 %v731_v13 }
  0x5a   :  { %928 = vmatmul.mubr.msk.bf16.gmra.mxu0 %vm512_vm0, %v1260_v54 }
  0x91   :  { %v1354_v26 = vpop.permute.xlu0 %104 }
  0x92   :  { %v1363_v34 = vpop.permute.xlu1 %114 }
  0x95   :  { %v1360_v1 = vpop.permute.xlu0 %109 }
  0x96   :  { %v1371_v55 = vpop.permute.xlu1 %119 }
  0xcb   :  { %v606_v21 = vpop.f32.mrf.mxu1 }
  0xcd   :  { %v608_v22 = vpop.f32.mrf.mxu1 }
  0xcf   :  { %v610_v23 = vpop.f32.mrf.mxu1 }
  0xd1   :  { %v612_v24 = vpop.f32.mrf.mxu1 }
  0xd5   :  { %v616_v25 = vpop.f32.mrf.mxu1 }
  0xd7   :  { %v618_v27 = vpop.f32.mrf.mxu1 }
  0xd9   :  { %v620_v31 = vpop.f32.mrf.mxu1 }
  0xdb   :  { %v622_v43 = vpop.f32.mrf.mxu1 }
 0x102   :  { %v553_v28 = vpop.f32.mrf.mxu0 }
 0x103   :  { %v554_v29 = vadd.f32 %v553_v28, %v1354_v26 }
 0x104   :  { %v555_v30 = vpop.f32.mrf.mxu0 }
 0x105   :  { %v607_v32 = vadd.f32 %v606_v21, %v554_v29  ;;  %v556_v33 = vadd.f32 %v555_v30, %v1354_v26 }
 0x106   :  { %v557_v36 = vpop.f32.mrf.mxu0 }
 0x107   :  { %v755_v37 = vmax.f32 %v607_v32, 0.0  ;;  %v609_v38 = vadd.f32 %v608_v22, %v556_v33  ;;  %v558_v40 = vadd.f32 %v557_v36, %v1360_v1  ;;  %v734_v32 = vld [vmem:[%s1429_s3 + $0x18] sm:$0xff] }
 0x108   :  { %v559_v42 = vpop.f32.mrf.mxu0 }
 0x109   :  { %v756_v44 = vmax.f32 %v609_v38, 0.0  ;;  %v611_v45 = vadd.f32 %v610_v23, %v558_v40  ;;  %v560_v46 = vadd.f32 %v559_v42, %v1360_v1  ;;  %v771_v47 = vadd.f32 %v755_v37, %v739_v35 }
 0x10a   :  { %v563_v50 = vpop.f32.mrf.mxu0  ;;  %v752_v23 = vunpack.c.h.bf16 %v737_v6  ;;  %v742_v37 = vunpack.c.h.bf16 %v732_v14 }
 0x10b   :  { %v772_v51 = vadd.f32 %v756_v44, %v740_v39  ;;  %v759_v52 = vmax.f32 %v611_v45, 0.0  ;;  %v613_v53 = vadd.f32 %v612_v24, %v560_v46  ;;  %v564_v54 = vadd.f32 %v563_v50, %v1363_v34  ;;  %v659_v56 = vpop.f32.mrf.mxu1 }
 0x10c   :  { %v565_v57 = vpop.f32.mrf.mxu0  ;;  %v660_v4 = vadd.f32 %v659_v56, %v1354_v26  ;;  %v746_v50 = vunpack.c.h.bf16 %v734_v32 }
 0x10d   :  { %v937_v58 = vpack.c.bf16 %v772_v51, %v771_v47  ;;  %v760_v59 = vmax.f32 %v613_v53, 0.0  ;;  %v617_v60 = vadd.f32 %v616_v25, %v564_v54  ;;  %v566_v62 = vadd.f32 %v565_v57, %v1363_v34  ;;  %v661_v63 = vpop.f32.mrf.mxu1 }
 0x10e   :  { %v567_v0 = vpop.f32.mrf.mxu0  ;;  %v775_v2 = vadd.f32 %v759_v52, %v743_v48  ;;  %v662_v22 = vadd.f32 %v661_v63, %v1354_v26  ;;  %v741_v25 = vunpack.c.l.bf16 %v732_v14 }
 0x10f   :  { %835 = vst [vmem:[%s1430_s4] sm:$0xff] %v937_v58  ;;  %v776_v3 = vadd.f32 %v760_v59, %v744_v49  ;;  %v568_v5 = vadd.f32 %v567_v0, %v1371_v55  ;;  %v763_v8 = vmax.f32 %v617_v60, 0.0  ;;  %v619_v9 = vadd.f32 %v618_v27, %v566_v62  ;;  %v663_v11 = vpop.f32.mrf.mxu1 }
 0x110   :  { %v569_v12 = vpop.f32.mrf.mxu0  ;;  %v664_v33 = vadd.f32 %v663_v11, %v1360_v1 }
 0x111   :  { %v939_v15 = vpack.c.bf16 %v776_v3, %v775_v2  ;;  %v621_v16 = vadd.f32 %v620_v31, %v568_v5  ;;  %v764_v17 = vmax.f32 %v619_v9, 0.0  ;;  %v570_v19 = vadd.f32 %v569_v12, %v1371_v55  ;;  %v665_v20 = vpop.f32.mrf.mxu1 }
 0x112   :  { %v712_v21 = vpop.f32.mrf.mxu0  ;;  %v779_v27 = vadd.f32 %v763_v8, %v747_v7  ;;  %v666_v41 = vadd.f32 %v665_v20, %v1360_v1  ;;  %v736_v1 = vld [vmem:[%s1429_s3 + $0x28] sm:$0xff] }
 0x113   :  { %837 = vst [vmem:[%s1430_s4 + $0x10] sm:$0xff] %v939_v15  ;;  %v713_v24 = vadd.f32 %v712_v21, %v660_v4  ;;  %v780_v28 = vadd.f32 %v764_v17, %v748_v10  ;;  %v767_v29 = vmax.f32 %v621_v16, 0.0  ;;  %v623_v13 = vadd.f32 %v622_v43, %v570_v19  ;;  %v669_v30 = vpop.f32.mrf.mxu1 }
 0x114   :  { %v714_v31 = vpop.f32.mrf.mxu0  ;;  %v745_v43 = vunpack.c.l.bf16 %v734_v32  ;;  %v670_v47 = vadd.f32 %v669_v30, %v1363_v34  ;;  %v749_v63 = vunpack.c.l.bf16 %v736_v1  ;;  %v750_v2 = vunpack.c.h.bf16 %v736_v1 }
 0x115   :  { %v757_v35 = vmax.f32 %v713_v24, 0.0  ;;  %v715_v36 = vadd.f32 %v714_v31, %v662_v22  ;;  %v941_v38 = vpack.c.bf16 %v780_v28, %v779_v27  ;;  %v768_v26 = vmax.f32 %v623_v13, 0.0  ;;  %v671_v39 = vpop.f32.mrf.mxu1 }
 0x116   :  { %v716_v40 = vpop.f32.mrf.mxu0  ;;  %v783_v45 = vadd.f32 %v767_v29, %v751_v18  ;;  %v672_v59 = vadd.f32 %v671_v39, %v1363_v34  ;;  %v738_v34 = vld [vmem:[%s1429_s3 + $0x38] sm:$0xff] }
 0x117   :  { %v758_v42 = vmax.f32 %v715_v36, 0.0  ;;  %v717_v44 = vadd.f32 %v716_v40, %v664_v33  ;;  %839 = vst [vmem:[%s1430_s4 + $0x20] sm:$0xff] %v941_v38  ;;  %v784_v46 = vadd.f32 %v768_v26, %v752_v23  ;;  %v673_v48 = vpop.f32.mrf.mxu1  ;;  %v773_v51 = vadd.f32 %v757_v35, %v741_v25 }
 0x118   :  { %v718_v49 = vpop.f32.mrf.mxu0  ;;  %v674_v4 = vadd.f32 %v673_v48, %v1371_v55  ;;  %v753_v14 = vunpack.c.l.bf16 %v738_v34  ;;  %v754_v16 = vunpack.c.h.bf16 %v738_v34 }
 0x119   :  { %v774_v52 = vadd.f32 %v758_v42, %v742_v37  ;;  %v761_v53 = vmax.f32 %v717_v44, 0.0  ;;  %v719_v54 = vadd.f32 %v718_v49, %v666_v41  ;;  %v943_v56 = vpack.c.bf16 %v784_v46, %v783_v45  ;;  %v675_v61 = vpop.f32.mrf.mxu1 }
 0x11a   :  { %v722_v57 = vpop.f32.mrf.mxu0  ;;  %v676_v10 = vadd.f32 %v675_v61, %v1371_v55 }
 0x11b   :  { %v938_v58 = vpack.c.bf16 %v774_v52, %v773_v51  ;;  %v762_v60 = vmax.f32 %v719_v54, 0.0  ;;  %841 = vst [vmem:[%s1430_s4 + $0x30] sm:$0xff] %v943_v56  ;;  %v723_v62 = vadd.f32 %v722_v57, %v670_v47  ;;  %v777_v3 = vadd.f32 %v761_v53, %v745_v43 }
 0x11c   :  { %v724_v0 = vpop.f32.mrf.mxu0 }
 0x11d   :  { %836 = vst [vmem:[%s1430_s4 + $0x8] sm:$0xff] %v938_v58  ;;  %v778_v5 = vadd.f32 %v762_v60, %v746_v50  ;;  %v725_v6 = vadd.f32 %v724_v0, %v672_v59  ;;  %v765_v7 = vmax.f32 %v723_v62, 0.0 }
 0x11e   :  { %v726_v8 = vpop.f32.mrf.mxu0 }
 0x11f   :  { %v940_v9 = vpack.c.bf16 %v778_v5, %v777_v3  ;;  %v766_v11 = vmax.f32 %v725_v6, 0.0  ;;  %v727_v12 = vadd.f32 %v726_v8, %v674_v4  ;;  %v781_v17 = vadd.f32 %v765_v7, %v749_v63 }
 0x120   :  { %v728_v15 = vpop.f32.mrf.mxu0 }
 0x121   :  { %838 = vst [vmem:[%s1430_s4 + $0x18] sm:$0xff] %v940_v9  ;;  %v782_v18 = vadd.f32 %v766_v11, %v750_v2  ;;  %v769_v19 = vmax.f32 %v727_v12, 0.0  ;;  %v729_v20 = vadd.f32 %v728_v15, %v676_v10 }
 0x123   :  { %v942_v21 = vpack.c.bf16 %v782_v18, %v781_v17  ;;  %v770_v22 = vmax.f32 %v729_v20, 0.0  ;;  %v785_v55 = vadd.f32 %v769_v19, %v753_v14 }
 0x125   :  { %840 = vst [vmem:[%s1430_s4 + $0x28] sm:$0xff] %v942_v21  ;;  %v786_v23 = vadd.f32 %v770_v22, %v754_v16 }
 0x127   :  { %v944_v24 = vpack.c.bf16 %v786_v23, %v785_v55 }
 0x129   :  { %842 = vst [vmem:[%s1430_s4 + $0x38] sm:$0xff] %v944_v24 }

</bundles_post_ra>
